<compile_context>
chip_gen: v7x
topology: tpu7x:2x2x1
jax: 0.10.0
libtpu: 0.0.40
codegen_flags: <defaults>
</compile_context>

<pallas_src>
import functools
import math

import jax
import jax.numpy as jnp
import numpy as np
from jax import lax
from jax.experimental import pallas as pl
from jax.experimental.pallas import tpu as pltpu

_LN_EPS = 1e-5
_MASK_NEG = -1e9

_WEIGHT_ORDER = (
    "wq1", "bq1", "wkv1", "bkv1", "wo1", "bo1", "ln1w", "ln1b",
    "wq2", "bq2", "wkv2", "bkv2", "wo2", "bo2", "ln2w", "ln2b",
    "wff1", "bff1", "wff2", "bff2", "ln3w", "ln3b",
)


def _positional_encoding_table(seq_len, d_model):
    """Additive table matching positional_encoding() in the PyTorch reference."""
    idx = jnp.arange(d_model)
    idx = idx - (idx % 2)                                    # [0, 0, 2, 2, 4, 4, ...]
    exponents = idx.astype(jnp.float32) / d_model
    pos = jnp.arange(seq_len, dtype=jnp.float32)[:, None]
    angles = pos / jnp.power(10000.0, exponents)[None, :]    # (S, D)
    pe = jnp.stack([jnp.sin(angles[:, 0::2]), jnp.cos(angles[:, 1::2])], axis=2)
    return pe.reshape(seq_len, d_model)


def _pick_q_tile(seq_len):
    """Largest query tile that keeps (8,128)/(16,128)-friendly blocks and divides S."""
    if seq_len <= 128:
        return seq_len
    for t in (512, 256, 128, 64, 32, 16):
        if seq_len % t == 0:
            return t
    return seq_len


def _make_decoder_layer_kernel(num_heads, d_k, compute_dtype):
    H = num_heads
    cd = compute_dtype

    def mm(a, b):
        # MXU matmul; operands in compute_dtype (bf16 recommended on all gens), f32 acc.
        return jnp.dot(a.astype(cd), b.astype(cd), preferred_element_type=jnp.float32)

    def split_heads(x, n):
        # (R, n*H*d_k) -> (n*H, R, d_k): head axis leading, d_k on lanes.
        r = x.shape[0]
        return jnp.transpose(x.reshape(r, n * H, d_k), (1, 0, 2))

    def attend(q, k, v, bias):
        # q: (H, tq, d_k) f32; k, v: (H, S, d_k) f32; bias: (tq, S) or (1, S) additive.
        s = jnp.einsum("hqd,hkd->hqk", q.astype(cd), k.astype(cd),
                       preferred_element_type=jnp.float32)        # (H, tq, S)
        s = s + bias[None]                                        # precomputed -1e9 bias
        m = jnp.max(s, axis=-1, keepdims=True)
        # exp in compute_dtype (bf16-capable EUP on v6e/v7x); max/denominator in f32.
        p = jnp.exp((s - m).astype(cd)).astype(jnp.float32)
        denom = jnp.sum(p, axis=-1, keepdims=True)
        att = p * pl.reciprocal(denom, approx=True)               # EUP vrcp, off VALU path
        o = jnp.einsum("hqk,hkd->hqd", att.astype(cd), v.astype(cd),
                       preferred_element_type=jnp.float32)        # (H, tq, d_k)
        return jnp.transpose(o, (1, 0, 2)).reshape(o.shape[1], H * d_k)   # (tq, D)

    def layer_norm(x, w, b):
        mu = jnp.mean(x, axis=-1, keepdims=True)
        xc = x - mu
        var = jnp.mean(xc * xc, axis=-1, keepdims=True)
        return xc * lax.rsqrt(var + _LN_EPS) * w + b

    def kernel(xq_ref, x_ref, enc_ref, tbias_ref, pbias_ref,
               wq1_ref, bq1_ref, wkv1_ref, bkv1_ref, wo1_ref, bo1_ref, ln1w_ref, ln1b_ref,
               wq2_ref, bq2_ref, wkv2_ref, bkv2_ref, wo2_ref, bo2_ref, ln2w_ref, ln2b_ref,
               wff1_ref, bff1_ref, wff2_ref, bff2_ref, ln3w_ref, ln3b_ref,
               out_ref):
        x_q = xq_ref[0].astype(jnp.float32)    # (tq, D) query rows of this tile
        x_all = x_ref[0]                       # (S, D)  full sequence (self-attn K/V)
        enc = enc_ref[0]                       # (S, D)  encoder output (cross-attn K/V)
        tbias = tbias_ref[...]                 # (tq, S) additive target-mask bias
        pbias = pbias_ref[0]                   # (1, S)  additive key-padding bias

        # ---- masked self-attention (1/sqrt(d_k) folded into the Q weights/bias) ----
        q1 = split_heads(mm(x_q, wq1_ref[...]) + bq1_ref[...], 1)        # (H, tq, d_k)
        kv1 = split_heads(mm(x_all, wkv1_ref[...]) + bkv1_ref[...], 2)   # (2H, S, d_k)
        a1 = attend(q1, kv1[0:H], kv1[H:2 * H], tbias)
        a1 = mm(a1, wo1_ref[...]) + bo1_ref[...]
        h1 = layer_norm(x_q + a1, ln1w_ref[...], ln1b_ref[...])

        # ---- encoder-decoder attention (fused KV projection on the encoder output) ----
        q2 = split_heads(mm(h1, wq2_ref[...]) + bq2_ref[...], 1)         # (H, tq, d_k)
        kv2 = split_heads(mm(enc, wkv2_ref[...]) + bkv2_ref[...], 2)     # (2H, S, d_k)
        a2 = attend(q2, kv2[0:H], kv2[H:2 * H], pbias)
        a2 = mm(a2, wo2_ref[...]) + bo2_ref[...]
        # TODO(synk): dropout on the cross-attention output is eval-mode identity here.
        h2 = layer_norm(h1 + a2, ln2w_ref[...], ln2b_ref[...])

        # ---- position-wise feed-forward ----
        ff = jnp.maximum(mm(h2, wff1_ref[...]) + bff1_ref[...], 0.0)
        ff = mm(ff, wff2_ref[...]) + bff2_ref[...]
        out_ref[0] = layer_norm(h2 + ff, ln3w_ref[...], ln3b_ref[...]).astype(out_ref.dtype)

    return kernel


def _fuse_layer_params(p, num_heads, compute_dtype):
    """Fuse K/V, fold 1/sqrt(d_k) into Q, reshape biases/LN params to (1, N), and cast
    matmul weights to compute_dtype (halves weight DMA in bf16 mode)."""
    d = p["self"]["wq"].shape[0]
    d_k = d // num_heads
    scale = jnp.float32(1.0 / math.sqrt(d_k))
    sa, ca = p["self"], p["cross"]
    wdt = compute_dtype
    f = {
        "wq1": (sa["wq"] * scale).astype(wdt), "bq1": (sa["bq"] * scale)[None, :],
        "wkv1": jnp.concatenate([sa["wk"], sa["wv"]], axis=1).astype(wdt),
        "bkv1": jnp.concatenate([sa["bk"], sa["bv"]])[None, :],
        "wo1": sa["wo"].astype(wdt), "bo1": sa["bo"][None, :],
        "ln1w": p["ln1w"][None, :], "ln1b": p["ln1b"][None, :],
        "wq2": (ca["wq"] * scale).astype(wdt), "bq2": (ca["bq"] * scale)[None, :],
        "wkv2": jnp.concatenate([ca["wk"], ca["wv"]], axis=1).astype(wdt),
        "bkv2": jnp.concatenate([ca["bk"], ca["bv"]])[None, :],
        "wo2": ca["wo"].astype(wdt), "bo2": ca["bo"][None, :],
        "ln2w": p["ln2w"][None, :], "ln2b": p["ln2b"][None, :],
        "wff1": p["w1"].astype(wdt), "bff1": p["b1"][None, :],
        "wff2": p["w2"].astype(wdt), "bff2": p["b2"][None, :],
        "ln3w": p["ln3w"][None, :], "ln3b": p["ln3b"][None, :],
    }
    return [f[k] for k in _WEIGHT_ORDER]


def _decoder_layer(x, enc, tbias, pbias, layer_p, num_heads, compute_dtype, out_dtype):
    B, S, D = x.shape
    d_k = D // num_heads
    d_ff = layer_p["w1"].shape[1]
    tq = _pick_q_tile(S)
    n_q = S // tq

    kernel = _make_decoder_layer_kernel(num_heads, d_k, compute_dtype)
    weights = _fuse_layer_params(layer_p, num_heads, compute_dtype)

    xq_spec = pl.BlockSpec((1, tq, D), lambda b, q: (b, q, 0))       # query-tile rows
    xfull_spec = pl.BlockSpec((1, S, D), lambda b, q: (b, 0, 0))     # full sequence (K/V)
    tbias_spec = pl.BlockSpec((tq, S), lambda b, q: (q, 0))          # (tq,S) mask bias slab
    pbias_spec = pl.BlockSpec((1, 1, S), lambda b, q: (b, 0, 0))     # (1,S) key-pad bias
    # Constant index_map + Buffered(1): each weight is DMA'd to VMEM once and kept
    # single-buffered — no dead second pipeline buffer doubling the weight footprint.
    w_specs = [pl.BlockSpec(w.shape, lambda b, q: (0, 0), pipeline_mode=pl.Buffered(1))
               for w in weights]

    # ---- VMEM budget + advisory cost estimate ----
    weight_bytes = sum(int(np.prod(w.shape)) * np.dtype(w.dtype).itemsize for w in weights)
    f32b = 4
    io_bytes = 2 * f32b * (2 * tq * D + 2 * S * D + tq * S + S)        # double-buffered IO
    tmp_bytes = f32b * (3 * num_heads * tq * S + tq * (4 * D + d_ff) + 4 * S * D)
    vmem_limit = int(min(max(int(1.5 * (weight_bytes + io_bytes + tmp_bytes)),
                             32 * 1024 * 1024), 112 * 1024 * 1024))

    flops = 2 * B * (4 * S * D * D + 2 * n_q * S * 2 * D * D
                     + 2 * S * D * d_ff + 4 * num_heads * S * S * d_k)
    cost = pl.CostEstimate(
        flops=int(flops),
        transcendentals=int(2 * B * num_heads * S * S),
        bytes_accessed=int(weight_bytes + 3 * f32b * B * S * D + f32b * (S * S + B * S)),
    )

    return pl.pallas_call(
        kernel,
        out_shape=jax.ShapeDtypeStruct((B, S, D), out_dtype),
        grid_spec=pltpu.PrefetchScalarGridSpec(
            num_scalar_prefetch=0,
            grid=(B, n_q),
            in_specs=[xq_spec, xfull_spec, xfull_spec, tbias_spec, pbias_spec] + w_specs,
            out_specs=pl.BlockSpec((1, tq, D), lambda b, q: (b, q, 0)),
        ),
        compiler_params=pltpu.CompilerParams(
            dimension_semantics=("parallel", "parallel"),
            vmem_limit_bytes=vmem_limit,
        ),
        cost_estimate=cost,
    )(x, x, enc, tbias, pbias, *weights)


@functools.partial(jax.jit, static_argnames=("num_heads", "compute_dtype"))
def decoder_forward(x, output_enc, target_mask, padding_mask, layer_params,
                    num_heads, compute_dtype=jnp.bfloat16):
    """Decoder.forward: positional encoding + num_layers fused DecoderLayer kernels.

    target_mask: (S, S), 1 = masked (e.g. causal), batch-invariant; applied as
                 score += mask * -1e9 (precomputed additive bias, broadcast over heads).
    padding_mask: (B, S) key-padding vector, 1 = masked key; broadcast over queries/heads.
    """
    B, S, D = x.shape
    out = x + _positional_encoding_table(S, D)[None, :, :]
    # TODO(synk): decoder-level dropout after positional encoding is eval-mode identity.
    tbias = target_mask.astype(jnp.float32) * _MASK_NEG                  # (S, S)
    pbias = (padding_mask.astype(jnp.float32) * _MASK_NEG).reshape(B, 1, S)
    enc = output_enc.astype(compute_dtype)        # bf16 mode: halve repeated enc DMA
    f32_mode = jnp.dtype(compute_dtype) == jnp.dtype(jnp.float32)
    n_layers = len(layer_params)
    for i, p in enumerate(layer_params):
        # Interlayer activations in bf16 (halves HBM writeback/re-read); final layer f32.
        out_dtype = jnp.float32 if (f32_mode or i == n_layers - 1) else compute_dtype
        out = _decoder_layer(out, enc, tbias, pbias, p, num_heads, compute_dtype, out_dtype)
    return out


# ----------------------------- init & pure-JAX reference -----------------------------

def _init_linear(key, in_dim, out_dim):
    # Mirrors nn.Linear default init; weight stored transposed as (in, out) for x @ W.
    k1, k2 = jax.random.split(key)
    bound = 1.0 / math.sqrt(in_dim)
    w = jax.random.uniform(k1, (in_dim, out_dim), jnp.float32, -bound, bound)
    b = jax.random.uniform(k2, (out_dim,), jnp.float32, -bound, bound)
    return w, b


def _init_mha(key, d):
    kq, kk, kv, ko = jax.random.split(key, 4)
    wq, bq = _init_linear(kq, d, d)
    wk, bk = _init_linear(kk, d, d)
    wv, bv = _init_linear(kv, d, d)
    wo, bo = _init_linear(ko, d, d)
    return dict(wq=wq, bq=bq, wk=wk, bk=bk, wv=wv, bv=bv, wo=wo, bo=bo)


def _init_decoder_layer(key, d, hidden):
    k1, k2, k3, k4 = jax.random.split(key, 4)
    w1, b1 = _init_linear(k3, d, hidden)
    w2, b2 = _init_linear(k4, hidden, d)
    return dict(
        self=_init_mha(k1, d), cross=_init_mha(k2, d),
        w1=w1, b1=b1, w2=w2, b2=b2,
        ln1w=jnp.ones((d,), jnp.float32), ln1b=jnp.zeros((d,), jnp.float32),
        ln2w=jnp.ones((d,), jnp.float32), ln2b=jnp.zeros((d,), jnp.float32),
        ln3w=jnp.ones((d,), jnp.float32), ln3b=jnp.zeros((d,), jnp.float32),
    )


def _ref_layer_norm(x, w, b):
    mu = x.mean(axis=-1, keepdims=True)
    var = ((x - mu) ** 2).mean(axis=-1, keepdims=True)
    return (x - mu) / jnp.sqrt(var + _LN_EPS) * w + b


def _ref_mha(query, key, value, p, num_heads, mask):
    B, S, D = query.shape
    d_k = D // num_heads
    q = (query @ p["wq"] + p["bq"]).reshape(B, S, num_heads, d_k).transpose(0, 2, 1, 3)
    k = (key @ p["wk"] + p["bk"]).reshape(B, S, num_heads, d_k).transpose(0, 2, 1, 3)
    v = (value @ p["wv"] + p["bv"]).reshape(B, S, num_heads, d_k).transpose(0, 2, 1, 3)
    s = jnp.einsum("bhqd,bhkd->bhqk", q, k) / math.sqrt(d_k)
    if mask is not None:
        s = s + mask[:, None, :, :] * _MASK_NEG
    att = jax.nn.softmax(s, axis=-1)
    o = jnp.einsum("bhqk,bhkd->bhqd", att, v).transpose(0, 2, 1, 3).reshape(B, S, D)
    return o @ p["wo"] + p["bo"]


def _ref_decoder(x, enc, tmask, pmask, layer_params, num_heads):
    _, S, D = x.shape
    out = x + _positional_encoding_table(S, D)[None, :, :]
    for p in layer_params:
        q = _ref_mha(out, out, out, p["self"], num_heads, tmask)
        q = _ref_layer_norm(out + q, p["ln1w"], p["ln1b"])
        o = _ref_mha(q, enc, enc, p["cross"], num_heads, pmask)
        o = _ref_layer_norm(q + o, p["ln2w"], p["ln2b"])
        ff = jax.nn.relu(o @ p["w1"] + p["b1"]) @ p["w2"] + p["b2"]
        out = _ref_layer_norm(o + ff, p["ln3w"], p["ln3b"])
    return out


if __name__ == "__main__":
    # Full-f32 matmuls for the pure-JAX reference (the Pallas kernel accumulates in f32).
    jax.config.update("jax_default_matmul_precision", "highest")

    B, S, D = 2, 8, 32
    hidden_dim, num_layers, num_heads = 64, 2, 4

    root = jax.random.PRNGKey(0)
    kx, ke, kl = jax.random.split(root, 3)
    x = jax.random.normal(kx, (B, S, D), jnp.float32)
    output_enc = jax.random.normal(ke, (B, S, D), jnp.float32)
    layer_params = [_init_decoder_layer(k, D, hidden_dim)
                    for k in jax.random.split(kl, num_layers)]

    # target mask: causal (S,S), 1 = masked; padding mask: last 2 keys of batch 1 masked.
    target_mask = jnp.triu(jnp.ones((S, S), jnp.float32), k=1)
    key_pad = jnp.zeros((B, S), jnp.float32).at[1, S - 2:].set(1.0)

    # Pure-JAX reference uses the broadcast (B,S,S) masks, as the PyTorch module would.
    tmask_full = jnp.broadcast_to(target_mask, (B, S, S))
    pmask_full = jnp.broadcast_to(key_pad[:, None, :], (B, S, S))
    ref = _ref_decoder(x, output_enc, tmask_full, pmask_full, layer_params, num_heads)

    # f32 MXU path (strictest comparison).
    out_f32 = decoder_forward(x, output_enc, target_mask, key_pad, layer_params,
                              num_heads=num_heads, compute_dtype=jnp.float32)
    jax.block_until_ready(out_f32)
    assert np.allclose(np.asarray(out_f32), np.asarray(ref), atol=5e-3, rtol=5e-3), \
        "f32 Pallas decoder mismatch vs reference"

    # bf16 MXU path (default; recommended on v5e/v6e/v7x).
    out_bf16 = decoder_forward(x, output_enc, target_mask, key_pad, layer_params,
                               num_heads=num_heads, compute_dtype=jnp.bfloat16)
    jax.block_until_ready(out_bf16)
    assert np.allclose(np.asarray(out_bf16), np.asarray(ref), atol=2e-1, rtol=2e-1), \
        "bf16 Pallas decoder mismatch vs reference"

    print("KERNEL_OK")
</pallas_src>

<mosaic_0001>
module attributes {stable_mosaic.version = 11 : i64} {
  func.func @kernel(%arg0: i32, %arg1: i32, %arg2: memref<1x8x32xf32, #tpu.memory_space<vmem>>, %arg3: memref<1x8x32xf32, #tpu.memory_space<vmem>>, %arg4: memref<1x8x32xf32, #tpu.memory_space<vmem>>, %arg5: memref<8x8xf32, #tpu.memory_space<vmem>>, %arg6: memref<1x1x8xf32, #tpu.memory_space<vmem>>, %arg7: memref<32x32xf32, #tpu.memory_space<vmem>>, %arg8: memref<1x32xf32, #tpu.memory_space<vmem>>, %arg9: memref<32x64xf32, #tpu.memory_space<vmem>>, %arg10: memref<1x64xf32, #tpu.memory_space<vmem>>, %arg11: memref<32x32xf32, #tpu.memory_space<vmem>>, %arg12: memref<1x32xf32, #tpu.memory_space<vmem>>, %arg13: memref<1x32xf32, #tpu.memory_space<vmem>>, %arg14: memref<1x32xf32, #tpu.memory_space<vmem>>, %arg15: memref<32x32xf32, #tpu.memory_space<vmem>>, %arg16: memref<1x32xf32, #tpu.memory_space<vmem>>, %arg17: memref<32x64xf32, #tpu.memory_space<vmem>>, %arg18: memref<1x64xf32, #tpu.memory_space<vmem>>, %arg19: memref<32x32xf32, #tpu.memory_space<vmem>>, %arg20: memref<1x32xf32, #tpu.memory_space<vmem>>, %arg21: memref<1x32xf32, #tpu.memory_space<vmem>>, %arg22: memref<1x32xf32, #tpu.memory_space<vmem>>, %arg23: memref<32x64xf32, #tpu.memory_space<vmem>>, %arg24: memref<1x64xf32, #tpu.memory_space<vmem>>, %arg25: memref<64x32xf32, #tpu.memory_space<vmem>>, %arg26: memref<1x32xf32, #tpu.memory_space<vmem>>, %arg27: memref<1x32xf32, #tpu.memory_space<vmem>>, %arg28: memref<1x32xf32, #tpu.memory_space<vmem>>, %arg29: memref<1x8x32xf32, #tpu.memory_space<vmem>>) attributes {dimension_semantics = [#tpu.dimension_semantics<parallel>, #tpu.dimension_semantics<parallel>], iteration_bounds = array<i64: 2, 1>, scalar_prefetch = 0 : i64, scratch_operands = 0 : i64, tpu.core_type = #tpu.core_type<tc>, window_params = [{transform_indices = @transform_0, window_bounds = array<i64: 1, 8, 32>}, {transform_indices = @transform_1, window_bounds = array<i64: 1, 8, 32>}, {transform_indices = @transform_2, window_bounds = array<i64: 1, 8, 32>}, {transform_indices = @transform_3, window_bounds = array<i64: 8, 8>}, {transform_indices = @transform_4, window_bounds = array<i64: 1, 1, 8>}, {pipeline_mode = #tpu.pipeline_mode<synchronous>, transform_indices = @transform_5, window_bounds = array<i64: 32, 32>}, {pipeline_mode = #tpu.pipeline_mode<synchronous>, transform_indices = @transform_6, window_bounds = array<i64: 1, 32>}, {pipeline_mode = #tpu.pipeline_mode<synchronous>, transform_indices = @transform_7, window_bounds = array<i64: 32, 64>}, {pipeline_mode = #tpu.pipeline_mode<synchronous>, transform_indices = @transform_8, window_bounds = array<i64: 1, 64>}, {pipeline_mode = #tpu.pipeline_mode<synchronous>, transform_indices = @transform_9, window_bounds = array<i64: 32, 32>}, {pipeline_mode = #tpu.pipeline_mode<synchronous>, transform_indices = @transform_10, window_bounds = array<i64: 1, 32>}, {pipeline_mode = #tpu.pipeline_mode<synchronous>, transform_indices = @transform_11, window_bounds = array<i64: 1, 32>}, {pipeline_mode = #tpu.pipeline_mode<synchronous>, transform_indices = @transform_12, window_bounds = array<i64: 1, 32>}, {pipeline_mode = #tpu.pipeline_mode<synchronous>, transform_indices = @transform_13, window_bounds = array<i64: 32, 32>}, {pipeline_mode = #tpu.pipeline_mode<synchronous>, transform_indices = @transform_14, window_bounds = array<i64: 1, 32>}, {pipeline_mode = #tpu.pipeline_mode<synchronous>, transform_indices = @transform_15, window_bounds = array<i64: 32, 64>}, {pipeline_mode = #tpu.pipeline_mode<synchronous>, transform_indices = @transform_16, window_bounds = array<i64: 1, 64>}, {pipeline_mode = #tpu.pipeline_mode<synchronous>, transform_indices = @transform_17, window_bounds = array<i64: 32, 32>}, {pipeline_mode = #tpu.pipeline_mode<synchronous>, transform_indices = @transform_18, window_bounds = array<i64: 1, 32>}, {pipeline_mode = #tpu.pipeline_mode<synchronous>, transform_indices = @transform_19, window_bounds = array<i64: 1, 32>}, {pipeline_mode = #tpu.pipeline_mode<synchronous>, transform_indices = @transform_20, window_bounds = array<i64: 1, 32>}, {pipeline_mode = #tpu.pipeline_mode<synchronous>, transform_indices = @transform_21, window_bounds = array<i64: 32, 64>}, {pipeline_mode = #tpu.pipeline_mode<synchronous>, transform_indices = @transform_22, window_bounds = array<i64: 1, 64>}, {pipeline_mode = #tpu.pipeline_mode<synchronous>, transform_indices = @transform_23, window_bounds = array<i64: 64, 32>}, {pipeline_mode = #tpu.pipeline_mode<synchronous>, transform_indices = @transform_24, window_bounds = array<i64: 1, 32>}, {pipeline_mode = #tpu.pipeline_mode<synchronous>, transform_indices = @transform_25, window_bounds = array<i64: 1, 32>}, {pipeline_mode = #tpu.pipeline_mode<synchronous>, transform_indices = @transform_26, window_bounds = array<i64: 1, 32>}, {transform_indices = @transform_27, window_bounds = array<i64: 1, 8, 32>}]} {
    %c0 = arith.constant 0 : index
    %c0_0 = arith.constant 0 : index
    %c0_1 = arith.constant 0 : index
    %0 = vector.load %arg2[%c0, %c0_0, %c0_1] : memref<1x8x32xf32, #tpu.memory_space<vmem>>, vector<1x8x32xf32>
    %1 = vector.shape_cast %0 : vector<1x8x32xf32> to vector<8x32xf32>
    %c0_2 = arith.constant 0 : index
    %c0_3 = arith.constant 0 : index
    %c0_4 = arith.constant 0 : index
    %2 = vector.load %arg3[%c0_2, %c0_3, %c0_4] : memref<1x8x32xf32, #tpu.memory_space<vmem>>, vector<1x8x32xf32>
    %3 = vector.shape_cast %2 : vector<1x8x32xf32> to vector<8x32xf32>
    %c0_5 = arith.constant 0 : index
    %c0_6 = arith.constant 0 : index
    %c0_7 = arith.constant 0 : index
    %4 = vector.load %arg4[%c0_5, %c0_6, %c0_7] : memref<1x8x32xf32, #tpu.memory_space<vmem>>, vector<1x8x32xf32>
    %5 = vector.shape_cast %4 : vector<1x8x32xf32> to vector<8x32xf32>
    %c0_8 = arith.constant 0 : index
    %c0_9 = arith.constant 0 : index
    %6 = vector.load %arg5[%c0_8, %c0_9] : memref<8x8xf32, #tpu.memory_space<vmem>>, vector<8x8xf32>
    %c0_10 = arith.constant 0 : index
    %c0_11 = arith.constant 0 : index
    %c0_12 = arith.constant 0 : index
    %7 = vector.load %arg6[%c0_10, %c0_11, %c0_12] : memref<1x1x8xf32, #tpu.memory_space<vmem>>, vector<1x1x8xf32>
    %8 = vector.shape_cast %7 : vector<1x1x8xf32> to vector<1x8xf32>
    %c0_13 = arith.constant 0 : index
    %c0_14 = arith.constant 0 : index
    %9 = vector.load %arg7[%c0_13, %c0_14] : memref<32x32xf32, #tpu.memory_space<vmem>>, vector<32x32xf32>
    %cst = arith.constant dense<0.000000e+00> : vector<8x32xf32>
    %10 = tpu.matmul %1, %9, %cst {dimension_numbers = #tpu.dot_dimension_numbers<[1], [0], [0], [1], [0, 0, 1, 1], [], []>, precision = #tpu.contract_precision<fp32>} : vector<8x32xf32>, vector<32x32xf32>, vector<8x32xf32> -> vector<8x32xf32>
    %c0_15 = arith.constant 0 : index
    %c0_16 = arith.constant 0 : index
    %11 = vector.load %arg8[%c0_15, %c0_16] : memref<1x32xf32, #tpu.memory_space<vmem>>, vector<1x32xf32>
    %12 = vector.broadcast %11 : vector<1x32xf32> to vector<8x32xf32>
    %13 = arith.addf %10, %12 : vector<8x32xf32>
    %14 = vector.shape_cast %13 : vector<8x32xf32> to vector<8x4x8xf32>
    %15 = tpu.transpose %14, [1, 0, 2] : vector<8x4x8xf32> -> vector<4x8x8xf32>
    %c0_17 = arith.constant 0 : index
    %c0_18 = arith.constant 0 : index
    %16 = vector.load %arg9[%c0_17, %c0_18] : memref<32x64xf32, #tpu.memory_space<vmem>>, vector<32x64xf32>
    %cst_19 = arith.constant dense<0.000000e+00> : vector<8x64xf32>
    %17 = tpu.matmul %3, %16, %cst_19 {dimension_numbers = #tpu.dot_dimension_numbers<[1], [0], [0], [1], [0, 0, 1, 1], [], []>, precision = #tpu.contract_precision<fp32>} : vector<8x32xf32>, vector<32x64xf32>, vector<8x64xf32> -> vector<8x64xf32>
    %c0_20 = arith.constant 0 : index
    %c0_21 = arith.constant 0 : index
    %18 = vector.load %arg10[%c0_20, %c0_21] : memref<1x64xf32, #tpu.memory_space<vmem>>, vector<1x64xf32>
    %19 = vector.broadcast %18 : vector<1x64xf32> to vector<8x64xf32>
    %20 = arith.addf %17, %19 : vector<8x64xf32>
    %21 = vector.shape_cast %20 : vector<8x64xf32> to vector<8x8x8xf32>
    %22 = tpu.transpose %21, [1, 0, 2] : vector<8x8x8xf32> -> vector<8x8x8xf32>
    %23 = vector.extract_strided_slice %22 {offsets = [0, 0, 0], sizes = [4, 8, 8], strides = [1, 1, 1]} : vector<8x8x8xf32> to vector<4x8x8xf32>
    %24 = vector.extract_strided_slice %22 {offsets = [4, 0, 0], sizes = [4, 8, 8], strides = [1, 1, 1]} : vector<8x8x8xf32> to vector<4x8x8xf32>
    "tpu.trace_start"() <{level = 10 : i32, message = "hqd,hkd->hqk"}> : () -> ()
    %cst_22 = arith.constant dense<0.000000e+00> : vector<4x8x8xf32>
    %25 = tpu.matmul %15, %23, %cst_22 {dimension_numbers = #tpu.dot_dimension_numbers<[2], [2], [1], [1], [0, 0, 0, 1, 1, 1], [0], [0]>, precision = #tpu.contract_precision<fp32>} : vector<4x8x8xf32>, vector<4x8x8xf32>, vector<4x8x8xf32> -> vector<4x8x8xf32>
    "tpu.trace_stop"() : () -> ()
    %26 = vector.shape_cast %6 : vector<8x8xf32> to vector<1x8x8xf32>
    %27 = vector.broadcast %26 : vector<1x8x8xf32> to vector<4x8x8xf32>
    %28 = arith.addf %25, %27 : vector<4x8x8xf32>
    %cst_23 = arith.constant dense<0xFF800000> : vector<4x8xf32>
    %29 = vector.multi_reduction <maximumf>, %28, %cst_23 [2] : vector<4x8x8xf32> to vector<4x8xf32>
    %30 = vector.shape_cast %29 : vector<4x8xf32> to vector<4x8x1xf32>
    %31 = vector.broadcast %30 : vector<4x8x1xf32> to vector<4x8x8xf32>
    %32 = arith.subf %28, %31 : vector<4x8x8xf32>
    %33 = math.exp %32 : vector<4x8x8xf32>
    %cst_24 = arith.constant dense<0.000000e+00> : vector<4x8xf32>
    %34 = vector.multi_reduction <add>, %33, %cst_24 [2] : vector<4x8x8xf32> to vector<4x8xf32>
    %35 = vector.shape_cast %34 : vector<4x8xf32> to vector<4x8x1xf32>
    %36 = tpu.reciprocal %35 {approx = true} : vector<4x8x1xf32> -> vector<4x8x1xf32>
    %37 = vector.broadcast %36 : vector<4x8x1xf32> to vector<4x8x8xf32>
    %38 = arith.mulf %33, %37 : vector<4x8x8xf32>
    "tpu.trace_start"() <{level = 10 : i32, message = "hqk,hkd->hqd"}> : () -> ()
    %cst_25 = arith.constant dense<0.000000e+00> : vector<4x8x8xf32>
    %39 = tpu.matmul %38, %24, %cst_25 {dimension_numbers = #tpu.dot_dimension_numbers<[2], [1], [1], [2], [0, 0, 0, 1, 1, 2], [0], [0]>, precision = #tpu.contract_precision<fp32>} : vector<4x8x8xf32>, vector<4x8x8xf32>, vector<4x8x8xf32> -> vector<4x8x8xf32>
    "tpu.trace_stop"() : () -> ()
    %40 = tpu.transpose %39, [1, 0, 2] : vector<4x8x8xf32> -> vector<8x4x8xf32>
    %41 = vector.shape_cast %40 : vector<8x4x8xf32> to vector<8x32xf32>
    %c0_26 = arith.constant 0 : index
    %c0_27 = arith.constant 0 : index
    %42 = vector.load %arg11[%c0_26, %c0_27] : memref<32x32xf32, #tpu.memory_space<vmem>>, vector<32x32xf32>
    %cst_28 = arith.constant dense<0.000000e+00> : vector<8x32xf32>
    %43 = tpu.matmul %41, %42, %cst_28 {dimension_numbers = #tpu.dot_dimension_numbers<[1], [0], [0], [1], [0, 0, 1, 1], [], []>, precision = #tpu.contract_precision<fp32>} : vector<8x32xf32>, vector<32x32xf32>, vector<8x32xf32> -> vector<8x32xf32>
    %c0_29 = arith.constant 0 : index
    %c0_30 = arith.constant 0 : index
    %44 = vector.load %arg12[%c0_29, %c0_30] : memref<1x32xf32, #tpu.memory_space<vmem>>, vector<1x32xf32>
    %45 = vector.broadcast %44 : vector<1x32xf32> to vector<8x32xf32>
    %46 = arith.addf %43, %45 : vector<8x32xf32>
    %47 = arith.addf %1, %46 : vector<8x32xf32>
    %c0_31 = arith.constant 0 : index
    %c0_32 = arith.constant 0 : index
    %48 = vector.load %arg13[%c0_31, %c0_32] : memref<1x32xf32, #tpu.memory_space<vmem>>, vector<1x32xf32>
    %c0_33 = arith.constant 0 : index
    %c0_34 = arith.constant 0 : index
    %49 = vector.load %arg14[%c0_33, %c0_34] : memref<1x32xf32, #tpu.memory_space<vmem>>, vector<1x32xf32>
    %cst_35 = arith.constant dense<0.000000e+00> : vector<8xf32>
    %50 = vector.multi_reduction <add>, %47, %cst_35 [1] : vector<8x32xf32> to vector<8xf32>
    %51 = vector.shape_cast %50 : vector<8xf32> to vector<8x1xf32>
    %cst_36 = arith.constant 3.200000e+01 : f32
    %52 = vector.broadcast %cst_36 : f32 to vector<8x1xf32>
    %53 = arith.divf %51, %52 : vector<8x1xf32>
    %54 = vector.broadcast %53 : vector<8x1xf32> to vector<8x32xf32>
    %55 = arith.subf %47, %54 : vector<8x32xf32>
    %56 = arith.mulf %55, %55 : vector<8x32xf32>
    %cst_37 = arith.constant dense<0.000000e+00> : vector<8xf32>
    %57 = vector.multi_reduction <add>, %56, %cst_37 [1] : vector<8x32xf32> to vector<8xf32>
    %58 = vector.shape_cast %57 : vector<8xf32> to vector<8x1xf32>
    %cst_38 = arith.constant 3.200000e+01 : f32
    %59 = vector.broadcast %cst_38 : f32 to vector<8x1xf32>
    %60 = arith.divf %58, %59 : vector<8x1xf32>
    %cst_39 = arith.constant 9.99999974E-6 : f32
    %61 = vector.broadcast %cst_39 : f32 to vector<8x1xf32>
    %62 = arith.addf %60, %61 : vector<8x1xf32>
    %63 = math.rsqrt %62 : vector<8x1xf32>
    %64 = vector.broadcast %63 : vector<8x1xf32> to vector<8x32xf32>
    %65 = arith.mulf %55, %64 : vector<8x32xf32>
    %66 = vector.broadcast %48 : vector<1x32xf32> to vector<8x32xf32>
    %67 = arith.mulf %65, %66 : vector<8x32xf32>
    %68 = vector.broadcast %49 : vector<1x32xf32> to vector<8x32xf32>
    %69 = arith.addf %67, %68 : vector<8x32xf32>
    %c0_40 = arith.constant 0 : index
    %c0_41 = arith.constant 0 : index
    %70 = vector.load %arg15[%c0_40, %c0_41] : memref<32x32xf32, #tpu.memory_space<vmem>>, vector<32x32xf32>
    %cst_42 = arith.constant dense<0.000000e+00> : vector<8x32xf32>
    %71 = tpu.matmul %69, %70, %cst_42 {dimension_numbers = #tpu.dot_dimension_numbers<[1], [0], [0], [1], [0, 0, 1, 1], [], []>, precision = #tpu.contract_precision<fp32>} : vector<8x32xf32>, vector<32x32xf32>, vector<8x32xf32> -> vector<8x32xf32>
    %c0_43 = arith.constant 0 : index
    %c0_44 = arith.constant 0 : index
    %72 = vector.load %arg16[%c0_43, %c0_44] : memref<1x32xf32, #tpu.memory_space<vmem>>, vector<1x32xf32>
    %73 = vector.broadcast %72 : vector<1x32xf32> to vector<8x32xf32>
    %74 = arith.addf %71, %73 : vector<8x32xf32>
    %75 = vector.shape_cast %74 : vector<8x32xf32> to vector<8x4x8xf32>
    %76 = tpu.transpose %75, [1, 0, 2] : vector<8x4x8xf32> -> vector<4x8x8xf32>
    %c0_45 = arith.constant 0 : index
    %c0_46 = arith.constant 0 : index
    %77 = vector.load %arg17[%c0_45, %c0_46] : memref<32x64xf32, #tpu.memory_space<vmem>>, vector<32x64xf32>
    %cst_47 = arith.constant dense<0.000000e+00> : vector<8x64xf32>
    %78 = tpu.matmul %5, %77, %cst_47 {dimension_numbers = #tpu.dot_dimension_numbers<[1], [0], [0], [1], [0, 0, 1, 1], [], []>, precision = #tpu.contract_precision<fp32>} : vector<8x32xf32>, vector<32x64xf32>, vector<8x64xf32> -> vector<8x64xf32>
    %c0_48 = arith.constant 0 : index
    %c0_49 = arith.constant 0 : index
    %79 = vector.load %arg18[%c0_48, %c0_49] : memref<1x64xf32, #tpu.memory_space<vmem>>, vector<1x64xf32>
    %80 = vector.broadcast %79 : vector<1x64xf32> to vector<8x64xf32>
    %81 = arith.addf %78, %80 : vector<8x64xf32>
    %82 = vector.shape_cast %81 : vector<8x64xf32> to vector<8x8x8xf32>
    %83 = tpu.transpose %82, [1, 0, 2] : vector<8x8x8xf32> -> vector<8x8x8xf32>
    %84 = vector.extract_strided_slice %83 {offsets = [0, 0, 0], sizes = [4, 8, 8], strides = [1, 1, 1]} : vector<8x8x8xf32> to vector<4x8x8xf32>
    %85 = vector.extract_strided_slice %83 {offsets = [4, 0, 0], sizes = [4, 8, 8], strides = [1, 1, 1]} : vector<8x8x8xf32> to vector<4x8x8xf32>
    "tpu.trace_start"() <{level = 10 : i32, message = "hqd,hkd->hqk"}> : () -> ()
    %cst_50 = arith.constant dense<0.000000e+00> : vector<4x8x8xf32>
    %86 = tpu.matmul %76, %84, %cst_50 {dimension_numbers = #tpu.dot_dimension_numbers<[2], [2], [1], [1], [0, 0, 0, 1, 1, 1], [0], [0]>, precision = #tpu.contract_precision<fp32>} : vector<4x8x8xf32>, vector<4x8x8xf32>, vector<4x8x8xf32> -> vector<4x8x8xf32>
    "tpu.trace_stop"() : () -> ()
    %87 = vector.shape_cast %8 : vector<1x8xf32> to vector<1x1x8xf32>
    %88 = vector.broadcast %87 : vector<1x1x8xf32> to vector<4x8x8xf32>
    %89 = arith.addf %86, %88 : vector<4x8x8xf32>
    %cst_51 = arith.constant dense<0xFF800000> : vector<4x8xf32>
    %90 = vector.multi_reduction <maximumf>, %89, %cst_51 [2] : vector<4x8x8xf32> to vector<4x8xf32>
    %91 = vector.shape_cast %90 : vector<4x8xf32> to vector<4x8x1xf32>
    %92 = vector.broadcast %91 : vector<4x8x1xf32> to vector<4x8x8xf32>
    %93 = arith.subf %89, %92 : vector<4x8x8xf32>
    %94 = math.exp %93 : vector<4x8x8xf32>
    %cst_52 = arith.constant dense<0.000000e+00> : vector<4x8xf32>
    %95 = vector.multi_reduction <add>, %94, %cst_52 [2] : vector<4x8x8xf32> to vector<4x8xf32>
    %96 = vector.shape_cast %95 : vector<4x8xf32> to vector<4x8x1xf32>
    %97 = tpu.reciprocal %96 {approx = true} : vector<4x8x1xf32> -> vector<4x8x1xf32>
    %98 = vector.broadcast %97 : vector<4x8x1xf32> to vector<4x8x8xf32>
    %99 = arith.mulf %94, %98 : vector<4x8x8xf32>
    "tpu.trace_start"() <{level = 10 : i32, message = "hqk,hkd->hqd"}> : () -> ()
    %cst_53 = arith.constant dense<0.000000e+00> : vector<4x8x8xf32>
    %100 = tpu.matmul %99, %85, %cst_53 {dimension_numbers = #tpu.dot_dimension_numbers<[2], [1], [1], [2], [0, 0, 0, 1, 1, 2], [0], [0]>, precision = #tpu.contract_precision<fp32>} : vector<4x8x8xf32>, vector<4x8x8xf32>, vector<4x8x8xf32> -> vector<4x8x8xf32>
    "tpu.trace_stop"() : () -> ()
    %101 = tpu.transpose %100, [1, 0, 2] : vector<4x8x8xf32> -> vector<8x4x8xf32>
    %102 = vector.shape_cast %101 : vector<8x4x8xf32> to vector<8x32xf32>
    %c0_54 = arith.constant 0 : index
    %c0_55 = arith.constant 0 : index
    %103 = vector.load %arg19[%c0_54, %c0_55] : memref<32x32xf32, #tpu.memory_space<vmem>>, vector<32x32xf32>
    %cst_56 = arith.constant dense<0.000000e+00> : vector<8x32xf32>
    %104 = tpu.matmul %102, %103, %cst_56 {dimension_numbers = #tpu.dot_dimension_numbers<[1], [0], [0], [1], [0, 0, 1, 1], [], []>, precision = #tpu.contract_precision<fp32>} : vector<8x32xf32>, vector<32x32xf32>, vector<8x32xf32> -> vector<8x32xf32>
    %c0_57 = arith.constant 0 : index
    %c0_58 = arith.constant 0 : index
    %105 = vector.load %arg20[%c0_57, %c0_58] : memref<1x32xf32, #tpu.memory_space<vmem>>, vector<1x32xf32>
    %106 = vector.broadcast %105 : vector<1x32xf32> to vector<8x32xf32>
    %107 = arith.addf %104, %106 : vector<8x32xf32>
    %108 = arith.addf %69, %107 : vector<8x32xf32>
    %c0_59 = arith.constant 0 : index
    %c0_60 = arith.constant 0 : index
    %109 = vector.load %arg21[%c0_59, %c0_60] : memref<1x32xf32, #tpu.memory_space<vmem>>, vector<1x32xf32>
    %c0_61 = arith.constant 0 : index
    %c0_62 = arith.constant 0 : index
    %110 = vector.load %arg22[%c0_61, %c0_62] : memref<1x32xf32, #tpu.memory_space<vmem>>, vector<1x32xf32>
    %cst_63 = arith.constant dense<0.000000e+00> : vector<8xf32>
    %111 = vector.multi_reduction <add>, %108, %cst_63 [1] : vector<8x32xf32> to vector<8xf32>
    %112 = vector.shape_cast %111 : vector<8xf32> to vector<8x1xf32>
    %cst_64 = arith.constant 3.200000e+01 : f32
    %113 = vector.broadcast %cst_64 : f32 to vector<8x1xf32>
    %114 = arith.divf %112, %113 : vector<8x1xf32>
    %115 = vector.broadcast %114 : vector<8x1xf32> to vector<8x32xf32>
    %116 = arith.subf %108, %115 : vector<8x32xf32>
    %117 = arith.mulf %116, %116 : vector<8x32xf32>
    %cst_65 = arith.constant dense<0.000000e+00> : vector<8xf32>
    %118 = vector.multi_reduction <add>, %117, %cst_65 [1] : vector<8x32xf32> to vector<8xf32>
    %119 = vector.shape_cast %118 : vector<8xf32> to vector<8x1xf32>
    %cst_66 = arith.constant 3.200000e+01 : f32
    %120 = vector.broadcast %cst_66 : f32 to vector<8x1xf32>
    %121 = arith.divf %119, %120 : vector<8x1xf32>
    %cst_67 = arith.constant 9.99999974E-6 : f32
    %122 = vector.broadcast %cst_67 : f32 to vector<8x1xf32>
    %123 = arith.addf %121, %122 : vector<8x1xf32>
    %124 = math.rsqrt %123 : vector<8x1xf32>
    %125 = vector.broadcast %124 : vector<8x1xf32> to vector<8x32xf32>
    %126 = arith.mulf %116, %125 : vector<8x32xf32>
    %127 = vector.broadcast %109 : vector<1x32xf32> to vector<8x32xf32>
    %128 = arith.mulf %126, %127 : vector<8x32xf32>
    %129 = vector.broadcast %110 : vector<1x32xf32> to vector<8x32xf32>
    %130 = arith.addf %128, %129 : vector<8x32xf32>
    %c0_68 = arith.constant 0 : index
    %c0_69 = arith.constant 0 : index
    %131 = vector.load %arg23[%c0_68, %c0_69] : memref<32x64xf32, #tpu.memory_space<vmem>>, vector<32x64xf32>
    %cst_70 = arith.constant dense<0.000000e+00> : vector<8x64xf32>
    %132 = tpu.matmul %130, %131, %cst_70 {dimension_numbers = #tpu.dot_dimension_numbers<[1], [0], [0], [1], [0, 0, 1, 1], [], []>, precision = #tpu.contract_precision<fp32>} : vector<8x32xf32>, vector<32x64xf32>, vector<8x64xf32> -> vector<8x64xf32>
    %c0_71 = arith.constant 0 : index
    %c0_72 = arith.constant 0 : index
    %133 = vector.load %arg24[%c0_71, %c0_72] : memref<1x64xf32, #tpu.memory_space<vmem>>, vector<1x64xf32>
    %134 = vector.broadcast %133 : vector<1x64xf32> to vector<8x64xf32>
    %135 = arith.addf %132, %134 : vector<8x64xf32>
    %cst_73 = arith.constant 0.000000e+00 : f32
    %136 = vector.broadcast %cst_73 : f32 to vector<8x64xf32>
    %137 = arith.maximumf %135, %136 : vector<8x64xf32>
    %c0_74 = arith.constant 0 : index
    %c0_75 = arith.constant 0 : index
    %138 = vector.load %arg25[%c0_74, %c0_75] : memref<64x32xf32, #tpu.memory_space<vmem>>, vector<64x32xf32>
    %cst_76 = arith.constant dense<0.000000e+00> : vector<8x32xf32>
    %139 = tpu.matmul %137, %138, %cst_76 {dimension_numbers = #tpu.dot_dimension_numbers<[1], [0], [0], [1], [0, 0, 1, 1], [], []>, precision = #tpu.contract_precision<fp32>} : vector<8x64xf32>, vector<64x32xf32>, vector<8x32xf32> -> vector<8x32xf32>
    %c0_77 = arith.constant 0 : index
    %c0_78 = arith.constant 0 : index
    %140 = vector.load %arg26[%c0_77, %c0_78] : memref<1x32xf32, #tpu.memory_space<vmem>>, vector<1x32xf32>
    %141 = vector.broadcast %140 : vector<1x32xf32> to vector<8x32xf32>
    %142 = arith.addf %139, %141 : vector<8x32xf32>
    %143 = arith.addf %130, %142 : vector<8x32xf32>
    %c0_79 = arith.constant 0 : index
    %c0_80 = arith.constant 0 : index
    %144 = vector.load %arg27[%c0_79, %c0_80] : memref<1x32xf32, #tpu.memory_space<vmem>>, vector<1x32xf32>
    %c0_81 = arith.constant 0 : index
    %c0_82 = arith.constant 0 : index
    %145 = vector.load %arg28[%c0_81, %c0_82] : memref<1x32xf32, #tpu.memory_space<vmem>>, vector<1x32xf32>
    %cst_83 = arith.constant dense<0.000000e+00> : vector<8xf32>
    %146 = vector.multi_reduction <add>, %143, %cst_83 [1] : vector<8x32xf32> to vector<8xf32>
    %147 = vector.shape_cast %146 : vector<8xf32> to vector<8x1xf32>
    %cst_84 = arith.constant 3.200000e+01 : f32
    %148 = vector.broadcast %cst_84 : f32 to vector<8x1xf32>
    %149 = arith.divf %147, %148 : vector<8x1xf32>
    %150 = vector.broadcast %149 : vector<8x1xf32> to vector<8x32xf32>
    %151 = arith.subf %143, %150 : vector<8x32xf32>
    %152 = arith.mulf %151, %151 : vector<8x32xf32>
    %cst_85 = arith.constant dense<0.000000e+00> : vector<8xf32>
    %153 = vector.multi_reduction <add>, %152, %cst_85 [1] : vector<8x32xf32> to vector<8xf32>
    %154 = vector.shape_cast %153 : vector<8xf32> to vector<8x1xf32>
    %cst_86 = arith.constant 3.200000e+01 : f32
    %155 = vector.broadcast %cst_86 : f32 to vector<8x1xf32>
    %156 = arith.divf %154, %155 : vector<8x1xf32>
    %cst_87 = arith.constant 9.99999974E-6 : f32
    %157 = vector.broadcast %cst_87 : f32 to vector<8x1xf32>
    %158 = arith.addf %156, %157 : vector<8x1xf32>
    %159 = math.rsqrt %158 : vector<8x1xf32>
    %160 = vector.broadcast %159 : vector<8x1xf32> to vector<8x32xf32>
    %161 = arith.mulf %151, %160 : vector<8x32xf32>
    %162 = vector.broadcast %144 : vector<1x32xf32> to vector<8x32xf32>
    %163 = arith.mulf %161, %162 : vector<8x32xf32>
    %164 = vector.broadcast %145 : vector<1x32xf32> to vector<8x32xf32>
    %165 = arith.addf %163, %164 : vector<8x32xf32>
    %c0_88 = arith.constant 0 : index
    %c0_89 = arith.constant 0 : index
    %c0_90 = arith.constant 0 : index
    %166 = vector.load %arg29[%c0_88, %c0_89, %c0_90] : memref<1x8x32xf32, #tpu.memory_space<vmem>>, vector<1x8x32xf32>
    %167 = vector.shape_cast %166 : vector<1x8x32xf32> to vector<8x32xf32>
    %168 = vector.shape_cast %165 : vector<8x32xf32> to vector<1x8x32xf32>
    tpu.vector_store %arg29[%c0_88, %c0_89, %c0_90], %168 {strides = array<i32>} : memref<1x8x32xf32, #tpu.memory_space<vmem>>, vector<1x8x32xf32>,
    return
  }
  func.func @transform_0(%arg0: i32, %arg1: i32) -> (i32, i32, i32) {
    %c0_i32 = arith.constant 0 : i32
    %c0_i32_0 = arith.constant 0 : i32
    return %arg0, %arg1, %c0_i32 : i32, i32, i32
  }
  func.func @transform_1(%arg0: i32, %arg1: i32) -> (i32, i32, i32) {
    %c0_i32 = arith.constant 0 : i32
    %c0_i32_0 = arith.constant 0 : i32
    %c0_i32_1 = arith.constant 0 : i32
    return %arg0, %c0_i32, %c0_i32_0 : i32, i32, i32
  }
  func.func @transform_2(%arg0: i32, %arg1: i32) -> (i32, i32, i32) {
    %c0_i32 = arith.constant 0 : i32
    %c0_i32_0 = arith.constant 0 : i32
    %c0_i32_1 = arith.constant 0 : i32
    return %arg0, %c0_i32, %c0_i32_0 : i32, i32, i32
  }
  func.func @transform_3(%arg0: i32, %arg1: i32) -> (i32, i32) {
    %c0_i32 = arith.constant 0 : i32
    %c0_i32_0 = arith.constant 0 : i32
    return %arg1, %c0_i32 : i32, i32
  }
  func.func @transform_4(%arg0: i32, %arg1: i32) -> (i32, i32, i32) {
    %c0_i32 = arith.constant 0 : i32
    %c0_i32_0 = arith.constant 0 : i32
    %c0_i32_1 = arith.constant 0 : i32
    return %arg0, %c0_i32, %c0_i32_0 : i32, i32, i32
  }
  func.func @transform_5(%arg0: i32, %arg1: i32) -> (i32, i32) {
    %c0_i32 = arith.constant 0 : i32
    %c0_i32_0 = arith.constant 0 : i32
    %c0_i32_1 = arith.constant 0 : i32
    return %c0_i32, %c0_i32_0 : i32, i32
  }
  func.func @transform_6(%arg0: i32, %arg1: i32) -> (i32, i32) {
    %c0_i32 = arith.constant 0 : i32
    %c0_i32_0 = arith.constant 0 : i32
    %c0_i32_1 = arith.constant 0 : i32
    return %c0_i32, %c0_i32_0 : i32, i32
  }
  func.func @transform_7(%arg0: i32, %arg1: i32) -> (i32, i32) {
    %c0_i32 = arith.constant 0 : i32
    %c0_i32_0 = arith.constant 0 : i32
    %c0_i32_1 = arith.constant 0 : i32
    return %c0_i32, %c0_i32_0 : i32, i32
  }
  func.func @transform_8(%arg0: i32, %arg1: i32) -> (i32, i32) {
    %c0_i32 = arith.constant 0 : i32
    %c0_i32_0 = arith.constant 0 : i32
    %c0_i32_1 = arith.constant 0 : i32
    return %c0_i32, %c0_i32_0 : i32, i32
  }
  func.func @transform_9(%arg0: i32, %arg1: i32) -> (i32, i32) {
    %c0_i32 = arith.constant 0 : i32
    %c0_i32_0 = arith.constant 0 : i32
    %c0_i32_1 = arith.constant 0 : i32
    return %c0_i32, %c0_i32_0 : i32, i32
  }
  func.func @transform_10(%arg0: i32, %arg1: i32) -> (i32, i32) {
    %c0_i32 = arith.constant 0 : i32
    %c0_i32_0 = arith.constant 0 : i32
    %c0_i32_1 = arith.constant 0 : i32
    return %c0_i32, %c0_i32_0 : i32, i32
  }
  func.func @transform_11(%arg0: i32, %arg1: i32) -> (i32, i32) {
    %c0_i32 = arith.constant 0 : i32
    %c0_i32_0 = arith.constant 0 : i32
    %c0_i32_1 = arith.constant 0 : i32
    return %c0_i32, %c0_i32_0 : i32, i32
  }
  func.func @transform_12(%arg0: i32, %arg1: i32) -> (i32, i32) {
    %c0_i32 = arith.constant 0 : i32
    %c0_i32_0 = arith.constant 0 : i32
    %c0_i32_1 = arith.constant 0 : i32
    return %c0_i32, %c0_i32_0 : i32, i32
  }
  func.func @transform_13(%arg0: i32, %arg1: i32) -> (i32, i32) {
    %c0_i32 = arith.constant 0 : i32
    %c0_i32_0 = arith.constant 0 : i32
    %c0_i32_1 = arith.constant 0 : i32
    return %c0_i32, %c0_i32_0 : i32, i32
  }
  func.func @transform_14(%arg0: i32, %arg1: i32) -> (i32, i32) {
    %c0_i32 = arith.constant 0 : i32
    %c0_i32_0 = arith.constant 0 : i32
    %c0_i32_1 = arith.constant 0 : i32
    return %c0_i32, %c0_i32_0 : i32, i32
  }
  func.func @transform_15(%arg0: i32, %arg1: i32) -> (i32, i32) {
    %c0_i32 = arith.constant 0 : i32
    %c0_i32_0 = arith.constant 0 : i32
    %c0_i32_1 = arith.constant 0 : i32
    return %c0_i32, %c0_i32_0 : i32, i32
  }
  func.func @transform_16(%arg0: i32, %arg1: i32) -> (i32, i32) {
    %c0_i32 = arith.constant 0 : i32
    %c0_i32_0 = arith.constant 0 : i32
    %c0_i32_1 = arith.constant 0 : i32
    return %c0_i32, %c0_i32_0 : i32, i32
  }
  func.func @transform_17(%arg0: i32, %arg1: i32) -> (i32, i32) {
    %c0_i32 = arith.constant 0 : i32
    %c0_i32_0 = arith.constant 0 : i32
    %c0_i32_1 = arith.constant 0 : i32
    return %c0_i32, %c0_i32_0 : i32, i32
  }
  func.func @transform_18(%arg0: i32, %arg1: i32) -> (i32, i32) {
    %c0_i32 = arith.constant 0 : i32
    %c0_i32_0 = arith.constant 0 : i32
    %c0_i32_1 = arith.constant 0 : i32
    return %c0_i32, %c0_i32_0 : i32, i32
  }
  func.func @transform_19(%arg0: i32, %arg1: i32) -> (i32, i32) {
    %c0_i32 = arith.constant 0 : i32
    %c0_i32_0 = arith.constant 0 : i32
    %c0_i32_1 = arith.constant 0 : i32
    return %c0_i32, %c0_i32_0 : i32, i32
  }
  func.func @transform_20(%arg0: i32, %arg1: i32) -> (i32, i32) {
    %c0_i32 = arith.constant 0 : i32
    %c0_i32_0 = arith.constant 0 : i32
    %c0_i32_1 = arith.constant 0 : i32
    return %c0_i32, %c0_i32_0 : i32, i32
  }
  func.func @transform_21(%arg0: i32, %arg1: i32) -> (i32, i32) {
    %c0_i32 = arith.constant 0 : i32
    %c0_i32_0 = arith.constant 0 : i32
    %c0_i32_1 = arith.constant 0 : i32
    return %c0_i32, %c0_i32_0 : i32, i32
  }
  func.func @transform_22(%arg0: i32, %arg1: i32) -> (i32, i32) {
    %c0_i32 = arith.constant 0 : i32
    %c0_i32_0 = arith.constant 0 : i32
    %c0_i32_1 = arith.constant 0 : i32
    return %c0_i32, %c0_i32_0 : i32, i32
  }
  func.func @transform_23(%arg0: i32, %arg1: i32) -> (i32, i32) {
    %c0_i32 = arith.constant 0 : i32
    %c0_i32_0 = arith.constant 0 : i32
    %c0_i32_1 = arith.constant 0 : i32
    return %c0_i32, %c0_i32_0 : i32, i32
  }
  func.func @transform_24(%arg0: i32, %arg1: i32) -> (i32, i32) {
    %c0_i32 = arith.constant 0 : i32
    %c0_i32_0 = arith.constant 0 : i32
    %c0_i32_1 = arith.constant 0 : i32
    return %c0_i32, %c0_i32_0 : i32, i32
  }
  func.func @transform_25(%arg0: i32, %arg1: i32) -> (i32, i32) {
    %c0_i32 = arith.constant 0 : i32
    %c0_i32_0 = arith.constant 0 : i32
    %c0_i32_1 = arith.constant 0 : i32
    return %c0_i32, %c0_i32_0 : i32, i32
  }
  func.func @transform_26(%arg0: i32, %arg1: i32) -> (i32, i32) {
    %c0_i32 = arith.constant 0 : i32
    %c0_i32_0 = arith.constant 0 : i32
    %c0_i32_1 = arith.constant 0 : i32
    return %c0_i32, %c0_i32_0 : i32, i32
  }
  func.func @transform_27(%arg0: i32, %arg1: i32) -> (i32, i32, i32) {
    %c0_i32 = arith.constant 0 : i32
    %c0_i32_0 = arith.constant 0 : i32
    return %arg0, %arg1, %c0_i32 : i32, i32, i32
  }
}

module attributes {stable_mosaic.version = 11 : i64} {
  func.func @kernel(%arg0: i32, %arg1: i32, %arg2: memref<1x8x32xf32, #tpu.memory_space<vmem>>, %arg3: memref<1x8x32xf32, #tpu.memory_space<vmem>>, %arg4: memref<1x8x32xf32, #tpu.memory_space<vmem>>, %arg5: memref<8x8xf32, #tpu.memory_space<vmem>>, %arg6: memref<1x1x8xf32, #tpu.memory_space<vmem>>, %arg7: memref<32x32xf32, #tpu.memory_space<vmem>>, %arg8: memref<1x32xf32, #tpu.memory_space<vmem>>, %arg9: memref<32x64xf32, #tpu.memory_space<vmem>>, %arg10: memref<1x64xf32, #tpu.memory_space<vmem>>, %arg11: memref<32x32xf32, #tpu.memory_space<vmem>>, %arg12: memref<1x32xf32, #tpu.memory_space<vmem>>, %arg13: memref<1x32xf32, #tpu.memory_space<vmem>>, %arg14: memref<1x32xf32, #tpu.memory_space<vmem>>, %arg15: memref<32x32xf32, #tpu.memory_space<vmem>>, %arg16: memref<1x32xf32, #tpu.memory_space<vmem>>, %arg17: memref<32x64xf32, #tpu.memory_space<vmem>>, %arg18: memref<1x64xf32, #tpu.memory_space<vmem>>, %arg19: memref<32x32xf32, #tpu.memory_space<vmem>>, %arg20: memref<1x32xf32, #tpu.memory_space<vmem>>, %arg21: memref<1x32xf32, #tpu.memory_space<vmem>>, %arg22: memref<1x32xf32, #tpu.memory_space<vmem>>, %arg23: memref<32x64xf32, #tpu.memory_space<vmem>>, %arg24: memref<1x64xf32, #tpu.memory_space<vmem>>, %arg25: memref<64x32xf32, #tpu.memory_space<vmem>>, %arg26: memref<1x32xf32, #tpu.memory_space<vmem>>, %arg27: memref<1x32xf32, #tpu.memory_space<vmem>>, %arg28: memref<1x32xf32, #tpu.memory_space<vmem>>, %arg29: memref<1x8x32xf32, #tpu.memory_space<vmem>>) attributes {dimension_semantics = [#tpu.dimension_semantics<parallel>, #tpu.dimension_semantics<parallel>], iteration_bounds = array<i64: 2, 1>, scalar_prefetch = 0 : i64, scratch_operands = 0 : i64, tpu.core_type = #tpu.core_type<tc>, window_params = [{transform_indices = @transform_0, window_bounds = array<i64: 1, 8, 32>}, {transform_indices = @transform_1, window_bounds = array<i64: 1, 8, 32>}, {transform_indices = @transform_2, window_bounds = array<i64: 1, 8, 32>}, {transform_indices = @transform_3, window_bounds = array<i64: 8, 8>}, {transform_indices = @transform_4, window_bounds = array<i64: 1, 1, 8>}, {pipeline_mode = #tpu.pipeline_mode<synchronous>, transform_indices = @transform_5, window_bounds = array<i64: 32, 32>}, {pipeline_mode = #tpu.pipeline_mode<synchronous>, transform_indices = @transform_6, window_bounds = array<i64: 1, 32>}, {pipeline_mode = #tpu.pipeline_mode<synchronous>, transform_indices = @transform_7, window_bounds = array<i64: 32, 64>}, {pipeline_mode = #tpu.pipeline_mode<synchronous>, transform_indices = @transform_8, window_bounds = array<i64: 1, 64>}, {pipeline_mode = #tpu.pipeline_mode<synchronous>, transform_indices = @transform_9, window_bounds = array<i64: 32, 32>}, {pipeline_mode = #tpu.pipeline_mode<synchronous>, transform_indices = @transform_10, window_bounds = array<i64: 1, 32>}, {pipeline_mode = #tpu.pipeline_mode<synchronous>, transform_indices = @transform_11, window_bounds = array<i64: 1, 32>}, {pipeline_mode = #tpu.pipeline_mode<synchronous>, transform_indices = @transform_12, window_bounds = array<i64: 1, 32>}, {pipeline_mode = #tpu.pipeline_mode<synchronous>, transform_indices = @transform_13, window_bounds = array<i64: 32, 32>}, {pipeline_mode = #tpu.pipeline_mode<synchronous>, transform_indices = @transform_14, window_bounds = array<i64: 1, 32>}, {pipeline_mode = #tpu.pipeline_mode<synchronous>, transform_indices = @transform_15, window_bounds = array<i64: 32, 64>}, {pipeline_mode = #tpu.pipeline_mode<synchronous>, transform_indices = @transform_16, window_bounds = array<i64: 1, 64>}, {pipeline_mode = #tpu.pipeline_mode<synchronous>, transform_indices = @transform_17, window_bounds = array<i64: 32, 32>}, {pipeline_mode = #tpu.pipeline_mode<synchronous>, transform_indices = @transform_18, window_bounds = array<i64: 1, 32>}, {pipeline_mode = #tpu.pipeline_mode<synchronous>, transform_indices = @transform_19, window_bounds = array<i64: 1, 32>}, {pipeline_mode = #tpu.pipeline_mode<synchronous>, transform_indices = @transform_20, window_bounds = array<i64: 1, 32>}, {pipeline_mode = #tpu.pipeline_mode<synchronous>, transform_indices = @transform_21, window_bounds = array<i64: 32, 64>}, {pipeline_mode = #tpu.pipeline_mode<synchronous>, transform_indices = @transform_22, window_bounds = array<i64: 1, 64>}, {pipeline_mode = #tpu.pipeline_mode<synchronous>, transform_indices = @transform_23, window_bounds = array<i64: 64, 32>}, {pipeline_mode = #tpu.pipeline_mode<synchronous>, transform_indices = @transform_24, window_bounds = array<i64: 1, 32>}, {pipeline_mode = #tpu.pipeline_mode<synchronous>, transform_indices = @transform_25, window_bounds = array<i64: 1, 32>}, {pipeline_mode = #tpu.pipeline_mode<synchronous>, transform_indices = @transform_26, window_bounds = array<i64: 1, 32>}, {transform_indices = @transform_27, window_bounds = array<i64: 1, 8, 32>}]} {
    %c0 = arith.constant 0 : index
    %c0_0 = arith.constant 0 : index
    %c0_1 = arith.constant 0 : index
    %0 = vector.load %arg2[%c0, %c0_0, %c0_1] : memref<1x8x32xf32, #tpu.memory_space<vmem>>, vector<1x8x32xf32>
    %1 = vector.shape_cast %0 : vector<1x8x32xf32> to vector<8x32xf32>
    %c0_2 = arith.constant 0 : index
    %c0_3 = arith.constant 0 : index
    %c0_4 = arith.constant 0 : index
    %2 = vector.load %arg3[%c0_2, %c0_3, %c0_4] : memref<1x8x32xf32, #tpu.memory_space<vmem>>, vector<1x8x32xf32>
    %3 = vector.shape_cast %2 : vector<1x8x32xf32> to vector<8x32xf32>
    %c0_5 = arith.constant 0 : index
    %c0_6 = arith.constant 0 : index
    %c0_7 = arith.constant 0 : index
    %4 = vector.load %arg4[%c0_5, %c0_6, %c0_7] : memref<1x8x32xf32, #tpu.memory_space<vmem>>, vector<1x8x32xf32>
    %5 = vector.shape_cast %4 : vector<1x8x32xf32> to vector<8x32xf32>
    %c0_8 = arith.constant 0 : index
    %c0_9 = arith.constant 0 : index
    %6 = vector.load %arg5[%c0_8, %c0_9] : memref<8x8xf32, #tpu.memory_space<vmem>>, vector<8x8xf32>
    %c0_10 = arith.constant 0 : index
    %c0_11 = arith.constant 0 : index
    %c0_12 = arith.constant 0 : index
    %7 = vector.load %arg6[%c0_10, %c0_11, %c0_12] : memref<1x1x8xf32, #tpu.memory_space<vmem>>, vector<1x1x8xf32>
    %8 = vector.shape_cast %7 : vector<1x1x8xf32> to vector<1x8xf32>
    %c0_13 = arith.constant 0 : index
    %c0_14 = arith.constant 0 : index
    %9 = vector.load %arg7[%c0_13, %c0_14] : memref<32x32xf32, #tpu.memory_space<vmem>>, vector<32x32xf32>
    %cst = arith.constant dense<0.000000e+00> : vector<8x32xf32>
    %10 = tpu.matmul %1, %9, %cst {dimension_numbers = #tpu.dot_dimension_numbers<[1], [0], [0], [1], [0, 0, 1, 1], [], []>, precision = #tpu.contract_precision<fp32>} : vector<8x32xf32>, vector<32x32xf32>, vector<8x32xf32> -> vector<8x32xf32>
    %c0_15 = arith.constant 0 : index
    %c0_16 = arith.constant 0 : index
    %11 = vector.load %arg8[%c0_15, %c0_16] : memref<1x32xf32, #tpu.memory_space<vmem>>, vector<1x32xf32>
    %12 = vector.broadcast %11 : vector<1x32xf32> to vector<8x32xf32>
    %13 = arith.addf %10, %12 : vector<8x32xf32>
    %14 = vector.shape_cast %13 : vector<8x32xf32> to vector<8x4x8xf32>
    %15 = tpu.transpose %14, [1, 0, 2] : vector<8x4x8xf32> -> vector<4x8x8xf32>
    %c0_17 = arith.constant 0 : index
    %c0_18 = arith.constant 0 : index
    %16 = vector.load %arg9[%c0_17, %c0_18] : memref<32x64xf32, #tpu.memory_space<vmem>>, vector<32x64xf32>
    %cst_19 = arith.constant dense<0.000000e+00> : vector<8x64xf32>
    %17 = tpu.matmul %3, %16, %cst_19 {dimension_numbers = #tpu.dot_dimension_numbers<[1], [0], [0], [1], [0, 0, 1, 1], [], []>, precision = #tpu.contract_precision<fp32>} : vector<8x32xf32>, vector<32x64xf32>, vector<8x64xf32> -> vector<8x64xf32>
    %c0_20 = arith.constant 0 : index
    %c0_21 = arith.constant 0 : index
    %18 = vector.load %arg10[%c0_20, %c0_21] : memref<1x64xf32, #tpu.memory_space<vmem>>, vector<1x64xf32>
    %19 = vector.broadcast %18 : vector<1x64xf32> to vector<8x64xf32>
    %20 = arith.addf %17, %19 : vector<8x64xf32>
    %21 = vector.shape_cast %20 : vector<8x64xf32> to vector<8x8x8xf32>
    %22 = tpu.transpose %21, [1, 0, 2] : vector<8x8x8xf32> -> vector<8x8x8xf32>
    %23 = vector.extract_strided_slice %22 {offsets = [0, 0, 0], sizes = [4, 8, 8], strides = [1, 1, 1]} : vector<8x8x8xf32> to vector<4x8x8xf32>
    %24 = vector.extract_strided_slice %22 {offsets = [4, 0, 0], sizes = [4, 8, 8], strides = [1, 1, 1]} : vector<8x8x8xf32> to vector<4x8x8xf32>
    "tpu.trace_start"() <{level = 10 : i32, message = "hqd,hkd->hqk"}> : () -> ()
    %cst_22 = arith.constant dense<0.000000e+00> : vector<4x8x8xf32>
    %25 = tpu.matmul %15, %23, %cst_22 {dimension_numbers = #tpu.dot_dimension_numbers<[2], [2], [1], [1], [0, 0, 0, 1, 1, 1], [0], [0]>, precision = #tpu.contract_precision<fp32>} : vector<4x8x8xf32>, vector<4x8x8xf32>, vector<4x8x8xf32> -> vector<4x8x8xf32>
    "tpu.trace_stop"() : () -> ()
    %26 = vector.shape_cast %6 : vector<8x8xf32> to vector<1x8x8xf32>
    %27 = vector.broadcast %26 : vector<1x8x8xf32> to vector<4x8x8xf32>
    %28 = arith.addf %25, %27 : vector<4x8x8xf32>
    %cst_23 = arith.constant dense<0xFF800000> : vector<4x8xf32>
    %29 = vector.multi_reduction <maximumf>, %28, %cst_23 [2] : vector<4x8x8xf32> to vector<4x8xf32>
    %30 = vector.shape_cast %29 : vector<4x8xf32> to vector<4x8x1xf32>
    %31 = vector.broadcast %30 : vector<4x8x1xf32> to vector<4x8x8xf32>
    %32 = arith.subf %28, %31 : vector<4x8x8xf32>
    %33 = math.exp %32 : vector<4x8x8xf32>
    %cst_24 = arith.constant dense<0.000000e+00> : vector<4x8xf32>
    %34 = vector.multi_reduction <add>, %33, %cst_24 [2] : vector<4x8x8xf32> to vector<4x8xf32>
    %35 = vector.shape_cast %34 : vector<4x8xf32> to vector<4x8x1xf32>
    %36 = tpu.reciprocal %35 {approx = true} : vector<4x8x1xf32> -> vector<4x8x1xf32>
    %37 = vector.broadcast %36 : vector<4x8x1xf32> to vector<4x8x8xf32>
    %38 = arith.mulf %33, %37 : vector<4x8x8xf32>
    "tpu.trace_start"() <{level = 10 : i32, message = "hqk,hkd->hqd"}> : () -> ()
    %cst_25 = arith.constant dense<0.000000e+00> : vector<4x8x8xf32>
    %39 = tpu.matmul %38, %24, %cst_25 {dimension_numbers = #tpu.dot_dimension_numbers<[2], [1], [1], [2], [0, 0, 0, 1, 1, 2], [0], [0]>, precision = #tpu.contract_precision<fp32>} : vector<4x8x8xf32>, vector<4x8x8xf32>, vector<4x8x8xf32> -> vector<4x8x8xf32>
    "tpu.trace_stop"() : () -> ()
    %40 = tpu.transpose %39, [1, 0, 2] : vector<4x8x8xf32> -> vector<8x4x8xf32>
    %41 = vector.shape_cast %40 : vector<8x4x8xf32> to vector<8x32xf32>
    %c0_26 = arith.constant 0 : index
    %c0_27 = arith.constant 0 : index
    %42 = vector.load %arg11[%c0_26, %c0_27] : memref<32x32xf32, #tpu.memory_space<vmem>>, vector<32x32xf32>
    %cst_28 = arith.constant dense<0.000000e+00> : vector<8x32xf32>
    %43 = tpu.matmul %41, %42, %cst_28 {dimension_numbers = #tpu.dot_dimension_numbers<[1], [0], [0], [1], [0, 0, 1, 1], [], []>, precision = #tpu.contract_precision<fp32>} : vector<8x32xf32>, vector<32x32xf32>, vector<8x32xf32> -> vector<8x32xf32>
    %c0_29 = arith.constant 0 : index
    %c0_30 = arith.constant 0 : index
    %44 = vector.load %arg12[%c0_29, %c0_30] : memref<1x32xf32, #tpu.memory_space<vmem>>, vector<1x32xf32>
    %45 = vector.broadcast %44 : vector<1x32xf32> to vector<8x32xf32>
    %46 = arith.addf %43, %45 : vector<8x32xf32>
    %47 = arith.addf %1, %46 : vector<8x32xf32>
    %c0_31 = arith.constant 0 : index
    %c0_32 = arith.constant 0 : index
    %48 = vector.load %arg13[%c0_31, %c0_32] : memref<1x32xf32, #tpu.memory_space<vmem>>, vector<1x32xf32>
    %c0_33 = arith.constant 0 : index
    %c0_34 = arith.constant 0 : index
    %49 = vector.load %arg14[%c0_33, %c0_34] : memref<1x32xf32, #tpu.memory_space<vmem>>, vector<1x32xf32>
    %cst_35 = arith.constant dense<0.000000e+00> : vector<8xf32>
    %50 = vector.multi_reduction <add>, %47, %cst_35 [1] : vector<8x32xf32> to vector<8xf32>
    %51 = vector.shape_cast %50 : vector<8xf32> to vector<8x1xf32>
    %cst_36 = arith.constant 3.200000e+01 : f32
    %52 = vector.broadcast %cst_36 : f32 to vector<8x1xf32>
    %53 = arith.divf %51, %52 : vector<8x1xf32>
    %54 = vector.broadcast %53 : vector<8x1xf32> to vector<8x32xf32>
    %55 = arith.subf %47, %54 : vector<8x32xf32>
    %56 = arith.mulf %55, %55 : vector<8x32xf32>
    %cst_37 = arith.constant dense<0.000000e+00> : vector<8xf32>
    %57 = vector.multi_reduction <add>, %56, %cst_37 [1] : vector<8x32xf32> to vector<8xf32>
    %58 = vector.shape_cast %57 : vector<8xf32> to vector<8x1xf32>
    %cst_38 = arith.constant 3.200000e+01 : f32
    %59 = vector.broadcast %cst_38 : f32 to vector<8x1xf32>
    %60 = arith.divf %58, %59 : vector<8x1xf32>
    %cst_39 = arith.constant 9.99999974E-6 : f32
    %61 = vector.broadcast %cst_39 : f32 to vector<8x1xf32>
    %62 = arith.addf %60, %61 : vector<8x1xf32>
    %63 = math.rsqrt %62 : vector<8x1xf32>
    %64 = vector.broadcast %63 : vector<8x1xf32> to vector<8x32xf32>
    %65 = arith.mulf %55, %64 : vector<8x32xf32>
    %66 = vector.broadcast %48 : vector<1x32xf32> to vector<8x32xf32>
    %67 = arith.mulf %65, %66 : vector<8x32xf32>
    %68 = vector.broadcast %49 : vector<1x32xf32> to vector<8x32xf32>
    %69 = arith.addf %67, %68 : vector<8x32xf32>
    %c0_40 = arith.constant 0 : index
    %c0_41 = arith.constant 0 : index
    %70 = vector.load %arg15[%c0_40, %c0_41] : memref<32x32xf32, #tpu.memory_space<vmem>>, vector<32x32xf32>
    %cst_42 = arith.constant dense<0.000000e+00> : vector<8x32xf32>
    %71 = tpu.matmul %69, %70, %cst_42 {dimension_numbers = #tpu.dot_dimension_numbers<[1], [0], [0], [1], [0, 0, 1, 1], [], []>, precision = #tpu.contract_precision<fp32>} : vector<8x32xf32>, vector<32x32xf32>, vector<8x32xf32> -> vector<8x32xf32>
    %c0_43 = arith.constant 0 : index
    %c0_44 = arith.constant 0 : index
    %72 = vector.load %arg16[%c0_43, %c0_44] : memref<1x32xf32, #tpu.memory_space<vmem>>, vector<1x32xf32>
    %73 = vector.broadcast %72 : vector<1x32xf32> to vector<8x32xf32>
    %74 = arith.addf %71, %73 : vector<8x32xf32>
    %75 = vector.shape_cast %74 : vector<8x32xf32> to vector<8x4x8xf32>
    %76 = tpu.transpose %75, [1, 0, 2] : vector<8x4x8xf32> -> vector<4x8x8xf32>
    %c0_45 = arith.constant 0 : index
    %c0_46 = arith.constant 0 : index
    %77 = vector.load %arg17[%c0_45, %c0_46] : memref<32x64xf32, #tpu.memory_space<vmem>>, vector<32x64xf32>
    %cst_47 = arith.constant dense<0.000000e+00> : vector<8x64xf32>
    %78 = tpu.matmul %5, %77, %cst_47 {dimension_numbers = #tpu.dot_dimension_numbers<[1], [0], [0], [1], [0, 0, 1, 1], [], []>, precision = #tpu.contract_precision<fp32>} : vector<8x32xf32>, vector<32x64xf32>, vector<8x64xf32> -> vector<8x64xf32>
    %c0_48 = arith.constant 0 : index
    %c0_49 = arith.constant 0 : index
    %79 = vector.load %arg18[%c0_48, %c0_49] : memref<1x64xf32, #tpu.memory_space<vmem>>, vector<1x64xf32>
    %80 = vector.broadcast %79 : vector<1x64xf32> to vector<8x64xf32>
    %81 = arith.addf %78, %80 : vector<8x64xf32>
    %82 = vector.shape_cast %81 : vector<8x64xf32> to vector<8x8x8xf32>
    %83 = tpu.transpose %82, [1, 0, 2] : vector<8x8x8xf32> -> vector<8x8x8xf32>
    %84 = vector.extract_strided_slice %83 {offsets = [0, 0, 0], sizes = [4, 8, 8], strides = [1, 1, 1]} : vector<8x8x8xf32> to vector<4x8x8xf32>
    %85 = vector.extract_strided_slice %83 {offsets = [4, 0, 0], sizes = [4, 8, 8], strides = [1, 1, 1]} : vector<8x8x8xf32> to vector<4x8x8xf32>
    "tpu.trace_start"() <{level = 10 : i32, message = "hqd,hkd->hqk"}> : () -> ()
    %cst_50 = arith.constant dense<0.000000e+00> : vector<4x8x8xf32>
    %86 = tpu.matmul %76, %84, %cst_50 {dimension_numbers = #tpu.dot_dimension_numbers<[2], [2], [1], [1], [0, 0, 0, 1, 1, 1], [0], [0]>, precision = #tpu.contract_precision<fp32>} : vector<4x8x8xf32>, vector<4x8x8xf32>, vector<4x8x8xf32> -> vector<4x8x8xf32>
    "tpu.trace_stop"() : () -> ()
    %87 = vector.shape_cast %8 : vector<1x8xf32> to vector<1x1x8xf32>
    %88 = vector.broadcast %87 : vector<1x1x8xf32> to vector<4x8x8xf32>
    %89 = arith.addf %86, %88 : vector<4x8x8xf32>
    %cst_51 = arith.constant dense<0xFF800000> : vector<4x8xf32>
    %90 = vector.multi_reduction <maximumf>, %89, %cst_51 [2] : vector<4x8x8xf32> to vector<4x8xf32>
    %91 = vector.shape_cast %90 : vector<4x8xf32> to vector<4x8x1xf32>
    %92 = vector.broadcast %91 : vector<4x8x1xf32> to vector<4x8x8xf32>
    %93 = arith.subf %89, %92 : vector<4x8x8xf32>
    %94 = math.exp %93 : vector<4x8x8xf32>
    %cst_52 = arith.constant dense<0.000000e+00> : vector<4x8xf32>
    %95 = vector.multi_reduction <add>, %94, %cst_52 [2] : vector<4x8x8xf32> to vector<4x8xf32>
    %96 = vector.shape_cast %95 : vector<4x8xf32> to vector<4x8x1xf32>
    %97 = tpu.reciprocal %96 {approx = true} : vector<4x8x1xf32> -> vector<4x8x1xf32>
    %98 = vector.broadcast %97 : vector<4x8x1xf32> to vector<4x8x8xf32>
    %99 = arith.mulf %94, %98 : vector<4x8x8xf32>
    "tpu.trace_start"() <{level = 10 : i32, message = "hqk,hkd->hqd"}> : () -> ()
    %cst_53 = arith.constant dense<0.000000e+00> : vector<4x8x8xf32>
    %100 = tpu.matmul %99, %85, %cst_53 {dimension_numbers = #tpu.dot_dimension_numbers<[2], [1], [1], [2], [0, 0, 0, 1, 1, 2], [0], [0]>, precision = #tpu.contract_precision<fp32>} : vector<4x8x8xf32>, vector<4x8x8xf32>, vector<4x8x8xf32> -> vector<4x8x8xf32>
    "tpu.trace_stop"() : () -> ()
    %101 = tpu.transpose %100, [1, 0, 2] : vector<4x8x8xf32> -> vector<8x4x8xf32>
    %102 = vector.shape_cast %101 : vector<8x4x8xf32> to vector<8x32xf32>
    %c0_54 = arith.constant 0 : index
    %c0_55 = arith.constant 0 : index
    %103 = vector.load %arg19[%c0_54, %c0_55] : memref<32x32xf32, #tpu.memory_space<vmem>>, vector<32x32xf32>
    %cst_56 = arith.constant dense<0.000000e+00> : vector<8x32xf32>
    %104 = tpu.matmul %102, %103, %cst_56 {dimension_numbers = #tpu.dot_dimension_numbers<[1], [0], [0], [1], [0, 0, 1, 1], [], []>, precision = #tpu.contract_precision<fp32>} : vector<8x32xf32>, vector<32x32xf32>, vector<8x32xf32> -> vector<8x32xf32>
    %c0_57 = arith.constant 0 : index
    %c0_58 = arith.constant 0 : index
    %105 = vector.load %arg20[%c0_57, %c0_58] : memref<1x32xf32, #tpu.memory_space<vmem>>, vector<1x32xf32>
    %106 = vector.broadcast %105 : vector<1x32xf32> to vector<8x32xf32>
    %107 = arith.addf %104, %106 : vector<8x32xf32>
    %108 = arith.addf %69, %107 : vector<8x32xf32>
    %c0_59 = arith.constant 0 : index
    %c0_60 = arith.constant 0 : index
    %109 = vector.load %arg21[%c0_59, %c0_60] : memref<1x32xf32, #tpu.memory_space<vmem>>, vector<1x32xf32>
    %c0_61 = arith.constant 0 : index
    %c0_62 = arith.constant 0 : index
    %110 = vector.load %arg22[%c0_61, %c0_62] : memref<1x32xf32, #tpu.memory_space<vmem>>, vector<1x32xf32>
    %cst_63 = arith.constant dense<0.000000e+00> : vector<8xf32>
    %111 = vector.multi_reduction <add>, %108, %cst_63 [1] : vector<8x32xf32> to vector<8xf32>
    %112 = vector.shape_cast %111 : vector<8xf32> to vector<8x1xf32>
    %cst_64 = arith.constant 3.200000e+01 : f32
    %113 = vector.broadcast %cst_64 : f32 to vector<8x1xf32>
    %114 = arith.divf %112, %113 : vector<8x1xf32>
    %115 = vector.broadcast %114 : vector<8x1xf32> to vector<8x32xf32>
    %116 = arith.subf %108, %115 : vector<8x32xf32>
    %117 = arith.mulf %116, %116 : vector<8x32xf32>
    %cst_65 = arith.constant dense<0.000000e+00> : vector<8xf32>
    %118 = vector.multi_reduction <add>, %117, %cst_65 [1] : vector<8x32xf32> to vector<8xf32>
    %119 = vector.shape_cast %118 : vector<8xf32> to vector<8x1xf32>
    %cst_66 = arith.constant 3.200000e+01 : f32
    %120 = vector.broadcast %cst_66 : f32 to vector<8x1xf32>
    %121 = arith.divf %119, %120 : vector<8x1xf32>
    %cst_67 = arith.constant 9.99999974E-6 : f32
    %122 = vector.broadcast %cst_67 : f32 to vector<8x1xf32>
    %123 = arith.addf %121, %122 : vector<8x1xf32>
    %124 = math.rsqrt %123 : vector<8x1xf32>
    %125 = vector.broadcast %124 : vector<8x1xf32> to vector<8x32xf32>
    %126 = arith.mulf %116, %125 : vector<8x32xf32>
    %127 = vector.broadcast %109 : vector<1x32xf32> to vector<8x32xf32>
    %128 = arith.mulf %126, %127 : vector<8x32xf32>
    %129 = vector.broadcast %110 : vector<1x32xf32> to vector<8x32xf32>
    %130 = arith.addf %128, %129 : vector<8x32xf32>
    %c0_68 = arith.constant 0 : index
    %c0_69 = arith.constant 0 : index
    %131 = vector.load %arg23[%c0_68, %c0_69] : memref<32x64xf32, #tpu.memory_space<vmem>>, vector<32x64xf32>
    %cst_70 = arith.constant dense<0.000000e+00> : vector<8x64xf32>
    %132 = tpu.matmul %130, %131, %cst_70 {dimension_numbers = #tpu.dot_dimension_numbers<[1], [0], [0], [1], [0, 0, 1, 1], [], []>, precision = #tpu.contract_precision<fp32>} : vector<8x32xf32>, vector<32x64xf32>, vector<8x64xf32> -> vector<8x64xf32>
    %c0_71 = arith.constant 0 : index
    %c0_72 = arith.constant 0 : index
    %133 = vector.load %arg24[%c0_71, %c0_72] : memref<1x64xf32, #tpu.memory_space<vmem>>, vector<1x64xf32>
    %134 = vector.broadcast %133 : vector<1x64xf32> to vector<8x64xf32>
    %135 = arith.addf %132, %134 : vector<8x64xf32>
    %cst_73 = arith.constant 0.000000e+00 : f32
    %136 = vector.broadcast %cst_73 : f32 to vector<8x64xf32>
    %137 = arith.maximumf %135, %136 : vector<8x64xf32>
    %c0_74 = arith.constant 0 : index
    %c0_75 = arith.constant 0 : index
    %138 = vector.load %arg25[%c0_74, %c0_75] : memref<64x32xf32, #tpu.memory_space<vmem>>, vector<64x32xf32>
    %cst_76 = arith.constant dense<0.000000e+00> : vector<8x32xf32>
    %139 = tpu.matmul %137, %138, %cst_76 {dimension_numbers = #tpu.dot_dimension_numbers<[1], [0], [0], [1], [0, 0, 1, 1], [], []>, precision = #tpu.contract_precision<fp32>} : vector<8x64xf32>, vector<64x32xf32>, vector<8x32xf32> -> vector<8x32xf32>
    %c0_77 = arith.constant 0 : index
    %c0_78 = arith.constant 0 : index
    %140 = vector.load %arg26[%c0_77, %c0_78] : memref<1x32xf32, #tpu.memory_space<vmem>>, vector<1x32xf32>
    %141 = vector.broadcast %140 : vector<1x32xf32> to vector<8x32xf32>
    %142 = arith.addf %139, %141 : vector<8x32xf32>
    %143 = arith.addf %130, %142 : vector<8x32xf32>
    %c0_79 = arith.constant 0 : index
    %c0_80 = arith.constant 0 : index
    %144 = vector.load %arg27[%c0_79, %c0_80] : memref<1x32xf32, #tpu.memory_space<vmem>>, vector<1x32xf32>
    %c0_81 = arith.constant 0 : index
    %c0_82 = arith.constant 0 : index
    %145 = vector.load %arg28[%c0_81, %c0_82] : memref<1x32xf32, #tpu.memory_space<vmem>>, vector<1x32xf32>
    %cst_83 = arith.constant dense<0.000000e+00> : vector<8xf32>
    %146 = vector.multi_reduction <add>, %143, %cst_83 [1] : vector<8x32xf32> to vector<8xf32>
    %147 = vector.shape_cast %146 : vector<8xf32> to vector<8x1xf32>
    %cst_84 = arith.constant 3.200000e+01 : f32
    %148 = vector.broadcast %cst_84 : f32 to vector<8x1xf32>
    %149 = arith.divf %147, %148 : vector<8x1xf32>
    %150 = vector.broadcast %149 : vector<8x1xf32> to vector<8x32xf32>
    %151 = arith.subf %143, %150 : vector<8x32xf32>
    %152 = arith.mulf %151, %151 : vector<8x32xf32>
    %cst_85 = arith.constant dense<0.000000e+00> : vector<8xf32>
    %153 = vector.multi_reduction <add>, %152, %cst_85 [1] : vector<8x32xf32> to vector<8xf32>
    %154 = vector.shape_cast %153 : vector<8xf32> to vector<8x1xf32>
    %cst_86 = arith.constant 3.200000e+01 : f32
    %155 = vector.broadcast %cst_86 : f32 to vector<8x1xf32>
    %156 = arith.divf %154, %155 : vector<8x1xf32>
    %cst_87 = arith.constant 9.99999974E-6 : f32
    %157 = vector.broadcast %cst_87 : f32 to vector<8x1xf32>
    %158 = arith.addf %156, %157 : vector<8x1xf32>
    %159 = math.rsqrt %158 : vector<8x1xf32>
    %160 = vector.broadcast %159 : vector<8x1xf32> to vector<8x32xf32>
    %161 = arith.mulf %151, %160 : vector<8x32xf32>
    %162 = vector.broadcast %144 : vector<1x32xf32> to vector<8x32xf32>
    %163 = arith.mulf %161, %162 : vector<8x32xf32>
    %164 = vector.broadcast %145 : vector<1x32xf32> to vector<8x32xf32>
    %165 = arith.addf %163, %164 : vector<8x32xf32>
    %c0_88 = arith.constant 0 : index
    %c0_89 = arith.constant 0 : index
    %c0_90 = arith.constant 0 : index
    %166 = vector.load %arg29[%c0_88, %c0_89, %c0_90] : memref<1x8x32xf32, #tpu.memory_space<vmem>>, vector<1x8x32xf32>
    %167 = vector.shape_cast %166 : vector<1x8x32xf32> to vector<8x32xf32>
    %168 = vector.shape_cast %165 : vector<8x32xf32> to vector<1x8x32xf32>
    tpu.vector_store %arg29[%c0_88, %c0_89, %c0_90], %168 {strides = array<i32>} : memref<1x8x32xf32, #tpu.memory_space<vmem>>, vector<1x8x32xf32>,
    return
  }
  func.func @transform_0(%arg0: i32, %arg1: i32) -> (i32, i32, i32) {
    %c0_i32 = arith.constant 0 : i32
    %c0_i32_0 = arith.constant 0 : i32
    return %arg0, %arg1, %c0_i32 : i32, i32, i32
  }
  func.func @transform_1(%arg0: i32, %arg1: i32) -> (i32, i32, i32) {
    %c0_i32 = arith.constant 0 : i32
    %c0_i32_0 = arith.constant 0 : i32
    %c0_i32_1 = arith.constant 0 : i32
    return %arg0, %c0_i32, %c0_i32_0 : i32, i32, i32
  }
  func.func @transform_2(%arg0: i32, %arg1: i32) -> (i32, i32, i32) {
    %c0_i32 = arith.constant 0 : i32
    %c0_i32_0 = arith.constant 0 : i32
    %c0_i32_1 = arith.constant 0 : i32
    return %arg0, %c0_i32, %c0_i32_0 : i32, i32, i32
  }
  func.func @transform_3(%arg0: i32, %arg1: i32) -> (i32, i32) {
    %c0_i32 = arith.constant 0 : i32
    %c0_i32_0 = arith.constant 0 : i32
    return %arg1, %c0_i32 : i32, i32
  }
  func.func @transform_4(%arg0: i32, %arg1: i32) -> (i32, i32, i32) {
    %c0_i32 = arith.constant 0 : i32
    %c0_i32_0 = arith.constant 0 : i32
    %c0_i32_1 = arith.constant 0 : i32
    return %arg0, %c0_i32, %c0_i32_0 : i32, i32, i32
  }
  func.func @transform_5(%arg0: i32, %arg1: i32) -> (i32, i32) {
    %c0_i32 = arith.constant 0 : i32
    %c0_i32_0 = arith.constant 0 : i32
    %c0_i32_1 = arith.constant 0 : i32
    return %c0_i32, %c0_i32_0 : i32, i32
  }
  func.func @transform_6(%arg0: i32, %arg1: i32) -> (i32, i32) {
    %c0_i32 = arith.constant 0 : i32
    %c0_i32_0 = arith.constant 0 : i32
    %c0_i32_1 = arith.constant 0 : i32
    return %c0_i32, %c0_i32_0 : i32, i32
  }
  func.func @transform_7(%arg0: i32, %arg1: i32) -> (i32, i32) {
    %c0_i32 = arith.constant 0 : i32
    %c0_i32_0 = arith.constant 0 : i32
    %c0_i32_1 = arith.constant 0 : i32
    return %c0_i32, %c0_i32_0 : i32, i32
  }
  func.func @transform_8(%arg0: i32, %arg1: i32) -> (i32, i32) {
    %c0_i32 = arith.constant 0 : i32
    %c0_i32_0 = arith.constant 0 : i32
    %c0_i32_1 = arith.constant 0 : i32
    return %c0_i32, %c0_i32_0 : i32, i32
  }
  func.func @transform_9(%arg0: i32, %arg1: i32) -> (i32, i32) {
    %c0_i32 = arith.constant 0 : i32
    %c0_i32_0 = arith.constant 0 : i32
    %c0_i32_1 = arith.constant 0 : i32
    return %c0_i32, %c0_i32_0 : i32, i32
  }
  func.func @transform_10(%arg0: i32, %arg1: i32) -> (i32, i32) {
    %c0_i32 = arith.constant 0 : i32
    %c0_i32_0 = arith.constant 0 : i32
    %c0_i32_1 = arith.constant 0 : i32
    return %c0_i32, %c0_i32_0 : i32, i32
  }
  func.func @transform_11(%arg0: i32, %arg1: i32) -> (i32, i32) {
    %c0_i32 = arith.constant 0 : i32
    %c0_i32_0 = arith.constant 0 : i32
    %c0_i32_1 = arith.constant 0 : i32
    return %c0_i32, %c0_i32_0 : i32, i32
  }
  func.func @transform_12(%arg0: i32, %arg1: i32) -> (i32, i32) {
    %c0_i32 = arith.constant 0 : i32
    %c0_i32_0 = arith.constant 0 : i32
    %c0_i32_1 = arith.constant 0 : i32
    return %c0_i32, %c0_i32_0 : i32, i32
  }
  func.func @transform_13(%arg0: i32, %arg1: i32) -> (i32, i32) {
    %c0_i32 = arith.constant 0 : i32
    %c0_i32_0 = arith.constant 0 : i32
    %c0_i32_1 = arith.constant 0 : i32
    return %c0_i32, %c0_i32_0 : i32, i32
  }
  func.func @transform_14(%arg0: i32, %arg1: i32) -> (i32, i32) {
    %c0_i32 = arith.constant 0 : i32
    %c0_i32_0 = arith.constant 0 : i32
    %c0_i32_1 = arith.constant 0 : i32
    return %c0_i32, %c0_i32_0 : i32, i32
  }
  func.func @transform_15(%arg0: i32, %arg1: i32) -> (i32, i32) {
    %c0_i32 = arith.constant 0 : i32
    %c0_i32_0 = arith.constant 0 : i32
    %c0_i32_1 = arith.constant 0 : i32
    return %c0_i32, %c0_i32_0 : i32, i32
  }
  func.func @transform_16(%arg0: i32, %arg1: i32) -> (i32, i32) {
    %c0_i32 = arith.constant 0 : i32
    %c0_i32_0 = arith.constant 0 : i32
    %c0_i32_1 = arith.constant 0 : i32
    return %c0_i32, %c0_i32_0 : i32, i32
  }
  func.func @transform_17(%arg0: i32, %arg1: i32) -> (i32, i32) {
    %c0_i32 = arith.constant 0 : i32
    %c0_i32_0 = arith.constant 0 : i32
    %c0_i32_1 = arith.constant 0 : i32
    return %c0_i32, %c0_i32_0 : i32, i32
  }
  func.func @transform_18(%arg0: i32, %arg1: i32) -> (i32, i32) {
    %c0_i32 = arith.constant 0 : i32
    %c0_i32_0 = arith.constant 0 : i32
    %c0_i32_1 = arith.constant 0 : i32
    return %c0_i32, %c0_i32_0 : i32, i32
  }
  func.func @transform_19(%arg0: i32, %arg1: i32) -> (i32, i32) {
    %c0_i32 = arith.constant 0 : i32
    %c0_i32_0 = arith.constant 0 : i32
    %c0_i32_1 = arith.constant 0 : i32
    return %c0_i32, %c0_i32_0 : i32, i32
  }
  func.func @transform_20(%arg0: i32, %arg1: i32) -> (i32, i32) {
    %c0_i32 = arith.constant 0 : i32
    %c0_i32_0 = arith.constant 0 : i32
    %c0_i32_1 = arith.constant 0 : i32
    return %c0_i32, %c0_i32_0 : i32, i32
  }
  func.func @transform_21(%arg0: i32, %arg1: i32) -> (i32, i32) {
    %c0_i32 = arith.constant 0 : i32
    %c0_i32_0 = arith.constant 0 : i32
    %c0_i32_1 = arith.constant 0 : i32
    return %c0_i32, %c0_i32_0 : i32, i32
  }
  func.func @transform_22(%arg0: i32, %arg1: i32) -> (i32, i32) {
    %c0_i32 = arith.constant 0 : i32
    %c0_i32_0 = arith.constant 0 : i32
    %c0_i32_1 = arith.constant 0 : i32
    return %c0_i32, %c0_i32_0 : i32, i32
  }
  func.func @transform_23(%arg0: i32, %arg1: i32) -> (i32, i32) {
    %c0_i32 = arith.constant 0 : i32
    %c0_i32_0 = arith.constant 0 : i32
    %c0_i32_1 = arith.constant 0 : i32
    return %c0_i32, %c0_i32_0 : i32, i32
  }
  func.func @transform_24(%arg0: i32, %arg1: i32) -> (i32, i32) {
    %c0_i32 = arith.constant 0 : i32
    %c0_i32_0 = arith.constant 0 : i32
    %c0_i32_1 = arith.constant 0 : i32
    return %c0_i32, %c0_i32_0 : i32, i32
  }
  func.func @transform_25(%arg0: i32, %arg1: i32) -> (i32, i32) {
    %c0_i32 = arith.constant 0 : i32
    %c0_i32_0 = arith.constant 0 : i32
    %c0_i32_1 = arith.constant 0 : i32
    return %c0_i32, %c0_i32_0 : i32, i32
  }
  func.func @transform_26(%arg0: i32, %arg1: i32) -> (i32, i32) {
    %c0_i32 = arith.constant 0 : i32
    %c0_i32_0 = arith.constant 0 : i32
    %c0_i32_1 = arith.constant 0 : i32
    return %c0_i32, %c0_i32_0 : i32, i32
  }
  func.func @transform_27(%arg0: i32, %arg1: i32) -> (i32, i32, i32) {
    %c0_i32 = arith.constant 0 : i32
    %c0_i32_0 = arith.constant 0 : i32
    return %arg0, %arg1, %c0_i32 : i32, i32, i32
  }
}

</mosaic_0001>

<bundles_post_ra>
// kernel: decoder_forward.3
= control target key start
LH: loop header
LB: loop body
LE: loop exit
PB: predicated region body
PF: predicated region fallthrough
CT: control target
= control target key end

     0   :  { %s17688_s0 = inlined_call_operand.vmem [shape: f32[2,8,32], index: 0, kind: input, shape index: {}, may-alias: {0,1}]   ;;  %s17689_s1 = inlined_call_operand.vmem [shape: f32[2,8,32], index: 1, kind: input, shape index: {}, may-alias: {0,1}]   ;;  %s17690_s2 = inlined_call_operand.vmem [shape: f32[2,8,32], index: 2, kind: input, shape index: {}]   ;;  %s17691_s3 = inlined_call_operand.vmem [shape: f32[8,8], index: 3, kind: input, shape index: {}]   ;;  %s17692_s4 = inlined_call_operand.vmem [shape: f32[2,1,8], index: 4, kind: input, shape index: {}]   ;;  %s17693_s5 = inlined_call_operand.vmem [shape: f32[32,32], index: 5, kind: input, shape index: {}]   ;;  %s17694_s6 = inlined_call_operand.vmem [shape: f32[1,32], index: 6, kind: input, shape index: {}]   ;;  %s17695_s7 = inlined_call_operand.vmem [shape: f32[32,64], index: 7, kind: input, shape index: {}]   ;;  %s17696_s8 = inlined_call_operand.vmem [shape: f32[1,64], index: 8, kind: input, shape index: {}]   ;;  %s17697_s9 = inlined_call_operand.vmem [shape: f32[32,32], index: 9, kind: input, shape index: {}]   ;;  %s17698_s10 = inlined_call_operand.vmem [shape: f32[1,32], index: 10, kind: input, shape index: {}]   ;;  %s17699_s11 = inlined_call_operand.vmem [shape: f32[1,32], index: 11, kind: input, shape index: {}]   ;;  %s17700_s12 = inlined_call_operand.vmem [shape: f32[1,32], index: 12, kind: input, shape index: {}]   ;;  %s17701_s13 = inlined_call_operand.vmem [shape: f32[32,32], index: 13, kind: input, shape index: {}]   ;;  %s17702_s14 = inlined_call_operand.vmem [shape: f32[1,32], index: 14, kind: input, shape index: {}]   ;;  %s17703_s15 = inlined_call_operand.vmem [shape: f32[32,64], index: 15, kind: input, shape index: {}]   ;;  %s17704_s16 = inlined_call_operand.vmem [shape: f32[1,64], index: 16, kind: input, shape index: {}]   ;;  %s17705_s17 = inlined_call_operand.vmem [shape: f32[32,32], index: 17, kind: input, shape index: {}]   ;;  %s17706_s18 = inlined_call_operand.vmem [shape: f32[1,32], index: 18, kind: input, shape index: {}]   ;;  %s17707_s19 = inlined_call_operand.vmem [shape: f32[1,32], index: 19, kind: input, shape index: {}]   ;;  %s17708_s20 = inlined_call_operand.vmem [shape: f32[1,32], index: 20, kind: input, shape index: {}]   ;;  %s17709_s21 = inlined_call_operand.vmem [shape: f32[32,64], index: 21, kind: input, shape index: {}]   ;;  %s17710_s22 = inlined_call_operand.vmem [shape: f32[1,64], index: 22, kind: input, shape index: {}]   ;;  %s17711_s23 = inlined_call_operand.vmem [shape: f32[64,32], index: 23, kind: input, shape index: {}]   ;;  %s17712_s24 = inlined_call_operand.vmem [shape: f32[1,32], index: 24, kind: input, shape index: {}]   ;;  %s17713_s25 = inlined_call_operand.vmem [shape: f32[1,32], index: 25, kind: input, shape index: {}]   ;;  %s17714_s26 = inlined_call_operand.vmem [shape: f32[1,32], index: 26, kind: input, shape index: {}]   ;;  %s17715_s27 = inlined_call_operand.hbm [shape: f32[2,8,32], index: 27, kind: output, shape index: {}]  }
   0x1   :  { %17741 = sst [smem:[#allocation11_spill]] %s17688_s0 }
   0x2   :  { %17742 = sst [smem:[#allocation12_spill]] %s17689_s1 }
   0x3   :  { %17743 = sst [smem:[#allocation13_spill]] %s17690_s2 }
   0x4   :  { %17744 = sst [smem:[#allocation14_spill]] %s17691_s3 }
   0x5   :  { %17745 = sst [smem:[#allocation15_spill]] %s17692_s4 }
   0x6   :  { %17746 = sst [smem:[#allocation16_spill]] %s17693_s5 }
   0x7   :  { %17747 = sst [smem:[#allocation17_spill]] %s17694_s6 }
   0x8   :  { %17748 = sst [smem:[#allocation18_spill]] %s17695_s7 }
   0x9   :  { %17749 = sst [smem:[#allocation19_spill]] %s17696_s8 }
   0xa   :  { %17750 = sst [smem:[#allocation20_spill]] %s17697_s9 }
   0xb   :  { %17751 = sst [smem:[#allocation21_spill]] %s17698_s10 }
   0xc   :  { %17752 = sst [smem:[#allocation22_spill]] %s17699_s11 }
   0xd   :  { %17753 = sst [smem:[#allocation23_spill]] %s17700_s12 }
   0xe   :  { %17754 = sst [smem:[#allocation24_spill]] %s17701_s13 }
   0xf   :  { %17755 = sst [smem:[#allocation25_spill]] %s17713_s25 }
  0x10   :  { %17756 = sst [smem:[#allocation26_spill]] %s17714_s26 }
  0x11   :  { %17757 = sst [smem:[#allocation27_spill]] %s17715_s27 }
  0x12   :  { %32 = vsyncpa [#allocation3], 0 }
  0x13   :  { %34 = vsyncpa [#allocation3 + $0x1], 0  ;;  %s16129_s7 = smov 0   ;;  %s16131_s4 = smov 0  }
  0x14   :  { %s16133_s8 = smov 0   ;;  %s16135_s30 = smov 0  }
  0x15   :  { %s16137_s9 = smov 0   ;;  %s16139_s5 = smov 0  }
  0x16 LB: > { %17758 = sst [smem:[#allocation5_spill]] %s15951_s7  ;;  %s13673_s28 = sadd.s32 4294967295, %s15971_s5   ;;  %s15971_s5 = sphi %s16139_s5, %s40_s5   ;;  %s15967_s9 = sphi %s16137_s9, %s17801_s9   ;;  %s15963_s30 = sphi %s16135_s30, %s17804_s30   ;;  %s15959_s8 = sphi %s16133_s8, %s17799_s8   ;;  %s15955_s4 = sphi %s16131_s4, %s17803_s4   ;;  %s15951_s7 = sphi %s16129_s7, %s17802_s7  }
  0x17   : > { %17759 = sst [smem:[#allocation6_spill]] %s15959_s8  ;;  %s13674_s0 = sadd.s32 4294967294, %s15971_s5  }
  0x18   : > { %17760 = sst [smem:[#allocation7_spill]] %s15967_s9  ;;  %s52_s10 = sadd.s32 1, %s15967_s9 }
  0x19   : > { %s655_s29 = sadd.s32 1, %s15959_s8  ;;  %p54_p0 = scmp.ge.s32.totalorder %s52_s10, 2 }
  0x1a   : > { %p665_p1 = scmp.ne.s32.totalorder %s15959_s8, %s15955_s4  ;;  %p666_p2 = scmp.eq.s32.totalorder %s13673_s28, 1 }
  0x1b   : > { %p671_p3 = scmp.ne.s32.totalorder %s15955_s4, %s15951_s7  ;;  %s17806_s10 = smov (%p54_p0, %s52_s10), 0 }
  0x1c   : > { %17761 = sst [smem:[#allocation8_spill]] %s17806_s10  ;;  %p16169_p4 = por %p666_p2, %p665_p1 }
  0x1d   : > { %p672_p5 = scmp.eq.s32.totalorder %s13674_s0, 1  ;;  %s650_s6 = ssub.s32 %s15967_s9, %s17806_s10 }
  0x1e   : > { %p13678_p6 = scmp.ge.s32.totalorder %s15971_s5, 1  ;;  %p653_p7 = scmp.eq.s32.totalorder %s650_s6, 0 }
  0x1f   : > { %p16176_p8 = por %p672_p5, %p671_p3  ;;  %p793_p9 = scmp.lt.s32.totalorder %s15971_s5, 3 }
  0x20   : > { %s16182_s2 = scalar_select %p653_p7, %s15959_s8, %s655_s29  }
  0x21   : > { %s17763_s11 = scalar_select %p16176_p8, 1, 0 }
  0x22   : > { %17765 = sst [smem:[#allocation10_spill]] %s16182_s2  ;;  %p794_p10 = pnand %p13678_p6, %p793_p9 }
  0x23   : > { %17764 = sst [smem:[#allocation9_spill]] %s17763_s11  ;;  %s17766_s7 = sld [smem:[#allocation16_spill]] (!%p794_p10)  ;;  %v15973_v3 = vmov (!%p794_p10), 0.0|0.0   ;;  %vm15974_vm0 = vmmov (!%p794_p10), 0   ;;  %v15975_v9 = vmov (!%p794_p10), 0.0   ;;  %vm920_vm1 = vcmask (!%p794_p10), 261120  }
  0x24   : > { %797 = sbr.rel (%p794_p10) target bundleno = 4916 (0x1334), region = 128  ;;  %15238 = vmatprep.subr.bf16.mxu1 (!%p794_p10), %v15973_v3  ;;  %15244 = vmatprep.subr.bf16.mxu0 (!%p794_p10), %v15973_v3  ;;  %p882_p11 = scmp.lt.s32.totalorder (!%p794_p10), %s15963_s30, 1  ;;  %vm2348_vm2 = vcmask (!%p794_p10), 64512   ;;  %vm6146_vm3 = vcmask (!%p794_p10), 130048   ;;  %vm6148_vm4 = vcmask (!%p794_p10), 195584   ;;  %vm12967_vm5 = vcmask (!%p794_p10), 523264  }
  0x25   : > { %14190 = vmatprep.mubr.msk.f32.mxu1 (!%p794_p10), %vm15974_vm0, %v15975_v9  ;;  %14201 = vmatprep.mubr.msk.f32.mxu0 (!%p794_p10), %vm15974_vm0, %v15975_v9  ;;  %s17770_s25 = sld [smem:[#allocation11_spill]] (!%p794_p10)  ;;  %s17771_s2 = sld [smem:[#allocation12_spill]] (!%p794_p10) }
  0x26   : > { %s17772_s10 = sld [smem:[#allocation17_spill]] (!%p794_p10)  ;;  %s17736_s0 = smov (!%p794_p10), 112  }
  0x27   : > { %s17727_s6 = smov (!%p794_p10), 96   ;;  %s17726_s3 = smov (!%p794_p10), 80  }
  0x28   : > { %s17778_s13 = sld [smem:[#allocation24_spill]] (!%p794_p10)  ;;  %s17779_s9 = sld [smem:[#allocation22_spill]] (!%p794_p10) }
  0x29   : > { %s17767_s27 = smov (!%p794_p10), %s17766_s7  ;;  %v909_v0 = vld [vmem:[%s17766_s7] sm:$0xff] (!%p794_p10)  ;;  %s17768_s7 = sld [smem:[#allocation18_spill]] (!%p794_p10) }
  0x2a   : > { %v910_v1 = vld [vmem:[%s17767_s27 + $0x8] sm:$0xff] (!%p794_p10)  ;;  %v911_v2 = vld [vmem:[%s17767_s27 + $0x10] sm:$0xff] (!%p794_p10)  ;;  %v925_v4 = vand.u32 (!%p794_p10), 4294901760, %v909_v0  ;;  %v912_v6 = vld [vmem:[%s17767_s27 + $0x18] sm:$0xff] (!%p794_p10)  ;;  %s17780_s12 = sld [smem:[#allocation23_spill]] (!%p794_p10)  ;;  %s17788_s11 = smov (!%p794_p10), 72  }
  0x2b   : > { %v928_v5 = vand.u32 4294901760, %v910_v1  ;;  %v931_v7 = vand.u32 4294901760, %v911_v2  ;;  %v934_v8 = vand.u32 4294901760, %v912_v6  ;;  %s16218_s29 = scalar_select %p882_p11, %s15963_s30, 1 }
  0x2c   : > { %v16211_v13 = vsub.f32 %v909_v0, %v925_v4 }
  0x2d   : > { %v16209_v12 = vpack.c.bf16 %v928_v5, %v925_v4  ;;  %v16213_v14 = vsub.f32 %v910_v1, %v928_v5  ;;  %v16215_v15 = vsub.f32 %v911_v2, %v931_v7  ;;  %v16220_v16 = vsub.f32 %v912_v6, %v934_v8  ;;  %s16232_s26 = sshll.u32 %s16218_s29, 3 }
  0x2e   : > { %v1006_v20 = vand.u32 4294901760, %v16211_v13  ;;  %v16228_v22 = vpack.c.bf16 %v934_v8, %v931_v7  ;;  %s16243_s27 = scalar_lea.vmem %s17770_s25, %s16232_s26  ;;  %s892_s8 = scalar_lea.vmem %s17771_s2, %s16232_s26 }
  0x2f   : > { %s17769_s28 = smov %s17768_s7  ;;  %v1555_v10 = vld [vmem:[%s17768_s7] sm:$0xff]  ;;  %15240 = vmatpush3.bf16.msra.mxu1 %v16209_v12  ;;  %v1013_v21 = vand.u32 4294901760, %v16213_v14  ;;  %v1020_v23 = vand.u32 4294901760, %v16215_v15  ;;  %v1027_v25 = vand.u32 4294901760, %v16220_v16  ;;  %v15251_v61 = vpack.c.bf16 %v16213_v14, %v16211_v13  ;;  %s17729_s2 = smov 104  }
  0x30   : > { %v1556_v11 = vld [vmem:[%s17769_s28 + $0x8] sm:$0xff]  ;;  %v1570_v17 = vand.u32 4294901760, %v1555_v10  ;;  %v1557_v19 = vld [vmem:[%s17769_s28 + $0x10] sm:$0xff]  ;;  %v1558_v24 = vld [vmem:[%s17769_s28 + $0x18] sm:$0xff]  ;;  %15241 = vmatprep.subr.bf16.mxu1 %v15973_v3  ;;  %v1007_v27 = vsub.f32 %v16211_v13, %v1006_v20  ;;  %v15254_v5 = vpack.c.bf16 %v16220_v16, %v16215_v15  ;;  %s17734_s7 = smov 120   ;;  %s17773_s25 = sld [smem:[#allocation19_spill]] }
  0x31   : > { %v1573_v18 = vand.u32 4294901760, %v1556_v11  ;;  %v1014_v28 = vsub.f32 %v16213_v14, %v1013_v21  ;;  %v1021_v29 = vsub.f32 %v16215_v15, %v1020_v23  ;;  %v904_v30 = vld [vmem:[%s16243_s27] sm:$0xff]  ;;  %v1576_v31 = vand.u32 4294901760, %v1557_v19 }
  0x32   : > { %v16245_v26 = vsub.f32 %v1555_v10, %v1570_v17  ;;  %v1028_v32 = vsub.f32 %v16220_v16, %v1027_v25  ;;  %v922_v33 = vsel %vm920_vm1, %v904_v30, 0  ;;  %v1579_v35 = vand.u32 4294901760, %v1558_v24  ;;  %v905_v36 = vld [vmem:[%s892_s8] sm:$0xff]  ;;  %s17728_s8 = smov 88  }
  0x33   : > { %v16265_v34 = vsub.f32 %v1556_v11, %v1573_v18  ;;  %v1008_v37 = vand.u32 4294901760, %v1007_v27  ;;  %v1015_v38 = vand.u32 4294901760, %v1014_v28  ;;  %15243 = vmatpush3.bf16.msra.mxu1 %v16228_v22  ;;  %v1022_v39 = vand.u32 4294901760, %v1021_v29 }
  0x34   : > { %v16268_v40 = vand.u32 4294901760, %v922_v33  ;;  %v1029_v41 = vand.u32 4294901760, %v1028_v32  ;;  %15274 = vmatprep.subr.bf16.mxu1 %v15973_v3  ;;  %v16274_v44 = vsub.f32 %v1557_v19, %v1576_v31  ;;  %v1567_v45 = vsel %vm920_vm1, %v905_v36, 0 }
  0x35   : > { %v15245_v42 = vpack.c.bf16 %v1015_v38, %v1008_v37  ;;  %v16277_v46 = vsub.f32 %v1558_v24, %v1579_v35  ;;  %v16279_v47 = vand.u32 4294901760, %v1567_v45  ;;  %v1651_v48 = vand.u32 4294901760, %v16245_v26 }
  0x36   : > { %v16272_v43 = vsub.f32 %v922_v33, %v16268_v40  ;;  %v1658_v49 = vand.u32 4294901760, %v16265_v34  ;;  %v15248_v50 = vpack.c.bf16 %v1029_v41, %v1022_v39  ;;  %v16289_v54 = vpack.c.bf16 %v1573_v18, %v1570_v17 }
  0x37   : > { %15246 = vmatpush3.bf16.msra.mxu0 %v15245_v42  ;;  %v16286_v52 = vsub.f32 %v1567_v45, %v16279_v47  ;;  %v1665_v55 = vand.u32 4294901760, %v16274_v44  ;;  %v1652_v57 = vsub.f32 %v16245_v26, %v1651_v48  ;;  %v1672_v59 = vand.u32 4294901760, %v16277_v46 }
  0x38   : > { %v995_v51 = vand.u32 4294901760, %v16272_v43  ;;  %15247 = vmatprep.subr.bf16.mxu0 %v15973_v3  ;;  %v1659_v58 = vsub.f32 %v16265_v34, %v1658_v49  ;;  %v16303_v62 = vpack.c.bf16 %v1579_v35, %v1576_v31  ;;  %v15287_v17 = vpack.c.bf16 %v16265_v34, %v16245_v26 }
  0x39   : > { %v1640_v56 = vand.u32 4294901760, %v16286_v52  ;;  %v1653_v0 = vand.u32 4294901760, %v1652_v57  ;;  %v1666_v2 = vsub.f32 %v16274_v44, %v1665_v55  ;;  %v1673_v4 = vsub.f32 %v16277_v46, %v1672_v59 }
  0x3a   : > { %v996_v53 = vsub.f32 %v16272_v43, %v995_v51  ;;  %v1660_v1 = vand.u32 4294901760, %v1659_v58  ;;  %v15263_v18 = vpack.c.bf16 %v1013_v21, %v1006_v20  ;;  %v15290_v19 = vpack.c.bf16 %v16277_v46, %v16274_v44  ;;  %v13683_v20 = vld [vmem:[%s17772_s10] ss:$0 sm:$0xff]  ;;  %s17774_s10 = sld [smem:[#allocation14_spill]] }
  0x3b   : > { %15249 = vmatpush3.bf16.msra.mxu0 %v15248_v50  ;;  %v1641_v63 = vsub.f32 %v16286_v52, %v1640_v56  ;;  %v1667_v8 = vand.u32 4294901760, %v1666_v2  ;;  %v1674_v10 = vand.u32 4294901760, %v1673_v4  ;;  %v15266_v13 = vpack.c.bf16 %v1027_v25, %v1020_v23  ;;  %v13686_v25 = vld [vmem:[%s17773_s25] ss:$0 sm:$0xff]  ;;  %s17725_s25 = smov 72  }
  0x3c   : > { %v997_v60 = vand.u32 4294901760, %v996_v53  ;;  %15250 = vmatprep.subr.bf16.mxu0 %v15973_v3  ;;  %v15281_v7 = vpack.c.bf16 %v1660_v1, %v1653_v0  ;;  %v15299_v14 = vpack.c.bf16 %v1658_v49, %v1651_v48  ;;  %v15979_v29 = vmov 1983009808  }
  0x3d   : > { %v1642_v6 = vand.u32 4294901760, %v1641_v63  ;;  %v15284_v11 = vpack.c.bf16 %v1674_v10, %v1667_v8  ;;  %v1422_v30 = vunpack.c.l.s4 %v15979_v29  ;;  %v1424_v31 = vlaneseq }
  0x3e   : > { %14191 = vmatmul.mubr.f32.vlgmr.msra.gmra.mrb[0].mxu1 %v997_v60  ;;  %14202 = vmatmul.mubr.f32.vlgmr.msra.gmra.mrb[0].mxu0 %v16268_v40  ;;  %v15980_v32 = vmov 1934713408  }
  0x3f   : > { %15276 = vmatpush3.bf16.msra.mxu1 %v16289_v54  ;;  %15252 = vmatpush3.bf16.msra.mxu0 %v15251_v61  ;;  %v1454_v33 = vunpack.c.l.s4 %v15980_v32  ;;  %v1423_v34 = vunpack.c.0.s8 %v1422_v30  ;;  %v1425_v35 = vshrl.u32 %v1424_v31, 7 }
  0x40   : > { %15277 = vmatprep.subr.bf16.mxu1 %v15973_v3  ;;  %15253 = vmatprep.subr.bf16.mxu0 %v15973_v3 }
  0x41   : > { %14256 = vmatprep.mubr.msk.f32.mxu1 %vm15974_vm0, %v15975_v9  ;;  %14212 = vmatprep.mubr.msk.f32.mxu0 %vm15974_vm0, %v15975_v9  ;;  %v1455_v38 = vunpack.c.0.s8 %v1454_v33  ;;  %v16417_v39 = vsub.s32 %v1423_v34, %v1425_v35 }
  0x43   : > { %15279 = vmatpush3.bf16.msra.mxu1 %v16303_v62  ;;  %15255 = vmatpush3.bf16.msra.mxu0 %v15254_v5  ;;  %v16419_v45 = vsub.s32 %v1455_v38, %v1425_v35 }
  0x44   : > { %15280 = vmatprep.subr.bf16.mxu1 %v15973_v3  ;;  %15256 = vmatprep.subr.bf16.mxu0 %v15973_v3 }
  0x46   : > { %14257 = vmatmul.mubr.f32.vlgmr.msra.gmra.mrb[2].mxu1 %v1642_v6  ;;  %14213 = vmatmul.mubr.f32.vlgmr.msra.gmra.mrb[0].mxu0 %v16272_v43 }
  0x47   : > { %15282 = vmatpush3.bf16.msra.mxu1 %v15281_v7  ;;  %15258 = vmatpush3.bf16.msra.mxu0 %v16209_v12 }
  0x48   : > { %15283 = vmatprep.subr.bf16.mxu1 %v15973_v3  ;;  %15259 = vmatprep.subr.bf16.mxu0 %v15973_v3 }
  0x49   : > { %14267 = vmatprep.mubr.msk.f32.mxu1 %vm15974_vm0, %v15975_v9  ;;  %14223 = vmatprep.mubr.msk.f32.mxu0 %vm15974_vm0, %v15975_v9 }
  0x4b   : > { %15285 = vmatpush3.bf16.msra.mxu1 %v15284_v11  ;;  %15261 = vmatpush3.bf16.msra.mxu0 %v16228_v22 }
  0x4c   : > { %15286 = vmatprep.subr.bf16.mxu1 %v15973_v3  ;;  %15262 = vmatprep.subr.bf16.mxu0 %v15973_v3 }
  0x4e   : > { %14268 = vmatmul.mubr.f32.vlgmr.msra.gmra.mrb[2].mxu1 %v16279_v47  ;;  %14224 = vmatmul.mubr.f32.vlgmr.msra.gmra.mrb[0].mxu0 %v995_v51 }
  0x4f   : > { %15288 = vmatpush3.bf16.msra.mxu1 %v15287_v17  ;;  %15264 = vmatpush3.bf16.msra.mxu0 %v15263_v18 }
  0x50   : > { %15289 = vmatprep.subr.bf16.mxu1 %v15973_v3  ;;  %15265 = vmatprep.subr.bf16.mxu0 %v15973_v3 }
  0x51   : > { %14278 = vmatprep.mubr.msk.f32.mxu1 %vm15974_vm0, %v15975_v9  ;;  %14234 = vmatprep.mubr.msk.f32.mxu0 %vm15974_vm0, %v15975_v9 }
  0x53   : > { %15291 = vmatpush3.bf16.msra.mxu1 %v15290_v19  ;;  %15267 = vmatpush3.bf16.msra.mxu0 %v15266_v13 }
  0x54   : > { %15292 = vmatprep.subr.bf16.mxu1 %v15973_v3  ;;  %15268 = vmatprep.subr.bf16.mxu0 %v15973_v3 }
  0x56   : > { %14279 = vmatmul.mubr.f32.vlgmr.msra.gmra.mrb[2].mxu1 %v16286_v52  ;;  %14235 = vmatmul.mubr.f32.vlgmr.msra.gmra.mrb[0].mxu0 %v16268_v40 }
  0x57   : > { %15294 = vmatpush3.bf16.msra.mxu1 %v16289_v54  ;;  %15270 = vmatpush3.bf16.msra.mxu0 %v16209_v12  ;;  %v15302_v12 = vpack.c.bf16 %v1672_v59, %v1665_v55 }
  0x58   : > { %15295 = vmatprep.subr.bf16.mxu1 %v15973_v3  ;;  %15271 = vmatprep.subr.bf16.mxu0 %v15973_v3 }
  0x59   : > { %14289 = vmatprep.mubr.msk.f32.mxu1 %vm15974_vm0, %v15975_v9  ;;  %14245 = vmatprep.mubr.msk.f32.mxu0 %vm15974_vm0, %v15975_v9 }
  0x5b   : > { %15297 = vmatpush3.bf16.msra.mxu1 %v16303_v62  ;;  %15273 = vmatpush3.bf16.msra.mxu0 %v16228_v22 }
  0x5c   : > { %15298 = vmatprep.subr.bf16.mxu1 %v15973_v3  ;;  %14314 = vmatprep.subr.mxu0 %v15975_v9 }
  0x5e   : > { %14290 = vmatmul.mubr.f32.vlgmr.msra.gmra.mrb[2].mxu1 %v1640_v56  ;;  %14246 = vmatmul.mubr.f32.vlgmr.msra.gmra.mrb[0].mxu0 %v16268_v40 }
  0x5f   : > { %15300 = vmatpush3.bf16.msra.mxu1 %v15299_v14  ;;  %14300 = vmatprep.mubr.msk.f32.mxu1 %vm15974_vm0, %v15975_v9 }
  0x60   : > { %15301 = vmatprep.subr.bf16.mxu1 %v15973_v3  ;;  %14316 = vmatprep.mubr.msk.f32.mxu0 %vm15974_vm0, %v15975_v9 }
  0x63   : > { %15303 = vmatpush3.bf16.msra.mxu1 %v15302_v12 }
  0x64   : > { %15304 = vmatprep.subr.bf16.mxu1 %v15973_v3 }
  0x66   : > { %14301 = vmatmul.mubr.f32.vlgmr.msra.gmra.mrb[2].mxu1 %v16279_v47 }
  0x67   : > { %15306 = vmatpush3.bf16.msra.mxu1 %v16289_v54  ;;  %14311 = vmatprep.mubr.msk.f32.mxu1 %vm15974_vm0, %v15975_v9 }
  0x68   : > { %15307 = vmatprep.subr.bf16.mxu1 %v15973_v3 }
  0x6b   : > { %15309 = vmatpush3.bf16.msra.mxu1 %v16303_v62 }
  0x6c   : > { %14344 = vmatprep.subr.mxu1 %v15975_v9 }
  0x6e   : > { %14312 = vmatmul.mubr.f32.vlgmr.msra.gmra.mrb[2].mxu1 %v16279_v47 }
  0x6f   : > { %14346 = vmatprep.mubr.msk.f32.mxu1 %vm15974_vm0, %v15975_v9 }
 0x111   : > { %v999_v15 = vpop.f32.mrb[0].mxu1 }
 0x112   : > { %v14192_v16 = vpop.f32.mrb[1].mxu1  ;;  %v1000_v21 = vadd.f32 %v13683_v20, %v999_v15 }
 0x131   : > { %v1405_v22 = vpop.f32.mrb[0].mxu0 }
 0x132   : > { %v15563_v23 = vadd.f32 %v1405_v22, %v1000_v21  ;;  %v14247_v24 = vpop.f32.mrb[1].mxu0 }
 0x134   : > { %1416 = vrot.lane.b32.xlu1 %v15563_v23, %s17729_s2  ;;  %1410 = vrot.lane.b32.xlu0 %v15563_v23, %s17734_s7 }
 0x138   : > { %1413 = vrot.lane.b32.xlu0 %v15563_v23, %s17736_s0 }
 0x141   : > { %v2050_v26 = vpop.f32.mrb[2].mxu1 }
 0x142   : > { %v16409_v27 = vadd.f32 %v13686_v25, %v2050_v26  ;;  %v14313_v28 = vpop.f32.mrb[3].mxu1 }
 0x144   : > { %2058 = vrot.lane.b32.xlu0 %v16409_v27, %s17736_s0  ;;  %2055 = vrot.lane.b32.xlu1 %v16409_v27, %s17734_s7  ;;  %s17781_s0 = smov 112   ;;  %s17794_s7 = sld [smem:[#allocation27_spill]] }
 0x148   : > { %2061 = vrot.lane.b32.xlu1 %v16409_v27, %s17729_s2  ;;  %s17733_s2 = smov 16  }
 0x1a6   : > { %v1417_v36 = vpop.permute.xlu1 %1416  ;;  %v1411_v37 = vpop.permute.xlu0 %1410 }
 0x1a7   : > { %v1435_v40 = vcombine.low %v1411_v37, %v1417_v36  ;;  %v1436_v41 = vcombine.high %v1411_v37, %v1417_v36 }
 0x1a9   : > { %v1443_v46 = vrot.slane %v1435_v40, %v16417_v39  ;;  %v1450_v47 = vrot.slane %v1436_v41, %v16417_v39 }
 0x1aa   : > { %v1414_v42 = vpop.permute.xlu0 %1413 }
 0x1ab   : > { %v1419_v43 = vcombine.low %v15563_v23, %v1414_v42  ;;  %v1420_v44 = vcombine.high %v15563_v23, %v1414_v42 }
 0x1ad   : > { %v1427_v48 = vrot.slane %v1419_v43, %v16417_v39  ;;  %v1434_v49 = vrot.slane %v1420_v44, %v16417_v39 }
 0x1af   : > { %v1451_v50 = vcombine.low %v1427_v48, %v1443_v46  ;;  %v1452_v51 = vcombine.high %v1427_v48, %v1443_v46  ;;  %v1467_v52 = vcombine.low %v1434_v49, %v1450_v47  ;;  %v1468_v53 = vcombine.high %v1434_v49, %v1450_v47 }
 0x1b1   : > { %v1459_v54 = vrot.slane %v1451_v50, %v16419_v45  ;;  %v1466_v55 = vrot.slane %v1452_v51, %v16419_v45  ;;  %v1475_v56 = vrot.slane %v1467_v52, %v16419_v45  ;;  %v1482_v57 = vrot.slane %v1468_v53, %v16419_v45 }
 0x1b3   : > { %v1487_v58 = vcombine.low %v1459_v54, %v1466_v55  ;;  %v13684_v59 = vcombine.high %v1459_v54, %v1466_v55  ;;  %v1503_v60 = vcombine.low %v1475_v56, %v1482_v57  ;;  %v13685_v61 = vcombine.high %v1475_v56, %v1482_v57 }
 0x1b5   : > { %v16430_v62 = vrot.slane %v1487_v58, %v16417_v39  ;;  %v16433_v63 = vrot.slane %v13684_v59, %v16417_v39  ;;  %v16436_v0 = vrot.slane %v1503_v60, %v16417_v39  ;;  %v16439_v1 = vrot.slane %v13685_v61, %v16417_v39 }
 0x1b6   : > { %v2059_v2 = vpop.permute.xlu0 %2058  ;;  %v2056_v4 = vpop.permute.xlu1 %2055 }
 0x1b7   : > { %v1519_v5 = vcombine.low %v16430_v62, %v16433_v63  ;;  %v1535_v6 = vcombine.low %v16436_v0, %v16439_v1  ;;  %v2076_v7 = vcombine.low %v16409_v27, %v2059_v2  ;;  %v2077_v8 = vcombine.high %v16409_v27, %v2059_v2 }
 0x1b9   : > { %v1527_v10 = vrot.slane %v1519_v5, %v16419_v45  ;;  %v1543_v11 = vrot.slane %v1535_v6, %v16419_v45  ;;  %v2084_v12 = vrot.slane %v2076_v7, %v16417_v39  ;;  %v2091_v15 = vrot.slane %v2077_v8, %v16417_v39 }
 0x1ba   : > { %v2062_v17 = vpop.permute.xlu1 %2061 }
 0x1bb   : > { %v2092_v18 = vcombine.low %v2056_v4, %v2062_v17  ;;  %v2093_v19 = vcombine.high %v2056_v4, %v2062_v17  ;;  %v1551_v13 = vcombine.low %v1527_v10, %v1543_v11  ;;  %v1552_v14 = vcombine.high %v1527_v10, %v1543_v11 }
 0x1bc   : > { %v1520_v17 = vcombine.high %v16430_v62, %v16433_v63 }
 0x1bd   : > { %v2100_v16 = vrot.slane %v2092_v18, %v16417_v39  ;;  %v2107_v20 = vrot.slane %v2093_v19, %v16417_v39  ;;  %v2350_v21 = vsel %vm2348_vm2, %v1551_v13, 0  ;;  %v2802_v22 = vsel %vm2348_vm2, %v1552_v14, 0 }
 0x1be   : > { %v16455_v28 = vand.u32 4294901760, %v2350_v21  ;;  %v16457_v29 = vand.u32 4294901760, %v2802_v22  ;;  %v1536_v18 = vcombine.high %v16436_v0, %v16439_v1  ;;  %v1534_v14 = vrot.slane %v1520_v17, %v16419_v45 }
 0x1bf   : > { %v2140_v23 = vcombine.low %v2084_v12, %v2100_v16  ;;  %v2141_v24 = vcombine.high %v2084_v12, %v2100_v16  ;;  %v2156_v25 = vcombine.low %v2091_v15, %v2107_v20  ;;  %v2157_v26 = vcombine.high %v2091_v15, %v2107_v20 }
 0x1c0   : > { %v16464_v38 = vsub.f32 %v2350_v21, %v16455_v28  ;;  %v16467_v40 = vsub.f32 %v2802_v22, %v16457_v29  ;;  %v1550_v12 = vrot.slane %v1536_v18, %v16419_v45 }
 0x1c1   : > { %v2148_v30 = vrot.slane %v2140_v23, %v16419_v45  ;;  %v2155_v31 = vrot.slane %v2141_v24, %v16419_v45  ;;  %v2164_v32 = vrot.slane %v2156_v25, %v16419_v45  ;;  %v2171_v33 = vrot.slane %v2157_v26, %v16419_v45 }
 0x1c2   : > { %v2423_v50 = vand.u32 4294901760, %v16464_v38  ;;  %v2875_v51 = vand.u32 4294901760, %v16467_v40  ;;  %v1553_v0 = vcombine.low %v1534_v14, %v1550_v12  ;;  %v1554_v1 = vcombine.high %v1534_v14, %v1550_v12 }
 0x1c3   : > { %v13687_v34 = vcombine.low %v2148_v30, %v2155_v31  ;;  %v13689_v35 = vcombine.high %v2148_v30, %v2155_v31  ;;  %v13691_v36 = vcombine.low %v2164_v32, %v2171_v33  ;;  %v13693_v37 = vcombine.high %v2164_v32, %v2171_v33 }
 0x1c4   : > { %v2424_v56 = vsub.f32 %v16464_v38, %v2423_v50  ;;  %v2876_v57 = vsub.f32 %v16467_v40, %v2875_v51  ;;  %v3254_v20 = vsel %vm2348_vm2, %v1553_v0, 0  ;;  %v3706_v21 = vsel %vm2348_vm2, %v1554_v1, 0 }
 0x1c5   : > { %v2220_v41 = vrot.slane %v13687_v34, %v16417_v39  ;;  %v2236_v42 = vrot.slane %v13689_v35, %v16417_v39  ;;  %v2252_v43 = vrot.slane %v13691_v36, %v16417_v39  ;;  %v2268_v44 = vrot.slane %v13693_v37, %v16417_v39 }
 0x1c6   : > { %v2425_v2 = vand.u32 4294901760, %v2424_v56  ;;  %v2877_v4 = vand.u32 4294901760, %v2876_v57  ;;  %v16530_v24 = vand.u32 4294901760, %v3254_v20  ;;  %v16532_v25 = vand.u32 4294901760, %v3706_v21 }
 0x1c7   : > { %v2276_v46 = vcombine.low %v2220_v41, %v2236_v42  ;;  %v2308_v47 = vcombine.low %v2252_v43, %v2268_v44  ;;  %v2277_v19 = vcombine.high %v2220_v41, %v2236_v42  ;;  %v2309_v13 = vcombine.high %v2252_v43, %v2268_v44 }
 0x1c8   : > { %v3326_v31 = vsub.f32 %v3254_v20, %v16530_v24  ;;  %v3778_v32 = vsub.f32 %v3706_v21, %v16532_v25 }
 0x1c9   : > { %v2284_v48 = vrot.slane %v2276_v46, %v16419_v45  ;;  %v2316_v49 = vrot.slane %v2308_v47, %v16419_v45  ;;  %v2291_v62 = vrot.slane %v2277_v19, %v16419_v45  ;;  %v2323_v63 = vrot.slane %v2309_v13, %v16419_v45 }
 0x1ca   : > { %v3327_v35 = vand.u32 4294901760, %v3326_v31  ;;  %v3779_v36 = vand.u32 4294901760, %v3778_v32 }
 0x1cb   : > { %v2340_v52 = vcombine.low %v2284_v48, %v2316_v49  ;;  %v2341_v53 = vcombine.high %v2284_v48, %v2316_v49  ;;  %v2342_v15 = vcombine.low %v2291_v62, %v2323_v63  ;;  %v2343_v16 = vcombine.high %v2291_v62, %v2323_v63 }
 0x1cc   : > { %v3780_v41 = vsub.f32 %v3778_v32, %v3779_v36 }
 0x1cd   : > { %v2353_v54 = vsel %vm2348_vm2, %v2340_v52, 0  ;;  %v2805_v55 = vsel %vm2348_vm2, %v2341_v53, 0  ;;  %v3257_v22 = vsel %vm2348_vm2, %v2342_v15, 0  ;;  %v3709_v23 = vsel %vm2348_vm2, %v2343_v16, 0 }
 0x1ce   : > { %v16481_v58 = vand.u32 4294901760, %v2353_v54  ;;  %v16483_v59 = vand.u32 4294901760, %v2805_v55  ;;  %v16537_v26 = vand.u32 4294901760, %v3257_v22  ;;  %v16539_v30 = vand.u32 4294901760, %v3709_v23 }
 0x1cf   : > { %v3781_v46 = vand.u32 4294901760, %v3780_v41 }
 0x1d0   : > { %14315 = vmatpush3.xpose.msra.mxu0 %v16481_v58  ;;  %v2433_v60 = vsub.f32 %v2353_v54, %v16481_v58  ;;  %14345 = vmatpush3.xpose.msra.mxu1 %v16483_v59  ;;  %v2885_v61 = vsub.f32 %v2805_v55, %v16483_v59  ;;  %v3337_v33 = vsub.f32 %v3257_v22, %v16537_v26 }
 0x1d1   : > { %14319 = vmatprep.subr.mxu0 %v15975_v9  ;;  %14349 = vmatprep.subr.mxu1 %v15975_v9  ;;  %v3789_v34 = vsub.f32 %v3709_v23, %v16539_v30 }
 0x1d2   : > { %v2434_v5 = vand.u32 4294901760, %v2433_v60  ;;  %v2886_v6 = vand.u32 4294901760, %v2885_v61  ;;  %v3338_v37 = vand.u32 4294901760, %v3337_v33 }
 0x1d3   : > { %14317 = vmatmul.mubr.f32.vlgmr.msra.gmra.mrb[2].mxu0 %v2425_v2  ;;  %14347 = vmatmul.mubr.f32.vlgmr.msra.gmra.mrb[4].mxu1 %v2877_v4 }
 0x1d4   : > { %v2435_v7 = vsub.f32 %v2433_v60, %v2434_v5  ;;  %v2887_v8 = vsub.f32 %v2885_v61, %v2886_v6  ;;  %14321 = vmatprep.mubr.msk.f32.mxu0 %vm15974_vm0, %v15975_v9  ;;  %14351 = vmatprep.mubr.msk.f32.mxu1 %vm15974_vm0, %v15975_v9  ;;  %v3339_v42 = vsub.f32 %v3337_v33, %v3338_v37 }
 0x1d6   : > { %v2436_v10 = vand.u32 4294901760, %v2435_v7  ;;  %v2888_v11 = vand.u32 4294901760, %v2887_v8  ;;  %v3340_v47 = vand.u32 4294901760, %v3339_v42 }
 0x1d8   : > { %14320 = vmatpush3.xpose.msra.mxu0 %v2436_v10  ;;  %14350 = vmatpush3.xpose.msra.mxu1 %v2888_v11 }
 0x1d9   : > { %14324 = vmatprep.subr.mxu0 %v15975_v9  ;;  %14354 = vmatprep.subr.mxu1 %v15975_v9 }
 0x1db   : > { %14322 = vmatmul.mubr.f32.vlgmr.msra.gmra.mrb[2].mxu0 %v16455_v28  ;;  %14352 = vmatmul.mubr.f32.vlgmr.msra.gmra.mrb[4].mxu1 %v16457_v29 }
 0x1dc   : > { %14325 = vmatpush3.xpose.msra.mxu0 %v2433_v60  ;;  %14355 = vmatpush3.xpose.msra.mxu1 %v2885_v61 }
 0x1dd   : > { %14326 = vmatprep.mubr.msk.f32.mxu0 %vm15974_vm0, %v15975_v9  ;;  %14329 = vmatprep.subr.mxu0 %v15975_v9 }
 0x1de   : > { %14356 = vmatprep.mubr.msk.f32.mxu1 %vm15974_vm0, %v15975_v9  ;;  %14359 = vmatprep.subr.mxu1 %v15975_v9 }
 0x1e3   : > { %14327 = vmatmul.mubr.f32.vlgmr.msra.gmra.mrb[2].mxu0 %v16464_v38  ;;  %14357 = vmatmul.mubr.f32.vlgmr.msra.gmra.mrb[4].mxu1 %v16467_v40  ;;  %v3790_v38 = vand.u32 4294901760, %v3789_v34  ;;  %v3328_v40 = vsub.f32 %v3326_v31, %v3327_v35 }
 0x1e4   : > { %14330 = vmatpush3.xpose.msra.mxu0 %v16481_v58  ;;  %14360 = vmatpush3.xpose.msra.mxu1 %v16483_v59 }
 0x1e5   : > { %14331 = vmatprep.mubr.msk.f32.mxu0 %vm15974_vm0, %v15975_v9  ;;  %14334 = vmatprep.subr.mxu0 %v15975_v9  ;;  %v3791_v43 = vsub.f32 %v3789_v34, %v3790_v38  ;;  %v3329_v44 = vand.u32 4294901760, %v3328_v40 }
 0x1e6   : > { %14361 = vmatprep.mubr.msk.f32.mxu1 %vm15974_vm0, %v15975_v9  ;;  %14364 = vmatprep.subr.mxu1 %v15975_v9 }
 0x1eb   : > { %14332 = vmatmul.mubr.f32.vlgmr.msra.gmra.mrb[2].mxu0 %v2423_v50  ;;  %14362 = vmatmul.mubr.f32.vlgmr.msra.gmra.mrb[4].mxu1 %v2875_v51 }
 0x1ec   : > { %14335 = vmatpush3.xpose.msra.mxu0 %v2434_v5  ;;  %14365 = vmatpush3.xpose.msra.mxu1 %v2886_v6 }
 0x1ed   : > { %14336 = vmatprep.mubr.msk.f32.mxu0 %vm15974_vm0, %v15975_v9  ;;  %14339 = vmatprep.subr.mxu0 %v15975_v9 }
 0x1ee   : > { %14366 = vmatprep.mubr.msk.f32.mxu1 %vm15974_vm0, %v15975_v9  ;;  %14369 = vmatprep.subr.mxu1 %v15975_v9 }
 0x1f3   : > { %14337 = vmatmul.mubr.f32.vlgmr.msra.gmra.mrb[2].mxu0 %v16455_v28  ;;  %14367 = vmatmul.mubr.f32.vlgmr.msra.gmra.mrb[4].mxu1 %v16457_v29 }
 0x1f4   : > { %14340 = vmatpush3.xpose.msra.mxu0 %v16481_v58  ;;  %14370 = vmatpush3.xpose.msra.mxu1 %v16483_v59 }
 0x1f5   : > { %14341 = vmatprep.mubr.msk.f32.mxu0 %vm15974_vm0, %v15975_v9  ;;  %14371 = vmatprep.mubr.msk.f32.mxu1 %vm15974_vm0, %v15975_v9 }
 0x1f6   : > { %14374 = vmatprep.subr.mxu0 %v15975_v9  ;;  %14404 = vmatprep.subr.mxu1 %v15975_v9 }
 0x1fb   : > { %14342 = vmatmul.mubr.f32.vlgmr.msra.gmra.mrb[2].mxu0 %v16455_v28  ;;  %14372 = vmatmul.mubr.f32.vlgmr.msra.gmra.mrb[4].mxu1 %v16457_v29  ;;  %v3792_v28 = vand.u32 4294901760, %v3791_v43  ;;  %v907_v29 = vld [vmem:[%s17774_s10] sm:$0xff]  ;;  %s17776_s10 = sld [smem:[#allocation21_spill]] }
 0x1fc   : > { %14375 = vmatpush3.xpose.msra.mxu0 %v16537_v26  ;;  %14405 = vmatpush3.xpose.msra.mxu1 %v16539_v30 }
 0x1fd   : > { %14376 = vmatprep.mubr.msk.f32.mxu0 %vm15974_vm0, %v15975_v9  ;;  %14379 = vmatprep.subr.mxu0 %v15975_v9 }
 0x1fe   : > { %14406 = vmatprep.mubr.msk.f32.mxu1 %vm15974_vm0, %v15975_v9  ;;  %14409 = vmatprep.subr.mxu1 %v15975_v9 }
 0x1ff   : > { %14377 = vmatmul.mubr.f32.vlgmr.msra.gmra.mrb[4].mxu0 %v3329_v44  ;;  %14407 = vmatmul.mubr.f32.vlgmr.msra.gmra.mrb[6].mxu1 %v3781_v46 }
 0x200   : > { %14380 = vmatpush3.xpose.msra.mxu0 %v3340_v47  ;;  %14410 = vmatpush3.xpose.msra.mxu1 %v3792_v28 }
 0x201   : > { %14381 = vmatprep.mubr.msk.f32.mxu0 %vm15974_vm0, %v15975_v9  ;;  %14384 = vmatprep.subr.mxu0 %v15975_v9 }
 0x202   : > { %14411 = vmatprep.mubr.msk.f32.mxu1 %vm15974_vm0, %v15975_v9  ;;  %14414 = vmatprep.subr.mxu1 %v15975_v9 }
 0x207   : > { %14382 = vmatmul.mubr.f32.vlgmr.msra.gmra.mrb[4].mxu0 %v16530_v24  ;;  %14412 = vmatmul.mubr.f32.vlgmr.msra.gmra.mrb[6].mxu1 %v16532_v25 }
 0x208   : > { %14385 = vmatpush3.xpose.msra.mxu0 %v3337_v33  ;;  %14415 = vmatpush3.xpose.msra.mxu1 %v3789_v34 }
 0x209   : > { %14386 = vmatprep.mubr.msk.f32.mxu0 %vm15974_vm0, %v15975_v9  ;;  %14389 = vmatprep.subr.mxu0 %v15975_v9 }
 0x20a   : > { %14416 = vmatprep.mubr.msk.f32.mxu1 %vm15974_vm0, %v15975_v9  ;;  %14419 = vmatprep.subr.mxu1 %v15975_v9 }
 0x20f   : > { %14387 = vmatmul.mubr.f32.vlgmr.msra.gmra.mrb[4].mxu0 %v3326_v31  ;;  %14417 = vmatmul.mubr.f32.vlgmr.msra.gmra.mrb[6].mxu1 %v3778_v32 }
 0x210   : > { %14390 = vmatpush3.xpose.msra.mxu0 %v16537_v26  ;;  %14420 = vmatpush3.xpose.msra.mxu1 %v16539_v30 }
 0x211   : > { %14391 = vmatprep.mubr.msk.f32.mxu0 %vm15974_vm0, %v15975_v9  ;;  %14394 = vmatprep.subr.mxu0 %v15975_v9 }
 0x212   : > { %14421 = vmatprep.mubr.msk.f32.mxu1 %vm15974_vm0, %v15975_v9  ;;  %14424 = vmatprep.subr.mxu1 %v15975_v9 }
 0x217   : > { %14392 = vmatmul.mubr.f32.vlgmr.msra.gmra.mrb[4].mxu0 %v3327_v35  ;;  %14422 = vmatmul.mubr.f32.vlgmr.msra.gmra.mrb[6].mxu1 %v3779_v36 }
 0x218   : > { %14395 = vmatpush3.xpose.msra.mxu0 %v3338_v37  ;;  %14425 = vmatpush3.xpose.msra.mxu1 %v3790_v38 }
 0x219   : > { %14396 = vmatprep.mubr.msk.f32.mxu0 %vm15974_vm0, %v15975_v9  ;;  %14399 = vmatprep.subr.mxu0 %v15975_v9 }
 0x21a   : > { %14426 = vmatprep.mubr.msk.f32.mxu1 %vm15974_vm0, %v15975_v9  ;;  %14429 = vmatprep.subr.mxu1 %v15975_v9 }
 0x21f   : > { %14397 = vmatmul.mubr.f32.vlgmr.msra.gmra.mrb[4].mxu0 %v16530_v24  ;;  %14427 = vmatmul.mubr.f32.vlgmr.msra.gmra.mrb[6].mxu1 %v16532_v25 }
 0x220   : > { %14400 = vmatpush3.xpose.msra.mxu0 %v16537_v26  ;;  %14430 = vmatpush3.xpose.msra.mxu1 %v16539_v30 }
 0x221   : > { %14401 = vmatprep.mubr.msk.f32.mxu0 %vm15974_vm0, %v15975_v9  ;;  %14431 = vmatprep.mubr.msk.f32.mxu1 %vm15974_vm0, %v15975_v9 }
 0x222   : > { %14434 = vmatprep.subr.mxu0 %v15975_v9  ;;  %14464 = vmatprep.subr.mxu1 %v15975_v9 }
 0x227   : > { %14402 = vmatmul.mubr.f32.vlgmr.msra.gmra.mrb[4].mxu0 %v16530_v24  ;;  %14432 = vmatmul.mubr.f32.vlgmr.msra.gmra.mrb[6].mxu1 %v16532_v25 }
 0x228   : > { %14436 = vmatprep.mubr.msk.f32.mxu0 %vm15974_vm0, %v15975_v9  ;;  %14466 = vmatprep.mubr.msk.f32.mxu1 %vm15974_vm0, %v15975_v9 }
 0x2ce   : > { %v2797_v48 = vpop.f32.mrb[2].mxu0  ;;  %v3249_v49 = vpop.f32.mrb[4].mxu1 }
 0x2cf   : > { %v15565_v50 = vadd.f32 %v2797_v48, %v907_v29  ;;  %v15566_v51 = vadd.f32 %v3249_v49, %v907_v29  ;;  %v14343_v52 = vpop.f32.mrb[3].mxu0  ;;  %v14373_v53 = vpop.f32.mrb[5].mxu1 }
 0x2d1   : > { %v4157_v54 = vsel %vm2348_vm2, %v15565_v50, -inf  ;;  %v4160_v55 = vsel %vm2348_vm2, %v15566_v51, -inf }
 0x2d2   : > { %4158 = vmax.xlane.f32.xlu0 %v4157_v54  ;;  %4161 = vmax.xlane.f32.xlu1 %v4160_v55 }
 0x2e3   : > { %2064 = vrot.lane.b32.xlu1 %v16409_v27, %s17727_s6  ;;  %s17732_s6 = smov 8  }
 0x2fa   : > { %v3701_v56 = vpop.f32.mrb[4].mxu0  ;;  %v4153_v57 = vpop.f32.mrb[6].mxu1 }
 0x2fb   : > { %v15567_v58 = vadd.f32 %v3701_v56, %v907_v29  ;;  %v14403_v59 = vpop.f32.mrb[5].mxu0  ;;  %v14433_v60 = vpop.f32.mrb[7].mxu1  ;;  %v15568_v61 = vadd.f32 %v4153_v57, %v907_v29 }
 0x2fd   : > { %v4163_v2 = vsel %vm2348_vm2, %v15567_v58, -inf  ;;  %v4166_v4 = vsel %vm2348_vm2, %v15568_v61, -inf }
 0x2fe   : > { %4164 = vmax.xlane.f32.xlu0 %v4163_v2 }
 0x302   : > { %4167 = vmax.xlane.f32.xlu0 %v4166_v4 }
 0x35f   : > { %v4159_v5 = vpop.xlane.xlu0 %4158  ;;  %v4162_v6 = vpop.xlane.xlu1 %4161 }
 0x360   : > { %v4169_v7 = vsub.f32 %v15565_v50, %v4159_v5  ;;  %v4170_v8 = vsub.f32 %v15566_v51, %v4162_v6 }
 0x362   : > { %v4173_v10 = vmul.f32 1.442695, %v4169_v7  ;;  %v4175_v11 = vmul.f32 1.442695, %v4170_v8 }
 0x364   : > { %15854 = vpow2.f32 %v4173_v10 }
 0x365   : > { %15856 = vpow2.f32 %v4175_v11 }
 0x36e   : > { %v15855_v17 = vpop.eup %15854 }
 0x36f   : > { %v15857_v18 = vpop.eup %15856  ;;  %v4181_v19 = vsel %vm2348_vm2, %v15855_v17, 0.0 }
 0x370   : > { %4182 = vadd.xlane.f32.xlu1 %v4181_v19  ;;  %v4184_v13 = vsel %vm2348_vm2, %v15857_v18, 0.0 }
 0x371   : > { %4185 = vadd.xlane.f32.xlu0 %v4184_v13 }
 0x381   : > { %2070 = vrot.lane.b32.xlu1 %v16409_v27, %s17726_s3  ;;  %s17731_s3 = smov 24  }
 0x385   : > { %2073 = vrot.lane.b32.xlu1 %v16409_v27, %s17725_s25  ;;  %s17775_s25 = sld [smem:[#allocation20_spill]] }
 0x387   : > { %2067 = vrot.lane.b32.xlu0 %v16409_v27, %s17728_s8  ;;  %v2065_v27 = vpop.permute.xlu1 %2064  ;;  %s17784_s8 = sld [smem:[#allocation15_spill]] }
 0x38b   : > { %v4165_v14 = vpop.xlane.xlu0 %4164 }
 0x38c   : > { %v4171_v12 = vsub.f32 %v15567_v58, %v4165_v14 }
 0x38e   : > { %v4177_v0 = vmul.f32 1.442695, %v4171_v12 }
 0x38f   : > { %v4168_v62 = vpop.xlane.xlu0 %4167 }
 0x390   : > { %v4172_v63 = vsub.f32 %v15568_v61, %v4168_v62  ;;  %15858 = vpow2.f32 %v4177_v0 }
 0x392   : > { %v4179_v1 = vmul.f32 1.442695, %v4172_v63 }
 0x394   : > { %15860 = vpow2.f32 %v4179_v1 }
 0x39a   : > { %v16626_v15 = vpop.eup %15858 }
 0x39b   : > { %v4187_v20 = vsel %vm2348_vm2, %v16626_v15, 0.0 }
 0x39e   : > { %v16628_v16 = vpop.eup %15860 }
 0x39f   : > { %v4190_v21 = vsel %vm2348_vm2, %v16628_v16, 0.0 }
 0x3a6   : > { %4188 = vadd.xlane.f32.xlu0 %v4187_v20 }
 0x3a9   : > { %4191 = vadd.xlane.f32.xlu1 %v4190_v21 }
 0x3fd   : > { %v4183_v22 = vpop.xlane.xlu1 %4182 }
 0x3fe   : > { %15862 = vrcp.f32 %v4183_v22  ;;  %v4186_v23 = vpop.xlane.xlu0 %4185 }
 0x3ff   : > { %15864 = vrcp.f32 %v4186_v23 }
 0x401   : > { %v2071_v24 = vpop.permute.xlu1 %2070 }
 0x402   : > { %v2108_v25 = vcombine.low %v2065_v27, %v2071_v24  ;;  %v2109_v26 = vcombine.high %v2065_v27, %v2071_v24  ;;  %v2068_v30 = vpop.permute.xlu0 %2067 }
 0x404   : > { %v2116_v35 = vrot.slane %v2108_v25, %v16417_v39  ;;  %v2123_v36 = vrot.slane %v2109_v26, %v16417_v39 }
 0x405   : > { %v2074_v31 = vpop.permute.xlu1 %2073 }
 0x406   : > { %v2124_v32 = vcombine.low %v2068_v30, %v2074_v31  ;;  %v2125_v33 = vcombine.high %v2068_v30, %v2074_v31 }
 0x408   : > { %v15863_v34 = vpop.eup %15862  ;;  %v2132_v37 = vrot.slane %v2124_v32, %v16417_v39  ;;  %v2139_v38 = vrot.slane %v2125_v33, %v16417_v39 }
 0x409   : > { %v15865_v40 = vpop.eup %15864  ;;  %v4197_v41 = vmul.f32 %v15863_v34, %v15855_v17 }
 0x40a   : > { %v4198_v42 = vmul.f32 %v15865_v40, %v15857_v18  ;;  %v2172_v43 = vcombine.low %v2116_v35, %v2132_v37  ;;  %v2173_v44 = vcombine.high %v2116_v35, %v2132_v37  ;;  %v2188_v46 = vcombine.low %v2123_v36, %v2139_v38 }
 0x40b   : > { %v2189_v47 = vcombine.high %v2123_v36, %v2139_v38  ;;  %v4202_v28 = vsel %vm2348_vm2, %v4197_v41, 0 }
 0x40c   : > { %v2180_v29 = vrot.slane %v2172_v43, %v16419_v45  ;;  %v2187_v48 = vrot.slane %v2173_v44, %v16419_v45  ;;  %v2196_v49 = vrot.slane %v2188_v46, %v16419_v45  ;;  %v16642_v50 = vand.u32 4294901760, %v4202_v28 }
 0x40d   : > { %v2203_v51 = vrot.slane %v2189_v47, %v16419_v45  ;;  %v4651_v52 = vsel %vm2348_vm2, %v4198_v42, 0 }
 0x40e   : > { %v13688_v53 = vcombine.low %v2180_v29, %v2187_v48  ;;  %v13690_v54 = vcombine.high %v2180_v29, %v2187_v48  ;;  %v16647_v55 = vsub.f32 %v4202_v28, %v16642_v50  ;;  %v16649_v56 = vand.u32 4294901760, %v4651_v52 }
 0x40f   : > { %v13692_v57 = vcombine.low %v2196_v49, %v2203_v51  ;;  %v13694_v58 = vcombine.high %v2196_v49, %v2203_v51 }
 0x410   : > { %v2227_v59 = vrot.slane %v13688_v53, %v16417_v39  ;;  %v2243_v60 = vrot.slane %v13690_v54, %v16417_v39  ;;  %v4720_v61 = vsub.f32 %v4651_v52, %v16649_v56  ;;  %v4272_v6 = vand.u32 4294901760, %v16647_v55 }
 0x411   : > { %v2259_v2 = vrot.slane %v13692_v57, %v16417_v39  ;;  %v2275_v4 = vrot.slane %v13694_v58, %v16417_v39 }
 0x412   : > { %v2292_v5 = vcombine.low %v2227_v59, %v2243_v60  ;;  %v4721_v7 = vand.u32 4294901760, %v4720_v61  ;;  %v4273_v17 = vsub.f32 %v16647_v55, %v4272_v6  ;;  %v2293_v25 = vcombine.high %v2227_v59, %v2243_v60 }
 0x413   : > { %v2324_v8 = vcombine.low %v2259_v2, %v2275_v4  ;;  %v2325_v26 = vcombine.high %v2259_v2, %v2275_v4 }
 0x414   : > { %v2300_v10 = vrot.slane %v2292_v5, %v16419_v45  ;;  %v4722_v18 = vsub.f32 %v4720_v61, %v4721_v7  ;;  %v4274_v62 = vand.u32 4294901760, %v4273_v17  ;;  %v2307_v31 = vrot.slane %v2293_v25, %v16419_v45  ;;  %v6150_v5 = vld [vmem:[%s17775_s25] sm:$0xff] }
 0x415   : > { %v2332_v11 = vrot.slane %v2324_v8, %v16419_v45  ;;  %v2339_v32 = vrot.slane %v2325_v26, %v16419_v45  ;;  %v6165_v8 = vand.u32 4294901760, %v6150_v5 }
 0x416   : > { %v4723_v63 = vand.u32 4294901760, %v4722_v18 }
 0x417   : > { %v2344_v19 = vcombine.low %v2300_v10, %v2332_v11  ;;  %v2345_v13 = vcombine.high %v2300_v10, %v2332_v11  ;;  %v2346_v34 = vcombine.low %v2307_v31, %v2339_v32  ;;  %v2347_v35 = vcombine.high %v2307_v31, %v2339_v32 }
 0x419   : > { %v4205_v14 = vand.u32 4294901760, %v2344_v19  ;;  %v4654_v12 = vand.u32 4294901760, %v2345_v13  ;;  %v16691_v36 = vand.u32 4294901760, %v2346_v34  ;;  %v16697_v38 = vand.u32 4294901760, %v2347_v35 }
 0x41b   : > { %14435 = vmatpush3.msra.mxu0 %v4205_v14  ;;  %v4282_v0 = vsub.f32 %v2344_v19, %v4205_v14  ;;  %14465 = vmatpush3.msra.mxu1 %v4654_v12  ;;  %v4731_v1 = vsub.f32 %v2345_v13, %v4654_v12  ;;  %v5180_v41 = vsub.f32 %v2346_v34, %v16691_v36 }
 0x41c   : > { %14437 = vmatmul.mubr.f32.vlgmr.msra.gmra.mrb[6].mxu0 %v4274_v62  ;;  %14467 = vmatmul.mubr.f32.vlgmr.msra.gmra.mrb[8].mxu1 %v4723_v63  ;;  %v5629_v46 = vsub.f32 %v2347_v35, %v16697_v38  ;;  %v16769_v19 = vsub.f32 %v6150_v5, %v6165_v8  ;;  %v6153_v62 = vld [vmem:[%s17775_s25 + $0x18] sm:$0xff] }
 0x41d   : > { %14439 = vmatprep.subr.mxu0 %v15975_v9  ;;  %14469 = vmatprep.subr.mxu1 %v15975_v9  ;;  %v4283_v20 = vand.u32 4294901760, %v4282_v0  ;;  %v4732_v21 = vand.u32 4294901760, %v4731_v1  ;;  %v5181_v28 = vand.u32 4294901760, %v5180_v41 }
 0x41e   : > { %14441 = vmatprep.mubr.msk.f32.mxu0 %vm15974_vm0, %v15975_v9  ;;  %14471 = vmatprep.mubr.msk.f32.mxu1 %vm15974_vm0, %v15975_v9  ;;  %v5630_v49 = vand.u32 4294901760, %v5629_v46 }
 0x41f   : > { %v4284_v27 = vsub.f32 %v4282_v0, %v4283_v20  ;;  %v4733_v22 = vsub.f32 %v4731_v1, %v4732_v21  ;;  %v5182_v51 = vsub.f32 %v5180_v41, %v5181_v28 }
 0x421   : > { %v4285_v23 = vand.u32 4294901760, %v4284_v27  ;;  %v4734_v24 = vand.u32 4294901760, %v4733_v22 }
 0x423   : > { %14440 = vmatpush3.msra.mxu0 %v4285_v23  ;;  %14470 = vmatpush3.msra.mxu1 %v4734_v24  ;;  %v6174_v24 = vand.u32 4294901760, %v6153_v62 }
 0x424   : > { %14442 = vmatmul.mubr.f32.vlgmr.msra.gmra.mrb[6].mxu0 %v16642_v50  ;;  %14444 = vmatprep.subr.mxu0 %v15975_v9 }
 0x425   : > { %14472 = vmatmul.mubr.f32.vlgmr.msra.gmra.mrb[8].mxu1 %v16649_v56  ;;  %14474 = vmatprep.subr.mxu1 %v15975_v9 }
 0x426   : > { %14445 = vmatpush3.msra.mxu0 %v4282_v0  ;;  %14475 = vmatpush3.msra.mxu1 %v4731_v1 }
 0x427   : > { %14446 = vmatprep.mubr.msk.f32.mxu0 %vm15974_vm0, %v15975_v9  ;;  %14449 = vmatprep.subr.mxu0 %v15975_v9 }
 0x428   : > { %14476 = vmatprep.mubr.msk.f32.mxu1 %vm15974_vm0, %v15975_v9  ;;  %14479 = vmatprep.subr.mxu1 %v15975_v9 }
 0x42c   : > { %14447 = vmatmul.mubr.f32.vlgmr.msra.gmra.mrb[6].mxu0 %v16647_v55  ;;  %v5631_v55 = vsub.f32 %v5629_v46, %v5630_v49 }
 0x42d   : > { %14450 = vmatpush3.msra.mxu0 %v4205_v14  ;;  %14477 = vmatmul.mubr.f32.vlgmr.msra.gmra.mrb[8].mxu1 %v4720_v61 }
 0x42e   : > { %14480 = vmatpush3.msra.mxu1 %v4654_v12  ;;  %14451 = vmatprep.mubr.msk.f32.mxu0 %vm15974_vm0, %v15975_v9  ;;  %v5632_v59 = vand.u32 4294901760, %v5631_v55 }
 0x42f   : > { %14454 = vmatprep.subr.mxu0 %v15975_v9  ;;  %14481 = vmatprep.mubr.msk.f32.mxu1 %vm15974_vm0, %v15975_v9 }
 0x430   : > { %14484 = vmatprep.subr.mxu1 %v15975_v9 }
 0x433   : > { %v4189_v30 = vpop.xlane.xlu0 %4188 }
 0x434   : > { %15866 = vrcp.f32 %v4189_v30  ;;  %14452 = vmatmul.mubr.f32.vlgmr.msra.gmra.mrb[6].mxu0 %v4272_v6  ;;  %v6151_v6 = vld [vmem:[%s17775_s25 + $0x8] sm:$0xff] }
 0x435   : > { %14455 = vmatpush3.msra.mxu0 %v4283_v20  ;;  %14482 = vmatmul.mubr.f32.vlgmr.msra.gmra.mrb[8].mxu1 %v4721_v7  ;;  %v6168_v10 = vand.u32 4294901760, %v6151_v6  ;;  %v6246_v20 = vand.u32 4294901760, %v16769_v19 }
 0x436   : > { %14485 = vmatpush3.msra.mxu1 %v4732_v21  ;;  %v4192_v33 = vpop.xlane.xlu1 %4191  ;;  %14456 = vmatprep.mubr.msk.f32.mxu0 %vm15974_vm0, %v15975_v9 }
 0x437   : > { %15868 = vrcp.f32 %v4192_v33  ;;  %14459 = vmatprep.subr.mxu0 %v15975_v9  ;;  %14486 = vmatprep.mubr.msk.f32.mxu1 %vm15974_vm0, %v15975_v9  ;;  %v16771_v13 = vsub.f32 %v6151_v6, %v6168_v10  ;;  %v6247_v30 = vsub.f32 %v16769_v19, %v6246_v20  ;;  %v16793_v33 = vsub.f32 %v6153_v62, %v6174_v24 }
 0x438   : > { %14489 = vmatprep.subr.mxu1 %v15975_v9 }
 0x439   : > { %v6253_v21 = vand.u32 4294901760, %v16771_v13 }
 0x43b   : > { %v6254_v31 = vsub.f32 %v16771_v13, %v6253_v21  ;;  %v15335_v62 = vpack.c.bf16 %v6253_v21, %v6246_v20 }
 0x43c   : > { %14457 = vmatmul.mubr.f32.vlgmr.msra.gmra.mrb[6].mxu0 %v16642_v50 }
 0x43d   : > { %14460 = vmatpush3.msra.mxu0 %v4205_v14  ;;  %14487 = vmatmul.mubr.f32.vlgmr.msra.gmra.mrb[8].mxu1 %v16649_v56 }
 0x43e   : > { %v15867_v37 = vpop.eup %15866  ;;  %14490 = vmatpush3.msra.mxu1 %v4654_v12  ;;  %14461 = vmatprep.mubr.msk.f32.mxu0 %vm15974_vm0, %v15975_v9  ;;  %v6152_v12 = vld [vmem:[%s17775_s25 + $0x10] sm:$0xff]  ;;  %s17777_s25 = sld [smem:[#allocation13_spill]] }
 0x43f   : > { %v4199_v40 = vmul.f32 %v15867_v37, %v16626_v15  ;;  %14491 = vmatprep.mubr.msk.f32.mxu1 %vm15974_vm0, %v15975_v9  ;;  %14494 = vmatprep.subr.mxu0 %v15975_v9  ;;  %v6171_v23 = vand.u32 4294901760, %v6152_v12 }
 0x440   : > { %14524 = vmatprep.subr.mxu1 %v15975_v9 }
 0x441   : > { %v15869_v42 = vpop.eup %15868  ;;  %v5100_v43 = vsel %vm2348_vm2, %v4199_v40, 0  ;;  %v16791_v32 = vsub.f32 %v6152_v12, %v6171_v23  ;;  %v6255_v40 = vand.u32 4294901760, %v6254_v31 }
 0x442   : > { %v4200_v44 = vmul.f32 %v15869_v42, %v16628_v16  ;;  %v16708_v47 = vand.u32 4294901760, %v5100_v43 }
 0x444   : > { %14462 = vmatmul.mubr.f32.vlgmr.msra.gmra.mrb[6].mxu0 %v16642_v50  ;;  %v5169_v15 = vsub.f32 %v5100_v43, %v16708_v47  ;;  %v5549_v29 = vsel %vm2348_vm2, %v4200_v44, 0 }
 0x445   : > { %14492 = vmatmul.mubr.f32.vlgmr.msra.gmra.mrb[8].mxu1 %v16649_v56  ;;  %14495 = vmatpush3.msra.mxu0 %v16691_v36  ;;  %v5617_v48 = vand.u32 4294901760, %v5549_v29  ;;  %v5183_v56 = vand.u32 4294901760, %v5182_v51 }
 0x446   : > { %14525 = vmatpush3.msra.mxu1 %v16697_v38  ;;  %14496 = vmatprep.mubr.msk.f32.mxu0 %vm15974_vm0, %v15975_v9  ;;  %v5170_v16 = vand.u32 4294901760, %v5169_v15 }
 0x447   : > { %14499 = vmatprep.subr.mxu0 %v15975_v9  ;;  %14526 = vmatprep.mubr.msk.f32.mxu1 %vm15974_vm0, %v15975_v9  ;;  %v5618_v50 = vsub.f32 %v5549_v29, %v5617_v48 }
 0x448   : > { %v5171_v52 = vsub.f32 %v5169_v15, %v5170_v16  ;;  %14529 = vmatprep.subr.mxu1 %v15975_v9 }
 0x449   : > { %v5619_v53 = vand.u32 4294901760, %v5618_v50 }
 0x44a   : > { %v5172_v54 = vand.u32 4294901760, %v5171_v52 }
 0x44b   : > { %v5620_v57 = vsub.f32 %v5618_v50, %v5619_v53 }
 0x44c   : > { %14497 = vmatmul.mubr.f32.vlgmr.msra.gmra.mrb[8].mxu0 %v5172_v54 }
 0x44d   : > { %14500 = vmatpush3.msra.mxu0 %v5183_v56  ;;  %v5621_v58 = vand.u32 4294901760, %v5620_v57  ;;  %14501 = vmatprep.mubr.msk.f32.mxu0 %vm15974_vm0, %v15975_v9 }
 0x44e   : > { %14504 = vmatprep.subr.mxu0 %v15975_v9 }
 0x44f   : > { %14527 = vmatmul.mubr.f32.vlgmr.msra.gmra.mrb[10].mxu1 %v5621_v58 }
 0x450   : > { %14530 = vmatpush3.msra.mxu1 %v5632_v59  ;;  %14531 = vmatprep.mubr.msk.f32.mxu1 %vm15974_vm0, %v15975_v9 }
 0x451   : > { %14534 = vmatprep.subr.mxu1 %v15975_v9 }
 0x454   : > { %14502 = vmatmul.mubr.f32.vlgmr.msra.gmra.mrb[8].mxu0 %v16708_v47 }
 0x455   : > { %14505 = vmatpush3.msra.mxu0 %v5180_v41  ;;  %14506 = vmatprep.mubr.msk.f32.mxu0 %vm15974_vm0, %v15975_v9 }
 0x456   : > { %14509 = vmatprep.subr.mxu0 %v15975_v9 }
 0x457   : > { %14532 = vmatmul.mubr.f32.vlgmr.msra.gmra.mrb[10].mxu1 %v5617_v48 }
 0x458   : > { %14535 = vmatpush3.msra.mxu1 %v5629_v46  ;;  %14536 = vmatprep.mubr.msk.f32.mxu1 %vm15974_vm0, %v15975_v9 }
 0x459   : > { %14539 = vmatprep.subr.mxu1 %v15975_v9 }
 0x45c   : > { %14507 = vmatmul.mubr.f32.vlgmr.msra.gmra.mrb[8].mxu0 %v5169_v15 }
 0x45d   : > { %14510 = vmatpush3.msra.mxu0 %v16691_v36  ;;  %14511 = vmatprep.mubr.msk.f32.mxu0 %vm15974_vm0, %v15975_v9 }
 0x45e   : > { %14514 = vmatprep.subr.mxu0 %v15975_v9 }
 0x45f   : > { %14537 = vmatmul.mubr.f32.vlgmr.msra.gmra.mrb[10].mxu1 %v5618_v50 }
 0x460   : > { %14540 = vmatpush3.msra.mxu1 %v16697_v38  ;;  %14541 = vmatprep.mubr.msk.f32.mxu1 %vm15974_vm0, %v15975_v9 }
 0x461   : > { %14544 = vmatprep.subr.mxu1 %v15975_v9 }
 0x464   : > { %14512 = vmatmul.mubr.f32.vlgmr.msra.gmra.mrb[8].mxu0 %v5170_v16 }
 0x465   : > { %14515 = vmatpush3.msra.mxu0 %v5181_v28  ;;  %14516 = vmatprep.mubr.msk.f32.mxu0 %vm15974_vm0, %v15975_v9  ;;  %v6267_v28 = vand.u32 4294901760, %v16793_v33 }
 0x466   : > { %14519 = vmatprep.subr.mxu0 %v15975_v9 }
 0x467   : > { %14542 = vmatmul.mubr.f32.vlgmr.msra.gmra.mrb[10].mxu1 %v5619_v53  ;;  %v6268_v51 = vsub.f32 %v16793_v33, %v6267_v28 }
 0x468   : > { %14545 = vmatpush3.msra.mxu1 %v5630_v49  ;;  %14546 = vmatprep.mubr.msk.f32.mxu1 %vm15974_vm0, %v15975_v9 }
 0x469   : > { %14549 = vmatprep.subr.mxu1 %v15975_v9  ;;  %v6269_v56 = vand.u32 4294901760, %v6268_v51  ;;  %v7325_v51 = vld [vmem:[%s17703_s15] sm:$0xff] }
 0x46c   : > { %14517 = vmatmul.mubr.f32.vlgmr.msra.gmra.mrb[8].mxu0 %v16708_v47 }
 0x46d   : > { %14520 = vmatpush3.msra.mxu0 %v16691_v36  ;;  %14521 = vmatprep.mubr.msk.f32.mxu0 %vm15974_vm0, %v15975_v9 }
 0x46e   : > { %15310 = vmatprep.subr.bf16.mxu0 %v15973_v3 }
 0x46f   : > { %14547 = vmatmul.mubr.f32.vlgmr.msra.gmra.mrb[10].mxu1 %v5617_v48 }
 0x470   : > { %14550 = vmatpush3.msra.mxu1 %v16697_v38  ;;  %14551 = vmatprep.mubr.msk.f32.mxu1 %vm15974_vm0, %v15975_v9  ;;  %v6248_v38 = vand.u32 4294901760, %v6247_v30 }
 0x471   : > { %15316 = vmatprep.subr.bf16.mxu1 %v15973_v3 }
 0x472   : > { %v15317_v46 = vpack.c.bf16 %v6255_v40, %v6248_v38 }
 0x474   : > { %14522 = vmatmul.mubr.f32.vlgmr.msra.gmra.mrb[8].mxu0 %v16708_v47  ;;  %v6260_v47 = vand.u32 4294901760, %v16791_v32 }
 0x475   : > { %14562 = vmatprep.mubr.msk.f32.mxu0 %vm15974_vm0, %v15975_v9 }
 0x476   : > { %v6261_v49 = vsub.f32 %v16791_v32, %v6260_v47 }
 0x477   : > { %14552 = vmatmul.mubr.f32.vlgmr.msra.gmra.mrb[10].mxu1 %v5617_v48 }
 0x478   : > { %14573 = vmatprep.mubr.msk.f32.mxu1 %vm15974_vm0, %v15975_v9  ;;  %15318 = vmatpush3.bf16.msra.mxu1 %v15317_v46  ;;  %v6262_v55 = vand.u32 4294901760, %v6261_v49 }
 0x479   : > { %15319 = vmatprep.subr.bf16.mxu1 %v15973_v3 }
 0x517   : > { %v4646_v60 = vpop.f32.mrb[6].mxu0 }
 0x518   : > { %v5095_v61 = vpop.f32.mrb[8].mxu1  ;;  %v14463_v2 = vpop.f32.mrb[7].mxu0 }
 0x519   : > { %v14493_v4 = vpop.f32.mrb[9].mxu1  ;;  %v15311_v2 = vpack.c.bf16 %v6168_v10, %v6165_v8  ;;  %v15323_v8 = vpack.c.bf16 %v16771_v13, %v16769_v19  ;;  %v15326_v10 = vpack.c.bf16 %v16793_v33, %v16791_v32  ;;  %v13697_v32 = vld [vmem:[%s17776_s10] ss:$0 sm:$0xff]  ;;  %s17786_s10 = smov 96  }
 0x51b   : > { %15312 = vmatpush3.bf16.msra.mxu0 %v15311_v2 }
 0x51c   : > { %15313 = vmatprep.subr.bf16.mxu0 %v15973_v3 }
 0x547   : > { %v5544_v7 = vpop.f32.mrb[8].mxu0 }
 0x548   : > { %v5997_v11 = vcombine.low %v4646_v60, %v5544_v7  ;;  %v5998_v17 = vcombine.high %v4646_v60, %v5544_v7  ;;  %v14523_v18 = vpop.f32.mrb[9].mxu0 }
 0x54a   : > { %v5993_v14 = vpop.f32.mrb[10].mxu1  ;;  %v6005_v27 = vrot.slane %v5997_v11, %v16417_v39  ;;  %v6012_v22 = vrot.slane %v5998_v17, %v16417_v39  ;;  %v15314_v11 = vpack.c.bf16 %v6174_v24, %v6171_v23 }
 0x54b   : > { %v6013_v63 = vcombine.low %v5095_v61, %v5993_v14  ;;  %v6014_v0 = vcombine.high %v5095_v61, %v5993_v14  ;;  %v14553_v1 = vpop.f32.mrb[11].mxu1  ;;  %v15320_v61 = vpack.c.bf16 %v6269_v56, %v6262_v55  ;;  %v7328_v55 = vld [vmem:[%s17703_s15 + $0x18] sm:$0xff] }
 0x54c   : > { %15315 = vmatpush3.bf16.msra.mxu0 %v15314_v11 }
 0x54d   : > { %v6021_v25 = vrot.slane %v6013_v63, %v16417_v39  ;;  %v6028_v26 = vrot.slane %v6014_v0, %v16417_v39  ;;  %15321 = vmatpush3.bf16.msra.mxu1 %v15320_v61  ;;  %15322 = vmatprep.subr.bf16.mxu0 %v15973_v3  ;;  %v15338_v63 = vpack.c.bf16 %v6267_v28, %v6260_v47 }
 0x54e   : > { %15328 = vmatprep.subr.bf16.mxu1 %v15973_v3 }
 0x54f   : > { %v6029_v34 = vcombine.low %v6005_v27, %v6021_v25  ;;  %v6030_v35 = vcombine.high %v6005_v27, %v6021_v25  ;;  %v6045_v36 = vcombine.low %v6012_v22, %v6028_v26  ;;  %v6046_v37 = vcombine.high %v6012_v22, %v6028_v26 }
 0x551   : > { %v6037_v41 = vrot.slane %v6029_v34, %v16419_v45  ;;  %v6044_v42 = vrot.slane %v6030_v35, %v16419_v45  ;;  %v6053_v43 = vrot.slane %v6045_v36, %v16419_v45  ;;  %v6060_v44 = vrot.slane %v6046_v37, %v16419_v45 }
 0x553   : > { %v6065_v15 = vcombine.low %v6037_v41, %v6044_v42  ;;  %v13695_v29 = vcombine.high %v6037_v41, %v6044_v42  ;;  %v6081_v48 = vcombine.low %v6053_v43, %v6060_v44  ;;  %v13696_v16 = vcombine.high %v6053_v43, %v6060_v44 }
 0x555   : > { %v6072_v50 = vrot.slane %v6065_v15, %v16417_v39  ;;  %v6080_v52 = vrot.slane %v13695_v29, %v16417_v39  ;;  %v6088_v53 = vrot.slane %v6081_v48, %v16417_v39  ;;  %v6096_v54 = vrot.slane %v13696_v16, %v16417_v39  ;;  %v15892_v48 = vld [vmem:[%s16243_s27] sm:$0xff]  ;;  %s896_s27 = scalar_lea.vmem %s17777_s25, %s16232_s26  ;;  %s17782_s25 = smov 120  }
 0x557   : > { %v6098_v57 = vcombine.high %v6072_v50, %v6080_v52  ;;  %v6114_v58 = vcombine.high %v6088_v53, %v6096_v54  ;;  %v6097_v59 = vcombine.low %v6072_v50, %v6080_v52  ;;  %v6113_v60 = vcombine.low %v6088_v53, %v6096_v54  ;;  %v7326_v50 = vld [vmem:[%s17703_s15 + $0x8] sm:$0xff]  ;;  %v7327_v52 = vld [vmem:[%s17703_s15 + $0x10] sm:$0xff] }
 0x558   : > { %v7340_v53 = vand.u32 4294901760, %v7325_v51  ;;  %v7343_v54 = vand.u32 4294901760, %v7326_v50  ;;  %v7346_v56 = vand.u32 4294901760, %v7327_v52 }
 0x559   : > { %v6112_v4 = vrot.slane %v6098_v57, %v16419_v45  ;;  %v6128_v5 = vrot.slane %v6114_v58, %v16419_v45  ;;  %v6105_v6 = vrot.slane %v6097_v59, %v16419_v45  ;;  %v6121_v7 = vrot.slane %v6113_v60, %v16419_v45  ;;  %v906_v57 = vld [vmem:[%s896_s27] sm:$0xff]  ;;  %s17787_s27 = smov 80  }
 0x55a   : > { %v7349_v58 = vand.u32 4294901760, %v7328_v55  ;;  %v7337_v59 = vsel %vm920_vm1, %v906_v57, 0  ;;  %v16872_v60 = vpack.c.bf16 %v7343_v54, %v7340_v53  ;;  %v7420_v61 = vsub.f32 %v7325_v51, %v7340_v53 }
 0x55b   : > { %v6131_v17 = vcombine.low %v6112_v4, %v6128_v5  ;;  %v6130_v18 = vcombine.high %v6105_v6, %v6121_v7  ;;  %v6132_v14 = vcombine.high %v6112_v4, %v6128_v5  ;;  %v6129_v12 = vcombine.low %v6105_v6, %v6121_v7 }
 0x55c   : > { %v7434_v4 = vsub.f32 %v7327_v52, %v7346_v56  ;;  %v7441_v5 = vsub.f32 %v7328_v55, %v7349_v58  ;;  %v16874_v6 = vand.u32 4294901760, %v7337_v59  ;;  %v16877_v7 = vpack.c.bf16 %v7349_v58, %v7346_v56 }
 0x55d   : > { %6138 = vrot.lane.b32.xlu1 %v6131_v17, %s17733_s2  ;;  %6134 = vrot.lane.b32.xlu0 %v6130_v18, %s17732_s6  ;;  %s17783_s2 = smov 104  }
 0x55e   : > { %v7409_v18 = vsub.f32 %v7337_v59, %v16874_v6 }
 0x561   : > { %6142 = vrot.lane.b32.xlu0 %v6132_v14, %s17731_s3  ;;  %s17792_s3 = sld [smem:[#allocation25_spill]] }
 0x5cf   : > { %v6135_v0 = vpop.permute.xlu0 %6134  ;;  %v6139_v1 = vpop.permute.xlu1 %6138 }
 0x5d0   : > { %v6145_v27 = vsel %vm2348_vm2, %v6129_v12, %v6135_v0 }
 0x5d1   : > { %v6147_v23 = vsel %vm6146_vm3, %v6145_v27, %v6139_v1 }
 0x5d3   : > { %v6143_v22 = vpop.permute.xlu0 %6142 }
 0x5d4   : > { %v6149_v24 = vsel %vm6148_vm4, %v6147_v23, %v6143_v22 }
 0x5d5   : > { %v6162_v25 = vsel %vm920_vm1, %v6149_v24, 0 }
 0x5d6   : > { %v6233_v26 = vand.u32 4294901760, %v6162_v25 }
 0x5d8   : > { %v6234_v30 = vsub.f32 %v6162_v25, %v6233_v26  ;;  %14574 = vmatmul.mubr.f32.vlgmr.msra.gmra.mrb[12].mxu1 %v6233_v26 }
 0x5d9   : > { %15330 = vmatpush3.bf16.msra.mxu1 %v15311_v2  ;;  %14595 = vmatprep.mubr.msk.f32.mxu1 %vm15974_vm0, %v15975_v9 }
 0x5da   : > { %15331 = vmatprep.subr.bf16.mxu1 %v15973_v3  ;;  %v6235_v19 = vand.u32 4294901760, %v6234_v30 }
 0x5dc   : > { %v6236_v13 = vsub.f32 %v6234_v30, %v6235_v19 }
 0x5dd   : > { %15333 = vmatpush3.bf16.msra.mxu1 %v15314_v11 }
 0x5de   : > { %15340 = vmatprep.subr.bf16.mxu1 %v15973_v3  ;;  %v6237_v20 = vand.u32 4294901760, %v6236_v13 }
 0x5e0   : > { %14596 = vmatmul.mubr.f32.vlgmr.msra.gmra.mrb[14].mxu1 %v6235_v19  ;;  %14563 = vmatmul.mubr.f32.vlgmr.msra.gmra.mrb[10].mxu0 %v6237_v20 }
 0x5e1   : > { %15324 = vmatpush3.bf16.msra.mxu0 %v15323_v8  ;;  %15342 = vmatpush3.bf16.msra.mxu1 %v15311_v2  ;;  %v7427_v2 = vsub.f32 %v7326_v50, %v7343_v54  ;;  %v7410_v8 = vand.u32 4294901760, %v7409_v18 }
 0x5e2   : > { %15325 = vmatprep.subr.bf16.mxu0 %v15973_v3  ;;  %15343 = vmatprep.subr.bf16.mxu1 %v15973_v3 }
 0x5e3   : > { %14584 = vmatprep.mubr.msk.f32.mxu0 %vm15974_vm0, %v15975_v9  ;;  %14617 = vmatprep.mubr.msk.f32.mxu1 %vm15974_vm0, %v15975_v9  ;;  %v7428_v17 = vand.u32 4294901760, %v7427_v2 }
 0x5e5   : > { %15327 = vmatpush3.bf16.msra.mxu0 %v15326_v10  ;;  %15345 = vmatpush3.bf16.msra.mxu1 %v15314_v11  ;;  %v7421_v11 = vand.u32 4294901760, %v7420_v61  ;;  %v7429_v12 = vsub.f32 %v7427_v2, %v7428_v17 }
 0x5e6   : > { %15334 = vmatprep.subr.bf16.mxu0 %v15973_v3  ;;  %15382 = vmatprep.subr.bf16.mxu1 %v15973_v3 }
 0x5e7   : > { %v7422_v14 = vsub.f32 %v7420_v61, %v7421_v11 }
 0x5e8   : > { %14585 = vmatmul.mubr.f32.vlgmr.msra.gmra.mrb[12].mxu0 %v6234_v30  ;;  %14618 = vmatmul.mubr.f32.vlgmr.msra.gmra.mrb[16].mxu1 %v6233_v26  ;;  %v7442_v30 = vand.u32 4294901760, %v7441_v5 }
 0x5e9   : > { %15336 = vmatpush3.bf16.msra.mxu0 %v15335_v62  ;;  %14606 = vmatprep.mubr.msk.f32.mxu0 %vm15974_vm0, %v15975_v9  ;;  %v7423_v10 = vand.u32 4294901760, %v7422_v14  ;;  %v7430_v62 = vand.u32 4294901760, %v7429_v12 }
 0x5ea   : > { %15337 = vmatprep.subr.bf16.mxu0 %v15973_v3  ;;  %14694 = vmatprep.mubr.msk.f32.mxu1 %vm15974_vm0, %v15975_v9  ;;  %v7443_v13 = vsub.f32 %v7441_v5, %v7442_v30 }
 0x5eb   : > { %15384 = vmatpush3.bf16.msra.mxu1 %v16872_v60  ;;  %v15389_v0 = vpack.c.bf16 %v7430_v62, %v7423_v10 }
 0x5ec   : > { %15385 = vmatprep.subr.bf16.mxu1 %v15973_v3 }
 0x5ed   : > { %15339 = vmatpush3.bf16.msra.mxu0 %v15338_v63  ;;  %v7411_v63 = vsub.f32 %v7409_v18, %v7410_v8 }
 0x5ee   : > { %15346 = vmatprep.subr.bf16.mxu0 %v15973_v3 }
 0x5ef   : > { %15387 = vmatpush3.bf16.msra.mxu1 %v16877_v7  ;;  %v7412_v1 = vand.u32 4294901760, %v7411_v63 }
 0x5f0   : > { %14607 = vmatmul.mubr.f32.vlgmr.msra.gmra.mrb[14].mxu0 %v6233_v26  ;;  %15388 = vmatprep.subr.bf16.mxu1 %v15973_v3  ;;  %v7435_v26 = vand.u32 4294901760, %v7434_v4 }
 0x5f1   : > { %14628 = vmatprep.mubr.msk.f32.mxu0 %vm15974_vm0, %v15975_v9 }
 0x5f2   : > { %14695 = vmatmul.mubr.f32.vlgmr.msra.gmra.mrb[18].mxu1 %v7412_v1  ;;  %v7436_v19 = vsub.f32 %v7434_v4, %v7435_v26 }
 0x5f3   : > { %15390 = vmatpush3.bf16.msra.mxu1 %v15389_v0  ;;  %14705 = vmatprep.mubr.msk.f32.mxu1 %vm15974_vm0, %v15975_v9 }
 0x5f4   : > { %15391 = vmatprep.subr.bf16.mxu1 %v15973_v3  ;;  %v7437_v20 = vand.u32 4294901760, %v7436_v19 }
 0x6ab   : > { %v6330_v21 = vpop.f32.mrb[12].mxu1 }
 0x6ac   : > { %v14575_v31 = vpop.f32.mrb[13].mxu1 }
 0x6b3   : > { %v6487_v33 = vpop.f32.mrb[14].mxu1  ;;  %v6239_v34 = vpop.f32.mrb[10].mxu0 }
 0x6b4   : > { %v6240_v35 = vadd.f32 %v13697_v32, %v6239_v34  ;;  %v14597_v36 = vpop.f32.mrb[15].mxu1  ;;  %v14564_v37 = vpop.f32.mrb[11].mxu0  ;;  %v15395_v32 = vpack.c.bf16 %v7427_v2, %v7420_v61  ;;  %v6680_v34 = vld [vmem:[%s17778_s13] sm:$0xff] }
 0x6b5   : > { %v15410_v36 = vpack.c.bf16 %v7442_v30, %v7435_v26  ;;  %v6682_v37 = vld [vmem:[%s17778_s13 + $0x10] sm:$0xff]  ;;  %v13700_v26 = vld [vmem:[%s17702_s14] ss:$0 sm:$0xff] }
 0x6b6   : > { %v6331_v38 = vadd.f32 %v6330_v21, %v6240_v35  ;;  %v7444_v21 = vand.u32 4294901760, %v7443_v13  ;;  %v6681_v35 = vld [vmem:[%s17778_s13 + $0x8] sm:$0xff] }
 0x6b8   : > { %v15392_v31 = vpack.c.bf16 %v7444_v21, %v7437_v20  ;;  %v13703_v20 = vld [vmem:[%s17704_s16] ss:$0 sm:$0xff] }
 0x6ba   : > { %15393 = vmatpush3.bf16.msra.mxu1 %v15392_v31 }
 0x6bb   : > { %v6410_v40 = vpop.f32.mrb[12].mxu0  ;;  %v6645_v41 = vpop.f32.mrb[16].mxu1  ;;  %15394 = vmatprep.subr.bf16.mxu1 %v15973_v3 }
 0x6bc   : > { %v6411_v42 = vadd.f32 %v6410_v40, %v6331_v38  ;;  %v14586_v43 = vpop.f32.mrb[13].mxu0  ;;  %v14619_v44 = vpop.f32.mrb[17].mxu1  ;;  %v6695_v38 = vand.u32 4294901760, %v6680_v34  ;;  %v6698_v40 = vand.u32 4294901760, %v6681_v35 }
 0x6bd   : > { %14706 = vmatmul.mubr.f32.vlgmr.msra.gmra.mrb[18].mxu1 %v16874_v6  ;;  %v15407_v43 = vpack.c.bf16 %v7428_v17, %v7421_v11 }
 0x6be   : > { %v6488_v46 = vadd.f32 %v6487_v33, %v6411_v42  ;;  %15396 = vmatpush3.bf16.msra.mxu1 %v15395_v32  ;;  %14716 = vmatprep.mubr.msk.f32.mxu1 %vm15974_vm0, %v15975_v9  ;;  %v15398_v33 = vpack.c.bf16 %v7441_v5, %v7434_v4  ;;  %v6701_v42 = vand.u32 4294901760, %v6682_v37 }
 0x6bf   : > { %15397 = vmatprep.subr.bf16.mxu1 %v15973_v3 }
 0x6c2   : > { %15399 = vmatpush3.bf16.msra.mxu1 %v15398_v33 }
 0x6c3   : > { %v6570_v47 = vpop.f32.mrb[14].mxu0  ;;  %15400 = vmatprep.subr.bf16.mxu1 %v15973_v3 }
 0x6c4   : > { %v6571_v28 = vadd.f32 %v6570_v47, %v6488_v46  ;;  %v14608_v15 = vpop.f32.mrb[15].mxu0  ;;  %v16915_v46 = vpack.c.bf16 %v6698_v40, %v6695_v38  ;;  %v16917_v47 = vsub.f32 %v6680_v34, %v6695_v38 }
 0x6c5   : > { %14717 = vmatmul.mubr.f32.vlgmr.msra.gmra.mrb[18].mxu1 %v7409_v18  ;;  %v16921_v15 = vsub.f32 %v6682_v37, %v6701_v42 }
 0x6c6   : > { %v6646_v29 = vadd.f32 %v6645_v41, %v6571_v28  ;;  %15402 = vmatpush3.bf16.msra.mxu1 %v16872_v60  ;;  %14727 = vmatprep.mubr.msk.f32.mxu1 %vm15974_vm0, %v15975_v9  ;;  %v6683_v41 = vld [vmem:[%s17778_s13 + $0x18] sm:$0xff]  ;;  %v16919_v28 = vsub.f32 %v6681_v35, %v6698_v40 }
 0x6c7   : > { %15403 = vmatprep.subr.bf16.mxu1 %v15973_v3  ;;  %v6704_v44 = vand.u32 4294901760, %v6683_v41  ;;  %15348 = vmatpush3.bf16.msra.mxu0 %v16915_v46  ;;  %v6790_v54 = vand.u32 4294901760, %v16921_v15 }
 0x6c8   : > { %v6649_v16 = vadd.f32 %v15892_v48, %v6646_v29  ;;  %15349 = vmatprep.subr.bf16.mxu0 %v15973_v3  ;;  %v15359_v2 = vpack.c.bf16 %v16919_v28, %v16917_v47 }
 0x6c9   : > { %v16923_v29 = vsub.f32 %v6683_v41, %v6704_v44  ;;  %v16926_v48 = vpack.c.bf16 %v6704_v44, %v6701_v42  ;;  %v6791_v57 = vsub.f32 %v16921_v15, %v6790_v54 }
 0x6ca   : > { %v6652_v49 = vsel %vm920_vm1, %v6649_v16, 0.0  ;;  %15405 = vmatpush3.bf16.msra.mxu1 %v16877_v7 }
 0x6cb   : > { %6653 = vadd.xlane.f32.xlu1 %v6652_v49  ;;  %15406 = vmatprep.subr.bf16.mxu1 %v15973_v3  ;;  %v6783_v49 = vand.u32 4294901760, %v16919_v28  ;;  %v6797_v55 = vand.u32 4294901760, %v16923_v29  ;;  %v6792_v59 = vand.u32 4294901760, %v6791_v57  ;;  %v15362_v4 = vpack.c.bf16 %v16923_v29, %v16921_v15 }
 0x6cc   : > { %15351 = vmatpush3.bf16.msra.mxu0 %v16926_v48 }
 0x6cd   : > { %14728 = vmatmul.mubr.f32.vlgmr.msra.gmra.mrb[18].mxu1 %v7410_v8  ;;  %15352 = vmatprep.subr.bf16.mxu0 %v15973_v3  ;;  %v6784_v50 = vsub.f32 %v16919_v28, %v6783_v49  ;;  %v6798_v58 = vsub.f32 %v16923_v29, %v6797_v55  ;;  %v15374_v11 = vpack.c.bf16 %v6797_v55, %v6790_v54  ;;  %v13699_v8 = vld [vmem:[%s17780_s12] ss:$0 sm:$0xff]  ;;  %s17795_s12 = smov %s17794_s7 }
 0x6ce   : > { %15408 = vmatpush3.bf16.msra.mxu1 %v15407_v43  ;;  %14738 = vmatprep.mubr.msk.f32.mxu1 %vm15974_vm0, %v15975_v9 }
 0x6cf   : > { %15409 = vmatprep.subr.bf16.mxu1 %v15973_v3  ;;  %v6785_v53 = vand.u32 4294901760, %v6784_v50 }
 0x6d2   : > { %15411 = vmatpush3.bf16.msra.mxu1 %v15410_v36 }
 0x6d3   : > { %15412 = vmatprep.subr.bf16.mxu1 %v15973_v3 }
 0x6d5   : > { %14739 = vmatmul.mubr.f32.vlgmr.msra.gmra.mrb[18].mxu1 %v16874_v6 }
 0x6d6   : > { %15414 = vmatpush3.bf16.msra.mxu1 %v16872_v60  ;;  %14749 = vmatprep.mubr.msk.f32.mxu1 %vm15974_vm0, %v15975_v9  ;;  %v6799_v60 = vand.u32 4294901760, %v6798_v58 }
 0x6d7   : > { %15415 = vmatprep.subr.bf16.mxu1 %v15973_v3 }
 0x6d8   : > { %v15356_v61 = vpack.c.bf16 %v6799_v60, %v6792_v59 }
 0x6da   : > { %15417 = vmatpush3.bf16.msra.mxu1 %v16877_v7 }
 0x6db   : > { %14782 = vmatprep.subr.mxu1 %v15975_v9 }
 0x6dd   : > { %14750 = vmatmul.mubr.f32.vlgmr.msra.gmra.mrb[18].mxu1 %v16874_v6  ;;  %v13698_v6 = vld [vmem:[%s17779_s9] ss:$0 sm:$0xff]  ;;  %s903_s9 = scalar_lea.vmem %s17784_s8, %s16218_s29  ;;  %s17785_s29 = smov 88  }
 0x6de   : > { %14784 = vmatprep.mubr.msk.f32.mxu1 %vm15974_vm0, %v15975_v9  ;;  %s17789_s8 = smov 16  }
 0x758   : > { %v6654_v27 = vpop.xlane.xlu1 %6653 }
 0x759   : > { %v6656_v22 = vmul.f32 0.03125, %v6654_v27 }
 0x75b   : > { %v16886_v23 = vsub.f32 %v6649_v16, %v6656_v22  ;;  %v6776_v16 = vand.u32 4294901760, %v16917_v47 }
 0x75d   : > { %v6658_v24 = vmul.f32 %v16886_v23, %v16886_v23  ;;  %v6777_v51 = vsub.f32 %v16917_v47, %v6776_v16  ;;  %v15371_v5 = vpack.c.bf16 %v6783_v49, %v6776_v16 }
 0x75f   : > { %v6659_v25 = vsel %vm920_vm1, %v6658_v24, 0.0  ;;  %v6778_v52 = vand.u32 4294901760, %v6777_v51 }
 0x760   : > { %6660 = vadd.xlane.f32.xlu0 %v6659_v25 }
 0x761   : > { %v15353_v56 = vpack.c.bf16 %v6785_v53, %v6778_v52 }
 0x7ed   : > { %v6661_v17 = vpop.xlane.xlu0 %6660 }
 0x7ee   : > { %v6662_v7 = vmul.f32 0.03125, %v6661_v17 }
 0x7f0   : > { %v6663_v18 = vadd.f32 1e-05, %v6662_v7 }
 0x7f2   : > { %15870 = vrsqrt.f32 %v6663_v18 }
 0x7fc   : > { %v15871_v14 = vpop.eup %15870 }
 0x7fd   : > { %v6665_v12 = vmul.f32 %v15871_v14, %v16886_v23  ;;  %v7820_v23 = vpop.f32.mrb[18].mxu1 }
 0x7fe   : > { %v14751_v25 = vpop.f32.mrb[19].mxu1  ;;  %v17002_v21 = vadd.f32 %v13703_v20, %v7820_v23 }
 0x7ff   : > { %v6672_v10 = vmul.f32 %v13698_v6, %v6665_v12 }
 0x801   : > { %v16964_v62 = vadd.f32 %v13699_v8, %v6672_v10 }
 0x803   : > { %v6692_v63 = vsel %vm920_vm1, %v16964_v62, 0 }
 0x804   : > { %v6763_v0 = vand.u32 4294901760, %v6692_v63 }
 0x806   : > { %v6764_v1 = vsub.f32 %v6692_v63, %v6763_v0 }
 0x808   : > { %v6765_v27 = vand.u32 4294901760, %v6764_v1 }
 0x80a   : > { %v6766_v22 = vsub.f32 %v6764_v1, %v6765_v27 }
 0x80c   : > { %v6767_v24 = vand.u32 4294901760, %v6766_v22 }
 0x80e   : > { %14629 = vmatmul.mubr.f32.vlgmr.msra.gmra.mrb[16].mxu0 %v6767_v24 }
 0x80f   : > { %15354 = vmatpush3.bf16.msra.mxu0 %v15353_v56  ;;  %14639 = vmatprep.mubr.msk.f32.mxu0 %vm15974_vm0, %v15975_v9 }
 0x810   : > { %15355 = vmatprep.subr.bf16.mxu0 %v15973_v3 }
 0x813   : > { %15357 = vmatpush3.bf16.msra.mxu0 %v15356_v61 }
 0x814   : > { %15358 = vmatprep.subr.bf16.mxu0 %v15973_v3 }
 0x816   : > { %14640 = vmatmul.mubr.f32.vlgmr.msra.gmra.mrb[16].mxu0 %v6763_v0 }
 0x817   : > { %15360 = vmatpush3.bf16.msra.mxu0 %v15359_v2  ;;  %14650 = vmatprep.mubr.msk.f32.mxu0 %vm15974_vm0, %v15975_v9 }
 0x818   : > { %15361 = vmatprep.subr.bf16.mxu0 %v15973_v3 }
 0x81b   : > { %15363 = vmatpush3.bf16.msra.mxu0 %v15362_v4 }
 0x81c   : > { %15364 = vmatprep.subr.bf16.mxu0 %v15973_v3 }
 0x81e   : > { %14651 = vmatmul.mubr.f32.vlgmr.msra.gmra.mrb[16].mxu0 %v6764_v1 }
 0x81f   : > { %15366 = vmatpush3.bf16.msra.mxu0 %v16915_v46  ;;  %14661 = vmatprep.mubr.msk.f32.mxu0 %vm15974_vm0, %v15975_v9 }
 0x820   : > { %15367 = vmatprep.subr.bf16.mxu0 %v15973_v3 }
 0x823   : > { %15369 = vmatpush3.bf16.msra.mxu0 %v16926_v48 }
 0x824   : > { %15370 = vmatprep.subr.bf16.mxu0 %v15973_v3 }
 0x826   : > { %14662 = vmatmul.mubr.f32.vlgmr.msra.gmra.mrb[16].mxu0 %v6765_v27 }
 0x827   : > { %15372 = vmatpush3.bf16.msra.mxu0 %v15371_v5  ;;  %14672 = vmatprep.mubr.msk.f32.mxu0 %vm15974_vm0, %v15975_v9 }
 0x828   : > { %15373 = vmatprep.subr.bf16.mxu0 %v15973_v3 }
 0x82b   : > { %15375 = vmatpush3.bf16.msra.mxu0 %v15374_v11 }
 0x82c   : > { %15376 = vmatprep.subr.bf16.mxu0 %v15973_v3 }
 0x82e   : > { %14673 = vmatmul.mubr.f32.vlgmr.msra.gmra.mrb[16].mxu0 %v6763_v0 }
 0x82f   : > { %15378 = vmatpush3.bf16.msra.mxu0 %v16915_v46  ;;  %14683 = vmatprep.mubr.msk.f32.mxu0 %vm15974_vm0, %v15975_v9 }
 0x830   : > { %15379 = vmatprep.subr.bf16.mxu0 %v15973_v3 }
 0x833   : > { %15381 = vmatpush3.bf16.msra.mxu0 %v16926_v48 }
 0x834   : > { %14752 = vmatprep.subr.mxu0 %v15975_v9 }
 0x836   : > { %14684 = vmatmul.mubr.f32.vlgmr.msra.gmra.mrb[16].mxu0 %v6763_v0 }
 0x837   : > { %14754 = vmatprep.mubr.msk.f32.mxu0 %vm15974_vm0, %v15975_v9 }
 0x909   : > { %v7175_v30 = vpop.f32.mrb[16].mxu0 }
 0x90a   : > { %v15569_v19 = vadd.f32 %v13700_v26, %v7175_v30  ;;  %v14685_v13 = vpop.f32.mrb[17].mxu0 }
 0x90c   : > { %7183 = vrot.lane.b32.xlu1 %v15569_v19, %s17781_s0  ;;  %7180 = vrot.lane.b32.xlu0 %v15569_v19, %s17782_s25 }
 0x910   : > { %7186 = vrot.lane.b32.xlu1 %v15569_v19, %s17783_s2  ;;  %7825 = vrot.lane.b32.xlu0 %v17002_v21, %s17782_s25 }
 0x914   : > { %7828 = vrot.lane.b32.xlu1 %v17002_v21, %s17781_s0  ;;  %7831 = vrot.lane.b32.xlu0 %v17002_v21, %s17783_s2  ;;  %s879_s0 = sand.u32 1, %s15955_s4  }
 0x915   : > { %s13679_s25 = sshll.u32 %s879_s0, 3  ;;  %s13540_s2 = scalar_lea.sflag [#allocation3], %s879_s0 }
 0x97e   : > { %v7184_v31 = vpop.permute.xlu1 %7183  ;;  %v7181_v32 = vpop.permute.xlu0 %7180 }
 0x97f   : > { %v7189_v33 = vcombine.low %v15569_v19, %v7184_v31  ;;  %v7190_v34 = vcombine.high %v15569_v19, %v7184_v31 }
 0x981   : > { %v7197_v40 = vrot.slane %v7189_v33, %v16417_v39  ;;  %v7204_v41 = vrot.slane %v7190_v34, %v16417_v39 }
 0x982   : > { %v7187_v35 = vpop.permute.xlu1 %7186  ;;  %v7826_v36 = vpop.permute.xlu0 %7825 }
 0x983   : > { %v7205_v37 = vcombine.low %v7181_v32, %v7187_v35  ;;  %v7206_v38 = vcombine.high %v7181_v32, %v7187_v35 }
 0x985   : > { %v7213_v42 = vrot.slane %v7205_v37, %v16417_v39  ;;  %v7220_v43 = vrot.slane %v7206_v38, %v16417_v39 }
 0x986   : > { %v7829_v44 = vpop.permute.xlu1 %7828  ;;  %v7832_v46 = vpop.permute.xlu0 %7831 }
 0x987   : > { %v7221_v47 = vcombine.low %v7197_v40, %v7213_v42  ;;  %v7222_v28 = vcombine.high %v7197_v40, %v7213_v42  ;;  %v7237_v15 = vcombine.low %v7204_v41, %v7220_v43  ;;  %v7238_v29 = vcombine.high %v7204_v41, %v7220_v43 }
 0x988   : > { %v7846_v48 = vcombine.low %v17002_v21, %v7829_v44  ;;  %v7847_v16 = vcombine.high %v17002_v21, %v7829_v44  ;;  %v7862_v49 = vcombine.low %v7826_v36, %v7832_v46  ;;  %v7863_v51 = vcombine.high %v7826_v36, %v7832_v46 }
 0x989   : > { %v7229_v50 = vrot.slane %v7221_v47, %v16419_v45  ;;  %v7236_v52 = vrot.slane %v7222_v28, %v16419_v45  ;;  %v7245_v53 = vrot.slane %v7237_v15, %v16419_v45  ;;  %v7252_v54 = vrot.slane %v7238_v29, %v16419_v45 }
 0x98a   : > { %v7854_v55 = vrot.slane %v7846_v48, %v16417_v39  ;;  %v7861_v56 = vrot.slane %v7847_v16, %v16417_v39  ;;  %v7870_v57 = vrot.slane %v7862_v49, %v16417_v39  ;;  %v7877_v58 = vrot.slane %v7863_v51, %v16417_v39 }
 0x98b   : > { %v7257_v59 = vcombine.low %v7229_v50, %v7236_v52  ;;  %v13701_v60 = vcombine.high %v7229_v50, %v7236_v52  ;;  %v7273_v61 = vcombine.low %v7245_v53, %v7252_v54  ;;  %v13702_v2 = vcombine.high %v7245_v53, %v7252_v54 }
 0x98c   : > { %v7910_v4 = vcombine.low %v7854_v55, %v7870_v57  ;;  %v7911_v5 = vcombine.high %v7854_v55, %v7870_v57  ;;  %v7926_v11 = vcombine.low %v7861_v56, %v7877_v58  ;;  %v7927_v17 = vcombine.high %v7861_v56, %v7877_v58 }
 0x98d   : > { %v17026_v7 = vrot.slane %v7257_v59, %v16417_v39  ;;  %v17029_v18 = vrot.slane %v13701_v60, %v16417_v39  ;;  %v17032_v14 = vrot.slane %v7273_v61, %v16417_v39  ;;  %v17035_v6 = vrot.slane %v13702_v2, %v16417_v39 }
 0x98e   : > { %v7918_v12 = vrot.slane %v7910_v4, %v16419_v45  ;;  %v7925_v8 = vrot.slane %v7911_v5, %v16419_v45  ;;  %v7934_v10 = vrot.slane %v7926_v11, %v16419_v45  ;;  %v7941_v63 = vrot.slane %v7927_v17, %v16419_v45 }
 0x98f   : > { %v7289_v0 = vcombine.low %v17026_v7, %v17029_v18  ;;  %v7305_v1 = vcombine.low %v17032_v14, %v17035_v6  ;;  %v7290_v61 = vcombine.high %v17026_v7, %v17029_v18  ;;  %v7306_v2 = vcombine.high %v17032_v14, %v17035_v6 }
 0x990   : > { %v13704_v27 = vcombine.low %v7918_v12, %v7925_v8  ;;  %v13706_v22 = vcombine.high %v7918_v12, %v7925_v8  ;;  %v13708_v24 = vcombine.low %v7934_v10, %v7941_v63  ;;  %v13710_v23 = vcombine.high %v7934_v10, %v7941_v63 }
 0x991   : > { %v7297_v25 = vrot.slane %v7289_v0, %v16419_v45  ;;  %v7313_v26 = vrot.slane %v7305_v1, %v16419_v45  ;;  %v7304_v11 = vrot.slane %v7290_v61, %v16419_v45  ;;  %v7320_v17 = vrot.slane %v7306_v2, %v16419_v45 }
 0x992   : > { %v17048_v30 = vrot.slane %v13704_v27, %v16417_v39  ;;  %v17051_v19 = vrot.slane %v13706_v22, %v16417_v39  ;;  %v17054_v13 = vrot.slane %v13708_v24, %v16417_v39  ;;  %v17057_v20 = vrot.slane %v13710_v23, %v16417_v39 }
 0x993   : > { %v7321_v31 = vcombine.low %v7297_v25, %v7313_v26  ;;  %v7322_v32 = vcombine.high %v7297_v25, %v7313_v26  ;;  %v7323_v14 = vcombine.low %v7304_v11, %v7320_v17  ;;  %v7324_v6 = vcombine.high %v7304_v11, %v7320_v17 }
 0x994   : > { %v8046_v33 = vcombine.low %v17048_v30, %v17051_v19  ;;  %v8078_v34 = vcombine.low %v17054_v13, %v17057_v20  ;;  %v8047_v4 = vcombine.high %v17048_v30, %v17051_v19  ;;  %v8079_v5 = vcombine.high %v17054_v13, %v17057_v20 }
 0x995   : > { %v8125_v35 = vsel %vm2348_vm2, %v7321_v31, 0  ;;  %v8577_v36 = vsel %vm2348_vm2, %v7322_v32, 0  ;;  %v9029_v10 = vsel %vm2348_vm2, %v7323_v14, 0  ;;  %v9481_v63 = vsel %vm2348_vm2, %v7324_v6, 0 }
 0x996   : > { %v8054_v37 = vrot.slane %v8046_v33, %v16419_v45  ;;  %v8086_v38 = vrot.slane %v8078_v34, %v16419_v45  ;;  %v17067_v40 = vand.u32 4294901760, %v8125_v35  ;;  %v17069_v41 = vand.u32 4294901760, %v8577_v36 }
 0x997   : > { %v8061_v7 = vrot.slane %v8047_v4, %v16419_v45  ;;  %v8093_v18 = vrot.slane %v8079_v5, %v16419_v45  ;;  %v17126_v27 = vand.u32 4294901760, %v9029_v10  ;;  %v17128_v22 = vand.u32 4294901760, %v9481_v63 }
 0x998   : > { %v8110_v42 = vcombine.low %v8054_v37, %v8086_v38  ;;  %v8111_v43 = vcombine.high %v8054_v37, %v8086_v38  ;;  %v8197_v44 = vsub.f32 %v8125_v35, %v17067_v40  ;;  %v8649_v46 = vsub.f32 %v8577_v36, %v17069_v41 }
 0x999   : > { %v8112_v12 = vcombine.low %v8061_v7, %v8093_v18  ;;  %v8113_v8 = vcombine.high %v8061_v7, %v8093_v18  ;;  %v9101_v25 = vsub.f32 %v9029_v10, %v17126_v27  ;;  %v9553_v26 = vsub.f32 %v9481_v63, %v17128_v22 }
 0x99a   : > { %v8128_v47 = vsel %vm2348_vm2, %v8110_v42, 0  ;;  %v8580_v28 = vsel %vm2348_vm2, %v8111_v43, 0  ;;  %v8198_v15 = vand.u32 4294901760, %v8197_v44  ;;  %v8650_v29 = vand.u32 4294901760, %v8649_v46 }
 0x99b   : > { %v17075_v48 = vand.u32 4294901760, %v8128_v47  ;;  %v17077_v16 = vand.u32 4294901760, %v8580_v28  ;;  %v9032_v0 = vsel %vm2348_vm2, %v8112_v12, 0  ;;  %v9484_v1 = vsel %vm2348_vm2, %v8113_v8, 0 }
 0x99c   : > { %v8199_v49 = vsub.f32 %v8197_v44, %v8198_v15  ;;  %v8651_v51 = vsub.f32 %v8649_v46, %v8650_v29  ;;  %v17133_v24 = vand.u32 4294901760, %v9032_v0  ;;  %v17135_v23 = vand.u32 4294901760, %v9484_v1 }
 0x99d   : > { %14753 = vmatpush3.xpose.msra.mxu0 %v17075_v48  ;;  %v8208_v50 = vsub.f32 %v8128_v47, %v17075_v48  ;;  %14783 = vmatpush3.xpose.msra.mxu1 %v17077_v16  ;;  %v8660_v52 = vsub.f32 %v8580_v28, %v17077_v16  ;;  %v9102_v13 = vand.u32 4294901760, %v9101_v25  ;;  %v9554_v20 = vand.u32 4294901760, %v9553_v26 }
 0x99e   : > { %v8200_v53 = vand.u32 4294901760, %v8199_v49  ;;  %v8652_v54 = vand.u32 4294901760, %v8651_v51  ;;  %14757 = vmatprep.subr.mxu0 %v15975_v9  ;;  %14787 = vmatprep.subr.mxu1 %v15975_v9  ;;  %v9112_v30 = vsub.f32 %v9032_v0, %v17133_v24  ;;  %v9564_v19 = vsub.f32 %v9484_v1, %v17135_v23 }
 0x99f   : > { %v8209_v55 = vand.u32 4294901760, %v8208_v50  ;;  %v8661_v56 = vand.u32 4294901760, %v8660_v52  ;;  %v9103_v33 = vsub.f32 %v9101_v25, %v9102_v13  ;;  %v9555_v34 = vsub.f32 %v9553_v26, %v9554_v20 }
 0x9a0   : > { %14755 = vmatmul.mubr.f32.vlgmr.msra.gmra.mrb[18].mxu0 %v8200_v53  ;;  %14785 = vmatmul.mubr.f32.vlgmr.msra.gmra.mrb[20].mxu1 %v8652_v54  ;;  %v9113_v31 = vand.u32 4294901760, %v9112_v30  ;;  %v9565_v32 = vand.u32 4294901760, %v9564_v19 }
 0x9a1   : > { %v8210_v57 = vsub.f32 %v8208_v50, %v8209_v55  ;;  %v8662_v58 = vsub.f32 %v8660_v52, %v8661_v56  ;;  %14759 = vmatprep.mubr.msk.f32.mxu0 %vm15974_vm0, %v15975_v9  ;;  %14789 = vmatprep.mubr.msk.f32.mxu1 %vm15974_vm0, %v15975_v9  ;;  %v9104_v37 = vand.u32 4294901760, %v9103_v33  ;;  %v9556_v38 = vand.u32 4294901760, %v9555_v34 }
 0x9a2   : > { %v9114_v35 = vsub.f32 %v9112_v30, %v9113_v31  ;;  %v9566_v36 = vsub.f32 %v9564_v19, %v9565_v32 }
 0x9a3   : > { %v8211_v59 = vand.u32 4294901760, %v8210_v57  ;;  %v8663_v60 = vand.u32 4294901760, %v8662_v58 }
 0x9a4   : > { %v9115_v42 = vand.u32 4294901760, %v9114_v35 }
 0x9a5   : > { %14758 = vmatpush3.xpose.msra.mxu0 %v8211_v59  ;;  %14788 = vmatpush3.xpose.msra.mxu1 %v8663_v60 }
 0x9a6   : > { %14762 = vmatprep.subr.mxu0 %v15975_v9  ;;  %14792 = vmatprep.subr.mxu1 %v15975_v9 }
 0x9a8   : > { %14760 = vmatmul.mubr.f32.vlgmr.msra.gmra.mrb[18].mxu0 %v17067_v40  ;;  %14790 = vmatmul.mubr.f32.vlgmr.msra.gmra.mrb[20].mxu1 %v17069_v41 }
 0x9a9   : > { %14763 = vmatpush3.xpose.msra.mxu0 %v8208_v50  ;;  %14793 = vmatpush3.xpose.msra.mxu1 %v8660_v52 }
 0x9aa   : > { %14764 = vmatprep.mubr.msk.f32.mxu0 %vm15974_vm0, %v15975_v9  ;;  %14767 = vmatprep.subr.mxu0 %v15975_v9 }
 0x9ab   : > { %14794 = vmatprep.mubr.msk.f32.mxu1 %vm15974_vm0, %v15975_v9  ;;  %14797 = vmatprep.subr.mxu1 %v15975_v9 }
 0x9b0   : > { %14765 = vmatmul.mubr.f32.vlgmr.msra.gmra.mrb[18].mxu0 %v8197_v44  ;;  %14795 = vmatmul.mubr.f32.vlgmr.msra.gmra.mrb[20].mxu1 %v8649_v46 }
 0x9b1   : > { %14768 = vmatpush3.xpose.msra.mxu0 %v17075_v48  ;;  %14798 = vmatpush3.xpose.msra.mxu1 %v17077_v16 }
 0x9b2   : > { %14769 = vmatprep.mubr.msk.f32.mxu0 %vm15974_vm0, %v15975_v9  ;;  %14772 = vmatprep.subr.mxu0 %v15975_v9 }
 0x9b3   : > { %14799 = vmatprep.mubr.msk.f32.mxu1 %vm15974_vm0, %v15975_v9  ;;  %14802 = vmatprep.subr.mxu1 %v15975_v9 }
 0x9b8   : > { %14770 = vmatmul.mubr.f32.vlgmr.msra.gmra.mrb[18].mxu0 %v8198_v15  ;;  %14800 = vmatmul.mubr.f32.vlgmr.msra.gmra.mrb[20].mxu1 %v8650_v29 }
 0x9b9   : > { %14773 = vmatpush3.xpose.msra.mxu0 %v8209_v55  ;;  %14803 = vmatpush3.xpose.msra.mxu1 %v8661_v56 }
 0x9ba   : > { %14774 = vmatprep.mubr.msk.f32.mxu0 %vm15974_vm0, %v15975_v9  ;;  %14777 = vmatprep.subr.mxu0 %v15975_v9 }
 0x9bb   : > { %14804 = vmatprep.mubr.msk.f32.mxu1 %vm15974_vm0, %v15975_v9  ;;  %14807 = vmatprep.subr.mxu1 %v15975_v9 }
 0x9c0   : > { %14775 = vmatmul.mubr.f32.vlgmr.msra.gmra.mrb[18].mxu0 %v17067_v40  ;;  %14805 = vmatmul.mubr.f32.vlgmr.msra.gmra.mrb[20].mxu1 %v17069_v41 }
 0x9c1   : > { %14778 = vmatpush3.xpose.msra.mxu0 %v17075_v48  ;;  %14808 = vmatpush3.xpose.msra.mxu1 %v17077_v16 }
 0x9c2   : > { %14779 = vmatprep.mubr.msk.f32.mxu0 %vm15974_vm0, %v15975_v9  ;;  %14809 = vmatprep.mubr.msk.f32.mxu1 %vm15974_vm0, %v15975_v9 }
 0x9c3   : > { %14812 = vmatprep.subr.mxu0 %v15975_v9  ;;  %14842 = vmatprep.subr.mxu1 %v15975_v9 }
 0x9c8   : > { %14780 = vmatmul.mubr.f32.vlgmr.msra.gmra.mrb[18].mxu0 %v17067_v40  ;;  %14810 = vmatmul.mubr.f32.vlgmr.msra.gmra.mrb[20].mxu1 %v17069_v41  ;;  %v9567_v40 = vand.u32 4294901760, %v9566_v36  ;;  %v13712_v41 = vld [vmem:[%s903_s9] ss:$0 sm:$0xff]  ;;  %s17790_s9 = smov 8  }
 0x9c9   : > { %14813 = vmatpush3.xpose.msra.mxu0 %v17133_v24  ;;  %14843 = vmatpush3.xpose.msra.mxu1 %v17135_v23 }
 0x9ca   : > { %14814 = vmatprep.mubr.msk.f32.mxu0 %vm15974_vm0, %v15975_v9  ;;  %14817 = vmatprep.subr.mxu0 %v15975_v9 }
 0x9cb   : > { %14844 = vmatprep.mubr.msk.f32.mxu1 %vm15974_vm0, %v15975_v9  ;;  %14847 = vmatprep.subr.mxu1 %v15975_v9 }
 0x9cc   : > { %14815 = vmatmul.mubr.f32.vlgmr.msra.gmra.mrb[20].mxu0 %v9104_v37  ;;  %14845 = vmatmul.mubr.f32.vlgmr.msra.gmra.mrb[22].mxu1 %v9556_v38 }
 0x9cd   : > { %14818 = vmatpush3.xpose.msra.mxu0 %v9115_v42  ;;  %14848 = vmatpush3.xpose.msra.mxu1 %v9567_v40 }
 0x9ce   : > { %14819 = vmatprep.mubr.msk.f32.mxu0 %vm15974_vm0, %v15975_v9  ;;  %14822 = vmatprep.subr.mxu0 %v15975_v9 }
 0x9cf   : > { %14849 = vmatprep.mubr.msk.f32.mxu1 %vm15974_vm0, %v15975_v9  ;;  %14852 = vmatprep.subr.mxu1 %v15975_v9 }
 0x9d4   : > { %14820 = vmatmul.mubr.f32.vlgmr.msra.gmra.mrb[20].mxu0 %v17126_v27  ;;  %14850 = vmatmul.mubr.f32.vlgmr.msra.gmra.mrb[22].mxu1 %v17128_v22 }
 0x9d5   : > { %14823 = vmatpush3.xpose.msra.mxu0 %v9112_v30  ;;  %14853 = vmatpush3.xpose.msra.mxu1 %v9564_v19 }
 0x9d6   : > { %14824 = vmatprep.mubr.msk.f32.mxu0 %vm15974_vm0, %v15975_v9  ;;  %14827 = vmatprep.subr.mxu0 %v15975_v9 }
 0x9d7   : > { %14854 = vmatprep.mubr.msk.f32.mxu1 %vm15974_vm0, %v15975_v9  ;;  %14857 = vmatprep.subr.mxu1 %v15975_v9 }
 0x9dc   : > { %14825 = vmatmul.mubr.f32.vlgmr.msra.gmra.mrb[20].mxu0 %v9101_v25  ;;  %14855 = vmatmul.mubr.f32.vlgmr.msra.gmra.mrb[22].mxu1 %v9553_v26 }
 0x9dd   : > { %14828 = vmatpush3.xpose.msra.mxu0 %v17133_v24  ;;  %14858 = vmatpush3.xpose.msra.mxu1 %v17135_v23 }
 0x9de   : > { %14829 = vmatprep.mubr.msk.f32.mxu0 %vm15974_vm0, %v15975_v9  ;;  %14832 = vmatprep.subr.mxu0 %v15975_v9 }
 0x9df   : > { %14859 = vmatprep.mubr.msk.f32.mxu1 %vm15974_vm0, %v15975_v9  ;;  %14862 = vmatprep.subr.mxu1 %v15975_v9 }
 0x9e4   : > { %14830 = vmatmul.mubr.f32.vlgmr.msra.gmra.mrb[20].mxu0 %v9102_v13  ;;  %14860 = vmatmul.mubr.f32.vlgmr.msra.gmra.mrb[22].mxu1 %v9554_v20 }
 0x9e5   : > { %14833 = vmatpush3.xpose.msra.mxu0 %v9113_v31  ;;  %14863 = vmatpush3.xpose.msra.mxu1 %v9565_v32 }
 0x9e6   : > { %14834 = vmatprep.mubr.msk.f32.mxu0 %vm15974_vm0, %v15975_v9  ;;  %14837 = vmatprep.subr.mxu0 %v15975_v9 }
 0x9e7   : > { %14864 = vmatprep.mubr.msk.f32.mxu1 %vm15974_vm0, %v15975_v9  ;;  %14867 = vmatprep.subr.mxu1 %v15975_v9 }
 0x9ec   : > { %14835 = vmatmul.mubr.f32.vlgmr.msra.gmra.mrb[20].mxu0 %v17126_v27  ;;  %14865 = vmatmul.mubr.f32.vlgmr.msra.gmra.mrb[22].mxu1 %v17128_v22 }
 0x9ed   : > { %14838 = vmatpush3.xpose.msra.mxu0 %v17133_v24  ;;  %14868 = vmatpush3.xpose.msra.mxu1 %v17135_v23 }
 0x9ee   : > { %14839 = vmatprep.mubr.msk.f32.mxu0 %vm15974_vm0, %v15975_v9  ;;  %14869 = vmatprep.mubr.msk.f32.mxu1 %vm15974_vm0, %v15975_v9 }
 0x9ef   : > { %14872 = vmatprep.subr.mxu0 %v15975_v9  ;;  %14902 = vmatprep.subr.mxu1 %v15975_v9 }
 0x9f4   : > { %14840 = vmatmul.mubr.f32.vlgmr.msra.gmra.mrb[20].mxu0 %v17126_v27  ;;  %14870 = vmatmul.mubr.f32.vlgmr.msra.gmra.mrb[22].mxu1 %v17128_v22 }
 0x9f5   : > { %14874 = vmatprep.mubr.msk.f32.mxu0 %vm15974_vm0, %v15975_v9  ;;  %14904 = vmatprep.mubr.msk.f32.mxu1 %vm15974_vm0, %v15975_v9 }
 0xa9b   : > { %v8572_v43 = vpop.f32.mrb[18].mxu0  ;;  %v9024_v44 = vpop.f32.mrb[20].mxu1 }
 0xa9c   : > { %v15571_v46 = vadd.f32 %v13712_v41, %v8572_v43  ;;  %v15572_v47 = vadd.f32 %v13712_v41, %v9024_v44  ;;  %v14781_v28 = vpop.f32.mrb[19].mxu0  ;;  %v14811_v15 = vpop.f32.mrb[21].mxu1 }
 0xa9e   : > { %v9932_v29 = vsel %vm2348_vm2, %v15571_v46, -inf  ;;  %v9935_v48 = vsel %vm2348_vm2, %v15572_v47, -inf }
 0xa9f   : > { %9933 = vmax.xlane.f32.xlu1 %v9932_v29  ;;  %9936 = vmax.xlane.f32.xlu0 %v9935_v48 }
 0xac7   : > { %v9476_v16 = vpop.f32.mrb[20].mxu0  ;;  %v9928_v49 = vpop.f32.mrb[22].mxu1 }
 0xac8   : > { %v15573_v51 = vadd.f32 %v13712_v41, %v9476_v16  ;;  %v15574_v50 = vadd.f32 %v13712_v41, %v9928_v49  ;;  %v14841_v52 = vpop.f32.mrb[21].mxu0  ;;  %v14871_v53 = vpop.f32.mrb[23].mxu1 }
 0xaca   : > { %v9938_v54 = vsel %vm2348_vm2, %v15573_v51, -inf  ;;  %v9941_v55 = vsel %vm2348_vm2, %v15574_v50, -inf }
 0xacb   : > { %9939 = vmax.xlane.f32.xlu0 %v9938_v54  ;;  %9942 = vmax.xlane.f32.xlu1 %v9941_v55 }
 0xadc   : > { %7837 = vrot.lane.b32.xlu1 %v17002_v21, %s17785_s29  ;;  %s17791_s29 = smov 24  }
 0xae1   : > { %7834 = vrot.lane.b32.xlu0 %v17002_v21, %s17786_s10  ;;  %s13723_s10 = sshll.u32 %s15963_s30, 7  ;;  %s15988_s30 = smov [#allocation2]  }
 0xae2   : > { %s17640_s13 = scalar_lea.hbm %s17794_s7, %s13723_s10 }
 0xb2c   : > { %v9934_v56 = vpop.xlane.xlu1 %9933  ;;  %v9937_v57 = vpop.xlane.xlu0 %9936 }
 0xb2d   : > { %v9944_v58 = vsub.f32 %v15571_v46, %v9934_v56  ;;  %v9945_v59 = vsub.f32 %v15572_v47, %v9937_v57 }
 0xb2f   : > { %v9948_v60 = vmul.f32 1.442695, %v9944_v58  ;;  %v9950_v61 = vmul.f32 1.442695, %v9945_v59 }
 0xb31   : > { %15872 = vpow2.f32 %v9948_v60 }
 0xb32   : > { %15874 = vpow2.f32 %v9950_v61 }
 0xb3b   : > { %v15873_v2 = vpop.eup %15872 }
 0xb3c   : > { %v15875_v4 = vpop.eup %15874  ;;  %v9956_v5 = vsel %vm2348_vm2, %v15873_v2, 0.0 }
 0xb3d   : > { %9957 = vadd.xlane.f32.xlu0 %v9956_v5  ;;  %v9959_v11 = vsel %vm2348_vm2, %v15875_v4, 0.0 }
 0xb3e   : > { %9960 = vadd.xlane.f32.xlu1 %v9959_v11 }
 0xb4f   : > { %7840 = vrot.lane.b32.xlu1 %v17002_v21, %s17787_s27  ;;  %s881_s27 = scalar_lea.vmem [#allocation2], %s13679_s25  ;;  %s15897_s25 = sshll.u32 %s15988_s30, 4  ;;  %s15898_s25 = int_to_ptr.vmem [resolvable:$false] %s15897_s25 }
 0xb53   : > { %7843 = vrot.lane.b32.xlu0 %v17002_v21, %s17788_s11  ;;  %s13554_s11 = sshll.u32 %s881_s27, 4  ;;  %s17642_s11 = int_to_ptr.vmem [resolvable:$true] %s13554_s11 }
 0xb54   : > { %s15893_s6 = scalar_lea.vmem %s17642_s11, 128  ;;  %p15900_p1 = scmp.lt.s32.totalorder %s17642_s11, %s15898_s25 }
 0xb55   : > { %p15894_p12 = scmp.ne.s32.totalorder %s17642_s11, %s15893_s6 }
 0xb57   : > { %p15895_p13 = pnand %p15894_p12, %p16169_p4 }
 0xb58   : > { %v9943_v17 = vpop.xlane.xlu1 %9942  ;;  %v9940_v7 = vpop.xlane.xlu0 %9939 }
 0xb59   : > { %v9947_v18 = vsub.f32 %v15574_v50, %v9943_v17  ;;  %v9946_v14 = vsub.f32 %v15573_v51, %v9940_v7  ;;  %p15896_p0 = pneg %p15895_p13 }
 0xb5b   : > { %v9954_v6 = vmul.f32 1.442695, %v9947_v18  ;;  %v9952_v12 = vmul.f32 1.442695, %v9946_v14 }
 0xb5c   : > { %v7835_v21 = vpop.permute.xlu0 %7834  ;;  %v7838_v1 = vpop.permute.xlu1 %7837 }
 0xb5d   : > { %15876 = vpow2.f32 %v9954_v6 }
 0xb5e   : > { %15878 = vpow2.f32 %v9952_v12 }
 0xb67   : > { %v17223_v8 = vpop.eup %15876 }
 0xb68   : > { %v17225_v10 = vpop.eup %15878  ;;  %v9965_v63 = vsel %vm2348_vm2, %v17223_v8, 0.0 }
 0xb69   : > { %v9962_v0 = vsel %vm2348_vm2, %v17225_v10, 0.0 }
 0xb72   : > { %9966 = vadd.xlane.f32.xlu0 %v9965_v63 }
 0xb73   : > { %9963 = vadd.xlane.f32.xlu1 %v9962_v0 }
 0xbca   : > { %v9958_v27 = vpop.xlane.xlu0 %9957 }
 0xbcb   : > { %15880 = vrcp.f32 %v9958_v27  ;;  %v9961_v22 = vpop.xlane.xlu1 %9960 }
 0xbcc   : > { %15882 = vrcp.f32 %v9961_v22 }
 0xbce   : > { %v7844_v24 = vpop.permute.xlu0 %7843 }
 0xbcf   : > { %v7894_v23 = vcombine.low %v7838_v1, %v7844_v24  ;;  %v7895_v25 = vcombine.high %v7838_v1, %v7844_v24  ;;  %v7841_v26 = vpop.permute.xlu1 %7840 }
 0xbd0   : > { %v7878_v30 = vcombine.low %v7835_v21, %v7841_v26  ;;  %v7879_v19 = vcombine.high %v7835_v21, %v7841_v26 }
 0xbd1   : > { %v7902_v13 = vrot.slane %v7894_v23, %v16417_v39  ;;  %v7909_v20 = vrot.slane %v7895_v25, %v16417_v39 }
 0xbd2   : > { %v7886_v31 = vrot.slane %v7878_v30, %v16417_v39  ;;  %v7893_v32 = vrot.slane %v7879_v19, %v16417_v39 }
 0xbd4   : > { %v7942_v33 = vcombine.low %v7886_v31, %v7902_v13  ;;  %v7943_v34 = vcombine.high %v7886_v31, %v7902_v13  ;;  %v7958_v35 = vcombine.low %v7893_v32, %v7909_v20  ;;  %v7959_v36 = vcombine.high %v7893_v32, %v7909_v20 }
 0xbd5   : > { %v15881_v37 = vpop.eup %15880 }
 0xbd6   : > { %v15883_v38 = vpop.eup %15882  ;;  %v9972_v42 = vmul.f32 %v15881_v37, %v15873_v2  ;;  %v7950_v40 = vrot.slane %v7942_v33, %v16419_v45  ;;  %v7957_v41 = vrot.slane %v7943_v34, %v16419_v45  ;;  %v7966_v43 = vrot.slane %v7958_v35, %v16419_v45 }
 0xbd7   : > { %v9973_v44 = vmul.f32 %v15883_v38, %v15875_v4  ;;  %v7973_v46 = vrot.slane %v7959_v36, %v16419_v45 }
 0xbd8   : > { %v13705_v47 = vcombine.low %v7950_v40, %v7957_v41  ;;  %v13707_v28 = vcombine.high %v7950_v40, %v7957_v41  ;;  %v9977_v15 = vsel %vm2348_vm2, %v9972_v42, 0 }
 0xbd9   : > { %v13709_v29 = vcombine.low %v7966_v43, %v7973_v46  ;;  %v13711_v48 = vcombine.high %v7966_v43, %v7973_v46  ;;  %v17240_v16 = vand.u32 4294901760, %v9977_v15  ;;  %v10426_v49 = vsel %vm2348_vm2, %v9973_v44, 0 }
 0xbda   : > { %v17244_v51 = vrot.slane %v13705_v47, %v16417_v39  ;;  %v17247_v50 = vrot.slane %v13707_v28, %v16417_v39  ;;  %v17249_v52 = vand.u32 4294901760, %v10426_v49 }
 0xbdb   : > { %v8029_v53 = vrot.slane %v13709_v29, %v16417_v39  ;;  %v8045_v54 = vrot.slane %v13711_v48, %v16417_v39  ;;  %v10046_v55 = vsub.f32 %v9977_v15, %v17240_v16 }
 0xbdc   : > { %v8062_v56 = vcombine.low %v17244_v51, %v17247_v50  ;;  %v10495_v57 = vsub.f32 %v10426_v49, %v17249_v52  ;;  %v8063_v23 = vcombine.high %v17244_v51, %v17247_v50 }
 0xbdd   : > { %v8094_v58 = vcombine.low %v8029_v53, %v8045_v54  ;;  %v10047_v59 = vand.u32 4294901760, %v10046_v55  ;;  %v8095_v25 = vcombine.high %v8029_v53, %v8045_v54 }
 0xbde   : > { %v8070_v60 = vrot.slane %v8062_v56, %v16419_v45  ;;  %v10496_v61 = vand.u32 4294901760, %v10495_v57  ;;  %v8077_v30 = vrot.slane %v8063_v23, %v16419_v45 }
 0xbdf   : > { %v8102_v2 = vrot.slane %v8094_v58, %v16419_v45  ;;  %v10048_v4 = vsub.f32 %v10046_v55, %v10047_v59  ;;  %v8109_v19 = vrot.slane %v8095_v25, %v16419_v45  ;;  %v11923_v58 = vld [vmem:[%s17705_s17] sm:$0xff] }
 0xbe0   : > { %v10497_v5 = vsub.f32 %v10495_v57, %v10496_v61 }
 0xbe1   : > { %v8114_v11 = vcombine.low %v8070_v60, %v8102_v2  ;;  %v8115_v17 = vcombine.high %v8070_v60, %v8102_v2  ;;  %v10049_v7 = vand.u32 4294901760, %v10048_v4  ;;  %v8117_v20 = vcombine.high %v8077_v30, %v8109_v19 }
 0xbe2   : > { %v10498_v18 = vand.u32 4294901760, %v10497_v5  ;;  %v8116_v31 = vcombine.low %v8077_v30, %v8109_v19  ;;  %v11938_v60 = vand.u32 4294901760, %v11923_v58 }
 0xbe3   : > { %v9980_v14 = vand.u32 4294901760, %v8114_v11  ;;  %v10429_v6 = vand.u32 4294901760, %v8115_v17  ;;  %v17293_v32 = vand.u32 4294901760, %v8117_v20 }
 0xbe4   : > { %v17297_v33 = vand.u32 4294901760, %v8116_v31  ;;  %v17363_v4 = vsub.f32 %v11923_v58, %v11938_v60 }
 0xbe5   : > { %14873 = vmatpush3.msra.mxu0 %v9980_v14  ;;  %v10057_v12 = vsub.f32 %v8114_v11, %v9980_v14  ;;  %14903 = vmatpush3.msra.mxu1 %v10429_v6  ;;  %v10506_v63 = vsub.f32 %v8115_v17, %v10429_v6  ;;  %v11404_v37 = vsub.f32 %v8117_v20, %v17293_v32 }
 0xbe6   : > { %14875 = vmatmul.mubr.f32.vlgmr.msra.gmra.mrb[22].mxu0 %v10049_v7  ;;  %14905 = vmatmul.mubr.f32.vlgmr.msra.gmra.mrb[24].mxu1 %v10498_v18  ;;  %v10955_v42 = vsub.f32 %v8116_v31, %v17297_v33 }
 0xbe7   : > { %14877 = vmatprep.subr.mxu0 %v15975_v9  ;;  %14907 = vmatprep.subr.mxu1 %v15975_v9  ;;  %v10058_v0 = vand.u32 4294901760, %v10057_v12  ;;  %v10507_v21 = vand.u32 4294901760, %v10506_v63  ;;  %v11405_v46 = vand.u32 4294901760, %v11404_v37 }
 0xbe8   : > { %14879 = vmatprep.mubr.msk.f32.mxu0 %vm15974_vm0, %v15975_v9  ;;  %14909 = vmatprep.mubr.msk.f32.mxu1 %vm15974_vm0, %v15975_v9 }
 0xbe9   : > { %v10059_v1 = vsub.f32 %v10057_v12, %v10058_v0  ;;  %v10508_v27 = vsub.f32 %v10506_v63, %v10507_v21  ;;  %v11406_v29 = vsub.f32 %v11404_v37, %v11405_v46 }
 0xbeb   : > { %v10060_v22 = vand.u32 4294901760, %v10059_v1  ;;  %v10509_v24 = vand.u32 4294901760, %v10508_v27 }
 0xbed   : > { %14878 = vmatpush3.msra.mxu0 %v10060_v22  ;;  %14908 = vmatpush3.msra.mxu1 %v10509_v24 }
 0xbee   : > { %14880 = vmatmul.mubr.f32.vlgmr.msra.gmra.mrb[22].mxu0 %v17240_v16  ;;  %14882 = vmatprep.subr.mxu0 %v15975_v9 }
 0xbef   : > { %14910 = vmatmul.mubr.f32.vlgmr.msra.gmra.mrb[24].mxu1 %v17249_v52  ;;  %14912 = vmatprep.subr.mxu1 %v15975_v9 }
 0xbf0   : > { %14883 = vmatpush3.msra.mxu0 %v10057_v12  ;;  %14913 = vmatpush3.msra.mxu1 %v10506_v63 }
 0xbf1   : > { %14884 = vmatprep.mubr.msk.f32.mxu0 %vm15974_vm0, %v15975_v9  ;;  %14887 = vmatprep.subr.mxu0 %v15975_v9 }
 0xbf2   : > { %14914 = vmatprep.mubr.msk.f32.mxu1 %vm15974_vm0, %v15975_v9  ;;  %14917 = vmatprep.subr.mxu1 %v15975_v9 }
 0xbf6   : > { %14885 = vmatmul.mubr.f32.vlgmr.msra.gmra.mrb[22].mxu0 %v10046_v55 }
 0xbf7   : > { %14888 = vmatpush3.msra.mxu0 %v9980_v14  ;;  %14915 = vmatmul.mubr.f32.vlgmr.msra.gmra.mrb[24].mxu1 %v10495_v57 }
 0xbf8   : > { %14918 = vmatpush3.msra.mxu1 %v10429_v6  ;;  %14889 = vmatprep.mubr.msk.f32.mxu0 %vm15974_vm0, %v15975_v9 }
 0xbf9   : > { %14892 = vmatprep.subr.mxu0 %v15975_v9  ;;  %14919 = vmatprep.mubr.msk.f32.mxu1 %vm15974_vm0, %v15975_v9 }
 0xbfa   : > { %14922 = vmatprep.subr.mxu1 %v15975_v9 }
 0xbfe   : > { %14890 = vmatmul.mubr.f32.vlgmr.msra.gmra.mrb[22].mxu0 %v10047_v59  ;;  %v11924_v59 = vld [vmem:[%s17705_s17 + $0x8] sm:$0xff] }
 0xbff   : > { %14893 = vmatpush3.msra.mxu0 %v10058_v0  ;;  %14920 = vmatmul.mubr.f32.vlgmr.msra.gmra.mrb[24].mxu1 %v10496_v61  ;;  %v9967_v26 = vpop.xlane.xlu0 %9966  ;;  %v11941_v61 = vand.u32 4294901760, %v11924_v59 }
 0xc00   : > { %14923 = vmatpush3.msra.mxu1 %v10507_v21  ;;  %15884 = vrcp.f32 %v9967_v26  ;;  %v9964_v13 = vpop.xlane.xlu1 %9963  ;;  %14894 = vmatprep.mubr.msk.f32.mxu0 %vm15974_vm0, %v15975_v9  ;;  %v12019_v21 = vand.u32 4294901760, %v17363_v4 }
 0xc01   : > { %15886 = vrcp.f32 %v9964_v13  ;;  %14897 = vmatprep.subr.mxu0 %v15975_v9  ;;  %14924 = vmatprep.mubr.msk.f32.mxu1 %vm15974_vm0, %v15975_v9  ;;  %v17365_v5 = vsub.f32 %v11924_v59, %v11941_v61 }
 0xc02   : > { %14927 = vmatprep.subr.mxu1 %v15975_v9  ;;  %v12020_v30 = vsub.f32 %v17363_v4, %v12019_v21 }
 0xc03   : > { %v12026_v1 = vand.u32 4294901760, %v17365_v5 }
 0xc05   : > { %v12027_v19 = vsub.f32 %v17365_v5, %v12026_v1 }
 0xc06   : > { %14895 = vmatmul.mubr.f32.vlgmr.msra.gmra.mrb[22].mxu0 %v17240_v16 }
 0xc07   : > { %14898 = vmatpush3.msra.mxu0 %v9980_v14  ;;  %14925 = vmatmul.mubr.f32.vlgmr.msra.gmra.mrb[24].mxu1 %v17249_v52  ;;  %v11925_v14 = vld [vmem:[%s17705_s17 + $0x10] sm:$0xff] }
 0xc08   : > { %14928 = vmatpush3.msra.mxu1 %v10429_v6  ;;  %14899 = vmatprep.mubr.msk.f32.mxu0 %vm15974_vm0, %v15975_v9  ;;  %v11926_v6 = vld [vmem:[%s17705_s17 + $0x18] sm:$0xff]  ;;  %v11944_v24 = vand.u32 4294901760, %v11925_v14 }
 0xc09   : > { %14929 = vmatprep.mubr.msk.f32.mxu1 %vm15974_vm0, %v15975_v9  ;;  %14932 = vmatprep.subr.mxu0 %v15975_v9  ;;  %v11947_v23 = vand.u32 4294901760, %v11926_v6 }
 0xc0a   : > { %v15885_v34 = vpop.eup %15884  ;;  %14962 = vmatprep.subr.mxu1 %v15975_v9  ;;  %v17385_v13 = vsub.f32 %v11925_v14, %v11944_v24 }
 0xc0b   : > { %v15887_v35 = vpop.eup %15886  ;;  %v9975_v36 = vmul.f32 %v15885_v34, %v17223_v8  ;;  %v10956_v8 = vand.u32 4294901760, %v10955_v42  ;;  %v17387_v20 = vsub.f32 %v11926_v6, %v11947_v23 }
 0xc0c   : > { %v9974_v38 = vmul.f32 %v15887_v35, %v17225_v10  ;;  %v12021_v35 = vand.u32 4294901760, %v12020_v30 }
 0xc0d   : > { %v11324_v40 = vsel %vm2348_vm2, %v9975_v36, 0  ;;  %v10957_v48 = vsub.f32 %v10955_v42, %v10956_v8  ;;  %v12028_v36 = vand.u32 4294901760, %v12027_v19  ;;  %v13715_v19 = vld [vmem:[%s17706_s18] ss:$0 sm:$0xff] }
 0xc0e   : > { %14900 = vmatmul.mubr.f32.vlgmr.msra.gmra.mrb[22].mxu0 %v17240_v16  ;;  %v10875_v41 = vsel %vm2348_vm2, %v9974_v38, 0  ;;  %v11392_v43 = vand.u32 4294901760, %v11324_v40  ;;  %v12040_v38 = vand.u32 4294901760, %v17387_v20 }
 0xc0f   : > { %14930 = vmatmul.mubr.f32.vlgmr.msra.gmra.mrb[24].mxu1 %v17249_v52  ;;  %14933 = vmatpush3.msra.mxu0 %v17297_v33  ;;  %v10943_v44 = vand.u32 4294901760, %v10875_v41  ;;  %v11407_v52 = vand.u32 4294901760, %v11406_v29  ;;  %v10958_v53 = vand.u32 4294901760, %v10957_v48 }
 0xc10   : > { %14963 = vmatpush3.msra.mxu1 %v17293_v32  ;;  %14934 = vmatprep.mubr.msk.f32.mxu0 %vm15974_vm0, %v15975_v9  ;;  %v11393_v10 = vsub.f32 %v11324_v40, %v11392_v43 }
 0xc11   : > { %14937 = vmatprep.subr.mxu0 %v15975_v9  ;;  %14964 = vmatprep.mubr.msk.f32.mxu1 %vm15974_vm0, %v15975_v9  ;;  %v10944_v47 = vsub.f32 %v10875_v41, %v10943_v44 }
 0xc12   : > { %14967 = vmatprep.subr.mxu1 %v15975_v9  ;;  %v11394_v28 = vand.u32 4294901760, %v11393_v10 }
 0xc13   : > { %v10945_v15 = vand.u32 4294901760, %v10944_v47 }
 0xc14   : > { %v11395_v16 = vsub.f32 %v11393_v10, %v11394_v28 }
 0xc15   : > { %v10946_v49 = vsub.f32 %v10944_v47, %v10945_v15 }
 0xc16   : > { %v11396_v51 = vand.u32 4294901760, %v11395_v16 }
 0xc17   : > { %v10947_v50 = vand.u32 4294901760, %v10946_v49 }
 0xc18   : > { %14965 = vmatmul.mubr.f32.vlgmr.msra.gmra.mrb[26].mxu1 %v11396_v51 }
 0xc19   : > { %14935 = vmatmul.mubr.f32.vlgmr.msra.gmra.mrb[24].mxu0 %v10947_v50  ;;  %14968 = vmatpush3.msra.mxu1 %v11407_v52 }
 0xc1a   : > { %14938 = vmatpush3.msra.mxu0 %v10958_v53  ;;  %14939 = vmatprep.mubr.msk.f32.mxu0 %vm15974_vm0, %v15975_v9 }
 0xc1b   : > { %14942 = vmatprep.subr.mxu0 %v15975_v9  ;;  %14969 = vmatprep.mubr.msk.f32.mxu1 %vm15974_vm0, %v15975_v9 }
 0xc1c   : > { %14972 = vmatprep.subr.mxu1 %v15975_v9 }
 0xc20   : > { %14970 = vmatmul.mubr.f32.vlgmr.msra.gmra.mrb[26].mxu1 %v11392_v43 }
 0xc21   : > { %14940 = vmatmul.mubr.f32.vlgmr.msra.gmra.mrb[24].mxu0 %v10943_v44  ;;  %14973 = vmatpush3.msra.mxu1 %v11404_v37  ;;  %v12033_v37 = vand.u32 4294901760, %v17385_v13 }
 0xc22   : > { %14943 = vmatpush3.msra.mxu0 %v10955_v42  ;;  %14944 = vmatprep.mubr.msk.f32.mxu0 %vm15974_vm0, %v15975_v9 }
 0xc23   : > { %14947 = vmatprep.subr.mxu0 %v15975_v9  ;;  %14974 = vmatprep.mubr.msk.f32.mxu1 %vm15974_vm0, %v15975_v9  ;;  %v15446_v6 = vpack.c.bf16 %v12040_v38, %v12033_v37 }
 0xc24   : > { %14977 = vmatprep.subr.mxu1 %v15975_v9 }
 0xc28   : > { %14975 = vmatmul.mubr.f32.vlgmr.msra.gmra.mrb[26].mxu1 %v11393_v10 }
 0xc29   : > { %14945 = vmatmul.mubr.f32.vlgmr.msra.gmra.mrb[24].mxu0 %v10944_v47  ;;  %14978 = vmatpush3.msra.mxu1 %v17293_v32 }
 0xc2a   : > { %14948 = vmatpush3.msra.mxu0 %v17297_v33  ;;  %14949 = vmatprep.mubr.msk.f32.mxu0 %vm15974_vm0, %v15975_v9 }
 0xc2b   : > { %14952 = vmatprep.subr.mxu0 %v15975_v9  ;;  %14979 = vmatprep.mubr.msk.f32.mxu1 %vm15974_vm0, %v15975_v9 }
 0xc2c   : > { %14982 = vmatprep.subr.mxu1 %v15975_v9 }
 0xc30   : > { %14980 = vmatmul.mubr.f32.vlgmr.msra.gmra.mrb[26].mxu1 %v11394_v28 }
 0xc31   : > { %14950 = vmatmul.mubr.f32.vlgmr.msra.gmra.mrb[24].mxu0 %v10945_v15  ;;  %14983 = vmatpush3.msra.mxu1 %v11405_v46  ;;  %v12034_v46 = vsub.f32 %v17385_v13, %v12033_v37 }
 0xc32   : > { %14953 = vmatpush3.msra.mxu0 %v10956_v8  ;;  %14954 = vmatprep.mubr.msk.f32.mxu0 %vm15974_vm0, %v15975_v9  ;;  %v12041_v8 = vsub.f32 %v17387_v20, %v12040_v38 }
 0xc33   : > { %14957 = vmatprep.subr.mxu0 %v15975_v9  ;;  %14984 = vmatprep.mubr.msk.f32.mxu1 %vm15974_vm0, %v15975_v9  ;;  %v12035_v29 = vand.u32 4294901760, %v12034_v46 }
 0xc34   : > { %14987 = vmatprep.subr.mxu1 %v15975_v9  ;;  %v12042_v48 = vand.u32 4294901760, %v12041_v8 }
 0xc36   : > { %v15428_v52 = vpack.c.bf16 %v12042_v48, %v12035_v29 }
 0xc38   : > { %14985 = vmatmul.mubr.f32.vlgmr.msra.gmra.mrb[26].mxu1 %v11392_v43 }
 0xc39   : > { %14955 = vmatmul.mubr.f32.vlgmr.msra.gmra.mrb[24].mxu0 %v10943_v44  ;;  %14988 = vmatpush3.msra.mxu1 %v17293_v32 }
 0xc3a   : > { %14958 = vmatpush3.msra.mxu0 %v17297_v33  ;;  %14959 = vmatprep.mubr.msk.f32.mxu0 %vm15974_vm0, %v15975_v9 }
 0xc3b   : > { %14989 = vmatprep.mubr.msk.f32.mxu1 %vm15974_vm0, %v15975_v9  ;;  %15424 = vmatprep.subr.bf16.mxu1 %v15973_v3 }
 0xc3c   : > { %15418 = vmatprep.subr.bf16.mxu0 %v15973_v3 }
 0xc40   : > { %14990 = vmatmul.mubr.f32.vlgmr.msra.gmra.mrb[26].mxu1 %v11392_v43 }
 0xc41   : > { %14960 = vmatmul.mubr.f32.vlgmr.msra.gmra.mrb[24].mxu0 %v10943_v44  ;;  %15011 = vmatprep.mubr.msk.f32.mxu1 %vm15974_vm0, %v15975_v9  ;;  %v15425_v44 = vpack.c.bf16 %v12028_v36, %v12021_v35 }
 0xc42   : > { %15000 = vmatprep.mubr.msk.f32.mxu0 %vm15974_vm0, %v15975_v9 }
 0xc43   : > { %15426 = vmatpush3.bf16.msra.mxu1 %v15425_v44 }
 0xc44   : > { %15427 = vmatprep.subr.bf16.mxu1 %v15973_v3 }
 0xc47   : > { %15429 = vmatpush3.bf16.msra.mxu1 %v15428_v52  ;;  %v12455_v52 = vld [vmem:[%s17709_s21 + $0x18] sm:$0xff] }
 0xc48   : > { %15436 = vmatprep.subr.bf16.mxu1 %v15973_v3 }
 0xce1   : > { %v10421_v54 = vpop.f32.mrb[22].mxu0 }
 0xce2   : > { %v10870_v55 = vpop.f32.mrb[24].mxu1  ;;  %v14901_v56 = vpop.f32.mrb[23].mxu0 }
 0xce3   : > { %v14931_v57 = vpop.f32.mrb[25].mxu1 }
 0xce4   : > { %v15419_v57 = vpack.c.bf16 %v11941_v61, %v11938_v60  ;;  %v15434_v60 = vpack.c.bf16 %v17387_v20, %v17385_v13  ;;  %v15443_v61 = vpack.c.bf16 %v12026_v1, %v12019_v21 }
 0xce6   : > { %15420 = vmatpush3.bf16.msra.mxu0 %v15419_v57 }
 0xce7   : > { %15421 = vmatprep.subr.bf16.mxu0 %v15973_v3 }
 0xd13   : > { %v11768_v2 = vpop.f32.mrb[26].mxu1 }
 0xd14   : > { %v11319_v11 = vpop.f32.mrb[24].mxu0  ;;  %v11788_v17 = vcombine.low %v10870_v55, %v11768_v2  ;;  %v11789_v7 = vcombine.high %v10870_v55, %v11768_v2  ;;  %v14991_v18 = vpop.f32.mrb[27].mxu1 }
 0xd15   : > { %v11772_v12 = vcombine.low %v10421_v54, %v11319_v11  ;;  %v11773_v63 = vcombine.high %v10421_v54, %v11319_v11  ;;  %v14961_v0 = vpop.f32.mrb[25].mxu0 }
 0xd16   : > { %v11796_v27 = vrot.slane %v11788_v17, %v16417_v39  ;;  %v11803_v22 = vrot.slane %v11789_v7, %v16417_v39 }
 0xd17   : > { %v11780_v25 = vrot.slane %v11772_v12, %v16417_v39  ;;  %v11787_v26 = vrot.slane %v11773_v63, %v16417_v39 }
 0xd19   : > { %v11804_v31 = vcombine.low %v11780_v25, %v11796_v27  ;;  %v11805_v32 = vcombine.high %v11780_v25, %v11796_v27  ;;  %v11820_v33 = vcombine.low %v11787_v26, %v11803_v22  ;;  %v11821_v34 = vcombine.high %v11787_v26, %v11803_v22 }
 0xd1b   : > { %v11812_v42 = vrot.slane %v11804_v31, %v16419_v45  ;;  %v11819_v40 = vrot.slane %v11805_v32, %v16419_v45  ;;  %v11828_v41 = vrot.slane %v11820_v33, %v16419_v45  ;;  %v11835_v43 = vrot.slane %v11821_v34, %v16419_v45 }
 0xd1d   : > { %v11840_v10 = vcombine.low %v11812_v42, %v11819_v40  ;;  %v13713_v47 = vcombine.high %v11812_v42, %v11819_v40  ;;  %v11856_v28 = vcombine.low %v11828_v41, %v11835_v43  ;;  %v13714_v15 = vcombine.high %v11828_v41, %v11835_v43 }
 0xd1f   : > { %v11847_v16 = vrot.slane %v11840_v10, %v16417_v39  ;;  %v11855_v49 = vrot.slane %v13713_v47, %v16417_v39  ;;  %v11863_v51 = vrot.slane %v11856_v28, %v16417_v39  ;;  %v11871_v50 = vrot.slane %v13714_v15, %v16417_v39 }
 0xd20   : > { %v15422_v39 = vpack.c.bf16 %v11947_v23, %v11944_v24 }
 0xd21   : > { %v11873_v53 = vcombine.high %v11847_v16, %v11855_v49  ;;  %v11889_v54 = vcombine.high %v11863_v51, %v11871_v50  ;;  %v11872_v55 = vcombine.low %v11847_v16, %v11855_v49  ;;  %v11888_v56 = vcombine.low %v11863_v51, %v11871_v50  ;;  %v12452_v16 = vld [vmem:[%s17709_s21] sm:$0xff]  ;;  %v12453_v49 = vld [vmem:[%s17709_s21 + $0x8] sm:$0xff] }
 0xd22   : > { %15423 = vmatpush3.bf16.msra.mxu0 %v15422_v39  ;;  %v12467_v51 = vand.u32 4294901760, %v12452_v16  ;;  %v12470_v50 = vand.u32 4294901760, %v12453_v49 }
 0xd23   : > { %v11887_v58 = vrot.slane %v11873_v53, %v16419_v45  ;;  %v11903_v59 = vrot.slane %v11889_v54, %v16419_v45  ;;  %v11880_v2 = vrot.slane %v11872_v55, %v16419_v45  ;;  %v11896_v11 = vrot.slane %v11888_v56, %v16419_v45  ;;  %15430 = vmatprep.subr.bf16.mxu0 %v15973_v3 }
 0xd24   : > { %v15431_v45 = vpack.c.bf16 %v17365_v5, %v17363_v4  ;;  %v12476_v54 = vand.u32 4294901760, %v12455_v52  ;;  %v17462_v55 = vpack.c.bf16 %v12470_v50, %v12467_v51  ;;  %v12547_v56 = vsub.f32 %v12452_v16, %v12467_v51  ;;  %v12959_v51 = vld [vmem:[%s17711_s23 + $0x38] sm:$0xff] }
 0xd25   : > { %v11906_v17 = vcombine.low %v11887_v58, %v11903_v59  ;;  %v11905_v7 = vcombine.high %v11880_v2, %v11896_v11  ;;  %v11907_v18 = vcombine.high %v11887_v58, %v11903_v59  ;;  %v11904_v14 = vcombine.low %v11880_v2, %v11896_v11 }
 0xd26   : > { %v12568_v59 = vsub.f32 %v12455_v52, %v12476_v54  ;;  %v12548_v11 = vand.u32 4294901760, %v12547_v56  ;;  %v12993_v52 = vand.u32 4294901760, %v12959_v51 }
 0xd27   : > { %11913 = vrot.lane.b32.xlu1 %v11906_v17, %s17789_s8  ;;  %11909 = vrot.lane.b32.xlu0 %v11905_v7, %s17790_s9 }
 0xd28   : > { %v12549_v17 = vsub.f32 %v12547_v56, %v12548_v11 }
 0xd2b   : > { %11917 = vrot.lane.b32.xlu1 %v11907_v18, %s17791_s29  ;;  %v12550_v18 = vand.u32 4294901760, %v12549_v17  ;;  %s17793_s29 = sld [smem:[#allocation26_spill]] }
 0xd99   : > { %v11914_v12 = vpop.permute.xlu1 %11913  ;;  %v11910_v63 = vpop.permute.xlu0 %11909 }
 0xd9a   : > { %v11920_v0 = vsel %vm2348_vm2, %v11904_v14, %v11910_v63 }
 0xd9b   : > { %v11921_v22 = vsel %vm6146_vm3, %v11920_v0, %v11914_v12 }
 0xd9d   : > { %v11918_v27 = vpop.permute.xlu1 %11917 }
 0xd9e   : > { %v11922_v24 = vsel %vm6148_vm4, %v11921_v22, %v11918_v27 }
 0xd9f   : > { %v11935_v23 = vsel %vm920_vm1, %v11922_v24, 0 }
 0xda0   : > { %v12006_v25 = vand.u32 4294901760, %v11935_v23 }
 0xda2   : > { %v12007_v26 = vsub.f32 %v11935_v23, %v12006_v25  ;;  %15012 = vmatmul.mubr.f32.vlgmr.msra.gmra.mrb[28].mxu1 %v12006_v25 }
 0xda3   : > { %15438 = vmatpush3.bf16.msra.mxu1 %v15419_v57  ;;  %15033 = vmatprep.mubr.msk.f32.mxu1 %vm15974_vm0, %v15975_v9 }
 0xda4   : > { %15439 = vmatprep.subr.bf16.mxu1 %v15973_v3  ;;  %v12008_v4 = vand.u32 4294901760, %v12007_v26 }
 0xda6   : > { %v12009_v5 = vsub.f32 %v12007_v26, %v12008_v4 }
 0xda7   : > { %15441 = vmatpush3.bf16.msra.mxu1 %v15422_v39 }
 0xda8   : > { %15448 = vmatprep.subr.bf16.mxu1 %v15973_v3  ;;  %v12010_v21 = vand.u32 4294901760, %v12009_v5 }
 0xdaa   : > { %15034 = vmatmul.mubr.f32.vlgmr.msra.gmra.mrb[30].mxu1 %v12008_v4  ;;  %15001 = vmatmul.mubr.f32.vlgmr.msra.gmra.mrb[26].mxu0 %v12010_v21  ;;  %v12953_v4 = vld [vmem:[%s17711_s23 + $0x8] sm:$0xff] }
 0xdab   : > { %15432 = vmatpush3.bf16.msra.mxu0 %v15431_v45  ;;  %15450 = vmatpush3.bf16.msra.mxu1 %v15419_v57  ;;  %v12554_v57 = vsub.f32 %v12453_v49, %v12470_v50  ;;  %v12975_v21 = vand.u32 4294901760, %v12953_v4 }
 0xdac   : > { %15433 = vmatprep.subr.bf16.mxu0 %v15973_v3  ;;  %15451 = vmatprep.subr.bf16.mxu1 %v15973_v3 }
 0xdad   : > { %15022 = vmatprep.mubr.msk.f32.mxu0 %vm15974_vm0, %v15975_v9  ;;  %15055 = vmatprep.mubr.msk.f32.mxu1 %vm15974_vm0, %v15975_v9  ;;  %v15467_v22 = vpack.c.bf16 %v12554_v57, %v12547_v56 }
 0xdaf   : > { %15435 = vmatpush3.bf16.msra.mxu0 %v15434_v60  ;;  %15453 = vmatpush3.bf16.msra.mxu1 %v15422_v39  ;;  %v12555_v39 = vand.u32 4294901760, %v12554_v57  ;;  %v12569_v60 = vand.u32 4294901760, %v12568_v59 }
 0xdb0   : > { %15442 = vmatprep.subr.bf16.mxu0 %v15973_v3  ;;  %15490 = vmatprep.subr.bf16.mxu1 %v15973_v3 }
 0xdb1   : > { %v12556_v7 = vsub.f32 %v12554_v57, %v12555_v39  ;;  %v12570_v12 = vsub.f32 %v12568_v59, %v12569_v60  ;;  %v15479_v23 = vpack.c.bf16 %v12555_v39, %v12548_v11 }
 0xdb2   : > { %15023 = vmatmul.mubr.f32.vlgmr.msra.gmra.mrb[28].mxu0 %v12007_v26  ;;  %15056 = vmatmul.mubr.f32.vlgmr.msra.gmra.mrb[32].mxu1 %v12006_v25  ;;  %v12952_v26 = vld [vmem:[%s17711_s23] sm:$0xff] }
 0xdb3   : > { %15444 = vmatpush3.bf16.msra.mxu0 %v15443_v61  ;;  %15044 = vmatprep.mubr.msk.f32.mxu0 %vm15974_vm0, %v15975_v9  ;;  %v12557_v14 = vand.u32 4294901760, %v12556_v7  ;;  %v12571_v0 = vand.u32 4294901760, %v12570_v12  ;;  %v12972_v5 = vand.u32 4294901760, %v12952_v26 }
 0xdb4   : > { %15445 = vmatprep.subr.bf16.mxu0 %v15973_v3  ;;  %15140 = vmatprep.mubr.msk.f32.mxu1 %vm15974_vm0, %v15975_v9 }
 0xdb5   : > { %v15461_v61 = vpack.c.bf16 %v12557_v14, %v12550_v18 }
 0xdb7   : > { %15447 = vmatpush3.bf16.msra.mxu0 %v15446_v6 }
 0xdb8   : > { %15454 = vmatprep.subr.bf16.mxu0 %v15973_v3 }
 0xdba   : > { %15045 = vmatmul.mubr.f32.vlgmr.msra.gmra.mrb[30].mxu0 %v12006_v25 }
 0xdbb   : > { %15066 = vmatprep.mubr.msk.f32.mxu0 %vm15974_vm0, %v15975_v9  ;;  %15456 = vmatpush3.bf16.msra.mxu0 %v17462_v55 }
 0xdbc   : > { %15457 = vmatprep.subr.bf16.mxu0 %v15973_v3 }
 0xe75   : > { %v12103_v1 = vpop.f32.mrb[28].mxu1 }
 0xe76   : > { %v15013_v30 = vpop.f32.mrb[29].mxu1 }
 0xe77   : > { %v17478_v30 = vsub.f32 %v12952_v26, %v12972_v5 }
 0xe7d   : > { %v12260_v13 = vpop.f32.mrb[30].mxu1  ;;  %v12012_v20 = vpop.f32.mrb[26].mxu0 }
 0xe7e   : > { %v12013_v31 = vadd.f32 %v13715_v19, %v12012_v20  ;;  %v15035_v32 = vpop.f32.mrb[31].mxu1  ;;  %v15002_v33 = vpop.f32.mrb[27].mxu0  ;;  %v17480_v19 = vsub.f32 %v12953_v4, %v12975_v21 }
 0xe7f   : > { %v13716_v33 = vld [vmem:[%s17707_s19] ss:$0 sm:$0xff] }
 0xe80   : > { %v12104_v34 = vadd.f32 %v12103_v1, %v12013_v31  ;;  %v17476_v1 = vpack.c.bf16 %v12975_v21, %v12972_v5  ;;  %v13064_v11 = vand.u32 4294901760, %v17480_v19 }
 0xe82   : > { %15492 = vmatpush3.bf16.msra.mxu1 %v17476_v1  ;;  %v13065_v17 = vsub.f32 %v17480_v19, %v13064_v11 }
 0xe83   : > { %15493 = vmatprep.subr.bf16.mxu1 %v15973_v3 }
 0xe84   : > { %v13066_v18 = vand.u32 4294901760, %v13065_v17 }
 0xe85   : > { %v12183_v35 = vpop.f32.mrb[28].mxu0  ;;  %v12418_v36 = vpop.f32.mrb[32].mxu1 }
 0xe86   : > { %v12184_v37 = vadd.f32 %v12183_v35, %v12104_v34  ;;  %v15024_v38 = vpop.f32.mrb[29].mxu0  ;;  %v15057_v42 = vpop.f32.mrb[33].mxu1  ;;  %v13717_v35 = vld [vmem:[%s17708_s20] ss:$0 sm:$0xff] }
 0xe88   : > { %v12261_v40 = vadd.f32 %v12260_v13, %v12184_v37 }
 0xe8d   : > { %v12343_v41 = vpop.f32.mrb[30].mxu0 }
 0xe8e   : > { %v12344_v43 = vadd.f32 %v12343_v41, %v12261_v40  ;;  %v15046_v44 = vpop.f32.mrb[31].mxu0 }
 0xe90   : > { %v12419_v46 = vadd.f32 %v12418_v36, %v12344_v43 }
 0xe92   : > { %v12422_v8 = vadd.f32 %v12419_v46, %v16964_v62  ;;  %v12454_v62 = vld [vmem:[%s17709_s21 + $0x10] sm:$0xff] }
 0xe93   : > { %v12473_v53 = vand.u32 4294901760, %v12454_v62  ;;  %v12954_v46 = vld [vmem:[%s17711_s23 + $0x10] sm:$0xff] }
 0xe94   : > { %v12425_v10 = vsel %vm920_vm1, %v12422_v8, 0.0 }
 0xe95   : > { %12426 = vadd.xlane.f32.xlu0 %v12425_v10  ;;  %v12561_v58 = vsub.f32 %v12454_v62, %v12473_v53  ;;  %v17465_v2 = vpack.c.bf16 %v12476_v54, %v12473_v53  ;;  %v12978_v10 = vand.u32 4294901760, %v12954_v46  ;;  %v12958_v62 = vld [vmem:[%s17711_s23 + $0x30] sm:$0xff] }
 0xe96   : > { %v12990_v50 = vand.u32 4294901760, %v12958_v62 }
 0xe97   : > { %15459 = vmatpush3.bf16.msra.mxu0 %v17465_v2  ;;  %v12562_v45 = vand.u32 4294901760, %v12561_v58  ;;  %v15470_v24 = vpack.c.bf16 %v12568_v59, %v12561_v58  ;;  %v17552_v53 = vsub.f32 %v12954_v46, %v12978_v10  ;;  %v17564_v59 = vsub.f32 %v12959_v51, %v12993_v52  ;;  %v13719_v51 = vld [vmem:[%s17712_s24] ss:$0 sm:$0xff] }
 0xe98   : > { %15460 = vmatprep.subr.bf16.mxu0 %v15973_v3  ;;  %v17560_v57 = vpack.c.bf16 %v12993_v52, %v12990_v50 }
 0xe99   : > { %v12563_v6 = vsub.f32 %v12561_v58, %v12562_v45  ;;  %v15482_v25 = vpack.c.bf16 %v12569_v60, %v12562_v45  ;;  %v17562_v58 = vsub.f32 %v12958_v62, %v12990_v50  ;;  %v13071_v14 = vand.u32 4294901760, %v17552_v53 }
 0xe9a   : > { %v13106_v5 = vand.u32 4294901760, %v17564_v59 }
 0xe9b   : > { %v12564_v63 = vand.u32 4294901760, %v12563_v6  ;;  %v13099_v4 = vand.u32 4294901760, %v17562_v58 }
 0xe9d   : > { %v15464_v27 = vpack.c.bf16 %v12571_v0, %v12564_v63 }
 0xf22   : > { %v12427_v47 = vpop.xlane.xlu0 %12426 }
 0xf23   : > { %v12428_v28 = vmul.f32 0.03125, %v12427_v47 }
 0xf25   : > { %v12429_v15 = vsub.f32 %v12422_v8, %v12428_v28  ;;  %v12955_v8 = vld [vmem:[%s17711_s23 + $0x18] sm:$0xff] }
 0xf26   : > { %v12981_v47 = vand.u32 4294901760, %v12955_v8 }
 0xf27   : > { %v12430_v29 = vmul.f32 %v12429_v15, %v12429_v15 }
 0xf28   : > { %v17528_v28 = vpack.c.bf16 %v12981_v47, %v12978_v10  ;;  %v17554_v54 = vsub.f32 %v12955_v8, %v12981_v47 }
 0xf29   : > { %v12431_v48 = vsel %vm920_vm1, %v12430_v29, 0.0  ;;  %v12957_v29 = vld [vmem:[%s17711_s23 + $0x28] sm:$0xff] }
 0xf2a   : > { %12432 = vadd.xlane.f32.xlu1 %v12431_v48  ;;  %15495 = vmatpush3.bf16.msra.mxu1 %v17528_v28  ;;  %v12987_v16 = vand.u32 4294901760, %v12957_v29  ;;  %v13078_v45 = vand.u32 4294901760, %v17554_v54 }
 0xf2b   : > { %15496 = vmatprep.subr.bf16.mxu1 %v15973_v3 }
 0xf2c   : > { %v17558_v56 = vsub.f32 %v12957_v29, %v12987_v16  ;;  %v13079_v6 = vsub.f32 %v17554_v54, %v13078_v45 }
 0xf2e   : > { %v13080_v63 = vand.u32 4294901760, %v13079_v6 }
 0xfb7   : > { %v12433_v13 = vpop.xlane.xlu1 %12432 }
 0xfb8   : > { %v12434_v20 = vmul.f32 0.03125, %v12433_v13  ;;  %v13100_v13 = vsub.f32 %v17562_v58, %v13099_v4 }
 0xfba   : > { %v12435_v31 = vadd.f32 1e-05, %v12434_v20  ;;  %v13107_v20 = vsub.f32 %v17564_v59, %v13106_v5 }
 0xfbc   : > { %15888 = vrsqrt.f32 %v12435_v31  ;;  %v13101_v31 = vand.u32 4294901760, %v13100_v13 }
 0xfc6   : > { %v15889_v32 = vpop.eup %15888 }
 0xfc7   : > { %v12437_v34 = vmul.f32 %v15889_v32, %v12429_v15  ;;  %v12956_v15 = vld [vmem:[%s17711_s23 + $0x20] sm:$0xff]  ;;  %v13108_v32 = vand.u32 4294901760, %v13107_v20 }
 0xfc8   : > { %v12984_v48 = vand.u32 4294901760, %v12956_v15 }
 0xfc9   : > { %v12444_v36 = vmul.f32 %v13716_v33, %v12437_v34  ;;  %v15512_v33 = vpack.c.bf16 %v13108_v32, %v13101_v31  ;;  %v15515_v34 = vpack.c.bf16 %v17480_v19, %v17478_v30 }
 0xfca   : > { %v17540_v49 = vpack.c.bf16 %v12987_v16, %v12984_v48 }
 0xfcb   : > { %v17490_v37 = vadd.f32 %v13717_v35, %v12444_v36  ;;  %v15518_v35 = vpack.c.bf16 %v17554_v54, %v17552_v53 }
 0xfcc   : > { %15498 = vmatpush3.bf16.msra.mxu1 %v17540_v49 }
 0xfcd   : > { %v12464_v38 = vsel %vm920_vm1, %v17490_v37, 0  ;;  %15499 = vmatprep.subr.bf16.mxu1 %v15973_v3 }
 0xfce   : > { %v12535_v42 = vand.u32 4294901760, %v12464_v38 }
 0xfd0   : > { %v12536_v40 = vsub.f32 %v12464_v38, %v12535_v42  ;;  %15501 = vmatpush3.bf16.msra.mxu1 %v17560_v57  ;;  %v15524_v38 = vpack.c.bf16 %v17564_v59, %v17562_v58 }
 0xfd1   : > { %15502 = vmatprep.subr.bf16.mxu1 %v15973_v3 }
 0xfd2   : > { %v12537_v41 = vand.u32 4294901760, %v12536_v40 }
 0xfd4   : > { %v12538_v43 = vsub.f32 %v12536_v40, %v12537_v41 }
 0xfd6   : > { %v12539_v44 = vand.u32 4294901760, %v12538_v43  ;;  %v15548_v43 = vpack.c.bf16 %v13106_v5, %v13099_v4 }
 0xfd8   : > { %15067 = vmatmul.mubr.f32.vlgmr.msra.gmra.mrb[32].mxu0 %v12539_v44  ;;  %v13718_v44 = vld [vmem:[%s17710_s22] ss:$0 sm:$0xff] }
 0xfd9   : > { %15462 = vmatpush3.bf16.msra.mxu0 %v15461_v61  ;;  %15077 = vmatprep.mubr.msk.f32.mxu0 %vm15974_vm0, %v15975_v9  ;;  %v13072_v61 = vsub.f32 %v17552_v53, %v13071_v14 }
 0xfda   : > { %15463 = vmatprep.subr.bf16.mxu0 %v15973_v3 }
 0xfdb   : > { %v13073_v12 = vand.u32 4294901760, %v13072_v61 }
 0xfdd   : > { %15465 = vmatpush3.bf16.msra.mxu0 %v15464_v27  ;;  %v13092_v27 = vand.u32 4294901760, %v17558_v56 }
 0xfde   : > { %15466 = vmatprep.subr.bf16.mxu0 %v15973_v3 }
 0xfe0   : > { %15078 = vmatmul.mubr.f32.vlgmr.msra.gmra.mrb[32].mxu0 %v12535_v42 }
 0xfe1   : > { %15468 = vmatpush3.bf16.msra.mxu0 %v15467_v22  ;;  %15088 = vmatprep.mubr.msk.f32.mxu0 %vm15974_vm0, %v15975_v9  ;;  %v15506_v22 = vpack.c.bf16 %v13080_v63, %v13073_v12 }
 0xfe2   : > { %15469 = vmatprep.subr.bf16.mxu0 %v15973_v3 }
 0xfe5   : > { %15471 = vmatpush3.bf16.msra.mxu0 %v15470_v24 }
 0xfe6   : > { %15472 = vmatprep.subr.bf16.mxu0 %v15973_v3 }
 0xfe8   : > { %15089 = vmatmul.mubr.f32.vlgmr.msra.gmra.mrb[32].mxu0 %v12536_v40  ;;  %v15542_v40 = vpack.c.bf16 %v13078_v45, %v13071_v14 }
 0xfe9   : > { %15474 = vmatpush3.bf16.msra.mxu0 %v17462_v55  ;;  %15099 = vmatprep.mubr.msk.f32.mxu0 %vm15974_vm0, %v15975_v9 }
 0xfea   : > { %15475 = vmatprep.subr.bf16.mxu0 %v15973_v3 }
 0xfed   : > { %15477 = vmatpush3.bf16.msra.mxu0 %v17465_v2 }
 0xfee   : > { %15478 = vmatprep.subr.bf16.mxu0 %v15973_v3 }
 0xff0   : > { %15100 = vmatmul.mubr.f32.vlgmr.msra.gmra.mrb[32].mxu0 %v12537_v41 }
 0xff1   : > { %15480 = vmatpush3.bf16.msra.mxu0 %v15479_v23  ;;  %15110 = vmatprep.mubr.msk.f32.mxu0 %vm15974_vm0, %v15975_v9  ;;  %v13093_v23 = vsub.f32 %v17558_v56, %v13092_v27 }
 0xff2   : > { %15481 = vmatprep.subr.bf16.mxu0 %v15973_v3 }
 0xff3   : > { %v13094_v26 = vand.u32 4294901760, %v13093_v23 }
 0xff5   : > { %15483 = vmatpush3.bf16.msra.mxu0 %v15482_v25 }
 0xff6   : > { %15484 = vmatprep.subr.bf16.mxu0 %v15973_v3 }
 0xff8   : > { %15111 = vmatmul.mubr.f32.vlgmr.msra.gmra.mrb[32].mxu0 %v12535_v42 }
 0xff9   : > { %15486 = vmatpush3.bf16.msra.mxu0 %v17462_v55  ;;  %15121 = vmatprep.mubr.msk.f32.mxu0 %vm15974_vm0, %v15975_v9  ;;  %v17556_v55 = vsub.f32 %v12956_v15, %v12984_v48 }
 0xffa   : > { %15487 = vmatprep.subr.bf16.mxu0 %v15973_v3 }
 0xffb   : > { %v13085_v0 = vand.u32 4294901760, %v17556_v55  ;;  %v15521_v36 = vpack.c.bf16 %v17558_v56, %v17556_v55 }
 0xffd   : > { %15489 = vmatpush3.bf16.msra.mxu0 %v17465_v2  ;;  %v13057_v2 = vand.u32 4294901760, %v17478_v30  ;;  %v13086_v24 = vsub.f32 %v17556_v55, %v13085_v0  ;;  %v15545_v41 = vpack.c.bf16 %v13092_v27, %v13085_v0 }
 0xffe   : > { %15526 = vmatprep.subr.bf16.mxu0 %v15973_v3 }
 0xfff   : > { %v13058_v39 = vsub.f32 %v17478_v30, %v13057_v2  ;;  %v13087_v25 = vand.u32 4294901760, %v13086_v24 }
0x1000   : > { %15122 = vmatmul.mubr.f32.vlgmr.msra.gmra.mrb[32].mxu0 %v12535_v42  ;;  %v15539_v42 = vpack.c.bf16 %v13064_v11, %v13057_v2 }
0x1001   : > { %15528 = vmatpush3.bf16.msra.mxu0 %v17476_v1  ;;  %15197 = vmatprep.mubr.msk.f32.mxu0 %vm15974_vm0, %v15975_v9  ;;  %v13059_v7 = vand.u32 4294901760, %v13058_v39  ;;  %v15509_v21 = vpack.c.bf16 %v13094_v26, %v13087_v25 }
0x1002   : > { %15529 = vmatprep.subr.bf16.mxu0 %v15973_v3 }
0x1003   : > { %v15503_v60 = vpack.c.bf16 %v13066_v18, %v13059_v7 }
0x1005   : > { %15531 = vmatpush3.bf16.msra.mxu0 %v17528_v28 }
0x1006   : > { %15532 = vmatprep.subr.bf16.mxu0 %v15973_v3 }
0x1009   : > { %15534 = vmatpush3.bf16.msra.mxu0 %v17540_v49 }
0x100a   : > { %15535 = vmatprep.subr.bf16.mxu0 %v15973_v3 }
0x100d   : > { %15537 = vmatpush3.bf16.msra.mxu0 %v17560_v57 }
0x100e   : > { %15550 = vmatprep.subr.bf16.mxu0 %v15973_v3 }
0x10d3   : > { %v12947_v46 = vpop.f32.mrb[32].mxu0 }
0x10d4   : > { %v15575_v8 = vadd.f32 %v13718_v44, %v12947_v46  ;;  %v15123_v30 = vpop.f32.mrb[33].mxu0 }
0x10d6   : > { %v12951_v19 = vmax.f32 %v15575_v8, 0.0 }
0x10d8   : > { %v12969_v10 = vsel %vm12967_vm5, %v12951_v19, 0 }
0x10d9   : > { %v13044_v47 = vand.u32 4294901760, %v12969_v10 }
0x10db   : > { %v13045_v15 = vsub.f32 %v12969_v10, %v13044_v47 }
0x10dd   : > { %v13046_v29 = vand.u32 4294901760, %v13045_v15 }
0x10df   : > { %15198 = vmatmul.mubr.f32.vlgmr.msra.gmra.mrb[34].mxu0 %v13046_v29  ;;  %v13047_v48 = vsub.f32 %v13045_v15, %v13046_v29 }
0x10e0   : > { %15552 = vmatpush3.bf16.msra.mxu0 %v17476_v1  ;;  %15235 = vmatprep.mubr.msk.f32.mxu0 %vm15974_vm0, %v15975_v9 }
0x10e1   : > { %15553 = vmatprep.subr.bf16.mxu0 %v15973_v3  ;;  %v13048_v16 = vand.u32 4294901760, %v13047_v48 }
0x10e3   : > { %15141 = vmatmul.mubr.f32.vlgmr.msra.gmra.mrb[34].mxu1 %v13048_v16 }
0x10e4   : > { %15504 = vmatpush3.bf16.msra.mxu1 %v15503_v60  ;;  %15555 = vmatpush3.bf16.msra.mxu0 %v17528_v28 }
0x10e5   : > { %15505 = vmatprep.subr.bf16.mxu1 %v15973_v3  ;;  %15556 = vmatprep.subr.bf16.mxu0 %v15973_v3 }
0x10e6   : > { %15159 = vmatprep.mubr.msk.f32.mxu1 %vm15974_vm0, %v15975_v9 }
0x10e8   : > { %15507 = vmatpush3.bf16.msra.mxu1 %v15506_v22  ;;  %15558 = vmatpush3.bf16.msra.mxu0 %v17540_v49  ;;  %v13721_v22 = vld [vmem:[%s17793_s29] ss:$0 sm:$0xff] }
0x10e9   : > { %15508 = vmatprep.subr.bf16.mxu1 %v15973_v3  ;;  %15559 = vmatprep.subr.bf16.mxu0 %v15973_v3 }
0x10ec   : > { %15510 = vmatpush3.bf16.msra.mxu1 %v15509_v21  ;;  %15561 = vmatpush3.bf16.msra.mxu0 %v17560_v57 }
0x10ed   : > { %15511 = vmatprep.subr.bf16.mxu1 %v15973_v3 }
0x10ef   : > { %15236 = vmatmul.mubr.f32.vlgmr.msra.gmra.mrb[36].mxu0 %v13044_v47 }
0x10f0   : > { %15513 = vmatpush3.bf16.msra.mxu1 %v15512_v33 }
0x10f1   : > { %15514 = vmatprep.subr.bf16.mxu1 %v15973_v3 }
0x10f3   : > { %15160 = vmatmul.mubr.f32.vlgmr.msra.gmra.mrb[36].mxu1 %v13044_v47 }
0x10f4   : > { %15516 = vmatpush3.bf16.msra.mxu1 %v15515_v34  ;;  %15178 = vmatprep.mubr.msk.f32.mxu1 %vm15974_vm0, %v15975_v9 }
0x10f5   : > { %15517 = vmatprep.subr.bf16.mxu1 %v15973_v3 }
0x10f8   : > { %15519 = vmatpush3.bf16.msra.mxu1 %v15518_v35 }
0x10f9   : > { %15520 = vmatprep.subr.bf16.mxu1 %v15973_v3 }
0x10fc   : > { %15522 = vmatpush3.bf16.msra.mxu1 %v15521_v36 }
0x10fd   : > { %15523 = vmatprep.subr.bf16.mxu1 %v15973_v3 }
0x1100   : > { %15525 = vmatpush3.bf16.msra.mxu1 %v15524_v38 }
0x1101   : > { %15538 = vmatprep.subr.bf16.mxu1 %v15973_v3 }
0x1103   : > { %15179 = vmatmul.mubr.f32.vlgmr.msra.gmra.mrb[38].mxu1 %v13045_v15 }
0x1104   : > { %15540 = vmatpush3.bf16.msra.mxu1 %v15539_v42  ;;  %15216 = vmatprep.mubr.msk.f32.mxu1 %vm15974_vm0, %v15975_v9 }
0x1105   : > { %15541 = vmatprep.subr.bf16.mxu1 %v15973_v3 }
0x1108   : > { %15543 = vmatpush3.bf16.msra.mxu1 %v15542_v40 }
0x1109   : > { %15544 = vmatprep.subr.bf16.mxu1 %v15973_v3 }
0x110c   : > { %15546 = vmatpush3.bf16.msra.mxu1 %v15545_v41 }
0x110d   : > { %15547 = vmatprep.subr.bf16.mxu1 %v15973_v3 }
0x1110   : > { %15549 = vmatpush3.bf16.msra.mxu1 %v15548_v43 }
0x1113   : > { %15217 = vmatmul.mubr.f32.vlgmr.msra.gmra.mrb[40].mxu1 %v13044_v47 }
0x11b2   : > { %v13330_v1 = vpop.f32.mrb[34].mxu0 }
0x11b3   : > { %v15199_v28 = vpop.f32.mrb[35].mxu0 }
0x11b6   : > { %v13050_v49 = vpop.f32.mrb[34].mxu1 }
0x11b7   : > { %v15142_v62 = vpop.f32.mrb[35].mxu1  ;;  %v13051_v52 = vadd.f32 %v13719_v51, %v13050_v49 }
0x11c2   : > { %v13504_v50 = vpop.f32.mrb[36].mxu0 }
0x11c3   : > { %v15237_v9 = vpop.f32.mrb[37].mxu0 }
0x11c6   : > { %v13161_v53 = vpop.f32.mrb[36].mxu1 }
0x11c7   : > { %v13162_v54 = vadd.f32 %v13161_v53, %v13051_v52  ;;  %v15161_v55 = vpop.f32.mrb[37].mxu1 }
0x11d6   : > { %v13249_v56 = vpop.f32.mrb[38].mxu1 }
0x11d7   : > { %v13250_v57 = vadd.f32 %v13249_v56, %v13162_v54  ;;  %v15180_v58 = vpop.f32.mrb[39].mxu1 }
0x11d9   : > { %v13331_v3 = vadd.f32 %v13330_v1, %v13250_v57 }
0x11e6   : > { %v13425_v59 = vpop.f32.mrb[40].mxu1 }
0x11e7   : > { %v13426_v2 = vadd.f32 %v13425_v59, %v13331_v3  ;;  %v15218_v11 = vpop.f32.mrb[41].mxu1 }
0x11e9   : > { %v13505_v39 = vadd.f32 %v13504_v50, %v13426_v2 }
0x11eb   : > { %v13508_v17 = vadd.f32 %v13505_v39, %v17490_v37  ;;  %v13720_v37 = vld [vmem:[%s17792_s3] ss:$0 sm:$0xff]  ;;  %s15899_s3 = scalar_lea.vmem %s15898_s25, 256 }
0x11ec   : > { %p15901_p2 = scmp.lt.s32.totalorder %s15899_s3, %s15893_s6 }
0x11ed   : > { %v13511_v7 = vsel %vm920_vm1, %v13508_v17, 0.0 }
0x11ee   : > { %13512 = vadd.xlane.f32.xlu0 %v13511_v7  ;;  %p15902_p3 = por %p15901_p2, %p15900_p1 }
0x11f0   : > { %p15903_p5 = pnand %p15902_p3, %p15896_p0 }
0x127b   : > { %v13513_v18 = vpop.xlane.xlu0 %13512 }
0x127c   : > { %v13514_v14 = vmul.f32 0.03125, %v13513_v18 }
0x127e   : > { %v13515_v45 = vsub.f32 %v13508_v17, %v13514_v14 }
0x1280   : > { %v13516_v60 = vmul.f32 %v13515_v45, %v13515_v45 }
0x1282   : > { %v13517_v61 = vsel %vm920_vm1, %v13516_v60, 0.0 }
0x1283   : > { %13518 = vadd.xlane.f32.xlu0 %v13517_v61 }
0x1310   : > { %v13519_v6 = vpop.xlane.xlu0 %13518 }
0x1311   : > { %v13520_v12 = vmul.f32 0.03125, %v13519_v6 }
0x1313   : > { %v13521_v63 = vadd.f32 1e-05, %v13520_v12 }
0x1315   : > { %15890 = vrsqrt.f32 %v13521_v63 }
0x131f   : > { %v15891_v0 = vpop.eup %15890 }
0x1320   : > { %v13523_v27 = vmul.f32 %v15891_v0, %v13515_v45 }
0x1322   : > { %v13530_v24 = vmul.f32 %v13720_v37, %v13523_v27 }
0x1324   : > { %v13537_v23 = vadd.f32 %v13721_v22, %v13530_v24 }
0x1326   : > { %13538 = vst.msk [vmem:[%s881_s27] sm:$0xff] %vm920_vm1, %v13537_v23 }
0x1327   : > { %15906 = shalt.err (!%p15903_p5)
}
0x1328   : > { %s15907_s0 = scalar_lea.hbm %s17640_s13, 128  ;;  %s15911_s29 = scalar_lea.hbm %s17795_s12, 256 }
0x1329   : > { %p15908_p6 = scmp.ne.s32.totalorder %s17640_s13, %s15907_s0  ;;  %p15912_p10 = scmp.lt.u32.totalorder %s17640_s13, %s17795_s12 }
0x132a   : > { %p15913_p11 = scmp.lt.u32.totalorder %s15911_s29, %s15907_s0  ;;  %p15915_p13 = scmp.lt.u32.totalorder %s15907_s0, %s17640_s13 }
0x132b   : > { %p15909_p7 = pnand %p15908_p6, %p16169_p4 }
0x132c   : > { %p15914_p12 = por %p15913_p11, %p15912_p10 }
0x132d   : > { %p15910_p9 = pneg %p15909_p7 }
0x132e   : > { %p15916_p0 = por %p15915_p13, %p15914_p12 }
0x1330   : > { %p15917_p1 = pnand %p15916_p0, %p15910_p9 }
0x1332   : > { %15920 = shalt.err (!%p15917_p1)
}
0x1333   : > { %15784 = dma.vmem_to_hbm [thread:$0]  (%p16169_p4), %s17642_s11, 128, %s17640_s13, %s13540_s2  }
0x1334 PF: > { %s17796_s28 = sld [smem:[#allocation5_spill]]  ;;  %p15790_p2 = scmp.ge.s32.totalorder %s15971_s5, 2 }
0x1336   : > { %p15787_p3 = pnand %p15790_p2, %p16176_p8 }
0x133a   : > { %s13566_s7 = sand.u32 1, %s17796_s28  }
0x133b   : > { %s13567_s6 = scalar_lea.sflag [#allocation3], %s13566_s7 }
0x133c   : > { %15946 = dma.done.wait (!%p15787_p3), %s13567_s6, 128  }
0x133d   : > { %15948 = vsyncadd (!%p15787_p3), %s13567_s6, 4294967168  ;;  %s40_s5 = sadd.s32 1, %s15971_s5   ;;  %s17798_s30 = sld [smem:[#allocation6_spill]] }
0x133e   : > { %p37_p5 = scmp.ge.s32.totalorder %s40_s5, 4   ;;  %s17799_s8 = sld [smem:[#allocation10_spill]] }
0x133f   : > { %s17800_s1 = sld [smem:[#allocation7_spill]]  ;;  %s17801_s9 = sld [smem:[#allocation8_spill]] }
0x1340   : > { %s17802_s7 = smov %s15955_s4  ;;  %39 = sbr.rel (!%p37_p5) target bundleno = 22 (0x16), region = 175 }
0x1343   : > { %s17803_s4 = smov %s17798_s30 }
0x1345   : > { %s17804_s30 = smov %s17800_s1 }
0x1347   :  { %13572 = vsyncpa [#allocation3], 1 }
0x1348   :  { %13574 = vsyncpa [#allocation3 + $0x1], 1 }

// kernel: decoder_forward.2
= control target key start
LH: loop header
LB: loop body
LE: loop exit
PB: predicated region body
PF: predicated region fallthrough
CT: control target
= control target key end

     0   :  { %s17519_s0 = inlined_call_operand.vmem [shape: f32[2,8,32], index: 0, kind: input, shape index: {}, may-alias: {0,1}]   ;;  %s17520_s1 = inlined_call_operand.vmem [shape: f32[2,8,32], index: 1, kind: input, shape index: {}, may-alias: {0,1}]   ;;  %s17521_s2 = inlined_call_operand.vmem [shape: f32[2,8,32], index: 2, kind: input, shape index: {}]   ;;  %s17522_s3 = inlined_call_operand.vmem [shape: f32[8,8], index: 3, kind: input, shape index: {}]   ;;  %s17523_s4 = inlined_call_operand.vmem [shape: f32[2,1,8], index: 4, kind: input, shape index: {}]   ;;  %s17524_s5 = inlined_call_operand.vmem [shape: f32[32,32], index: 5, kind: input, shape index: {}]   ;;  %s17525_s6 = inlined_call_operand.vmem [shape: f32[1,32], index: 6, kind: input, shape index: {}]   ;;  %s17526_s7 = inlined_call_operand.vmem [shape: f32[32,64], index: 7, kind: input, shape index: {}]   ;;  %s17527_s8 = inlined_call_operand.vmem [shape: f32[1,64], index: 8, kind: input, shape index: {}]   ;;  %s17528_s9 = inlined_call_operand.vmem [shape: f32[32,32], index: 9, kind: input, shape index: {}]   ;;  %s17529_s10 = inlined_call_operand.vmem [shape: f32[1,32], index: 10, kind: input, shape index: {}]   ;;  %s17530_s11 = inlined_call_operand.vmem [shape: f32[1,32], index: 11, kind: input, shape index: {}]   ;;  %s17531_s12 = inlined_call_operand.vmem [shape: f32[1,32], index: 12, kind: input, shape index: {}]   ;;  %s17532_s13 = inlined_call_operand.vmem [shape: f32[32,32], index: 13, kind: input, shape index: {}]   ;;  %s17533_s14 = inlined_call_operand.vmem [shape: f32[1,32], index: 14, kind: input, shape index: {}]   ;;  %s17534_s15 = inlined_call_operand.vmem [shape: f32[32,64], index: 15, kind: input, shape index: {}]   ;;  %s17535_s16 = inlined_call_operand.vmem [shape: f32[1,64], index: 16, kind: input, shape index: {}]   ;;  %s17536_s17 = inlined_call_operand.vmem [shape: f32[32,32], index: 17, kind: input, shape index: {}]   ;;  %s17537_s18 = inlined_call_operand.vmem [shape: f32[1,32], index: 18, kind: input, shape index: {}]   ;;  %s17538_s19 = inlined_call_operand.vmem [shape: f32[1,32], index: 19, kind: input, shape index: {}]   ;;  %s17539_s20 = inlined_call_operand.vmem [shape: f32[1,32], index: 20, kind: input, shape index: {}]   ;;  %s17540_s21 = inlined_call_operand.vmem [shape: f32[32,64], index: 21, kind: input, shape index: {}]   ;;  %s17541_s22 = inlined_call_operand.vmem [shape: f32[1,64], index: 22, kind: input, shape index: {}]   ;;  %s17542_s23 = inlined_call_operand.vmem [shape: f32[64,32], index: 23, kind: input, shape index: {}]   ;;  %s17543_s24 = inlined_call_operand.vmem [shape: f32[1,32], index: 24, kind: input, shape index: {}]   ;;  %s17544_s25 = inlined_call_operand.vmem [shape: f32[1,32], index: 25, kind: input, shape index: {}]   ;;  %s17545_s26 = inlined_call_operand.vmem [shape: f32[1,32], index: 26, kind: input, shape index: {}]   ;;  %s17546_s27 = inlined_call_operand.vmem [shape: f32[2,8,32], index: 27, kind: output, shape index: {}]  }
   0x1   :  { %17567 = sst [smem:[#allocation4_spill]] %s17519_s0 }
   0x2   :  { %17568 = sst [smem:[#allocation5_spill]] %s17520_s1 }
   0x3   :  { %17569 = sst [smem:[#allocation6_spill]] %s17521_s2 }
   0x4   :  { %17570 = sst [smem:[#allocation7_spill]] %s17522_s3 }
   0x5   :  { %17571 = sst [smem:[#allocation8_spill]] %s17523_s4  ;;  %s16036_s4 = smov 0  }
   0x6   :  { %17572 = sst [smem:[#allocation9_spill]] %s17524_s5 }
   0x7   :  { %17573 = sst [smem:[#allocation10_spill]] %s17525_s6 }
   0x8   :  { %17574 = sst [smem:[#allocation11_spill]] %s17526_s7  ;;  %s16034_s7 = smov 0  }
   0x9   :  { %17575 = sst [smem:[#allocation12_spill]] %s17527_s8  ;;  %s16038_s8 = smov 0  }
   0xa   :  { %17576 = sst [smem:[#allocation13_spill]] %s17528_s9 }
   0xb   :  { %17577 = sst [smem:[#allocation14_spill]] %s17529_s10 }
   0xc   :  { %17578 = sst [smem:[#allocation15_spill]] %s17530_s11 }
   0xd LB: > { %17579 = sst [smem:[#allocation2_spill]] %s15873_s4  ;;  %s49_s30 = sadd.s32 1, %s15873_s4  ;;  %s15877_s8 = sphi %s16038_s8, %s37_s8   ;;  %s15873_s4 = sphi %s16036_s4, %s17604_s4   ;;  %s15869_s7 = sphi %s16034_s7, %s17603_s7  }
   0xe   : > { %p13673_p0 = scmp.ge.s32.totalorder %s15877_s8, 1  ;;  %p51_p1 = scmp.ge.s32.totalorder %s49_s30, 2 }
   0xf   : > { %p790_p2 = scmp.lt.s32.totalorder %s15877_s8, 3 }
  0x10   : > { %s17606_s30 = smov (%p51_p1, %s49_s30), 0 }
  0x11   : > { %17580 = sst [smem:[#allocation3_spill]] %s17606_s30  ;;  %p791_p3 = pnand %p13673_p0, %p790_p2 }
  0x12   : > { %s17581_s28 = sld [smem:[#allocation9_spill]] (!%p791_p3)  ;;  %v15879_v3 = vmov (!%p791_p3), 0.0|0.0   ;;  %p881_p4 = scmp.lt.s32.totalorder (!%p791_p3), %s15869_s7, 1  ;;  %vm15880_vm0 = vmmov (!%p791_p3), 0   ;;  %v15881_v9 = vmov (!%p791_p3), 0.0   ;;  %vm926_vm1 = vcmask (!%p791_p3), 261120  }
  0x13   : > { %794 = sbr.rel (%p791_p3) target bundleno = 4883 (0x1313), region = 128  ;;  %15231 = vmatprep.subr.bf16.mxu1 (!%p791_p3), %v15879_v3  ;;  %15237 = vmatprep.subr.bf16.mxu0 (!%p791_p3), %v15879_v3  ;;  %s17582_s9 = sld [smem:[#allocation11_spill]] (!%p791_p3)  ;;  %vm2354_vm2 = vcmask (!%p791_p3), 64512   ;;  %vm6152_vm3 = vcmask (!%p791_p3), 130048   ;;  %vm6154_vm4 = vcmask (!%p791_p3), 195584   ;;  %vm12973_vm5 = vcmask (!%p791_p3), 523264  }
  0x14   : > { %14183 = vmatprep.mubr.msk.f32.mxu1 (!%p791_p3), %vm15880_vm0, %v15881_v9  ;;  %14194 = vmatprep.mubr.msk.f32.mxu0 (!%p791_p3), %vm15880_vm0, %v15881_v9  ;;  %s17583_s5 = sld [smem:[#allocation4_spill]] (!%p791_p3)  ;;  %s17584_s6 = sld [smem:[#allocation5_spill]] (!%p791_p3) }
  0x15   : > { %s17556_s10 = smov (!%p791_p3), 104   ;;  %s17561_s29 = smov (!%p791_p3), 120  }
  0x16   : > { %s17587_s2 = sld [smem:[#allocation7_spill]] (!%p791_p3)  ;;  %s17554_s3 = smov (!%p791_p3), 96  }
  0x17   : > { %s17597_s4 = smov (!%p791_p3), 96   ;;  %s17598_s30 = smov (!%p791_p3), 80  }
  0x18   : > { %v915_v0 = vld [vmem:[%s17581_s28] sm:$0xff] (!%p791_p3)  ;;  %v916_v1 = vld [vmem:[%s17581_s28 + $0x8] sm:$0xff] (!%p791_p3)  ;;  %v917_v2 = vld [vmem:[%s17581_s28 + $0x10] sm:$0xff] (!%p791_p3) }
  0x19   : > { %v931_v4 = vand.u32 (!%p791_p3), 4294901760, %v915_v0  ;;  %v934_v5 = vand.u32 (!%p791_p3), 4294901760, %v916_v1  ;;  %v918_v6 = vld [vmem:[%s17581_s28 + $0x18] sm:$0xff] (!%p791_p3)  ;;  %v937_v7 = vand.u32 (!%p791_p3), 4294901760, %v917_v2  ;;  %v1561_v10 = vld [vmem:[%s17582_s9] sm:$0xff] (!%p791_p3)  ;;  %v1562_v11 = vld [vmem:[%s17582_s9 + $0x8] sm:$0xff] (!%p791_p3) }
  0x1a   : > { %v940_v8 = vand.u32 4294901760, %v918_v6  ;;  %s17608_s7 = smov (!%p881_p4, %s15869_s7), 1  ;;  %v1576_v17 = vand.u32 4294901760, %v1561_v10  ;;  %v1579_v18 = vand.u32 4294901760, %v1562_v11  ;;  %v1563_v19 = vld [vmem:[%s17582_s9 + $0x10] sm:$0xff]  ;;  %v1564_v24 = vld [vmem:[%s17582_s9 + $0x18] sm:$0xff] }
  0x1b   : > { %v16079_v12 = vpack.c.bf16 %v934_v5, %v931_v4  ;;  %v16081_v13 = vsub.f32 %v915_v0, %v931_v4  ;;  %v16083_v14 = vsub.f32 %v916_v1, %v934_v5  ;;  %v16085_v15 = vsub.f32 %v917_v2, %v937_v7  ;;  %s16102_s1 = sshll.u32 %s17608_s7, 3  ;;  %s17586_s28 = sld [smem:[#allocation12_spill]] }
  0x1c   : > { %v16090_v16 = vsub.f32 %v918_v6, %v940_v8  ;;  %v16098_v22 = vpack.c.bf16 %v940_v8, %v937_v7  ;;  %s16113_s0 = scalar_lea.vmem %s17583_s5, %s16102_s1  ;;  %v16115_v26 = vsub.f32 %v1561_v10, %v1576_v17  ;;  %v1582_v31 = vand.u32 4294901760, %v1563_v19  ;;  %s891_s11 = scalar_lea.vmem %s17584_s6, %s16102_s1 }
  0x1d   : > { %15233 = vmatpush3.bf16.msra.mxu1 %v16079_v12  ;;  %v1012_v20 = vand.u32 4294901760, %v16081_v13  ;;  %v1019_v21 = vand.u32 4294901760, %v16083_v14  ;;  %v1026_v23 = vand.u32 4294901760, %v16085_v15  ;;  %v910_v30 = vld [vmem:[%s16113_s0] sm:$0xff]  ;;  %v16135_v34 = vsub.f32 %v1562_v11, %v1579_v18  ;;  %s17585_s5 = sld [smem:[#allocation10_spill]]  ;;  %s17563_s6 = smov 112  }
  0x1e   : > { %15234 = vmatprep.subr.bf16.mxu1 %v15879_v3  ;;  %v1033_v25 = vand.u32 4294901760, %v16090_v16  ;;  %v928_v33 = vsel %vm926_vm1, %v910_v30, 0  ;;  %v1585_v35 = vand.u32 4294901760, %v1564_v24  ;;  %v911_v36 = vld [vmem:[%s891_s11] sm:$0xff]  ;;  %v16144_v44 = vsub.f32 %v1563_v19, %v1582_v31  ;;  %s17552_s11 = smov 72  }
  0x1f   : > { %v1013_v27 = vsub.f32 %v16081_v13, %v1012_v20  ;;  %v1020_v28 = vsub.f32 %v16083_v14, %v1019_v21  ;;  %v1027_v29 = vsub.f32 %v16085_v15, %v1026_v23  ;;  %v16138_v40 = vand.u32 4294901760, %v928_v33 }
  0x20   : > { %v1034_v32 = vsub.f32 %v16090_v16, %v1033_v25  ;;  %v1573_v45 = vsel %vm926_vm1, %v911_v36, 0  ;;  %v16147_v46 = vsub.f32 %v1564_v24, %v1585_v35  ;;  %v1657_v48 = vand.u32 4294901760, %v16115_v26 }
  0x21   : > { %v1014_v37 = vand.u32 4294901760, %v1013_v27  ;;  %v1021_v38 = vand.u32 4294901760, %v1020_v28  ;;  %15236 = vmatpush3.bf16.msra.mxu1 %v16098_v22  ;;  %v1028_v39 = vand.u32 4294901760, %v1027_v29  ;;  %v16142_v43 = vsub.f32 %v928_v33, %v16138_v40 }
  0x22   : > { %v1035_v41 = vand.u32 4294901760, %v1034_v32  ;;  %15267 = vmatprep.subr.bf16.mxu1 %v15879_v3  ;;  %v16149_v47 = vand.u32 4294901760, %v1573_v45  ;;  %v1664_v49 = vand.u32 4294901760, %v16135_v34  ;;  %v16159_v54 = vpack.c.bf16 %v1579_v18, %v1576_v17 }
  0x23   : > { %v15238_v42 = vpack.c.bf16 %v1021_v38, %v1014_v37  ;;  %v1001_v51 = vand.u32 4294901760, %v16142_v43  ;;  %v1671_v55 = vand.u32 4294901760, %v16144_v44  ;;  %v1658_v57 = vsub.f32 %v16115_v26, %v1657_v48 }
  0x24   : > { %v15241_v50 = vpack.c.bf16 %v1035_v41, %v1028_v39  ;;  %v16156_v52 = vsub.f32 %v1573_v45, %v16149_v47  ;;  %v1665_v58 = vsub.f32 %v16135_v34, %v1664_v49  ;;  %v1678_v59 = vand.u32 4294901760, %v16147_v46 }
  0x25   : > { %15239 = vmatpush3.bf16.msra.mxu0 %v15238_v42  ;;  %v1002_v53 = vsub.f32 %v16142_v43, %v1001_v51  ;;  %v15244_v61 = vpack.c.bf16 %v16083_v14, %v16081_v13  ;;  %v16173_v62 = vpack.c.bf16 %v1585_v35, %v1582_v31  ;;  %v1659_v0 = vand.u32 4294901760, %v1658_v57 }
  0x26   : > { %15240 = vmatprep.subr.bf16.mxu0 %v15879_v3  ;;  %v1646_v56 = vand.u32 4294901760, %v16156_v52  ;;  %v1666_v1 = vand.u32 4294901760, %v1665_v58  ;;  %v1672_v2 = vsub.f32 %v16144_v44, %v1671_v55  ;;  %v1679_v4 = vsub.f32 %v16147_v46, %v1678_v59 }
  0x27   : > { %v1003_v60 = vand.u32 4294901760, %v1002_v53  ;;  %v15247_v5 = vpack.c.bf16 %v16090_v16, %v16085_v15  ;;  %v15280_v17 = vpack.c.bf16 %v16135_v34, %v16115_v26  ;;  %v15256_v18 = vpack.c.bf16 %v1019_v21, %v1012_v20  ;;  %v13678_v20 = vld [vmem:[%s17585_s5] ss:$0 sm:$0xff]  ;;  %s17553_s5 = smov 80  }
  0x28   : > { %v1647_v63 = vsub.f32 %v16156_v52, %v1646_v56  ;;  %v15274_v7 = vpack.c.bf16 %v1666_v1, %v1659_v0  ;;  %v1673_v8 = vand.u32 4294901760, %v1672_v2  ;;  %v1680_v10 = vand.u32 4294901760, %v1679_v4 }
  0x29   : > { %15242 = vmatpush3.bf16.msra.mxu0 %v15241_v50  ;;  %14184 = vmatmul.mubr.f32.vlgmr.msra.gmra.mrb[0].mxu1 %v1003_v60  ;;  %v15283_v19 = vpack.c.bf16 %v16147_v46, %v16144_v44  ;;  %v15259_v13 = vpack.c.bf16 %v1033_v25, %v1026_v23  ;;  %v15292_v14 = vpack.c.bf16 %v1664_v49, %v1657_v48  ;;  %v13681_v25 = vld [vmem:[%s17586_s28] ss:$0 sm:$0xff]  ;;  %v15885_v29 = vmov 1983009808   ;;  %s17555_s28 = smov 88  }
  0x2a   : > { %15243 = vmatprep.subr.bf16.mxu0 %v15879_v3  ;;  %15269 = vmatpush3.bf16.msra.mxu1 %v16159_v54  ;;  %v1648_v6 = vand.u32 4294901760, %v1647_v63  ;;  %v15277_v11 = vpack.c.bf16 %v1680_v10, %v1673_v8  ;;  %v1428_v30 = vunpack.c.l.s4 %v15885_v29  ;;  %v1430_v31 = vlaneseq }
  0x2b   : > { %15270 = vmatprep.subr.bf16.mxu1 %v15879_v3  ;;  %14249 = vmatprep.mubr.msk.f32.mxu1 %vm15880_vm0, %v15881_v9  ;;  %v15886_v32 = vmov 1934713408  }
  0x2c   : > { %14195 = vmatmul.mubr.f32.vlgmr.msra.gmra.mrb[0].mxu0 %v16138_v40  ;;  %v1460_v33 = vunpack.c.l.s4 %v15886_v32  ;;  %v1429_v34 = vunpack.c.0.s8 %v1428_v30  ;;  %v1431_v35 = vshrl.u32 %v1430_v31, 7 }
  0x2d   : > { %15245 = vmatpush3.bf16.msra.mxu0 %v15244_v61  ;;  %14205 = vmatprep.mubr.msk.f32.mxu0 %vm15880_vm0, %v15881_v9 }
  0x2e   : > { %15246 = vmatprep.subr.bf16.mxu0 %v15879_v3  ;;  %15272 = vmatpush3.bf16.msra.mxu1 %v16173_v62  ;;  %v1461_v38 = vunpack.c.0.s8 %v1460_v33  ;;  %v16287_v39 = vsub.s32 %v1429_v34, %v1431_v35 }
  0x2f   : > { %15273 = vmatprep.subr.bf16.mxu1 %v15879_v3 }
  0x30   : > { %v16289_v45 = vsub.s32 %v1461_v38, %v1431_v35 }
  0x31   : > { %15248 = vmatpush3.bf16.msra.mxu0 %v15247_v5  ;;  %14250 = vmatmul.mubr.f32.vlgmr.msra.gmra.mrb[2].mxu1 %v1648_v6 }
  0x32   : > { %15249 = vmatprep.subr.bf16.mxu0 %v15879_v3  ;;  %15275 = vmatpush3.bf16.msra.mxu1 %v15274_v7 }
  0x33   : > { %15276 = vmatprep.subr.bf16.mxu1 %v15879_v3  ;;  %14260 = vmatprep.mubr.msk.f32.mxu1 %vm15880_vm0, %v15881_v9 }
  0x34   : > { %14206 = vmatmul.mubr.f32.vlgmr.msra.gmra.mrb[0].mxu0 %v16142_v43 }
  0x35   : > { %15251 = vmatpush3.bf16.msra.mxu0 %v16079_v12  ;;  %14216 = vmatprep.mubr.msk.f32.mxu0 %vm15880_vm0, %v15881_v9 }
  0x36   : > { %15252 = vmatprep.subr.bf16.mxu0 %v15879_v3  ;;  %15278 = vmatpush3.bf16.msra.mxu1 %v15277_v11 }
  0x37   : > { %15279 = vmatprep.subr.bf16.mxu1 %v15879_v3 }
  0x39   : > { %15254 = vmatpush3.bf16.msra.mxu0 %v16098_v22  ;;  %14261 = vmatmul.mubr.f32.vlgmr.msra.gmra.mrb[2].mxu1 %v16149_v47 }
  0x3a   : > { %15255 = vmatprep.subr.bf16.mxu0 %v15879_v3  ;;  %15281 = vmatpush3.bf16.msra.mxu1 %v15280_v17 }
  0x3b   : > { %15282 = vmatprep.subr.bf16.mxu1 %v15879_v3  ;;  %14271 = vmatprep.mubr.msk.f32.mxu1 %vm15880_vm0, %v15881_v9 }
  0x3c   : > { %14217 = vmatmul.mubr.f32.vlgmr.msra.gmra.mrb[0].mxu0 %v1001_v51 }
  0x3d   : > { %15257 = vmatpush3.bf16.msra.mxu0 %v15256_v18  ;;  %14227 = vmatprep.mubr.msk.f32.mxu0 %vm15880_vm0, %v15881_v9 }
  0x3e   : > { %15258 = vmatprep.subr.bf16.mxu0 %v15879_v3  ;;  %15284 = vmatpush3.bf16.msra.mxu1 %v15283_v19 }
  0x3f   : > { %15285 = vmatprep.subr.bf16.mxu1 %v15879_v3 }
  0x41   : > { %15260 = vmatpush3.bf16.msra.mxu0 %v15259_v13  ;;  %14272 = vmatmul.mubr.f32.vlgmr.msra.gmra.mrb[2].mxu1 %v16156_v52 }
  0x42   : > { %15261 = vmatprep.subr.bf16.mxu0 %v15879_v3  ;;  %15287 = vmatpush3.bf16.msra.mxu1 %v16159_v54 }
  0x43   : > { %15288 = vmatprep.subr.bf16.mxu1 %v15879_v3  ;;  %14282 = vmatprep.mubr.msk.f32.mxu1 %vm15880_vm0, %v15881_v9 }
  0x44   : > { %14228 = vmatmul.mubr.f32.vlgmr.msra.gmra.mrb[0].mxu0 %v16138_v40 }
  0x45   : > { %15263 = vmatpush3.bf16.msra.mxu0 %v16079_v12  ;;  %14238 = vmatprep.mubr.msk.f32.mxu0 %vm15880_vm0, %v15881_v9  ;;  %v15295_v12 = vpack.c.bf16 %v1678_v59, %v1671_v55 }
  0x46   : > { %15264 = vmatprep.subr.bf16.mxu0 %v15879_v3  ;;  %15290 = vmatpush3.bf16.msra.mxu1 %v16173_v62 }
  0x47   : > { %15291 = vmatprep.subr.bf16.mxu1 %v15879_v3 }
  0x49   : > { %15266 = vmatpush3.bf16.msra.mxu0 %v16098_v22  ;;  %14283 = vmatmul.mubr.f32.vlgmr.msra.gmra.mrb[2].mxu1 %v1646_v56 }
  0x4a   : > { %14307 = vmatprep.subr.mxu0 %v15881_v9  ;;  %15293 = vmatpush3.bf16.msra.mxu1 %v15292_v14 }
  0x4b   : > { %15294 = vmatprep.subr.bf16.mxu1 %v15879_v3  ;;  %14293 = vmatprep.mubr.msk.f32.mxu1 %vm15880_vm0, %v15881_v9 }
  0x4c   : > { %14239 = vmatmul.mubr.f32.vlgmr.msra.gmra.mrb[0].mxu0 %v16138_v40 }
  0x4d   : > { %14309 = vmatprep.mubr.msk.f32.mxu0 %vm15880_vm0, %v15881_v9 }
  0x4e   : > { %15296 = vmatpush3.bf16.msra.mxu1 %v15295_v12 }
  0x4f   : > { %15297 = vmatprep.subr.bf16.mxu1 %v15879_v3 }
  0x51   : > { %14294 = vmatmul.mubr.f32.vlgmr.msra.gmra.mrb[2].mxu1 %v16149_v47 }
  0x52   : > { %15299 = vmatpush3.bf16.msra.mxu1 %v16159_v54  ;;  %14304 = vmatprep.mubr.msk.f32.mxu1 %vm15880_vm0, %v15881_v9 }
  0x53   : > { %15300 = vmatprep.subr.bf16.mxu1 %v15879_v3 }
  0x56   : > { %15302 = vmatpush3.bf16.msra.mxu1 %v16173_v62 }
  0x57   : > { %14337 = vmatprep.subr.mxu1 %v15881_v9 }
  0x59   : > { %14305 = vmatmul.mubr.f32.vlgmr.msra.gmra.mrb[2].mxu1 %v16149_v47 }
  0x5a   : > { %14339 = vmatprep.mubr.msk.f32.mxu1 %vm15880_vm0, %v15881_v9 }
  0xfc   : > { %v1005_v15 = vpop.f32.mrb[0].mxu1 }
  0xfd   : > { %v14185_v16 = vpop.f32.mrb[1].mxu1  ;;  %v1006_v21 = vadd.f32 %v13678_v20, %v1005_v15 }
 0x11f   : > { %v1411_v22 = vpop.f32.mrb[0].mxu0 }
 0x120   : > { %v15556_v23 = vadd.f32 %v1411_v22, %v1006_v21  ;;  %v14240_v24 = vpop.f32.mrb[1].mxu0 }
 0x122   : > { %1422 = vrot.lane.b32.xlu1 %v15556_v23, %s17556_s10  ;;  %1416 = vrot.lane.b32.xlu0 %v15556_v23, %s17561_s29 }
 0x126   : > { %1419 = vrot.lane.b32.xlu0 %v15556_v23, %s17563_s6 }
 0x12c   : > { %v2056_v26 = vpop.f32.mrb[2].mxu1 }
 0x12d   : > { %v16279_v27 = vadd.f32 %v13681_v25, %v2056_v26  ;;  %v14306_v28 = vpop.f32.mrb[3].mxu1 }
 0x12f   : > { %2064 = vrot.lane.b32.xlu0 %v16279_v27, %s17563_s6  ;;  %2061 = vrot.lane.b32.xlu1 %v16279_v27, %s17561_s29  ;;  %s17599_s29 = smov 72  }
 0x133   : > { %2067 = vrot.lane.b32.xlu1 %v16279_v27, %s17556_s10  ;;  %s17560_s10 = smov 16  }
 0x194   : > { %v1423_v36 = vpop.permute.xlu1 %1422  ;;  %v1417_v37 = vpop.permute.xlu0 %1416 }
 0x195   : > { %v1441_v40 = vcombine.low %v1417_v37, %v1423_v36  ;;  %v1442_v41 = vcombine.high %v1417_v37, %v1423_v36 }
 0x197   : > { %v1449_v46 = vrot.slane %v1441_v40, %v16287_v39  ;;  %v1456_v47 = vrot.slane %v1442_v41, %v16287_v39 }
 0x198   : > { %v1420_v42 = vpop.permute.xlu0 %1419 }
 0x199   : > { %v1425_v43 = vcombine.low %v15556_v23, %v1420_v42  ;;  %v1426_v44 = vcombine.high %v15556_v23, %v1420_v42 }
 0x19b   : > { %v1433_v48 = vrot.slane %v1425_v43, %v16287_v39  ;;  %v1440_v49 = vrot.slane %v1426_v44, %v16287_v39 }
 0x19d   : > { %v1457_v50 = vcombine.low %v1433_v48, %v1449_v46  ;;  %v1458_v51 = vcombine.high %v1433_v48, %v1449_v46  ;;  %v1473_v52 = vcombine.low %v1440_v49, %v1456_v47  ;;  %v1474_v53 = vcombine.high %v1440_v49, %v1456_v47 }
 0x19f   : > { %v1465_v54 = vrot.slane %v1457_v50, %v16289_v45  ;;  %v1472_v55 = vrot.slane %v1458_v51, %v16289_v45  ;;  %v1481_v56 = vrot.slane %v1473_v52, %v16289_v45  ;;  %v1488_v57 = vrot.slane %v1474_v53, %v16289_v45 }
 0x1a1   : > { %v1493_v58 = vcombine.low %v1465_v54, %v1472_v55  ;;  %v13679_v59 = vcombine.high %v1465_v54, %v1472_v55  ;;  %v1509_v60 = vcombine.low %v1481_v56, %v1488_v57  ;;  %v13680_v61 = vcombine.high %v1481_v56, %v1488_v57  ;;  %v2065_v2 = vpop.permute.xlu0 %2064  ;;  %v2062_v4 = vpop.permute.xlu1 %2061 }
 0x1a2   : > { %v2082_v7 = vcombine.low %v16279_v27, %v2065_v2  ;;  %v2083_v8 = vcombine.high %v16279_v27, %v2065_v2 }
 0x1a3   : > { %v16300_v62 = vrot.slane %v1493_v58, %v16287_v39  ;;  %v16303_v63 = vrot.slane %v13679_v59, %v16287_v39  ;;  %v16306_v0 = vrot.slane %v1509_v60, %v16287_v39  ;;  %v16309_v1 = vrot.slane %v13680_v61, %v16287_v39 }
 0x1a4   : > { %v2090_v12 = vrot.slane %v2082_v7, %v16287_v39  ;;  %v2097_v15 = vrot.slane %v2083_v8, %v16287_v39 }
 0x1a5   : > { %v1525_v5 = vcombine.low %v16300_v62, %v16303_v63  ;;  %v1541_v6 = vcombine.low %v16306_v0, %v16309_v1  ;;  %v2068_v17 = vpop.permute.xlu1 %2067 }
 0x1a6   : > { %v2098_v18 = vcombine.low %v2062_v4, %v2068_v17  ;;  %v2099_v19 = vcombine.high %v2062_v4, %v2068_v17  ;;  %v1526_v17 = vcombine.high %v16300_v62, %v16303_v63 }
 0x1a7   : > { %v1533_v10 = vrot.slane %v1525_v5, %v16289_v45  ;;  %v1549_v11 = vrot.slane %v1541_v6, %v16289_v45 }
 0x1a8   : > { %v2106_v16 = vrot.slane %v2098_v18, %v16287_v39  ;;  %v2113_v20 = vrot.slane %v2099_v19, %v16287_v39  ;;  %v1542_v18 = vcombine.high %v16306_v0, %v16309_v1 }
 0x1a9   : > { %v1557_v13 = vcombine.low %v1533_v10, %v1549_v11  ;;  %v1558_v14 = vcombine.high %v1533_v10, %v1549_v11 }
 0x1aa   : > { %v2146_v23 = vcombine.low %v2090_v12, %v2106_v16  ;;  %v2147_v24 = vcombine.high %v2090_v12, %v2106_v16  ;;  %v2162_v25 = vcombine.low %v2097_v15, %v2113_v20  ;;  %v2163_v26 = vcombine.high %v2097_v15, %v2113_v20 }
 0x1ab   : > { %v2356_v21 = vsel %vm2354_vm2, %v1557_v13, 0  ;;  %v2808_v22 = vsel %vm2354_vm2, %v1558_v14, 0  ;;  %v1540_v14 = vrot.slane %v1526_v17, %v16289_v45  ;;  %v1556_v12 = vrot.slane %v1542_v18, %v16289_v45 }
 0x1ac   : > { %v16325_v28 = vand.u32 4294901760, %v2356_v21  ;;  %v16327_v29 = vand.u32 4294901760, %v2808_v22  ;;  %v2154_v30 = vrot.slane %v2146_v23, %v16289_v45  ;;  %v2161_v31 = vrot.slane %v2147_v24, %v16289_v45 }
 0x1ad   : > { %v2170_v32 = vrot.slane %v2162_v25, %v16289_v45  ;;  %v2177_v33 = vrot.slane %v2163_v26, %v16289_v45  ;;  %v1559_v0 = vcombine.low %v1540_v14, %v1556_v12  ;;  %v1560_v1 = vcombine.high %v1540_v14, %v1556_v12 }
 0x1ae   : > { %v13682_v34 = vcombine.low %v2154_v30, %v2161_v31  ;;  %v13684_v35 = vcombine.high %v2154_v30, %v2161_v31  ;;  %v16334_v38 = vsub.f32 %v2356_v21, %v16325_v28  ;;  %v16337_v40 = vsub.f32 %v2808_v22, %v16327_v29 }
 0x1af   : > { %v13686_v36 = vcombine.low %v2170_v32, %v2177_v33  ;;  %v13688_v37 = vcombine.high %v2170_v32, %v2177_v33  ;;  %v3260_v20 = vsel %vm2354_vm2, %v1559_v0, 0  ;;  %v3712_v21 = vsel %vm2354_vm2, %v1560_v1, 0 }
 0x1b0   : > { %v2226_v41 = vrot.slane %v13682_v34, %v16287_v39  ;;  %v2242_v42 = vrot.slane %v13684_v35, %v16287_v39  ;;  %v2429_v50 = vand.u32 4294901760, %v16334_v38  ;;  %v2881_v51 = vand.u32 4294901760, %v16337_v40 }
 0x1b1   : > { %v2258_v43 = vrot.slane %v13686_v36, %v16287_v39  ;;  %v2274_v44 = vrot.slane %v13688_v37, %v16287_v39  ;;  %v16400_v24 = vand.u32 4294901760, %v3260_v20  ;;  %v16402_v25 = vand.u32 4294901760, %v3712_v21 }
 0x1b2   : > { %v2282_v46 = vcombine.low %v2226_v41, %v2242_v42  ;;  %v2430_v56 = vsub.f32 %v16334_v38, %v2429_v50  ;;  %v2882_v57 = vsub.f32 %v16337_v40, %v2881_v51  ;;  %v2283_v19 = vcombine.high %v2226_v41, %v2242_v42 }
 0x1b3   : > { %v2314_v47 = vcombine.low %v2258_v43, %v2274_v44  ;;  %v2315_v13 = vcombine.high %v2258_v43, %v2274_v44  ;;  %v3332_v31 = vsub.f32 %v3260_v20, %v16400_v24  ;;  %v3784_v32 = vsub.f32 %v3712_v21, %v16402_v25 }
 0x1b4   : > { %v2290_v48 = vrot.slane %v2282_v46, %v16289_v45  ;;  %v2431_v2 = vand.u32 4294901760, %v2430_v56  ;;  %v2883_v4 = vand.u32 4294901760, %v2882_v57  ;;  %v2297_v62 = vrot.slane %v2283_v19, %v16289_v45 }
 0x1b5   : > { %v2322_v49 = vrot.slane %v2314_v47, %v16289_v45  ;;  %v2329_v63 = vrot.slane %v2315_v13, %v16289_v45  ;;  %v3333_v35 = vand.u32 4294901760, %v3332_v31  ;;  %v3785_v36 = vand.u32 4294901760, %v3784_v32 }
 0x1b7   : > { %v2346_v52 = vcombine.low %v2290_v48, %v2322_v49  ;;  %v2347_v53 = vcombine.high %v2290_v48, %v2322_v49  ;;  %v2348_v15 = vcombine.low %v2297_v62, %v2329_v63  ;;  %v2349_v16 = vcombine.high %v2297_v62, %v2329_v63 }
 0x1b8   : > { %v3786_v41 = vsub.f32 %v3784_v32, %v3785_v36 }
 0x1b9   : > { %v2359_v54 = vsel %vm2354_vm2, %v2346_v52, 0  ;;  %v2811_v55 = vsel %vm2354_vm2, %v2347_v53, 0  ;;  %v3263_v22 = vsel %vm2354_vm2, %v2348_v15, 0  ;;  %v3715_v23 = vsel %vm2354_vm2, %v2349_v16, 0 }
 0x1ba   : > { %v16351_v58 = vand.u32 4294901760, %v2359_v54  ;;  %v16353_v59 = vand.u32 4294901760, %v2811_v55  ;;  %v16407_v26 = vand.u32 4294901760, %v3263_v22  ;;  %v16409_v30 = vand.u32 4294901760, %v3715_v23 }
 0x1bb   : > { %v3787_v46 = vand.u32 4294901760, %v3786_v41 }
 0x1bc   : > { %14308 = vmatpush3.xpose.msra.mxu0 %v16351_v58  ;;  %v2439_v60 = vsub.f32 %v2359_v54, %v16351_v58  ;;  %14338 = vmatpush3.xpose.msra.mxu1 %v16353_v59  ;;  %v2891_v61 = vsub.f32 %v2811_v55, %v16353_v59  ;;  %v3343_v33 = vsub.f32 %v3263_v22, %v16407_v26 }
 0x1bd   : > { %14312 = vmatprep.subr.mxu0 %v15881_v9  ;;  %14342 = vmatprep.subr.mxu1 %v15881_v9  ;;  %v3795_v34 = vsub.f32 %v3715_v23, %v16409_v30 }
 0x1be   : > { %v2440_v5 = vand.u32 4294901760, %v2439_v60  ;;  %v2892_v6 = vand.u32 4294901760, %v2891_v61  ;;  %v3344_v37 = vand.u32 4294901760, %v3343_v33 }
 0x1bf   : > { %14310 = vmatmul.mubr.f32.vlgmr.msra.gmra.mrb[2].mxu0 %v2431_v2  ;;  %14340 = vmatmul.mubr.f32.vlgmr.msra.gmra.mrb[4].mxu1 %v2883_v4 }
 0x1c0   : > { %v2441_v7 = vsub.f32 %v2439_v60, %v2440_v5  ;;  %v2893_v8 = vsub.f32 %v2891_v61, %v2892_v6  ;;  %14314 = vmatprep.mubr.msk.f32.mxu0 %vm15880_vm0, %v15881_v9  ;;  %14344 = vmatprep.mubr.msk.f32.mxu1 %vm15880_vm0, %v15881_v9  ;;  %v3345_v42 = vsub.f32 %v3343_v33, %v3344_v37 }
 0x1c2   : > { %v2442_v10 = vand.u32 4294901760, %v2441_v7  ;;  %v2894_v11 = vand.u32 4294901760, %v2893_v8  ;;  %v3346_v47 = vand.u32 4294901760, %v3345_v42 }
 0x1c4   : > { %14313 = vmatpush3.xpose.msra.mxu0 %v2442_v10  ;;  %14343 = vmatpush3.xpose.msra.mxu1 %v2894_v11 }
 0x1c5   : > { %14317 = vmatprep.subr.mxu0 %v15881_v9  ;;  %14347 = vmatprep.subr.mxu1 %v15881_v9 }
 0x1c7   : > { %14315 = vmatmul.mubr.f32.vlgmr.msra.gmra.mrb[2].mxu0 %v16325_v28  ;;  %14345 = vmatmul.mubr.f32.vlgmr.msra.gmra.mrb[4].mxu1 %v16327_v29 }
 0x1c8   : > { %14318 = vmatpush3.xpose.msra.mxu0 %v2439_v60  ;;  %14348 = vmatpush3.xpose.msra.mxu1 %v2891_v61 }
 0x1c9   : > { %14319 = vmatprep.mubr.msk.f32.mxu0 %vm15880_vm0, %v15881_v9  ;;  %14322 = vmatprep.subr.mxu0 %v15881_v9 }
 0x1ca   : > { %14349 = vmatprep.mubr.msk.f32.mxu1 %vm15880_vm0, %v15881_v9  ;;  %14352 = vmatprep.subr.mxu1 %v15881_v9 }
 0x1cf   : > { %14320 = vmatmul.mubr.f32.vlgmr.msra.gmra.mrb[2].mxu0 %v16334_v38  ;;  %14350 = vmatmul.mubr.f32.vlgmr.msra.gmra.mrb[4].mxu1 %v16337_v40  ;;  %v3796_v38 = vand.u32 4294901760, %v3795_v34  ;;  %v3334_v40 = vsub.f32 %v3332_v31, %v3333_v35 }
 0x1d0   : > { %14323 = vmatpush3.xpose.msra.mxu0 %v16351_v58  ;;  %14353 = vmatpush3.xpose.msra.mxu1 %v16353_v59 }
 0x1d1   : > { %14324 = vmatprep.mubr.msk.f32.mxu0 %vm15880_vm0, %v15881_v9  ;;  %14327 = vmatprep.subr.mxu0 %v15881_v9  ;;  %v3797_v43 = vsub.f32 %v3795_v34, %v3796_v38  ;;  %v3335_v44 = vand.u32 4294901760, %v3334_v40 }
 0x1d2   : > { %14354 = vmatprep.mubr.msk.f32.mxu1 %vm15880_vm0, %v15881_v9  ;;  %14357 = vmatprep.subr.mxu1 %v15881_v9 }
 0x1d7   : > { %14325 = vmatmul.mubr.f32.vlgmr.msra.gmra.mrb[2].mxu0 %v2429_v50  ;;  %14355 = vmatmul.mubr.f32.vlgmr.msra.gmra.mrb[4].mxu1 %v2881_v51 }
 0x1d8   : > { %14328 = vmatpush3.xpose.msra.mxu0 %v2440_v5  ;;  %14358 = vmatpush3.xpose.msra.mxu1 %v2892_v6 }
 0x1d9   : > { %14329 = vmatprep.mubr.msk.f32.mxu0 %vm15880_vm0, %v15881_v9  ;;  %14332 = vmatprep.subr.mxu0 %v15881_v9 }
 0x1da   : > { %14359 = vmatprep.mubr.msk.f32.mxu1 %vm15880_vm0, %v15881_v9  ;;  %14362 = vmatprep.subr.mxu1 %v15881_v9 }
 0x1df   : > { %14330 = vmatmul.mubr.f32.vlgmr.msra.gmra.mrb[2].mxu0 %v16325_v28  ;;  %14360 = vmatmul.mubr.f32.vlgmr.msra.gmra.mrb[4].mxu1 %v16327_v29 }
 0x1e0   : > { %14333 = vmatpush3.xpose.msra.mxu0 %v16351_v58  ;;  %14363 = vmatpush3.xpose.msra.mxu1 %v16353_v59 }
 0x1e1   : > { %14334 = vmatprep.mubr.msk.f32.mxu0 %vm15880_vm0, %v15881_v9  ;;  %14364 = vmatprep.mubr.msk.f32.mxu1 %vm15880_vm0, %v15881_v9 }
 0x1e2   : > { %14367 = vmatprep.subr.mxu0 %v15881_v9  ;;  %14397 = vmatprep.subr.mxu1 %v15881_v9 }
 0x1e7   : > { %14335 = vmatmul.mubr.f32.vlgmr.msra.gmra.mrb[2].mxu0 %v16325_v28  ;;  %14365 = vmatmul.mubr.f32.vlgmr.msra.gmra.mrb[4].mxu1 %v16327_v29  ;;  %v3798_v28 = vand.u32 4294901760, %v3797_v43  ;;  %v913_v29 = vld [vmem:[%s17587_s2] sm:$0xff]  ;;  %s17589_s2 = sld [smem:[#allocation14_spill]] }
 0x1e8   : > { %14368 = vmatpush3.xpose.msra.mxu0 %v16407_v26  ;;  %14398 = vmatpush3.xpose.msra.mxu1 %v16409_v30 }
 0x1e9   : > { %14369 = vmatprep.mubr.msk.f32.mxu0 %vm15880_vm0, %v15881_v9  ;;  %14372 = vmatprep.subr.mxu0 %v15881_v9 }
 0x1ea   : > { %14399 = vmatprep.mubr.msk.f32.mxu1 %vm15880_vm0, %v15881_v9  ;;  %14402 = vmatprep.subr.mxu1 %v15881_v9 }
 0x1eb   : > { %14370 = vmatmul.mubr.f32.vlgmr.msra.gmra.mrb[4].mxu0 %v3335_v44  ;;  %14400 = vmatmul.mubr.f32.vlgmr.msra.gmra.mrb[6].mxu1 %v3787_v46 }
 0x1ec   : > { %14373 = vmatpush3.xpose.msra.mxu0 %v3346_v47  ;;  %14403 = vmatpush3.xpose.msra.mxu1 %v3798_v28 }
 0x1ed   : > { %14374 = vmatprep.mubr.msk.f32.mxu0 %vm15880_vm0, %v15881_v9  ;;  %14377 = vmatprep.subr.mxu0 %v15881_v9 }
 0x1ee   : > { %14404 = vmatprep.mubr.msk.f32.mxu1 %vm15880_vm0, %v15881_v9  ;;  %14407 = vmatprep.subr.mxu1 %v15881_v9 }
 0x1f3   : > { %14375 = vmatmul.mubr.f32.vlgmr.msra.gmra.mrb[4].mxu0 %v16400_v24  ;;  %14405 = vmatmul.mubr.f32.vlgmr.msra.gmra.mrb[6].mxu1 %v16402_v25 }
 0x1f4   : > { %14378 = vmatpush3.xpose.msra.mxu0 %v3343_v33  ;;  %14408 = vmatpush3.xpose.msra.mxu1 %v3795_v34 }
 0x1f5   : > { %14379 = vmatprep.mubr.msk.f32.mxu0 %vm15880_vm0, %v15881_v9  ;;  %14382 = vmatprep.subr.mxu0 %v15881_v9 }
 0x1f6   : > { %14409 = vmatprep.mubr.msk.f32.mxu1 %vm15880_vm0, %v15881_v9  ;;  %14412 = vmatprep.subr.mxu1 %v15881_v9 }
 0x1fb   : > { %14380 = vmatmul.mubr.f32.vlgmr.msra.gmra.mrb[4].mxu0 %v3332_v31  ;;  %14410 = vmatmul.mubr.f32.vlgmr.msra.gmra.mrb[6].mxu1 %v3784_v32 }
 0x1fc   : > { %14383 = vmatpush3.xpose.msra.mxu0 %v16407_v26  ;;  %14413 = vmatpush3.xpose.msra.mxu1 %v16409_v30 }
 0x1fd   : > { %14384 = vmatprep.mubr.msk.f32.mxu0 %vm15880_vm0, %v15881_v9  ;;  %14387 = vmatprep.subr.mxu0 %v15881_v9 }
 0x1fe   : > { %14414 = vmatprep.mubr.msk.f32.mxu1 %vm15880_vm0, %v15881_v9  ;;  %14417 = vmatprep.subr.mxu1 %v15881_v9 }
 0x203   : > { %14385 = vmatmul.mubr.f32.vlgmr.msra.gmra.mrb[4].mxu0 %v3333_v35  ;;  %14415 = vmatmul.mubr.f32.vlgmr.msra.gmra.mrb[6].mxu1 %v3785_v36 }
 0x204   : > { %14388 = vmatpush3.xpose.msra.mxu0 %v3344_v37  ;;  %14418 = vmatpush3.xpose.msra.mxu1 %v3796_v38 }
 0x205   : > { %14389 = vmatprep.mubr.msk.f32.mxu0 %vm15880_vm0, %v15881_v9  ;;  %14392 = vmatprep.subr.mxu0 %v15881_v9 }
 0x206   : > { %14419 = vmatprep.mubr.msk.f32.mxu1 %vm15880_vm0, %v15881_v9  ;;  %14422 = vmatprep.subr.mxu1 %v15881_v9 }
 0x20b   : > { %14390 = vmatmul.mubr.f32.vlgmr.msra.gmra.mrb[4].mxu0 %v16400_v24  ;;  %14420 = vmatmul.mubr.f32.vlgmr.msra.gmra.mrb[6].mxu1 %v16402_v25 }
 0x20c   : > { %14393 = vmatpush3.xpose.msra.mxu0 %v16407_v26  ;;  %14423 = vmatpush3.xpose.msra.mxu1 %v16409_v30 }
 0x20d   : > { %14394 = vmatprep.mubr.msk.f32.mxu0 %vm15880_vm0, %v15881_v9  ;;  %14424 = vmatprep.mubr.msk.f32.mxu1 %vm15880_vm0, %v15881_v9 }
 0x20e   : > { %14427 = vmatprep.subr.mxu0 %v15881_v9  ;;  %14457 = vmatprep.subr.mxu1 %v15881_v9 }
 0x213   : > { %14395 = vmatmul.mubr.f32.vlgmr.msra.gmra.mrb[4].mxu0 %v16400_v24  ;;  %14425 = vmatmul.mubr.f32.vlgmr.msra.gmra.mrb[6].mxu1 %v16402_v25 }
 0x214   : > { %14429 = vmatprep.mubr.msk.f32.mxu0 %vm15880_vm0, %v15881_v9  ;;  %14459 = vmatprep.mubr.msk.f32.mxu1 %vm15880_vm0, %v15881_v9 }
 0x2ba   : > { %v2803_v48 = vpop.f32.mrb[2].mxu0  ;;  %v3255_v49 = vpop.f32.mrb[4].mxu1 }
 0x2bb   : > { %v15558_v50 = vadd.f32 %v2803_v48, %v913_v29  ;;  %v15559_v51 = vadd.f32 %v3255_v49, %v913_v29  ;;  %v14336_v52 = vpop.f32.mrb[3].mxu0  ;;  %v14366_v53 = vpop.f32.mrb[5].mxu1 }
 0x2bd   : > { %v4163_v54 = vsel %vm2354_vm2, %v15558_v50, -inf  ;;  %v4166_v55 = vsel %vm2354_vm2, %v15559_v51, -inf }
 0x2be   : > { %4164 = vmax.xlane.f32.xlu0 %v4163_v54  ;;  %4167 = vmax.xlane.f32.xlu1 %v4166_v55 }
 0x2cf   : > { %2070 = vrot.lane.b32.xlu1 %v16279_v27, %s17554_s3  ;;  %s17559_s3 = smov 8  }
 0x2e6   : > { %v3707_v56 = vpop.f32.mrb[4].mxu0  ;;  %v4159_v57 = vpop.f32.mrb[6].mxu1 }
 0x2e7   : > { %v15560_v58 = vadd.f32 %v3707_v56, %v913_v29  ;;  %v14396_v59 = vpop.f32.mrb[5].mxu0  ;;  %v14426_v60 = vpop.f32.mrb[7].mxu1  ;;  %v15561_v61 = vadd.f32 %v4159_v57, %v913_v29 }
 0x2e9   : > { %v4169_v2 = vsel %vm2354_vm2, %v15560_v58, -inf  ;;  %v4172_v4 = vsel %vm2354_vm2, %v15561_v61, -inf }
 0x2ea   : > { %4170 = vmax.xlane.f32.xlu0 %v4169_v2 }
 0x2ee   : > { %4173 = vmax.xlane.f32.xlu0 %v4172_v4 }
 0x34b   : > { %v4165_v5 = vpop.xlane.xlu0 %4164  ;;  %v4168_v6 = vpop.xlane.xlu1 %4167 }
 0x34c   : > { %v4175_v7 = vsub.f32 %v15558_v50, %v4165_v5  ;;  %v4176_v8 = vsub.f32 %v15559_v51, %v4168_v6 }
 0x34e   : > { %v4179_v10 = vmul.f32 1.442695, %v4175_v7  ;;  %v4181_v11 = vmul.f32 1.442695, %v4176_v8 }
 0x350   : > { %15816 = vpow2.f32 %v4179_v10 }
 0x351   : > { %15818 = vpow2.f32 %v4181_v11 }
 0x35a   : > { %v15817_v17 = vpop.eup %15816 }
 0x35b   : > { %v15819_v18 = vpop.eup %15818  ;;  %v4187_v19 = vsel %vm2354_vm2, %v15817_v17, 0.0 }
 0x35c   : > { %4188 = vadd.xlane.f32.xlu1 %v4187_v19  ;;  %v4190_v13 = vsel %vm2354_vm2, %v15819_v18, 0.0 }
 0x35d   : > { %4191 = vadd.xlane.f32.xlu0 %v4190_v13 }
 0x36d   : > { %2076 = vrot.lane.b32.xlu1 %v16279_v27, %s17553_s5  ;;  %s17558_s5 = smov 24  }
 0x371   : > { %2079 = vrot.lane.b32.xlu1 %v16279_v27, %s17552_s11  ;;  %s17588_s11 = sld [smem:[#allocation13_spill]] }
 0x373   : > { %2073 = vrot.lane.b32.xlu0 %v16279_v27, %s17555_s28  ;;  %v2071_v27 = vpop.permute.xlu1 %2070 }
 0x377   : > { %v4171_v14 = vpop.xlane.xlu0 %4170 }
 0x378   : > { %v4177_v12 = vsub.f32 %v15560_v58, %v4171_v14 }
 0x37a   : > { %v4183_v0 = vmul.f32 1.442695, %v4177_v12 }
 0x37b   : > { %v4174_v62 = vpop.xlane.xlu0 %4173 }
 0x37c   : > { %v4178_v63 = vsub.f32 %v15561_v61, %v4174_v62  ;;  %15820 = vpow2.f32 %v4183_v0 }
 0x37e   : > { %v4185_v1 = vmul.f32 1.442695, %v4178_v63 }
 0x380   : > { %15822 = vpow2.f32 %v4185_v1 }
 0x386   : > { %v16496_v15 = vpop.eup %15820 }
 0x387   : > { %v4193_v20 = vsel %vm2354_vm2, %v16496_v15, 0.0 }
 0x38a   : > { %v16498_v16 = vpop.eup %15822 }
 0x38b   : > { %v4196_v21 = vsel %vm2354_vm2, %v16498_v16, 0.0 }
 0x392   : > { %4194 = vadd.xlane.f32.xlu0 %v4193_v20 }
 0x395   : > { %4197 = vadd.xlane.f32.xlu1 %v4196_v21 }
 0x3e9   : > { %v4189_v22 = vpop.xlane.xlu1 %4188 }
 0x3ea   : > { %15824 = vrcp.f32 %v4189_v22  ;;  %v4192_v23 = vpop.xlane.xlu0 %4191 }
 0x3eb   : > { %15826 = vrcp.f32 %v4192_v23 }
 0x3ed   : > { %v2077_v24 = vpop.permute.xlu1 %2076 }
 0x3ee   : > { %v2114_v25 = vcombine.low %v2071_v27, %v2077_v24  ;;  %v2115_v26 = vcombine.high %v2071_v27, %v2077_v24  ;;  %v2074_v30 = vpop.permute.xlu0 %2073 }
 0x3f0   : > { %v2122_v35 = vrot.slane %v2114_v25, %v16287_v39  ;;  %v2129_v36 = vrot.slane %v2115_v26, %v16287_v39 }
 0x3f1   : > { %v2080_v31 = vpop.permute.xlu1 %2079 }
 0x3f2   : > { %v2130_v32 = vcombine.low %v2074_v30, %v2080_v31  ;;  %v2131_v33 = vcombine.high %v2074_v30, %v2080_v31 }
 0x3f4   : > { %v15825_v34 = vpop.eup %15824  ;;  %v2138_v37 = vrot.slane %v2130_v32, %v16287_v39  ;;  %v2145_v38 = vrot.slane %v2131_v33, %v16287_v39 }
 0x3f5   : > { %v15827_v40 = vpop.eup %15826  ;;  %v4203_v41 = vmul.f32 %v15825_v34, %v15817_v17 }
 0x3f6   : > { %v4204_v42 = vmul.f32 %v15827_v40, %v15819_v18  ;;  %v2178_v43 = vcombine.low %v2122_v35, %v2138_v37  ;;  %v2179_v44 = vcombine.high %v2122_v35, %v2138_v37  ;;  %v2194_v46 = vcombine.low %v2129_v36, %v2145_v38 }
 0x3f7   : > { %v2195_v47 = vcombine.high %v2129_v36, %v2145_v38  ;;  %v4208_v28 = vsel %vm2354_vm2, %v4203_v41, 0 }
 0x3f8   : > { %v2186_v29 = vrot.slane %v2178_v43, %v16289_v45  ;;  %v2193_v48 = vrot.slane %v2179_v44, %v16289_v45  ;;  %v2202_v49 = vrot.slane %v2194_v46, %v16289_v45  ;;  %v16512_v50 = vand.u32 4294901760, %v4208_v28 }
 0x3f9   : > { %v2209_v51 = vrot.slane %v2195_v47, %v16289_v45  ;;  %v4657_v52 = vsel %vm2354_vm2, %v4204_v42, 0 }
 0x3fa   : > { %v13683_v53 = vcombine.low %v2186_v29, %v2193_v48  ;;  %v13685_v54 = vcombine.high %v2186_v29, %v2193_v48  ;;  %v16517_v55 = vsub.f32 %v4208_v28, %v16512_v50  ;;  %v16519_v56 = vand.u32 4294901760, %v4657_v52 }
 0x3fb   : > { %v13687_v57 = vcombine.low %v2202_v49, %v2209_v51  ;;  %v13689_v58 = vcombine.high %v2202_v49, %v2209_v51 }
 0x3fc   : > { %v2233_v59 = vrot.slane %v13683_v53, %v16287_v39  ;;  %v2249_v60 = vrot.slane %v13685_v54, %v16287_v39  ;;  %v4726_v61 = vsub.f32 %v4657_v52, %v16519_v56  ;;  %v4278_v6 = vand.u32 4294901760, %v16517_v55 }
 0x3fd   : > { %v2265_v2 = vrot.slane %v13687_v57, %v16287_v39  ;;  %v2281_v4 = vrot.slane %v13689_v58, %v16287_v39 }
 0x3fe   : > { %v2298_v5 = vcombine.low %v2233_v59, %v2249_v60  ;;  %v4727_v7 = vand.u32 4294901760, %v4726_v61  ;;  %v4279_v17 = vsub.f32 %v16517_v55, %v4278_v6  ;;  %v2299_v25 = vcombine.high %v2233_v59, %v2249_v60 }
 0x3ff   : > { %v2330_v8 = vcombine.low %v2265_v2, %v2281_v4  ;;  %v2331_v26 = vcombine.high %v2265_v2, %v2281_v4 }
 0x400   : > { %v2306_v10 = vrot.slane %v2298_v5, %v16289_v45  ;;  %v4728_v18 = vsub.f32 %v4726_v61, %v4727_v7  ;;  %v4280_v62 = vand.u32 4294901760, %v4279_v17  ;;  %v2313_v31 = vrot.slane %v2299_v25, %v16289_v45  ;;  %v6156_v5 = vld [vmem:[%s17588_s11] sm:$0xff] }
 0x401   : > { %v2338_v11 = vrot.slane %v2330_v8, %v16289_v45  ;;  %v2345_v32 = vrot.slane %v2331_v26, %v16289_v45  ;;  %v6171_v8 = vand.u32 4294901760, %v6156_v5 }
 0x402   : > { %v4729_v63 = vand.u32 4294901760, %v4728_v18 }
 0x403   : > { %v2350_v19 = vcombine.low %v2306_v10, %v2338_v11  ;;  %v2351_v13 = vcombine.high %v2306_v10, %v2338_v11  ;;  %v2352_v34 = vcombine.low %v2313_v31, %v2345_v32  ;;  %v2353_v35 = vcombine.high %v2313_v31, %v2345_v32 }
 0x405   : > { %v4211_v14 = vand.u32 4294901760, %v2350_v19  ;;  %v4660_v12 = vand.u32 4294901760, %v2351_v13  ;;  %v16561_v36 = vand.u32 4294901760, %v2352_v34  ;;  %v16567_v38 = vand.u32 4294901760, %v2353_v35 }
 0x407   : > { %14428 = vmatpush3.msra.mxu0 %v4211_v14  ;;  %v4288_v0 = vsub.f32 %v2350_v19, %v4211_v14  ;;  %14458 = vmatpush3.msra.mxu1 %v4660_v12  ;;  %v4737_v1 = vsub.f32 %v2351_v13, %v4660_v12  ;;  %v5186_v41 = vsub.f32 %v2352_v34, %v16561_v36 }
 0x408   : > { %14430 = vmatmul.mubr.f32.vlgmr.msra.gmra.mrb[6].mxu0 %v4280_v62  ;;  %14460 = vmatmul.mubr.f32.vlgmr.msra.gmra.mrb[8].mxu1 %v4729_v63  ;;  %v5635_v46 = vsub.f32 %v2353_v35, %v16567_v38  ;;  %v16639_v19 = vsub.f32 %v6156_v5, %v6171_v8  ;;  %v6159_v62 = vld [vmem:[%s17588_s11 + $0x18] sm:$0xff] }
 0x409   : > { %14432 = vmatprep.subr.mxu0 %v15881_v9  ;;  %14462 = vmatprep.subr.mxu1 %v15881_v9  ;;  %v4289_v20 = vand.u32 4294901760, %v4288_v0  ;;  %v4738_v21 = vand.u32 4294901760, %v4737_v1  ;;  %v5187_v28 = vand.u32 4294901760, %v5186_v41 }
 0x40a   : > { %14434 = vmatprep.mubr.msk.f32.mxu0 %vm15880_vm0, %v15881_v9  ;;  %14464 = vmatprep.mubr.msk.f32.mxu1 %vm15880_vm0, %v15881_v9  ;;  %v5636_v49 = vand.u32 4294901760, %v5635_v46 }
 0x40b   : > { %v4290_v27 = vsub.f32 %v4288_v0, %v4289_v20  ;;  %v4739_v22 = vsub.f32 %v4737_v1, %v4738_v21  ;;  %v5188_v51 = vsub.f32 %v5186_v41, %v5187_v28 }
 0x40d   : > { %v4291_v23 = vand.u32 4294901760, %v4290_v27  ;;  %v4740_v24 = vand.u32 4294901760, %v4739_v22 }
 0x40f   : > { %14433 = vmatpush3.msra.mxu0 %v4291_v23  ;;  %14463 = vmatpush3.msra.mxu1 %v4740_v24  ;;  %v6180_v24 = vand.u32 4294901760, %v6159_v62 }
 0x410   : > { %14435 = vmatmul.mubr.f32.vlgmr.msra.gmra.mrb[6].mxu0 %v16512_v50  ;;  %14437 = vmatprep.subr.mxu0 %v15881_v9 }
 0x411   : > { %14465 = vmatmul.mubr.f32.vlgmr.msra.gmra.mrb[8].mxu1 %v16519_v56  ;;  %14467 = vmatprep.subr.mxu1 %v15881_v9 }
 0x412   : > { %14438 = vmatpush3.msra.mxu0 %v4288_v0  ;;  %14468 = vmatpush3.msra.mxu1 %v4737_v1 }
 0x413   : > { %14439 = vmatprep.mubr.msk.f32.mxu0 %vm15880_vm0, %v15881_v9  ;;  %14442 = vmatprep.subr.mxu0 %v15881_v9 }
 0x414   : > { %14469 = vmatprep.mubr.msk.f32.mxu1 %vm15880_vm0, %v15881_v9  ;;  %14472 = vmatprep.subr.mxu1 %v15881_v9 }
 0x418   : > { %14440 = vmatmul.mubr.f32.vlgmr.msra.gmra.mrb[6].mxu0 %v16517_v55  ;;  %v5637_v55 = vsub.f32 %v5635_v46, %v5636_v49 }
 0x419   : > { %14443 = vmatpush3.msra.mxu0 %v4211_v14  ;;  %14470 = vmatmul.mubr.f32.vlgmr.msra.gmra.mrb[8].mxu1 %v4726_v61 }
 0x41a   : > { %14473 = vmatpush3.msra.mxu1 %v4660_v12  ;;  %14444 = vmatprep.mubr.msk.f32.mxu0 %vm15880_vm0, %v15881_v9  ;;  %v5638_v59 = vand.u32 4294901760, %v5637_v55 }
 0x41b   : > { %14447 = vmatprep.subr.mxu0 %v15881_v9  ;;  %14474 = vmatprep.mubr.msk.f32.mxu1 %vm15880_vm0, %v15881_v9 }
 0x41c   : > { %14477 = vmatprep.subr.mxu1 %v15881_v9 }
 0x41f   : > { %v4195_v30 = vpop.xlane.xlu0 %4194 }
 0x420   : > { %15828 = vrcp.f32 %v4195_v30  ;;  %14445 = vmatmul.mubr.f32.vlgmr.msra.gmra.mrb[6].mxu0 %v4278_v6  ;;  %v6157_v6 = vld [vmem:[%s17588_s11 + $0x8] sm:$0xff] }
 0x421   : > { %14448 = vmatpush3.msra.mxu0 %v4289_v20  ;;  %14475 = vmatmul.mubr.f32.vlgmr.msra.gmra.mrb[8].mxu1 %v4727_v7  ;;  %v6174_v10 = vand.u32 4294901760, %v6157_v6  ;;  %v6252_v20 = vand.u32 4294901760, %v16639_v19 }
 0x422   : > { %14478 = vmatpush3.msra.mxu1 %v4738_v21  ;;  %v4198_v33 = vpop.xlane.xlu1 %4197  ;;  %14449 = vmatprep.mubr.msk.f32.mxu0 %vm15880_vm0, %v15881_v9 }
 0x423   : > { %15830 = vrcp.f32 %v4198_v33  ;;  %14452 = vmatprep.subr.mxu0 %v15881_v9  ;;  %14479 = vmatprep.mubr.msk.f32.mxu1 %vm15880_vm0, %v15881_v9  ;;  %v16641_v13 = vsub.f32 %v6157_v6, %v6174_v10  ;;  %v6253_v30 = vsub.f32 %v16639_v19, %v6252_v20  ;;  %v16663_v33 = vsub.f32 %v6159_v62, %v6180_v24 }
 0x424   : > { %14482 = vmatprep.subr.mxu1 %v15881_v9 }
 0x425   : > { %v6259_v21 = vand.u32 4294901760, %v16641_v13 }
 0x427   : > { %v6260_v31 = vsub.f32 %v16641_v13, %v6259_v21  ;;  %v15328_v62 = vpack.c.bf16 %v6259_v21, %v6252_v20 }
 0x428   : > { %14450 = vmatmul.mubr.f32.vlgmr.msra.gmra.mrb[6].mxu0 %v16512_v50 }
 0x429   : > { %14453 = vmatpush3.msra.mxu0 %v4211_v14  ;;  %14480 = vmatmul.mubr.f32.vlgmr.msra.gmra.mrb[8].mxu1 %v16519_v56 }
 0x42a   : > { %v15829_v37 = vpop.eup %15828  ;;  %14483 = vmatpush3.msra.mxu1 %v4660_v12  ;;  %14454 = vmatprep.mubr.msk.f32.mxu0 %vm15880_vm0, %v15881_v9  ;;  %v6158_v12 = vld [vmem:[%s17588_s11 + $0x10] sm:$0xff]  ;;  %s17590_s11 = sld [smem:[#allocation6_spill]] }
 0x42b   : > { %v4205_v40 = vmul.f32 %v15829_v37, %v16496_v15  ;;  %14484 = vmatprep.mubr.msk.f32.mxu1 %vm15880_vm0, %v15881_v9  ;;  %14487 = vmatprep.subr.mxu0 %v15881_v9  ;;  %v6177_v23 = vand.u32 4294901760, %v6158_v12 }
 0x42c   : > { %14517 = vmatprep.subr.mxu1 %v15881_v9 }
 0x42d   : > { %v15831_v42 = vpop.eup %15830  ;;  %v5106_v43 = vsel %vm2354_vm2, %v4205_v40, 0  ;;  %v16661_v32 = vsub.f32 %v6158_v12, %v6177_v23  ;;  %v6261_v40 = vand.u32 4294901760, %v6260_v31 }
 0x42e   : > { %v4206_v44 = vmul.f32 %v15831_v42, %v16498_v16  ;;  %v16578_v47 = vand.u32 4294901760, %v5106_v43 }
 0x430   : > { %14455 = vmatmul.mubr.f32.vlgmr.msra.gmra.mrb[6].mxu0 %v16512_v50  ;;  %v5175_v15 = vsub.f32 %v5106_v43, %v16578_v47  ;;  %v5555_v29 = vsel %vm2354_vm2, %v4206_v44, 0 }
 0x431   : > { %14485 = vmatmul.mubr.f32.vlgmr.msra.gmra.mrb[8].mxu1 %v16519_v56  ;;  %14488 = vmatpush3.msra.mxu0 %v16561_v36  ;;  %v5623_v48 = vand.u32 4294901760, %v5555_v29  ;;  %v5189_v56 = vand.u32 4294901760, %v5188_v51 }
 0x432   : > { %14518 = vmatpush3.msra.mxu1 %v16567_v38  ;;  %14489 = vmatprep.mubr.msk.f32.mxu0 %vm15880_vm0, %v15881_v9  ;;  %v5176_v16 = vand.u32 4294901760, %v5175_v15 }
 0x433   : > { %14492 = vmatprep.subr.mxu0 %v15881_v9  ;;  %14519 = vmatprep.mubr.msk.f32.mxu1 %vm15880_vm0, %v15881_v9  ;;  %v5624_v50 = vsub.f32 %v5555_v29, %v5623_v48 }
 0x434   : > { %v5177_v52 = vsub.f32 %v5175_v15, %v5176_v16  ;;  %14522 = vmatprep.subr.mxu1 %v15881_v9 }
 0x435   : > { %v5625_v53 = vand.u32 4294901760, %v5624_v50 }
 0x436   : > { %v5178_v54 = vand.u32 4294901760, %v5177_v52 }
 0x437   : > { %v5626_v57 = vsub.f32 %v5624_v50, %v5625_v53 }
 0x438   : > { %14490 = vmatmul.mubr.f32.vlgmr.msra.gmra.mrb[8].mxu0 %v5178_v54 }
 0x439   : > { %14493 = vmatpush3.msra.mxu0 %v5189_v56  ;;  %v5627_v58 = vand.u32 4294901760, %v5626_v57  ;;  %14494 = vmatprep.mubr.msk.f32.mxu0 %vm15880_vm0, %v15881_v9 }
 0x43a   : > { %14497 = vmatprep.subr.mxu0 %v15881_v9 }
 0x43b   : > { %14520 = vmatmul.mubr.f32.vlgmr.msra.gmra.mrb[10].mxu1 %v5627_v58 }
 0x43c   : > { %14523 = vmatpush3.msra.mxu1 %v5638_v59  ;;  %14524 = vmatprep.mubr.msk.f32.mxu1 %vm15880_vm0, %v15881_v9 }
 0x43d   : > { %14527 = vmatprep.subr.mxu1 %v15881_v9 }
 0x440   : > { %14495 = vmatmul.mubr.f32.vlgmr.msra.gmra.mrb[8].mxu0 %v16578_v47 }
 0x441   : > { %14498 = vmatpush3.msra.mxu0 %v5186_v41  ;;  %14499 = vmatprep.mubr.msk.f32.mxu0 %vm15880_vm0, %v15881_v9 }
 0x442   : > { %14502 = vmatprep.subr.mxu0 %v15881_v9 }
 0x443   : > { %14525 = vmatmul.mubr.f32.vlgmr.msra.gmra.mrb[10].mxu1 %v5623_v48 }
 0x444   : > { %14528 = vmatpush3.msra.mxu1 %v5635_v46  ;;  %14529 = vmatprep.mubr.msk.f32.mxu1 %vm15880_vm0, %v15881_v9 }
 0x445   : > { %14532 = vmatprep.subr.mxu1 %v15881_v9 }
 0x448   : > { %14500 = vmatmul.mubr.f32.vlgmr.msra.gmra.mrb[8].mxu0 %v5175_v15 }
 0x449   : > { %14503 = vmatpush3.msra.mxu0 %v16561_v36  ;;  %14504 = vmatprep.mubr.msk.f32.mxu0 %vm15880_vm0, %v15881_v9 }
 0x44a   : > { %14507 = vmatprep.subr.mxu0 %v15881_v9 }
 0x44b   : > { %14530 = vmatmul.mubr.f32.vlgmr.msra.gmra.mrb[10].mxu1 %v5624_v50 }
 0x44c   : > { %14533 = vmatpush3.msra.mxu1 %v16567_v38  ;;  %14534 = vmatprep.mubr.msk.f32.mxu1 %vm15880_vm0, %v15881_v9 }
 0x44d   : > { %14537 = vmatprep.subr.mxu1 %v15881_v9 }
 0x450   : > { %14505 = vmatmul.mubr.f32.vlgmr.msra.gmra.mrb[8].mxu0 %v5176_v16 }
 0x451   : > { %14508 = vmatpush3.msra.mxu0 %v5187_v28  ;;  %14509 = vmatprep.mubr.msk.f32.mxu0 %vm15880_vm0, %v15881_v9  ;;  %v6273_v28 = vand.u32 4294901760, %v16663_v33 }
 0x452   : > { %14512 = vmatprep.subr.mxu0 %v15881_v9 }
 0x453   : > { %14535 = vmatmul.mubr.f32.vlgmr.msra.gmra.mrb[10].mxu1 %v5625_v53  ;;  %v6274_v51 = vsub.f32 %v16663_v33, %v6273_v28 }
 0x454   : > { %14538 = vmatpush3.msra.mxu1 %v5636_v49  ;;  %14539 = vmatprep.mubr.msk.f32.mxu1 %vm15880_vm0, %v15881_v9 }
 0x455   : > { %14542 = vmatprep.subr.mxu1 %v15881_v9  ;;  %v6275_v56 = vand.u32 4294901760, %v6274_v51  ;;  %v7331_v51 = vld [vmem:[%s17534_s15] sm:$0xff] }
 0x458   : > { %14510 = vmatmul.mubr.f32.vlgmr.msra.gmra.mrb[8].mxu0 %v16578_v47 }
 0x459   : > { %14513 = vmatpush3.msra.mxu0 %v16561_v36  ;;  %14514 = vmatprep.mubr.msk.f32.mxu0 %vm15880_vm0, %v15881_v9 }
 0x45a   : > { %15303 = vmatprep.subr.bf16.mxu0 %v15879_v3 }
 0x45b   : > { %14540 = vmatmul.mubr.f32.vlgmr.msra.gmra.mrb[10].mxu1 %v5623_v48 }
 0x45c   : > { %14543 = vmatpush3.msra.mxu1 %v16567_v38  ;;  %14544 = vmatprep.mubr.msk.f32.mxu1 %vm15880_vm0, %v15881_v9  ;;  %v6254_v38 = vand.u32 4294901760, %v6253_v30 }
 0x45d   : > { %15309 = vmatprep.subr.bf16.mxu1 %v15879_v3 }
 0x45e   : > { %v15310_v46 = vpack.c.bf16 %v6261_v40, %v6254_v38 }
 0x460   : > { %14515 = vmatmul.mubr.f32.vlgmr.msra.gmra.mrb[8].mxu0 %v16578_v47  ;;  %v6266_v47 = vand.u32 4294901760, %v16661_v32 }
 0x461   : > { %14555 = vmatprep.mubr.msk.f32.mxu0 %vm15880_vm0, %v15881_v9 }
 0x462   : > { %v6267_v49 = vsub.f32 %v16661_v32, %v6266_v47 }
 0x463   : > { %14545 = vmatmul.mubr.f32.vlgmr.msra.gmra.mrb[10].mxu1 %v5623_v48 }
 0x464   : > { %14566 = vmatprep.mubr.msk.f32.mxu1 %vm15880_vm0, %v15881_v9  ;;  %15311 = vmatpush3.bf16.msra.mxu1 %v15310_v46  ;;  %v6268_v55 = vand.u32 4294901760, %v6267_v49 }
 0x465   : > { %15312 = vmatprep.subr.bf16.mxu1 %v15879_v3 }
 0x503   : > { %v4652_v60 = vpop.f32.mrb[6].mxu0 }
 0x504   : > { %v5101_v61 = vpop.f32.mrb[8].mxu1  ;;  %v14456_v2 = vpop.f32.mrb[7].mxu0 }
 0x505   : > { %v14486_v4 = vpop.f32.mrb[9].mxu1  ;;  %v15304_v2 = vpack.c.bf16 %v6174_v10, %v6171_v8  ;;  %v15316_v8 = vpack.c.bf16 %v16641_v13, %v16639_v19  ;;  %v15319_v10 = vpack.c.bf16 %v16663_v33, %v16661_v32  ;;  %v13692_v32 = vld [vmem:[%s17589_s2] ss:$0 sm:$0xff]  ;;  %s17591_s2 = sld [smem:[#allocation15_spill]] }
 0x507   : > { %15305 = vmatpush3.bf16.msra.mxu0 %v15304_v2 }
 0x508   : > { %15306 = vmatprep.subr.bf16.mxu0 %v15879_v3 }
 0x533   : > { %v5550_v7 = vpop.f32.mrb[8].mxu0 }
 0x534   : > { %v6003_v11 = vcombine.low %v4652_v60, %v5550_v7  ;;  %v6004_v17 = vcombine.high %v4652_v60, %v5550_v7  ;;  %v14516_v18 = vpop.f32.mrb[9].mxu0 }
 0x536   : > { %v5999_v14 = vpop.f32.mrb[10].mxu1  ;;  %v6011_v27 = vrot.slane %v6003_v11, %v16287_v39  ;;  %v6018_v22 = vrot.slane %v6004_v17, %v16287_v39  ;;  %v15307_v11 = vpack.c.bf16 %v6180_v24, %v6177_v23 }
 0x537   : > { %v6019_v63 = vcombine.low %v5101_v61, %v5999_v14  ;;  %v6020_v0 = vcombine.high %v5101_v61, %v5999_v14  ;;  %v14546_v1 = vpop.f32.mrb[11].mxu1  ;;  %v15313_v61 = vpack.c.bf16 %v6275_v56, %v6268_v55  ;;  %v7334_v55 = vld [vmem:[%s17534_s15 + $0x18] sm:$0xff] }
 0x538   : > { %15308 = vmatpush3.bf16.msra.mxu0 %v15307_v11 }
 0x539   : > { %v6027_v25 = vrot.slane %v6019_v63, %v16287_v39  ;;  %v6034_v26 = vrot.slane %v6020_v0, %v16287_v39  ;;  %15314 = vmatpush3.bf16.msra.mxu1 %v15313_v61  ;;  %15315 = vmatprep.subr.bf16.mxu0 %v15879_v3  ;;  %v15331_v63 = vpack.c.bf16 %v6273_v28, %v6266_v47 }
 0x53a   : > { %15321 = vmatprep.subr.bf16.mxu1 %v15879_v3 }
 0x53b   : > { %v6035_v34 = vcombine.low %v6011_v27, %v6027_v25  ;;  %v6036_v35 = vcombine.high %v6011_v27, %v6027_v25  ;;  %v6051_v36 = vcombine.low %v6018_v22, %v6034_v26  ;;  %v6052_v37 = vcombine.high %v6018_v22, %v6034_v26 }
 0x53d   : > { %v6043_v41 = vrot.slane %v6035_v34, %v16289_v45  ;;  %v6050_v42 = vrot.slane %v6036_v35, %v16289_v45  ;;  %v6059_v43 = vrot.slane %v6051_v36, %v16289_v45  ;;  %v6066_v44 = vrot.slane %v6052_v37, %v16289_v45 }
 0x53f   : > { %v6071_v15 = vcombine.low %v6043_v41, %v6050_v42  ;;  %v13690_v29 = vcombine.high %v6043_v41, %v6050_v42  ;;  %v6087_v48 = vcombine.low %v6059_v43, %v6066_v44  ;;  %v13691_v16 = vcombine.high %v6059_v43, %v6066_v44 }
 0x541   : > { %v6078_v50 = vrot.slane %v6071_v15, %v16287_v39  ;;  %v6086_v52 = vrot.slane %v13690_v29, %v16287_v39  ;;  %v6094_v53 = vrot.slane %v6087_v48, %v16287_v39  ;;  %v6102_v54 = vrot.slane %v13691_v16, %v16287_v39  ;;  %v15854_v48 = vld [vmem:[%s16113_s0] sm:$0xff]  ;;  %s895_s0 = scalar_lea.vmem %s17590_s11, %s16102_s1 }
 0x543   : > { %v6104_v57 = vcombine.high %v6078_v50, %v6086_v52  ;;  %v6120_v58 = vcombine.high %v6094_v53, %v6102_v54  ;;  %v6103_v59 = vcombine.low %v6078_v50, %v6086_v52  ;;  %v6119_v60 = vcombine.low %v6094_v53, %v6102_v54  ;;  %v7332_v50 = vld [vmem:[%s17534_s15 + $0x8] sm:$0xff]  ;;  %v7333_v52 = vld [vmem:[%s17534_s15 + $0x10] sm:$0xff] }
 0x544   : > { %v7346_v53 = vand.u32 4294901760, %v7331_v51  ;;  %v7349_v54 = vand.u32 4294901760, %v7332_v50  ;;  %v7352_v56 = vand.u32 4294901760, %v7333_v52 }
 0x545   : > { %v6118_v4 = vrot.slane %v6104_v57, %v16289_v45  ;;  %v6134_v5 = vrot.slane %v6120_v58, %v16289_v45  ;;  %v6111_v6 = vrot.slane %v6103_v59, %v16289_v45  ;;  %v6127_v7 = vrot.slane %v6119_v60, %v16289_v45  ;;  %v912_v57 = vld [vmem:[%s895_s0] sm:$0xff] }
 0x546   : > { %v7355_v58 = vand.u32 4294901760, %v7334_v55  ;;  %v7343_v59 = vsel %vm926_vm1, %v912_v57, 0  ;;  %v16742_v60 = vpack.c.bf16 %v7349_v54, %v7346_v53  ;;  %v7426_v61 = vsub.f32 %v7331_v51, %v7346_v53 }
 0x547   : > { %v6137_v17 = vcombine.low %v6118_v4, %v6134_v5  ;;  %v6136_v18 = vcombine.high %v6111_v6, %v6127_v7  ;;  %v6138_v14 = vcombine.high %v6118_v4, %v6134_v5  ;;  %v6135_v12 = vcombine.low %v6111_v6, %v6127_v7 }
 0x548   : > { %v7440_v4 = vsub.f32 %v7333_v52, %v7352_v56  ;;  %v7447_v5 = vsub.f32 %v7334_v55, %v7355_v58  ;;  %v16744_v6 = vand.u32 4294901760, %v7343_v59  ;;  %v16747_v7 = vpack.c.bf16 %v7355_v58, %v7352_v56 }
 0x549   : > { %6144 = vrot.lane.b32.xlu1 %v6137_v17, %s17560_s10  ;;  %6140 = vrot.lane.b32.xlu0 %v6136_v18, %s17559_s3  ;;  %s17592_s10 = smov 112   ;;  %s17593_s3 = smov 120  }
 0x54a   : > { %v7415_v18 = vsub.f32 %v7343_v59, %v16744_v6 }
 0x54d   : > { %6148 = vrot.lane.b32.xlu0 %v6138_v14, %s17558_s5  ;;  %s17594_s5 = smov 104  }
 0x5bb   : > { %v6141_v0 = vpop.permute.xlu0 %6140  ;;  %v6145_v1 = vpop.permute.xlu1 %6144 }
 0x5bc   : > { %v6151_v27 = vsel %vm2354_vm2, %v6135_v12, %v6141_v0 }
 0x5bd   : > { %v6153_v23 = vsel %vm6152_vm3, %v6151_v27, %v6145_v1 }
 0x5bf   : > { %v6149_v22 = vpop.permute.xlu0 %6148 }
 0x5c0   : > { %v6155_v24 = vsel %vm6154_vm4, %v6153_v23, %v6149_v22 }
 0x5c1   : > { %v6168_v25 = vsel %vm926_vm1, %v6155_v24, 0 }
 0x5c2   : > { %v6239_v26 = vand.u32 4294901760, %v6168_v25 }
 0x5c4   : > { %v6240_v30 = vsub.f32 %v6168_v25, %v6239_v26  ;;  %14567 = vmatmul.mubr.f32.vlgmr.msra.gmra.mrb[12].mxu1 %v6239_v26 }
 0x5c5   : > { %15323 = vmatpush3.bf16.msra.mxu1 %v15304_v2  ;;  %14588 = vmatprep.mubr.msk.f32.mxu1 %vm15880_vm0, %v15881_v9 }
 0x5c6   : > { %15324 = vmatprep.subr.bf16.mxu1 %v15879_v3  ;;  %v6241_v19 = vand.u32 4294901760, %v6240_v30 }
 0x5c8   : > { %v6242_v13 = vsub.f32 %v6240_v30, %v6241_v19 }
 0x5c9   : > { %15326 = vmatpush3.bf16.msra.mxu1 %v15307_v11 }
 0x5ca   : > { %15333 = vmatprep.subr.bf16.mxu1 %v15879_v3  ;;  %v6243_v20 = vand.u32 4294901760, %v6242_v13 }
 0x5cc   : > { %14589 = vmatmul.mubr.f32.vlgmr.msra.gmra.mrb[14].mxu1 %v6241_v19  ;;  %14556 = vmatmul.mubr.f32.vlgmr.msra.gmra.mrb[10].mxu0 %v6243_v20 }
 0x5cd   : > { %15317 = vmatpush3.bf16.msra.mxu0 %v15316_v8  ;;  %15335 = vmatpush3.bf16.msra.mxu1 %v15304_v2  ;;  %v7433_v2 = vsub.f32 %v7332_v50, %v7349_v54  ;;  %v7416_v8 = vand.u32 4294901760, %v7415_v18 }
 0x5ce   : > { %15318 = vmatprep.subr.bf16.mxu0 %v15879_v3  ;;  %15336 = vmatprep.subr.bf16.mxu1 %v15879_v3 }
 0x5cf   : > { %14577 = vmatprep.mubr.msk.f32.mxu0 %vm15880_vm0, %v15881_v9  ;;  %14610 = vmatprep.mubr.msk.f32.mxu1 %vm15880_vm0, %v15881_v9  ;;  %v7434_v17 = vand.u32 4294901760, %v7433_v2 }
 0x5d1   : > { %15320 = vmatpush3.bf16.msra.mxu0 %v15319_v10  ;;  %15338 = vmatpush3.bf16.msra.mxu1 %v15307_v11  ;;  %v7427_v11 = vand.u32 4294901760, %v7426_v61  ;;  %v7435_v12 = vsub.f32 %v7433_v2, %v7434_v17 }
 0x5d2   : > { %15327 = vmatprep.subr.bf16.mxu0 %v15879_v3  ;;  %15375 = vmatprep.subr.bf16.mxu1 %v15879_v3 }
 0x5d3   : > { %v7428_v14 = vsub.f32 %v7426_v61, %v7427_v11 }
 0x5d4   : > { %14578 = vmatmul.mubr.f32.vlgmr.msra.gmra.mrb[12].mxu0 %v6240_v30  ;;  %14611 = vmatmul.mubr.f32.vlgmr.msra.gmra.mrb[16].mxu1 %v6239_v26  ;;  %v7448_v30 = vand.u32 4294901760, %v7447_v5 }
 0x5d5   : > { %15329 = vmatpush3.bf16.msra.mxu0 %v15328_v62  ;;  %14599 = vmatprep.mubr.msk.f32.mxu0 %vm15880_vm0, %v15881_v9  ;;  %v7429_v10 = vand.u32 4294901760, %v7428_v14  ;;  %v7436_v62 = vand.u32 4294901760, %v7435_v12 }
 0x5d6   : > { %15330 = vmatprep.subr.bf16.mxu0 %v15879_v3  ;;  %14687 = vmatprep.mubr.msk.f32.mxu1 %vm15880_vm0, %v15881_v9  ;;  %v7449_v13 = vsub.f32 %v7447_v5, %v7448_v30 }
 0x5d7   : > { %15377 = vmatpush3.bf16.msra.mxu1 %v16742_v60  ;;  %v15382_v0 = vpack.c.bf16 %v7436_v62, %v7429_v10 }
 0x5d8   : > { %15378 = vmatprep.subr.bf16.mxu1 %v15879_v3 }
 0x5d9   : > { %15332 = vmatpush3.bf16.msra.mxu0 %v15331_v63  ;;  %v7417_v63 = vsub.f32 %v7415_v18, %v7416_v8 }
 0x5da   : > { %15339 = vmatprep.subr.bf16.mxu0 %v15879_v3 }
 0x5db   : > { %15380 = vmatpush3.bf16.msra.mxu1 %v16747_v7  ;;  %v7418_v1 = vand.u32 4294901760, %v7417_v63 }
 0x5dc   : > { %14600 = vmatmul.mubr.f32.vlgmr.msra.gmra.mrb[14].mxu0 %v6239_v26  ;;  %15381 = vmatprep.subr.bf16.mxu1 %v15879_v3  ;;  %v7441_v26 = vand.u32 4294901760, %v7440_v4 }
 0x5dd   : > { %14621 = vmatprep.mubr.msk.f32.mxu0 %vm15880_vm0, %v15881_v9 }
 0x5de   : > { %14688 = vmatmul.mubr.f32.vlgmr.msra.gmra.mrb[18].mxu1 %v7418_v1  ;;  %v7442_v19 = vsub.f32 %v7440_v4, %v7441_v26 }
 0x5df   : > { %15383 = vmatpush3.bf16.msra.mxu1 %v15382_v0  ;;  %14698 = vmatprep.mubr.msk.f32.mxu1 %vm15880_vm0, %v15881_v9 }
 0x5e0   : > { %15384 = vmatprep.subr.bf16.mxu1 %v15879_v3  ;;  %v7443_v20 = vand.u32 4294901760, %v7442_v19 }
 0x697   : > { %v6336_v21 = vpop.f32.mrb[12].mxu1 }
 0x698   : > { %v14568_v31 = vpop.f32.mrb[13].mxu1 }
 0x69f   : > { %v6493_v33 = vpop.f32.mrb[14].mxu1  ;;  %v6245_v34 = vpop.f32.mrb[10].mxu0 }
 0x6a0   : > { %v6246_v35 = vadd.f32 %v13692_v32, %v6245_v34  ;;  %v14590_v36 = vpop.f32.mrb[15].mxu1  ;;  %v14557_v37 = vpop.f32.mrb[11].mxu0  ;;  %v15388_v32 = vpack.c.bf16 %v7433_v2, %v7426_v61  ;;  %v6686_v34 = vld [vmem:[%s17532_s13] sm:$0xff] }
 0x6a1   : > { %v15403_v36 = vpack.c.bf16 %v7448_v30, %v7441_v26  ;;  %v6688_v37 = vld [vmem:[%s17532_s13 + $0x10] sm:$0xff]  ;;  %v13695_v26 = vld [vmem:[%s17533_s14] ss:$0 sm:$0xff] }
 0x6a2   : > { %v6337_v38 = vadd.f32 %v6336_v21, %v6246_v35  ;;  %v7450_v21 = vand.u32 4294901760, %v7449_v13  ;;  %v6687_v35 = vld [vmem:[%s17532_s13 + $0x8] sm:$0xff] }
 0x6a4   : > { %v15385_v31 = vpack.c.bf16 %v7450_v21, %v7443_v20  ;;  %v13698_v20 = vld [vmem:[%s17535_s16] ss:$0 sm:$0xff] }
 0x6a6   : > { %15386 = vmatpush3.bf16.msra.mxu1 %v15385_v31 }
 0x6a7   : > { %v6416_v40 = vpop.f32.mrb[12].mxu0  ;;  %v6651_v41 = vpop.f32.mrb[16].mxu1  ;;  %15387 = vmatprep.subr.bf16.mxu1 %v15879_v3 }
 0x6a8   : > { %v6417_v42 = vadd.f32 %v6416_v40, %v6337_v38  ;;  %v14579_v43 = vpop.f32.mrb[13].mxu0  ;;  %v14612_v44 = vpop.f32.mrb[17].mxu1  ;;  %v6701_v38 = vand.u32 4294901760, %v6686_v34  ;;  %v6704_v40 = vand.u32 4294901760, %v6687_v35 }
 0x6a9   : > { %14699 = vmatmul.mubr.f32.vlgmr.msra.gmra.mrb[18].mxu1 %v16744_v6  ;;  %v15400_v43 = vpack.c.bf16 %v7434_v17, %v7427_v11 }
 0x6aa   : > { %v6494_v46 = vadd.f32 %v6493_v33, %v6417_v42  ;;  %15389 = vmatpush3.bf16.msra.mxu1 %v15388_v32  ;;  %14709 = vmatprep.mubr.msk.f32.mxu1 %vm15880_vm0, %v15881_v9  ;;  %v15391_v33 = vpack.c.bf16 %v7447_v5, %v7440_v4  ;;  %v6707_v42 = vand.u32 4294901760, %v6688_v37 }
 0x6ab   : > { %15390 = vmatprep.subr.bf16.mxu1 %v15879_v3 }
 0x6ae   : > { %15392 = vmatpush3.bf16.msra.mxu1 %v15391_v33 }
 0x6af   : > { %v6576_v47 = vpop.f32.mrb[14].mxu0  ;;  %15393 = vmatprep.subr.bf16.mxu1 %v15879_v3 }
 0x6b0   : > { %v6577_v28 = vadd.f32 %v6576_v47, %v6494_v46  ;;  %v14601_v15 = vpop.f32.mrb[15].mxu0  ;;  %v16785_v46 = vpack.c.bf16 %v6704_v40, %v6701_v38  ;;  %v16787_v47 = vsub.f32 %v6686_v34, %v6701_v38 }
 0x6b1   : > { %14710 = vmatmul.mubr.f32.vlgmr.msra.gmra.mrb[18].mxu1 %v7415_v18  ;;  %v16791_v15 = vsub.f32 %v6688_v37, %v6707_v42 }
 0x6b2   : > { %v6652_v29 = vadd.f32 %v6651_v41, %v6577_v28  ;;  %15395 = vmatpush3.bf16.msra.mxu1 %v16742_v60  ;;  %14720 = vmatprep.mubr.msk.f32.mxu1 %vm15880_vm0, %v15881_v9  ;;  %v6689_v41 = vld [vmem:[%s17532_s13 + $0x18] sm:$0xff]  ;;  %v16789_v28 = vsub.f32 %v6687_v35, %v6704_v40 }
 0x6b3   : > { %15396 = vmatprep.subr.bf16.mxu1 %v15879_v3  ;;  %v6710_v44 = vand.u32 4294901760, %v6689_v41  ;;  %15341 = vmatpush3.bf16.msra.mxu0 %v16785_v46  ;;  %v6796_v54 = vand.u32 4294901760, %v16791_v15 }
 0x6b4   : > { %v6655_v16 = vadd.f32 %v15854_v48, %v6652_v29  ;;  %15342 = vmatprep.subr.bf16.mxu0 %v15879_v3  ;;  %v15352_v2 = vpack.c.bf16 %v16789_v28, %v16787_v47 }
 0x6b5   : > { %v16793_v29 = vsub.f32 %v6689_v41, %v6710_v44  ;;  %v16796_v48 = vpack.c.bf16 %v6710_v44, %v6707_v42  ;;  %v6797_v57 = vsub.f32 %v16791_v15, %v6796_v54 }
 0x6b6   : > { %v6658_v49 = vsel %vm926_vm1, %v6655_v16, 0.0  ;;  %15398 = vmatpush3.bf16.msra.mxu1 %v16747_v7 }
 0x6b7   : > { %6659 = vadd.xlane.f32.xlu1 %v6658_v49  ;;  %15399 = vmatprep.subr.bf16.mxu1 %v15879_v3  ;;  %v6789_v49 = vand.u32 4294901760, %v16789_v28  ;;  %v6803_v55 = vand.u32 4294901760, %v16793_v29  ;;  %v6798_v59 = vand.u32 4294901760, %v6797_v57  ;;  %v15355_v4 = vpack.c.bf16 %v16793_v29, %v16791_v15 }
 0x6b8   : > { %15344 = vmatpush3.bf16.msra.mxu0 %v16796_v48 }
 0x6b9   : > { %14721 = vmatmul.mubr.f32.vlgmr.msra.gmra.mrb[18].mxu1 %v7416_v8  ;;  %15345 = vmatprep.subr.bf16.mxu0 %v15879_v3  ;;  %v6790_v50 = vsub.f32 %v16789_v28, %v6789_v49  ;;  %v6804_v58 = vsub.f32 %v16793_v29, %v6803_v55  ;;  %v15367_v11 = vpack.c.bf16 %v6803_v55, %v6796_v54  ;;  %v13694_v8 = vld [vmem:[%s17531_s12] ss:$0 sm:$0xff] }
 0x6ba   : > { %15401 = vmatpush3.bf16.msra.mxu1 %v15400_v43  ;;  %14731 = vmatprep.mubr.msk.f32.mxu1 %vm15880_vm0, %v15881_v9 }
 0x6bb   : > { %15402 = vmatprep.subr.bf16.mxu1 %v15879_v3  ;;  %v6791_v53 = vand.u32 4294901760, %v6790_v50 }
 0x6be   : > { %15404 = vmatpush3.bf16.msra.mxu1 %v15403_v36 }
 0x6bf   : > { %15405 = vmatprep.subr.bf16.mxu1 %v15879_v3 }
 0x6c1   : > { %14732 = vmatmul.mubr.f32.vlgmr.msra.gmra.mrb[18].mxu1 %v16744_v6 }
 0x6c2   : > { %15407 = vmatpush3.bf16.msra.mxu1 %v16742_v60  ;;  %14742 = vmatprep.mubr.msk.f32.mxu1 %vm15880_vm0, %v15881_v9  ;;  %v6805_v60 = vand.u32 4294901760, %v6804_v58 }
 0x6c3   : > { %15408 = vmatprep.subr.bf16.mxu1 %v15879_v3 }
 0x6c4   : > { %v15349_v61 = vpack.c.bf16 %v6805_v60, %v6798_v59 }
 0x6c6   : > { %15410 = vmatpush3.bf16.msra.mxu1 %v16747_v7 }
 0x6c7   : > { %14775 = vmatprep.subr.mxu1 %v15881_v9 }
 0x6c9   : > { %14743 = vmatmul.mubr.f32.vlgmr.msra.gmra.mrb[18].mxu1 %v16744_v6  ;;  %v13693_v6 = vld [vmem:[%s17591_s2] ss:$0 sm:$0xff]  ;;  %s17595_s2 = sld [smem:[#allocation8_spill]] }
 0x6ca   : > { %14777 = vmatprep.mubr.msk.f32.mxu1 %vm15880_vm0, %v15881_v9 }
 0x6cf   : > { %s902_s0 = scalar_lea.vmem %s17595_s2, %s17608_s7  ;;  %s17596_s7 = smov 88  }
 0x744   : > { %v6660_v27 = vpop.xlane.xlu1 %6659 }
 0x745   : > { %v6662_v22 = vmul.f32 0.03125, %v6660_v27 }
 0x747   : > { %v16756_v23 = vsub.f32 %v6655_v16, %v6662_v22  ;;  %v6782_v16 = vand.u32 4294901760, %v16787_v47 }
 0x749   : > { %v6664_v24 = vmul.f32 %v16756_v23, %v16756_v23  ;;  %v6783_v51 = vsub.f32 %v16787_v47, %v6782_v16  ;;  %v15364_v5 = vpack.c.bf16 %v6789_v49, %v6782_v16 }
 0x74b   : > { %v6665_v25 = vsel %vm926_vm1, %v6664_v24, 0.0  ;;  %v6784_v52 = vand.u32 4294901760, %v6783_v51 }
 0x74c   : > { %6666 = vadd.xlane.f32.xlu0 %v6665_v25 }
 0x74d   : > { %v15346_v56 = vpack.c.bf16 %v6791_v53, %v6784_v52 }
 0x7d9   : > { %v6667_v17 = vpop.xlane.xlu0 %6666 }
 0x7da   : > { %v6668_v7 = vmul.f32 0.03125, %v6667_v17 }
 0x7dc   : > { %v6669_v18 = vadd.f32 1e-05, %v6668_v7 }
 0x7de   : > { %15832 = vrsqrt.f32 %v6669_v18 }
 0x7e8   : > { %v15833_v14 = vpop.eup %15832 }
 0x7e9   : > { %v6671_v12 = vmul.f32 %v15833_v14, %v16756_v23  ;;  %v7826_v23 = vpop.f32.mrb[18].mxu1 }
 0x7ea   : > { %v14744_v25 = vpop.f32.mrb[19].mxu1  ;;  %v16872_v21 = vadd.f32 %v13698_v20, %v7826_v23 }
 0x7eb   : > { %v6678_v10 = vmul.f32 %v13693_v6, %v6671_v12 }
 0x7ed   : > { %v16834_v62 = vadd.f32 %v13694_v8, %v6678_v10 }
 0x7ef   : > { %v6698_v63 = vsel %vm926_vm1, %v16834_v62, 0 }
 0x7f0   : > { %v6769_v0 = vand.u32 4294901760, %v6698_v63 }
 0x7f2   : > { %v6770_v1 = vsub.f32 %v6698_v63, %v6769_v0 }
 0x7f4   : > { %v6771_v27 = vand.u32 4294901760, %v6770_v1 }
 0x7f6   : > { %v6772_v22 = vsub.f32 %v6770_v1, %v6771_v27 }
 0x7f8   : > { %v6773_v24 = vand.u32 4294901760, %v6772_v22 }
 0x7fa   : > { %14622 = vmatmul.mubr.f32.vlgmr.msra.gmra.mrb[16].mxu0 %v6773_v24 }
 0x7fb   : > { %15347 = vmatpush3.bf16.msra.mxu0 %v15346_v56  ;;  %14632 = vmatprep.mubr.msk.f32.mxu0 %vm15880_vm0, %v15881_v9 }
 0x7fc   : > { %15348 = vmatprep.subr.bf16.mxu0 %v15879_v3 }
 0x7ff   : > { %15350 = vmatpush3.bf16.msra.mxu0 %v15349_v61 }
 0x800   : > { %15351 = vmatprep.subr.bf16.mxu0 %v15879_v3 }
 0x802   : > { %14633 = vmatmul.mubr.f32.vlgmr.msra.gmra.mrb[16].mxu0 %v6769_v0 }
 0x803   : > { %15353 = vmatpush3.bf16.msra.mxu0 %v15352_v2  ;;  %14643 = vmatprep.mubr.msk.f32.mxu0 %vm15880_vm0, %v15881_v9 }
 0x804   : > { %15354 = vmatprep.subr.bf16.mxu0 %v15879_v3 }
 0x807   : > { %15356 = vmatpush3.bf16.msra.mxu0 %v15355_v4 }
 0x808   : > { %15357 = vmatprep.subr.bf16.mxu0 %v15879_v3 }
 0x80a   : > { %14644 = vmatmul.mubr.f32.vlgmr.msra.gmra.mrb[16].mxu0 %v6770_v1 }
 0x80b   : > { %15359 = vmatpush3.bf16.msra.mxu0 %v16785_v46  ;;  %14654 = vmatprep.mubr.msk.f32.mxu0 %vm15880_vm0, %v15881_v9 }
 0x80c   : > { %15360 = vmatprep.subr.bf16.mxu0 %v15879_v3 }
 0x80f   : > { %15362 = vmatpush3.bf16.msra.mxu0 %v16796_v48 }
 0x810   : > { %15363 = vmatprep.subr.bf16.mxu0 %v15879_v3 }
 0x812   : > { %14655 = vmatmul.mubr.f32.vlgmr.msra.gmra.mrb[16].mxu0 %v6771_v27 }
 0x813   : > { %15365 = vmatpush3.bf16.msra.mxu0 %v15364_v5  ;;  %14665 = vmatprep.mubr.msk.f32.mxu0 %vm15880_vm0, %v15881_v9 }
 0x814   : > { %15366 = vmatprep.subr.bf16.mxu0 %v15879_v3 }
 0x817   : > { %15368 = vmatpush3.bf16.msra.mxu0 %v15367_v11 }
 0x818   : > { %15369 = vmatprep.subr.bf16.mxu0 %v15879_v3 }
 0x81a   : > { %14666 = vmatmul.mubr.f32.vlgmr.msra.gmra.mrb[16].mxu0 %v6769_v0 }
 0x81b   : > { %15371 = vmatpush3.bf16.msra.mxu0 %v16785_v46  ;;  %14676 = vmatprep.mubr.msk.f32.mxu0 %vm15880_vm0, %v15881_v9 }
 0x81c   : > { %15372 = vmatprep.subr.bf16.mxu0 %v15879_v3 }
 0x81f   : > { %15374 = vmatpush3.bf16.msra.mxu0 %v16796_v48 }
 0x820   : > { %14745 = vmatprep.subr.mxu0 %v15881_v9 }
 0x822   : > { %14677 = vmatmul.mubr.f32.vlgmr.msra.gmra.mrb[16].mxu0 %v6769_v0 }
 0x823   : > { %14747 = vmatprep.mubr.msk.f32.mxu0 %vm15880_vm0, %v15881_v9 }
 0x8f5   : > { %v7181_v30 = vpop.f32.mrb[16].mxu0 }
 0x8f6   : > { %v15562_v19 = vadd.f32 %v13695_v26, %v7181_v30  ;;  %v14678_v13 = vpop.f32.mrb[17].mxu0 }
 0x8f8   : > { %7189 = vrot.lane.b32.xlu1 %v15562_v19, %s17592_s10  ;;  %7186 = vrot.lane.b32.xlu0 %v15562_v19, %s17593_s3 }
 0x8fc   : > { %7192 = vrot.lane.b32.xlu1 %v15562_v19, %s17594_s5  ;;  %7831 = vrot.lane.b32.xlu0 %v16872_v21, %s17593_s3 }
 0x900   : > { %7834 = vrot.lane.b32.xlu1 %v16872_v21, %s17592_s10  ;;  %7837 = vrot.lane.b32.xlu0 %v16872_v21, %s17594_s5 }
 0x96a   : > { %v7190_v31 = vpop.permute.xlu1 %7189  ;;  %v7187_v32 = vpop.permute.xlu0 %7186 }
 0x96b   : > { %v7195_v33 = vcombine.low %v15562_v19, %v7190_v31  ;;  %v7196_v34 = vcombine.high %v15562_v19, %v7190_v31 }
 0x96d   : > { %v7203_v40 = vrot.slane %v7195_v33, %v16287_v39  ;;  %v7210_v41 = vrot.slane %v7196_v34, %v16287_v39 }
 0x96e   : > { %v7193_v35 = vpop.permute.xlu1 %7192  ;;  %v7832_v36 = vpop.permute.xlu0 %7831 }
 0x96f   : > { %v7211_v37 = vcombine.low %v7187_v32, %v7193_v35  ;;  %v7212_v38 = vcombine.high %v7187_v32, %v7193_v35 }
 0x971   : > { %v7219_v42 = vrot.slane %v7211_v37, %v16287_v39  ;;  %v7226_v43 = vrot.slane %v7212_v38, %v16287_v39 }
 0x972   : > { %v7835_v44 = vpop.permute.xlu1 %7834  ;;  %v7838_v46 = vpop.permute.xlu0 %7837 }
 0x973   : > { %v7227_v47 = vcombine.low %v7203_v40, %v7219_v42  ;;  %v7228_v28 = vcombine.high %v7203_v40, %v7219_v42  ;;  %v7243_v15 = vcombine.low %v7210_v41, %v7226_v43  ;;  %v7244_v29 = vcombine.high %v7210_v41, %v7226_v43 }
 0x974   : > { %v7852_v48 = vcombine.low %v16872_v21, %v7835_v44  ;;  %v7853_v16 = vcombine.high %v16872_v21, %v7835_v44  ;;  %v7868_v49 = vcombine.low %v7832_v36, %v7838_v46  ;;  %v7869_v51 = vcombine.high %v7832_v36, %v7838_v46 }
 0x975   : > { %v7235_v50 = vrot.slane %v7227_v47, %v16289_v45  ;;  %v7242_v52 = vrot.slane %v7228_v28, %v16289_v45  ;;  %v7251_v53 = vrot.slane %v7243_v15, %v16289_v45  ;;  %v7258_v54 = vrot.slane %v7244_v29, %v16289_v45 }
 0x976   : > { %v7860_v55 = vrot.slane %v7852_v48, %v16287_v39  ;;  %v7867_v56 = vrot.slane %v7853_v16, %v16287_v39  ;;  %v7876_v57 = vrot.slane %v7868_v49, %v16287_v39  ;;  %v7883_v58 = vrot.slane %v7869_v51, %v16287_v39 }
 0x977   : > { %v7263_v59 = vcombine.low %v7235_v50, %v7242_v52  ;;  %v13696_v60 = vcombine.high %v7235_v50, %v7242_v52  ;;  %v7279_v61 = vcombine.low %v7251_v53, %v7258_v54  ;;  %v13697_v2 = vcombine.high %v7251_v53, %v7258_v54 }
 0x978   : > { %v7916_v4 = vcombine.low %v7860_v55, %v7876_v57  ;;  %v7917_v5 = vcombine.high %v7860_v55, %v7876_v57  ;;  %v7932_v11 = vcombine.low %v7867_v56, %v7883_v58  ;;  %v7933_v17 = vcombine.high %v7867_v56, %v7883_v58 }
 0x979   : > { %v16896_v7 = vrot.slane %v7263_v59, %v16287_v39  ;;  %v16899_v18 = vrot.slane %v13696_v60, %v16287_v39  ;;  %v16902_v14 = vrot.slane %v7279_v61, %v16287_v39  ;;  %v16905_v6 = vrot.slane %v13697_v2, %v16287_v39 }
 0x97a   : > { %v7924_v12 = vrot.slane %v7916_v4, %v16289_v45  ;;  %v7931_v8 = vrot.slane %v7917_v5, %v16289_v45  ;;  %v7940_v10 = vrot.slane %v7932_v11, %v16289_v45  ;;  %v7947_v63 = vrot.slane %v7933_v17, %v16289_v45 }
 0x97b   : > { %v7295_v0 = vcombine.low %v16896_v7, %v16899_v18  ;;  %v7311_v1 = vcombine.low %v16902_v14, %v16905_v6  ;;  %v7296_v61 = vcombine.high %v16896_v7, %v16899_v18  ;;  %v7312_v2 = vcombine.high %v16902_v14, %v16905_v6 }
 0x97c   : > { %v13699_v27 = vcombine.low %v7924_v12, %v7931_v8  ;;  %v13701_v22 = vcombine.high %v7924_v12, %v7931_v8  ;;  %v13703_v24 = vcombine.low %v7940_v10, %v7947_v63  ;;  %v13705_v23 = vcombine.high %v7940_v10, %v7947_v63 }
 0x97d   : > { %v7303_v25 = vrot.slane %v7295_v0, %v16289_v45  ;;  %v7319_v26 = vrot.slane %v7311_v1, %v16289_v45  ;;  %v7310_v11 = vrot.slane %v7296_v61, %v16289_v45  ;;  %v7326_v17 = vrot.slane %v7312_v2, %v16289_v45 }
 0x97e   : > { %v16918_v30 = vrot.slane %v13699_v27, %v16287_v39  ;;  %v16921_v19 = vrot.slane %v13701_v22, %v16287_v39  ;;  %v16924_v13 = vrot.slane %v13703_v24, %v16287_v39  ;;  %v16927_v20 = vrot.slane %v13705_v23, %v16287_v39 }
 0x97f   : > { %v7327_v31 = vcombine.low %v7303_v25, %v7319_v26  ;;  %v7328_v32 = vcombine.high %v7303_v25, %v7319_v26  ;;  %v7329_v14 = vcombine.low %v7310_v11, %v7326_v17  ;;  %v7330_v6 = vcombine.high %v7310_v11, %v7326_v17 }
 0x980   : > { %v8052_v33 = vcombine.low %v16918_v30, %v16921_v19  ;;  %v8084_v34 = vcombine.low %v16924_v13, %v16927_v20  ;;  %v8053_v4 = vcombine.high %v16918_v30, %v16921_v19  ;;  %v8085_v5 = vcombine.high %v16924_v13, %v16927_v20 }
 0x981   : > { %v8131_v35 = vsel %vm2354_vm2, %v7327_v31, 0  ;;  %v8583_v36 = vsel %vm2354_vm2, %v7328_v32, 0  ;;  %v9035_v10 = vsel %vm2354_vm2, %v7329_v14, 0  ;;  %v9487_v63 = vsel %vm2354_vm2, %v7330_v6, 0 }
 0x982   : > { %v8060_v37 = vrot.slane %v8052_v33, %v16289_v45  ;;  %v8092_v38 = vrot.slane %v8084_v34, %v16289_v45  ;;  %v16937_v40 = vand.u32 4294901760, %v8131_v35  ;;  %v16939_v41 = vand.u32 4294901760, %v8583_v36 }
 0x983   : > { %v8067_v7 = vrot.slane %v8053_v4, %v16289_v45  ;;  %v8099_v18 = vrot.slane %v8085_v5, %v16289_v45  ;;  %v16996_v27 = vand.u32 4294901760, %v9035_v10  ;;  %v16998_v22 = vand.u32 4294901760, %v9487_v63 }
 0x984   : > { %v8116_v42 = vcombine.low %v8060_v37, %v8092_v38  ;;  %v8117_v43 = vcombine.high %v8060_v37, %v8092_v38  ;;  %v8203_v44 = vsub.f32 %v8131_v35, %v16937_v40  ;;  %v8655_v46 = vsub.f32 %v8583_v36, %v16939_v41 }
 0x985   : > { %v8118_v12 = vcombine.low %v8067_v7, %v8099_v18  ;;  %v8119_v8 = vcombine.high %v8067_v7, %v8099_v18  ;;  %v9107_v25 = vsub.f32 %v9035_v10, %v16996_v27  ;;  %v9559_v26 = vsub.f32 %v9487_v63, %v16998_v22 }
 0x986   : > { %v8134_v47 = vsel %vm2354_vm2, %v8116_v42, 0  ;;  %v8586_v28 = vsel %vm2354_vm2, %v8117_v43, 0  ;;  %v8204_v15 = vand.u32 4294901760, %v8203_v44  ;;  %v8656_v29 = vand.u32 4294901760, %v8655_v46 }
 0x987   : > { %v16945_v48 = vand.u32 4294901760, %v8134_v47  ;;  %v16947_v16 = vand.u32 4294901760, %v8586_v28  ;;  %v9038_v0 = vsel %vm2354_vm2, %v8118_v12, 0  ;;  %v9490_v1 = vsel %vm2354_vm2, %v8119_v8, 0 }
 0x988   : > { %v8205_v49 = vsub.f32 %v8203_v44, %v8204_v15  ;;  %v8657_v51 = vsub.f32 %v8655_v46, %v8656_v29  ;;  %v17003_v24 = vand.u32 4294901760, %v9038_v0  ;;  %v17005_v23 = vand.u32 4294901760, %v9490_v1 }
 0x989   : > { %14746 = vmatpush3.xpose.msra.mxu0 %v16945_v48  ;;  %v8214_v50 = vsub.f32 %v8134_v47, %v16945_v48  ;;  %14776 = vmatpush3.xpose.msra.mxu1 %v16947_v16  ;;  %v8666_v52 = vsub.f32 %v8586_v28, %v16947_v16  ;;  %v9108_v13 = vand.u32 4294901760, %v9107_v25  ;;  %v9560_v20 = vand.u32 4294901760, %v9559_v26 }
 0x98a   : > { %v8206_v53 = vand.u32 4294901760, %v8205_v49  ;;  %v8658_v54 = vand.u32 4294901760, %v8657_v51  ;;  %14750 = vmatprep.subr.mxu0 %v15881_v9  ;;  %14780 = vmatprep.subr.mxu1 %v15881_v9  ;;  %v9118_v30 = vsub.f32 %v9038_v0, %v17003_v24  ;;  %v9570_v19 = vsub.f32 %v9490_v1, %v17005_v23 }
 0x98b   : > { %v8215_v55 = vand.u32 4294901760, %v8214_v50  ;;  %v8667_v56 = vand.u32 4294901760, %v8666_v52  ;;  %v9109_v33 = vsub.f32 %v9107_v25, %v9108_v13  ;;  %v9561_v34 = vsub.f32 %v9559_v26, %v9560_v20 }
 0x98c   : > { %14748 = vmatmul.mubr.f32.vlgmr.msra.gmra.mrb[18].mxu0 %v8206_v53  ;;  %14778 = vmatmul.mubr.f32.vlgmr.msra.gmra.mrb[20].mxu1 %v8658_v54  ;;  %v9119_v31 = vand.u32 4294901760, %v9118_v30  ;;  %v9571_v32 = vand.u32 4294901760, %v9570_v19 }
 0x98d   : > { %v8216_v57 = vsub.f32 %v8214_v50, %v8215_v55  ;;  %v8668_v58 = vsub.f32 %v8666_v52, %v8667_v56  ;;  %14752 = vmatprep.mubr.msk.f32.mxu0 %vm15880_vm0, %v15881_v9  ;;  %14782 = vmatprep.mubr.msk.f32.mxu1 %vm15880_vm0, %v15881_v9  ;;  %v9110_v37 = vand.u32 4294901760, %v9109_v33  ;;  %v9562_v38 = vand.u32 4294901760, %v9561_v34 }
 0x98e   : > { %v9120_v35 = vsub.f32 %v9118_v30, %v9119_v31  ;;  %v9572_v36 = vsub.f32 %v9570_v19, %v9571_v32 }
 0x98f   : > { %v8217_v59 = vand.u32 4294901760, %v8216_v57  ;;  %v8669_v60 = vand.u32 4294901760, %v8668_v58 }
 0x990   : > { %v9121_v42 = vand.u32 4294901760, %v9120_v35 }
 0x991   : > { %14751 = vmatpush3.xpose.msra.mxu0 %v8217_v59  ;;  %14781 = vmatpush3.xpose.msra.mxu1 %v8669_v60 }
 0x992   : > { %14755 = vmatprep.subr.mxu0 %v15881_v9  ;;  %14785 = vmatprep.subr.mxu1 %v15881_v9 }
 0x994   : > { %14753 = vmatmul.mubr.f32.vlgmr.msra.gmra.mrb[18].mxu0 %v16937_v40  ;;  %14783 = vmatmul.mubr.f32.vlgmr.msra.gmra.mrb[20].mxu1 %v16939_v41 }
 0x995   : > { %14756 = vmatpush3.xpose.msra.mxu0 %v8214_v50  ;;  %14786 = vmatpush3.xpose.msra.mxu1 %v8666_v52 }
 0x996   : > { %14757 = vmatprep.mubr.msk.f32.mxu0 %vm15880_vm0, %v15881_v9  ;;  %14760 = vmatprep.subr.mxu0 %v15881_v9 }
 0x997   : > { %14787 = vmatprep.mubr.msk.f32.mxu1 %vm15880_vm0, %v15881_v9  ;;  %14790 = vmatprep.subr.mxu1 %v15881_v9 }
 0x99c   : > { %14758 = vmatmul.mubr.f32.vlgmr.msra.gmra.mrb[18].mxu0 %v8203_v44  ;;  %14788 = vmatmul.mubr.f32.vlgmr.msra.gmra.mrb[20].mxu1 %v8655_v46 }
 0x99d   : > { %14761 = vmatpush3.xpose.msra.mxu0 %v16945_v48  ;;  %14791 = vmatpush3.xpose.msra.mxu1 %v16947_v16 }
 0x99e   : > { %14762 = vmatprep.mubr.msk.f32.mxu0 %vm15880_vm0, %v15881_v9  ;;  %14765 = vmatprep.subr.mxu0 %v15881_v9 }
 0x99f   : > { %14792 = vmatprep.mubr.msk.f32.mxu1 %vm15880_vm0, %v15881_v9  ;;  %14795 = vmatprep.subr.mxu1 %v15881_v9 }
 0x9a4   : > { %14763 = vmatmul.mubr.f32.vlgmr.msra.gmra.mrb[18].mxu0 %v8204_v15  ;;  %14793 = vmatmul.mubr.f32.vlgmr.msra.gmra.mrb[20].mxu1 %v8656_v29 }
 0x9a5   : > { %14766 = vmatpush3.xpose.msra.mxu0 %v8215_v55  ;;  %14796 = vmatpush3.xpose.msra.mxu1 %v8667_v56 }
 0x9a6   : > { %14767 = vmatprep.mubr.msk.f32.mxu0 %vm15880_vm0, %v15881_v9  ;;  %14770 = vmatprep.subr.mxu0 %v15881_v9 }
 0x9a7   : > { %14797 = vmatprep.mubr.msk.f32.mxu1 %vm15880_vm0, %v15881_v9  ;;  %14800 = vmatprep.subr.mxu1 %v15881_v9 }
 0x9ac   : > { %14768 = vmatmul.mubr.f32.vlgmr.msra.gmra.mrb[18].mxu0 %v16937_v40  ;;  %14798 = vmatmul.mubr.f32.vlgmr.msra.gmra.mrb[20].mxu1 %v16939_v41 }
 0x9ad   : > { %14771 = vmatpush3.xpose.msra.mxu0 %v16945_v48  ;;  %14801 = vmatpush3.xpose.msra.mxu1 %v16947_v16 }
 0x9ae   : > { %14772 = vmatprep.mubr.msk.f32.mxu0 %vm15880_vm0, %v15881_v9  ;;  %14802 = vmatprep.mubr.msk.f32.mxu1 %vm15880_vm0, %v15881_v9 }
 0x9af   : > { %14805 = vmatprep.subr.mxu0 %v15881_v9  ;;  %14835 = vmatprep.subr.mxu1 %v15881_v9 }
 0x9b4   : > { %14773 = vmatmul.mubr.f32.vlgmr.msra.gmra.mrb[18].mxu0 %v16937_v40  ;;  %14803 = vmatmul.mubr.f32.vlgmr.msra.gmra.mrb[20].mxu1 %v16939_v41  ;;  %v9573_v40 = vand.u32 4294901760, %v9572_v36  ;;  %v13707_v41 = vld [vmem:[%s902_s0] ss:$0 sm:$0xff]  ;;  %s17600_s0 = smov 16  }
 0x9b5   : > { %14806 = vmatpush3.xpose.msra.mxu0 %v17003_v24  ;;  %14836 = vmatpush3.xpose.msra.mxu1 %v17005_v23 }
 0x9b6   : > { %14807 = vmatprep.mubr.msk.f32.mxu0 %vm15880_vm0, %v15881_v9  ;;  %14810 = vmatprep.subr.mxu0 %v15881_v9 }
 0x9b7   : > { %14837 = vmatprep.mubr.msk.f32.mxu1 %vm15880_vm0, %v15881_v9  ;;  %14840 = vmatprep.subr.mxu1 %v15881_v9 }
 0x9b8   : > { %14808 = vmatmul.mubr.f32.vlgmr.msra.gmra.mrb[20].mxu0 %v9110_v37  ;;  %14838 = vmatmul.mubr.f32.vlgmr.msra.gmra.mrb[22].mxu1 %v9562_v38 }
 0x9b9   : > { %14811 = vmatpush3.xpose.msra.mxu0 %v9121_v42  ;;  %14841 = vmatpush3.xpose.msra.mxu1 %v9573_v40 }
 0x9ba   : > { %14812 = vmatprep.mubr.msk.f32.mxu0 %vm15880_vm0, %v15881_v9  ;;  %14815 = vmatprep.subr.mxu0 %v15881_v9 }
 0x9bb   : > { %14842 = vmatprep.mubr.msk.f32.mxu1 %vm15880_vm0, %v15881_v9  ;;  %14845 = vmatprep.subr.mxu1 %v15881_v9 }
 0x9c0   : > { %14813 = vmatmul.mubr.f32.vlgmr.msra.gmra.mrb[20].mxu0 %v16996_v27  ;;  %14843 = vmatmul.mubr.f32.vlgmr.msra.gmra.mrb[22].mxu1 %v16998_v22 }
 0x9c1   : > { %14816 = vmatpush3.xpose.msra.mxu0 %v9118_v30  ;;  %14846 = vmatpush3.xpose.msra.mxu1 %v9570_v19 }
 0x9c2   : > { %14817 = vmatprep.mubr.msk.f32.mxu0 %vm15880_vm0, %v15881_v9  ;;  %14820 = vmatprep.subr.mxu0 %v15881_v9 }
 0x9c3   : > { %14847 = vmatprep.mubr.msk.f32.mxu1 %vm15880_vm0, %v15881_v9  ;;  %14850 = vmatprep.subr.mxu1 %v15881_v9 }
 0x9c8   : > { %14818 = vmatmul.mubr.f32.vlgmr.msra.gmra.mrb[20].mxu0 %v9107_v25  ;;  %14848 = vmatmul.mubr.f32.vlgmr.msra.gmra.mrb[22].mxu1 %v9559_v26 }
 0x9c9   : > { %14821 = vmatpush3.xpose.msra.mxu0 %v17003_v24  ;;  %14851 = vmatpush3.xpose.msra.mxu1 %v17005_v23 }
 0x9ca   : > { %14822 = vmatprep.mubr.msk.f32.mxu0 %vm15880_vm0, %v15881_v9  ;;  %14825 = vmatprep.subr.mxu0 %v15881_v9 }
 0x9cb   : > { %14852 = vmatprep.mubr.msk.f32.mxu1 %vm15880_vm0, %v15881_v9  ;;  %14855 = vmatprep.subr.mxu1 %v15881_v9 }
 0x9d0   : > { %14823 = vmatmul.mubr.f32.vlgmr.msra.gmra.mrb[20].mxu0 %v9108_v13  ;;  %14853 = vmatmul.mubr.f32.vlgmr.msra.gmra.mrb[22].mxu1 %v9560_v20 }
 0x9d1   : > { %14826 = vmatpush3.xpose.msra.mxu0 %v9119_v31  ;;  %14856 = vmatpush3.xpose.msra.mxu1 %v9571_v32 }
 0x9d2   : > { %14827 = vmatprep.mubr.msk.f32.mxu0 %vm15880_vm0, %v15881_v9  ;;  %14830 = vmatprep.subr.mxu0 %v15881_v9 }
 0x9d3   : > { %14857 = vmatprep.mubr.msk.f32.mxu1 %vm15880_vm0, %v15881_v9  ;;  %14860 = vmatprep.subr.mxu1 %v15881_v9 }
 0x9d8   : > { %14828 = vmatmul.mubr.f32.vlgmr.msra.gmra.mrb[20].mxu0 %v16996_v27  ;;  %14858 = vmatmul.mubr.f32.vlgmr.msra.gmra.mrb[22].mxu1 %v16998_v22 }
 0x9d9   : > { %14831 = vmatpush3.xpose.msra.mxu0 %v17003_v24  ;;  %14861 = vmatpush3.xpose.msra.mxu1 %v17005_v23 }
 0x9da   : > { %14832 = vmatprep.mubr.msk.f32.mxu0 %vm15880_vm0, %v15881_v9  ;;  %14862 = vmatprep.mubr.msk.f32.mxu1 %vm15880_vm0, %v15881_v9 }
 0x9db   : > { %14865 = vmatprep.subr.mxu0 %v15881_v9  ;;  %14895 = vmatprep.subr.mxu1 %v15881_v9 }
 0x9e0   : > { %14833 = vmatmul.mubr.f32.vlgmr.msra.gmra.mrb[20].mxu0 %v16996_v27  ;;  %14863 = vmatmul.mubr.f32.vlgmr.msra.gmra.mrb[22].mxu1 %v16998_v22 }
 0x9e1   : > { %14867 = vmatprep.mubr.msk.f32.mxu0 %vm15880_vm0, %v15881_v9  ;;  %14897 = vmatprep.mubr.msk.f32.mxu1 %vm15880_vm0, %v15881_v9 }
 0xa87   : > { %v8578_v43 = vpop.f32.mrb[18].mxu0  ;;  %v9030_v44 = vpop.f32.mrb[20].mxu1 }
 0xa88   : > { %v15564_v46 = vadd.f32 %v13707_v41, %v8578_v43  ;;  %v15565_v47 = vadd.f32 %v13707_v41, %v9030_v44  ;;  %v14774_v28 = vpop.f32.mrb[19].mxu0  ;;  %v14804_v15 = vpop.f32.mrb[21].mxu1 }
 0xa8a   : > { %v9938_v29 = vsel %vm2354_vm2, %v15564_v46, -inf  ;;  %v9941_v48 = vsel %vm2354_vm2, %v15565_v47, -inf }
 0xa8b   : > { %9939 = vmax.xlane.f32.xlu1 %v9938_v29  ;;  %9942 = vmax.xlane.f32.xlu0 %v9941_v48 }
 0xab3   : > { %v9482_v16 = vpop.f32.mrb[20].mxu0  ;;  %v9934_v49 = vpop.f32.mrb[22].mxu1 }
 0xab4   : > { %v15566_v51 = vadd.f32 %v13707_v41, %v9482_v16  ;;  %v15567_v50 = vadd.f32 %v13707_v41, %v9934_v49  ;;  %v14834_v52 = vpop.f32.mrb[21].mxu0  ;;  %v14864_v53 = vpop.f32.mrb[23].mxu1 }
 0xab6   : > { %v9944_v54 = vsel %vm2354_vm2, %v15566_v51, -inf  ;;  %v9947_v55 = vsel %vm2354_vm2, %v15567_v50, -inf }
 0xab7   : > { %9945 = vmax.xlane.f32.xlu0 %v9944_v54  ;;  %9948 = vmax.xlane.f32.xlu1 %v9947_v55 }
 0xac8   : > { %7843 = vrot.lane.b32.xlu1 %v16872_v21, %s17596_s7  ;;  %s17601_s7 = smov 8  }
 0xacd   : > { %7840 = vrot.lane.b32.xlu0 %v16872_v21, %s17597_s4  ;;  %s17602_s4 = smov 24  }
 0xb18   : > { %v9940_v56 = vpop.xlane.xlu1 %9939  ;;  %v9943_v57 = vpop.xlane.xlu0 %9942 }
 0xb19   : > { %v9950_v58 = vsub.f32 %v15564_v46, %v9940_v56  ;;  %v9951_v59 = vsub.f32 %v15565_v47, %v9943_v57 }
 0xb1b   : > { %v9954_v60 = vmul.f32 1.442695, %v9950_v58  ;;  %v9956_v61 = vmul.f32 1.442695, %v9951_v59 }
 0xb1d   : > { %15834 = vpow2.f32 %v9954_v60 }
 0xb1e   : > { %15836 = vpow2.f32 %v9956_v61 }
 0xb27   : > { %v15835_v2 = vpop.eup %15834 }
 0xb28   : > { %v15837_v4 = vpop.eup %15836  ;;  %v9962_v5 = vsel %vm2354_vm2, %v15835_v2, 0.0 }
 0xb29   : > { %9963 = vadd.xlane.f32.xlu0 %v9962_v5  ;;  %v9965_v11 = vsel %vm2354_vm2, %v15837_v4, 0.0 }
 0xb2a   : > { %9966 = vadd.xlane.f32.xlu1 %v9965_v11 }
 0xb3b   : > { %7846 = vrot.lane.b32.xlu1 %v16872_v21, %s17598_s30 }
 0xb3f   : > { %7849 = vrot.lane.b32.xlu0 %v16872_v21, %s17599_s29  ;;  %s909_s29 = scalar_lea.vmem %s17546_s27, %s16102_s1 }
 0xb44   : > { %v9949_v17 = vpop.xlane.xlu1 %9948  ;;  %v9946_v7 = vpop.xlane.xlu0 %9945 }
 0xb45   : > { %v9953_v18 = vsub.f32 %v15567_v50, %v9949_v17  ;;  %v9952_v14 = vsub.f32 %v15566_v51, %v9946_v7 }
 0xb47   : > { %v9960_v6 = vmul.f32 1.442695, %v9953_v18  ;;  %v9958_v12 = vmul.f32 1.442695, %v9952_v14 }
 0xb48   : > { %v7841_v21 = vpop.permute.xlu0 %7840  ;;  %v7844_v1 = vpop.permute.xlu1 %7843 }
 0xb49   : > { %15838 = vpow2.f32 %v9960_v6 }
 0xb4a   : > { %15840 = vpow2.f32 %v9958_v12 }
 0xb53   : > { %v17093_v8 = vpop.eup %15838 }
 0xb54   : > { %v17095_v10 = vpop.eup %15840  ;;  %v9971_v63 = vsel %vm2354_vm2, %v17093_v8, 0.0 }
 0xb55   : > { %v9968_v0 = vsel %vm2354_vm2, %v17095_v10, 0.0 }
 0xb5e   : > { %9972 = vadd.xlane.f32.xlu0 %v9971_v63 }
 0xb5f   : > { %9969 = vadd.xlane.f32.xlu1 %v9968_v0 }
 0xbb6   : > { %v9964_v27 = vpop.xlane.xlu0 %9963 }
 0xbb7   : > { %15842 = vrcp.f32 %v9964_v27  ;;  %v9967_v22 = vpop.xlane.xlu1 %9966 }
 0xbb8   : > { %15844 = vrcp.f32 %v9967_v22 }
 0xbba   : > { %v7850_v24 = vpop.permute.xlu0 %7849 }
 0xbbb   : > { %v7900_v23 = vcombine.low %v7844_v1, %v7850_v24  ;;  %v7901_v25 = vcombine.high %v7844_v1, %v7850_v24  ;;  %v7847_v26 = vpop.permute.xlu1 %7846 }
 0xbbc   : > { %v7884_v30 = vcombine.low %v7841_v21, %v7847_v26  ;;  %v7885_v19 = vcombine.high %v7841_v21, %v7847_v26 }
 0xbbd   : > { %v7908_v13 = vrot.slane %v7900_v23, %v16287_v39  ;;  %v7915_v20 = vrot.slane %v7901_v25, %v16287_v39 }
 0xbbe   : > { %v7892_v31 = vrot.slane %v7884_v30, %v16287_v39  ;;  %v7899_v32 = vrot.slane %v7885_v19, %v16287_v39 }
 0xbc0   : > { %v7948_v33 = vcombine.low %v7892_v31, %v7908_v13  ;;  %v7949_v34 = vcombine.high %v7892_v31, %v7908_v13  ;;  %v7964_v35 = vcombine.low %v7899_v32, %v7915_v20  ;;  %v7965_v36 = vcombine.high %v7899_v32, %v7915_v20 }
 0xbc1   : > { %v15843_v37 = vpop.eup %15842 }
 0xbc2   : > { %v15845_v38 = vpop.eup %15844  ;;  %v9978_v42 = vmul.f32 %v15843_v37, %v15835_v2  ;;  %v7956_v40 = vrot.slane %v7948_v33, %v16289_v45  ;;  %v7963_v41 = vrot.slane %v7949_v34, %v16289_v45  ;;  %v7972_v43 = vrot.slane %v7964_v35, %v16289_v45 }
 0xbc3   : > { %v9979_v44 = vmul.f32 %v15845_v38, %v15837_v4  ;;  %v7979_v46 = vrot.slane %v7965_v36, %v16289_v45 }
 0xbc4   : > { %v13700_v47 = vcombine.low %v7956_v40, %v7963_v41  ;;  %v13702_v28 = vcombine.high %v7956_v40, %v7963_v41  ;;  %v9983_v15 = vsel %vm2354_vm2, %v9978_v42, 0 }
 0xbc5   : > { %v13704_v29 = vcombine.low %v7972_v43, %v7979_v46  ;;  %v13706_v48 = vcombine.high %v7972_v43, %v7979_v46  ;;  %v17110_v16 = vand.u32 4294901760, %v9983_v15  ;;  %v10432_v49 = vsel %vm2354_vm2, %v9979_v44, 0 }
 0xbc6   : > { %v17114_v51 = vrot.slane %v13700_v47, %v16287_v39  ;;  %v17117_v50 = vrot.slane %v13702_v28, %v16287_v39  ;;  %v17119_v52 = vand.u32 4294901760, %v10432_v49 }
 0xbc7   : > { %v8035_v53 = vrot.slane %v13704_v29, %v16287_v39  ;;  %v8051_v54 = vrot.slane %v13706_v48, %v16287_v39  ;;  %v10052_v55 = vsub.f32 %v9983_v15, %v17110_v16 }
 0xbc8   : > { %v8068_v56 = vcombine.low %v17114_v51, %v17117_v50  ;;  %v10501_v57 = vsub.f32 %v10432_v49, %v17119_v52  ;;  %v8069_v23 = vcombine.high %v17114_v51, %v17117_v50 }
 0xbc9   : > { %v8100_v58 = vcombine.low %v8035_v53, %v8051_v54  ;;  %v10053_v59 = vand.u32 4294901760, %v10052_v55  ;;  %v8101_v25 = vcombine.high %v8035_v53, %v8051_v54 }
 0xbca   : > { %v8076_v60 = vrot.slane %v8068_v56, %v16289_v45  ;;  %v10502_v61 = vand.u32 4294901760, %v10501_v57  ;;  %v8083_v30 = vrot.slane %v8069_v23, %v16289_v45 }
 0xbcb   : > { %v8108_v2 = vrot.slane %v8100_v58, %v16289_v45  ;;  %v10054_v4 = vsub.f32 %v10052_v55, %v10053_v59  ;;  %v8115_v19 = vrot.slane %v8101_v25, %v16289_v45  ;;  %v11929_v58 = vld [vmem:[%s17536_s17] sm:$0xff] }
 0xbcc   : > { %v10503_v5 = vsub.f32 %v10501_v57, %v10502_v61 }
 0xbcd   : > { %v8120_v11 = vcombine.low %v8076_v60, %v8108_v2  ;;  %v8121_v17 = vcombine.high %v8076_v60, %v8108_v2  ;;  %v10055_v7 = vand.u32 4294901760, %v10054_v4  ;;  %v8123_v20 = vcombine.high %v8083_v30, %v8115_v19 }
 0xbce   : > { %v10504_v18 = vand.u32 4294901760, %v10503_v5  ;;  %v8122_v31 = vcombine.low %v8083_v30, %v8115_v19  ;;  %v11944_v60 = vand.u32 4294901760, %v11929_v58 }
 0xbcf   : > { %v9986_v14 = vand.u32 4294901760, %v8120_v11  ;;  %v10435_v6 = vand.u32 4294901760, %v8121_v17  ;;  %v17163_v32 = vand.u32 4294901760, %v8123_v20 }
 0xbd0   : > { %v17167_v33 = vand.u32 4294901760, %v8122_v31  ;;  %v17233_v4 = vsub.f32 %v11929_v58, %v11944_v60 }
 0xbd1   : > { %14866 = vmatpush3.msra.mxu0 %v9986_v14  ;;  %v10063_v12 = vsub.f32 %v8120_v11, %v9986_v14  ;;  %14896 = vmatpush3.msra.mxu1 %v10435_v6  ;;  %v10512_v63 = vsub.f32 %v8121_v17, %v10435_v6  ;;  %v11410_v37 = vsub.f32 %v8123_v20, %v17163_v32 }
 0xbd2   : > { %14868 = vmatmul.mubr.f32.vlgmr.msra.gmra.mrb[22].mxu0 %v10055_v7  ;;  %14898 = vmatmul.mubr.f32.vlgmr.msra.gmra.mrb[24].mxu1 %v10504_v18  ;;  %v10961_v42 = vsub.f32 %v8122_v31, %v17167_v33 }
 0xbd3   : > { %14870 = vmatprep.subr.mxu0 %v15881_v9  ;;  %14900 = vmatprep.subr.mxu1 %v15881_v9  ;;  %v10064_v0 = vand.u32 4294901760, %v10063_v12  ;;  %v10513_v21 = vand.u32 4294901760, %v10512_v63  ;;  %v11411_v46 = vand.u32 4294901760, %v11410_v37 }
 0xbd4   : > { %14872 = vmatprep.mubr.msk.f32.mxu0 %vm15880_vm0, %v15881_v9  ;;  %14902 = vmatprep.mubr.msk.f32.mxu1 %vm15880_vm0, %v15881_v9 }
 0xbd5   : > { %v10065_v1 = vsub.f32 %v10063_v12, %v10064_v0  ;;  %v10514_v27 = vsub.f32 %v10512_v63, %v10513_v21  ;;  %v11412_v29 = vsub.f32 %v11410_v37, %v11411_v46 }
 0xbd7   : > { %v10066_v22 = vand.u32 4294901760, %v10065_v1  ;;  %v10515_v24 = vand.u32 4294901760, %v10514_v27 }
 0xbd9   : > { %14871 = vmatpush3.msra.mxu0 %v10066_v22  ;;  %14901 = vmatpush3.msra.mxu1 %v10515_v24 }
 0xbda   : > { %14873 = vmatmul.mubr.f32.vlgmr.msra.gmra.mrb[22].mxu0 %v17110_v16  ;;  %14875 = vmatprep.subr.mxu0 %v15881_v9 }
 0xbdb   : > { %14903 = vmatmul.mubr.f32.vlgmr.msra.gmra.mrb[24].mxu1 %v17119_v52  ;;  %14905 = vmatprep.subr.mxu1 %v15881_v9 }
 0xbdc   : > { %14876 = vmatpush3.msra.mxu0 %v10063_v12  ;;  %14906 = vmatpush3.msra.mxu1 %v10512_v63 }
 0xbdd   : > { %14877 = vmatprep.mubr.msk.f32.mxu0 %vm15880_vm0, %v15881_v9  ;;  %14880 = vmatprep.subr.mxu0 %v15881_v9 }
 0xbde   : > { %14907 = vmatprep.mubr.msk.f32.mxu1 %vm15880_vm0, %v15881_v9  ;;  %14910 = vmatprep.subr.mxu1 %v15881_v9 }
 0xbe2   : > { %14878 = vmatmul.mubr.f32.vlgmr.msra.gmra.mrb[22].mxu0 %v10052_v55 }
 0xbe3   : > { %14881 = vmatpush3.msra.mxu0 %v9986_v14  ;;  %14908 = vmatmul.mubr.f32.vlgmr.msra.gmra.mrb[24].mxu1 %v10501_v57 }
 0xbe4   : > { %14911 = vmatpush3.msra.mxu1 %v10435_v6  ;;  %14882 = vmatprep.mubr.msk.f32.mxu0 %vm15880_vm0, %v15881_v9 }
 0xbe5   : > { %14885 = vmatprep.subr.mxu0 %v15881_v9  ;;  %14912 = vmatprep.mubr.msk.f32.mxu1 %vm15880_vm0, %v15881_v9 }
 0xbe6   : > { %14915 = vmatprep.subr.mxu1 %v15881_v9 }
 0xbea   : > { %14883 = vmatmul.mubr.f32.vlgmr.msra.gmra.mrb[22].mxu0 %v10053_v59  ;;  %v11930_v59 = vld [vmem:[%s17536_s17 + $0x8] sm:$0xff] }
 0xbeb   : > { %14886 = vmatpush3.msra.mxu0 %v10064_v0  ;;  %14913 = vmatmul.mubr.f32.vlgmr.msra.gmra.mrb[24].mxu1 %v10502_v61  ;;  %v9973_v26 = vpop.xlane.xlu0 %9972  ;;  %v11947_v61 = vand.u32 4294901760, %v11930_v59 }
 0xbec   : > { %14916 = vmatpush3.msra.mxu1 %v10513_v21  ;;  %15846 = vrcp.f32 %v9973_v26  ;;  %v9970_v13 = vpop.xlane.xlu1 %9969  ;;  %14887 = vmatprep.mubr.msk.f32.mxu0 %vm15880_vm0, %v15881_v9  ;;  %v12025_v21 = vand.u32 4294901760, %v17233_v4 }
 0xbed   : > { %15848 = vrcp.f32 %v9970_v13  ;;  %14890 = vmatprep.subr.mxu0 %v15881_v9  ;;  %14917 = vmatprep.mubr.msk.f32.mxu1 %vm15880_vm0, %v15881_v9  ;;  %v17235_v5 = vsub.f32 %v11930_v59, %v11947_v61 }
 0xbee   : > { %14920 = vmatprep.subr.mxu1 %v15881_v9  ;;  %v12026_v30 = vsub.f32 %v17233_v4, %v12025_v21 }
 0xbef   : > { %v12032_v1 = vand.u32 4294901760, %v17235_v5 }
 0xbf1   : > { %v12033_v19 = vsub.f32 %v17235_v5, %v12032_v1 }
 0xbf2   : > { %14888 = vmatmul.mubr.f32.vlgmr.msra.gmra.mrb[22].mxu0 %v17110_v16 }
 0xbf3   : > { %14891 = vmatpush3.msra.mxu0 %v9986_v14  ;;  %14918 = vmatmul.mubr.f32.vlgmr.msra.gmra.mrb[24].mxu1 %v17119_v52  ;;  %v11931_v14 = vld [vmem:[%s17536_s17 + $0x10] sm:$0xff] }
 0xbf4   : > { %14921 = vmatpush3.msra.mxu1 %v10435_v6  ;;  %14892 = vmatprep.mubr.msk.f32.mxu0 %vm15880_vm0, %v15881_v9  ;;  %v11932_v6 = vld [vmem:[%s17536_s17 + $0x18] sm:$0xff]  ;;  %v11950_v24 = vand.u32 4294901760, %v11931_v14 }
 0xbf5   : > { %14922 = vmatprep.mubr.msk.f32.mxu1 %vm15880_vm0, %v15881_v9  ;;  %14925 = vmatprep.subr.mxu0 %v15881_v9  ;;  %v11953_v23 = vand.u32 4294901760, %v11932_v6 }
 0xbf6   : > { %v15847_v34 = vpop.eup %15846  ;;  %14955 = vmatprep.subr.mxu1 %v15881_v9  ;;  %v17255_v13 = vsub.f32 %v11931_v14, %v11950_v24 }
 0xbf7   : > { %v15849_v35 = vpop.eup %15848  ;;  %v9981_v36 = vmul.f32 %v15847_v34, %v17093_v8  ;;  %v10962_v8 = vand.u32 4294901760, %v10961_v42  ;;  %v17257_v20 = vsub.f32 %v11932_v6, %v11953_v23 }
 0xbf8   : > { %v9980_v38 = vmul.f32 %v15849_v35, %v17095_v10  ;;  %v12027_v35 = vand.u32 4294901760, %v12026_v30 }
 0xbf9   : > { %v11330_v40 = vsel %vm2354_vm2, %v9981_v36, 0  ;;  %v10963_v48 = vsub.f32 %v10961_v42, %v10962_v8  ;;  %v12034_v36 = vand.u32 4294901760, %v12033_v19  ;;  %v13710_v19 = vld [vmem:[%s17537_s18] ss:$0 sm:$0xff] }
 0xbfa   : > { %14893 = vmatmul.mubr.f32.vlgmr.msra.gmra.mrb[22].mxu0 %v17110_v16  ;;  %v10881_v41 = vsel %vm2354_vm2, %v9980_v38, 0  ;;  %v11398_v43 = vand.u32 4294901760, %v11330_v40  ;;  %v12046_v38 = vand.u32 4294901760, %v17257_v20 }
 0xbfb   : > { %14923 = vmatmul.mubr.f32.vlgmr.msra.gmra.mrb[24].mxu1 %v17119_v52  ;;  %14926 = vmatpush3.msra.mxu0 %v17167_v33  ;;  %v10949_v44 = vand.u32 4294901760, %v10881_v41  ;;  %v11413_v52 = vand.u32 4294901760, %v11412_v29  ;;  %v10964_v53 = vand.u32 4294901760, %v10963_v48 }
 0xbfc   : > { %14956 = vmatpush3.msra.mxu1 %v17163_v32  ;;  %14927 = vmatprep.mubr.msk.f32.mxu0 %vm15880_vm0, %v15881_v9  ;;  %v11399_v10 = vsub.f32 %v11330_v40, %v11398_v43 }
 0xbfd   : > { %14930 = vmatprep.subr.mxu0 %v15881_v9  ;;  %14957 = vmatprep.mubr.msk.f32.mxu1 %vm15880_vm0, %v15881_v9  ;;  %v10950_v47 = vsub.f32 %v10881_v41, %v10949_v44 }
 0xbfe   : > { %14960 = vmatprep.subr.mxu1 %v15881_v9  ;;  %v11400_v28 = vand.u32 4294901760, %v11399_v10 }
 0xbff   : > { %v10951_v15 = vand.u32 4294901760, %v10950_v47 }
 0xc00   : > { %v11401_v16 = vsub.f32 %v11399_v10, %v11400_v28 }
 0xc01   : > { %v10952_v49 = vsub.f32 %v10950_v47, %v10951_v15 }
 0xc02   : > { %v11402_v51 = vand.u32 4294901760, %v11401_v16 }
 0xc03   : > { %v10953_v50 = vand.u32 4294901760, %v10952_v49 }
 0xc04   : > { %14958 = vmatmul.mubr.f32.vlgmr.msra.gmra.mrb[26].mxu1 %v11402_v51 }
 0xc05   : > { %14928 = vmatmul.mubr.f32.vlgmr.msra.gmra.mrb[24].mxu0 %v10953_v50  ;;  %14961 = vmatpush3.msra.mxu1 %v11413_v52 }
 0xc06   : > { %14931 = vmatpush3.msra.mxu0 %v10964_v53  ;;  %14932 = vmatprep.mubr.msk.f32.mxu0 %vm15880_vm0, %v15881_v9 }
 0xc07   : > { %14935 = vmatprep.subr.mxu0 %v15881_v9  ;;  %14962 = vmatprep.mubr.msk.f32.mxu1 %vm15880_vm0, %v15881_v9 }
 0xc08   : > { %14965 = vmatprep.subr.mxu1 %v15881_v9 }
 0xc0c   : > { %14963 = vmatmul.mubr.f32.vlgmr.msra.gmra.mrb[26].mxu1 %v11398_v43 }
 0xc0d   : > { %14933 = vmatmul.mubr.f32.vlgmr.msra.gmra.mrb[24].mxu0 %v10949_v44  ;;  %14966 = vmatpush3.msra.mxu1 %v11410_v37  ;;  %v12039_v37 = vand.u32 4294901760, %v17255_v13 }
 0xc0e   : > { %14936 = vmatpush3.msra.mxu0 %v10961_v42  ;;  %14937 = vmatprep.mubr.msk.f32.mxu0 %vm15880_vm0, %v15881_v9 }
 0xc0f   : > { %14940 = vmatprep.subr.mxu0 %v15881_v9  ;;  %14967 = vmatprep.mubr.msk.f32.mxu1 %vm15880_vm0, %v15881_v9  ;;  %v15439_v6 = vpack.c.bf16 %v12046_v38, %v12039_v37 }
 0xc10   : > { %14970 = vmatprep.subr.mxu1 %v15881_v9 }
 0xc14   : > { %14968 = vmatmul.mubr.f32.vlgmr.msra.gmra.mrb[26].mxu1 %v11399_v10 }
 0xc15   : > { %14938 = vmatmul.mubr.f32.vlgmr.msra.gmra.mrb[24].mxu0 %v10950_v47  ;;  %14971 = vmatpush3.msra.mxu1 %v17163_v32 }
 0xc16   : > { %14941 = vmatpush3.msra.mxu0 %v17167_v33  ;;  %14942 = vmatprep.mubr.msk.f32.mxu0 %vm15880_vm0, %v15881_v9 }
 0xc17   : > { %14945 = vmatprep.subr.mxu0 %v15881_v9  ;;  %14972 = vmatprep.mubr.msk.f32.mxu1 %vm15880_vm0, %v15881_v9 }
 0xc18   : > { %14975 = vmatprep.subr.mxu1 %v15881_v9 }
 0xc1c   : > { %14973 = vmatmul.mubr.f32.vlgmr.msra.gmra.mrb[26].mxu1 %v11400_v28 }
 0xc1d   : > { %14943 = vmatmul.mubr.f32.vlgmr.msra.gmra.mrb[24].mxu0 %v10951_v15  ;;  %14976 = vmatpush3.msra.mxu1 %v11411_v46  ;;  %v12040_v46 = vsub.f32 %v17255_v13, %v12039_v37 }
 0xc1e   : > { %14946 = vmatpush3.msra.mxu0 %v10962_v8  ;;  %14947 = vmatprep.mubr.msk.f32.mxu0 %vm15880_vm0, %v15881_v9  ;;  %v12047_v8 = vsub.f32 %v17257_v20, %v12046_v38 }
 0xc1f   : > { %14950 = vmatprep.subr.mxu0 %v15881_v9  ;;  %14977 = vmatprep.mubr.msk.f32.mxu1 %vm15880_vm0, %v15881_v9  ;;  %v12041_v29 = vand.u32 4294901760, %v12040_v46 }
 0xc20   : > { %14980 = vmatprep.subr.mxu1 %v15881_v9  ;;  %v12048_v48 = vand.u32 4294901760, %v12047_v8 }
 0xc22   : > { %v15421_v52 = vpack.c.bf16 %v12048_v48, %v12041_v29 }
 0xc24   : > { %14978 = vmatmul.mubr.f32.vlgmr.msra.gmra.mrb[26].mxu1 %v11398_v43 }
 0xc25   : > { %14948 = vmatmul.mubr.f32.vlgmr.msra.gmra.mrb[24].mxu0 %v10949_v44  ;;  %14981 = vmatpush3.msra.mxu1 %v17163_v32 }
 0xc26   : > { %14951 = vmatpush3.msra.mxu0 %v17167_v33  ;;  %14952 = vmatprep.mubr.msk.f32.mxu0 %vm15880_vm0, %v15881_v9 }
 0xc27   : > { %14982 = vmatprep.mubr.msk.f32.mxu1 %vm15880_vm0, %v15881_v9  ;;  %15417 = vmatprep.subr.bf16.mxu1 %v15879_v3 }
 0xc28   : > { %15411 = vmatprep.subr.bf16.mxu0 %v15879_v3 }
 0xc2c   : > { %14983 = vmatmul.mubr.f32.vlgmr.msra.gmra.mrb[26].mxu1 %v11398_v43 }
 0xc2d   : > { %14953 = vmatmul.mubr.f32.vlgmr.msra.gmra.mrb[24].mxu0 %v10949_v44  ;;  %15004 = vmatprep.mubr.msk.f32.mxu1 %vm15880_vm0, %v15881_v9  ;;  %v15418_v44 = vpack.c.bf16 %v12034_v36, %v12027_v35 }
 0xc2e   : > { %14993 = vmatprep.mubr.msk.f32.mxu0 %vm15880_vm0, %v15881_v9 }
 0xc2f   : > { %15419 = vmatpush3.bf16.msra.mxu1 %v15418_v44 }
 0xc30   : > { %15420 = vmatprep.subr.bf16.mxu1 %v15879_v3 }
 0xc33   : > { %15422 = vmatpush3.bf16.msra.mxu1 %v15421_v52  ;;  %v12461_v52 = vld [vmem:[%s17540_s21 + $0x18] sm:$0xff] }
 0xc34   : > { %15429 = vmatprep.subr.bf16.mxu1 %v15879_v3 }
 0xccd   : > { %v10427_v54 = vpop.f32.mrb[22].mxu0 }
 0xcce   : > { %v10876_v55 = vpop.f32.mrb[24].mxu1  ;;  %v14894_v56 = vpop.f32.mrb[23].mxu0 }
 0xccf   : > { %v14924_v57 = vpop.f32.mrb[25].mxu1 }
 0xcd0   : > { %v15412_v57 = vpack.c.bf16 %v11947_v61, %v11944_v60  ;;  %v15427_v60 = vpack.c.bf16 %v17257_v20, %v17255_v13  ;;  %v15436_v61 = vpack.c.bf16 %v12032_v1, %v12025_v21 }
 0xcd2   : > { %15413 = vmatpush3.bf16.msra.mxu0 %v15412_v57 }
 0xcd3   : > { %15414 = vmatprep.subr.bf16.mxu0 %v15879_v3 }
 0xcff   : > { %v11774_v2 = vpop.f32.mrb[26].mxu1 }
 0xd00   : > { %v11325_v11 = vpop.f32.mrb[24].mxu0  ;;  %v11794_v17 = vcombine.low %v10876_v55, %v11774_v2  ;;  %v11795_v7 = vcombine.high %v10876_v55, %v11774_v2  ;;  %v14984_v18 = vpop.f32.mrb[27].mxu1 }
 0xd01   : > { %v11778_v12 = vcombine.low %v10427_v54, %v11325_v11  ;;  %v11779_v63 = vcombine.high %v10427_v54, %v11325_v11  ;;  %v14954_v0 = vpop.f32.mrb[25].mxu0 }
 0xd02   : > { %v11802_v27 = vrot.slane %v11794_v17, %v16287_v39  ;;  %v11809_v22 = vrot.slane %v11795_v7, %v16287_v39 }
 0xd03   : > { %v11786_v25 = vrot.slane %v11778_v12, %v16287_v39  ;;  %v11793_v26 = vrot.slane %v11779_v63, %v16287_v39 }
 0xd05   : > { %v11810_v31 = vcombine.low %v11786_v25, %v11802_v27  ;;  %v11811_v32 = vcombine.high %v11786_v25, %v11802_v27  ;;  %v11826_v33 = vcombine.low %v11793_v26, %v11809_v22  ;;  %v11827_v34 = vcombine.high %v11793_v26, %v11809_v22 }
 0xd07   : > { %v11818_v42 = vrot.slane %v11810_v31, %v16289_v45  ;;  %v11825_v40 = vrot.slane %v11811_v32, %v16289_v45  ;;  %v11834_v41 = vrot.slane %v11826_v33, %v16289_v45  ;;  %v11841_v43 = vrot.slane %v11827_v34, %v16289_v45 }
 0xd09   : > { %v11846_v10 = vcombine.low %v11818_v42, %v11825_v40  ;;  %v13708_v47 = vcombine.high %v11818_v42, %v11825_v40  ;;  %v11862_v28 = vcombine.low %v11834_v41, %v11841_v43  ;;  %v13709_v15 = vcombine.high %v11834_v41, %v11841_v43 }
 0xd0b   : > { %v11853_v16 = vrot.slane %v11846_v10, %v16287_v39  ;;  %v11861_v49 = vrot.slane %v13708_v47, %v16287_v39  ;;  %v11869_v51 = vrot.slane %v11862_v28, %v16287_v39  ;;  %v11877_v50 = vrot.slane %v13709_v15, %v16287_v39 }
 0xd0c   : > { %v15415_v39 = vpack.c.bf16 %v11953_v23, %v11950_v24 }
 0xd0d   : > { %v11879_v53 = vcombine.high %v11853_v16, %v11861_v49  ;;  %v11895_v54 = vcombine.high %v11869_v51, %v11877_v50  ;;  %v11878_v55 = vcombine.low %v11853_v16, %v11861_v49  ;;  %v11894_v56 = vcombine.low %v11869_v51, %v11877_v50  ;;  %v12458_v16 = vld [vmem:[%s17540_s21] sm:$0xff]  ;;  %v12459_v49 = vld [vmem:[%s17540_s21 + $0x8] sm:$0xff] }
 0xd0e   : > { %15416 = vmatpush3.bf16.msra.mxu0 %v15415_v39  ;;  %v12473_v51 = vand.u32 4294901760, %v12458_v16  ;;  %v12476_v50 = vand.u32 4294901760, %v12459_v49 }
 0xd0f   : > { %v11893_v58 = vrot.slane %v11879_v53, %v16289_v45  ;;  %v11909_v59 = vrot.slane %v11895_v54, %v16289_v45  ;;  %v11886_v2 = vrot.slane %v11878_v55, %v16289_v45  ;;  %v11902_v11 = vrot.slane %v11894_v56, %v16289_v45  ;;  %15423 = vmatprep.subr.bf16.mxu0 %v15879_v3 }
 0xd10   : > { %v15424_v45 = vpack.c.bf16 %v17235_v5, %v17233_v4  ;;  %v12482_v54 = vand.u32 4294901760, %v12461_v52  ;;  %v17332_v55 = vpack.c.bf16 %v12476_v50, %v12473_v51  ;;  %v12553_v56 = vsub.f32 %v12458_v16, %v12473_v51  ;;  %v12965_v51 = vld [vmem:[%s17542_s23 + $0x38] sm:$0xff] }
 0xd11   : > { %v11912_v17 = vcombine.low %v11893_v58, %v11909_v59  ;;  %v11911_v7 = vcombine.high %v11886_v2, %v11902_v11  ;;  %v11913_v18 = vcombine.high %v11893_v58, %v11909_v59  ;;  %v11910_v14 = vcombine.low %v11886_v2, %v11902_v11 }
 0xd12   : > { %v12574_v59 = vsub.f32 %v12461_v52, %v12482_v54  ;;  %v12554_v11 = vand.u32 4294901760, %v12553_v56  ;;  %v12999_v52 = vand.u32 4294901760, %v12965_v51 }
 0xd13   : > { %11919 = vrot.lane.b32.xlu1 %v11912_v17, %s17600_s0  ;;  %11915 = vrot.lane.b32.xlu0 %v11911_v7, %s17601_s7 }
 0xd14   : > { %v12555_v17 = vsub.f32 %v12553_v56, %v12554_v11 }
 0xd17   : > { %11923 = vrot.lane.b32.xlu1 %v11913_v18, %s17602_s4  ;;  %v12556_v18 = vand.u32 4294901760, %v12555_v17 }
 0xd85   : > { %v11920_v12 = vpop.permute.xlu1 %11919  ;;  %v11916_v63 = vpop.permute.xlu0 %11915 }
 0xd86   : > { %v11926_v0 = vsel %vm2354_vm2, %v11910_v14, %v11916_v63 }
 0xd87   : > { %v11927_v22 = vsel %vm6152_vm3, %v11926_v0, %v11920_v12 }
 0xd89   : > { %v11924_v27 = vpop.permute.xlu1 %11923 }
 0xd8a   : > { %v11928_v24 = vsel %vm6154_vm4, %v11927_v22, %v11924_v27 }
 0xd8b   : > { %v11941_v23 = vsel %vm926_vm1, %v11928_v24, 0 }
 0xd8c   : > { %v12012_v25 = vand.u32 4294901760, %v11941_v23 }
 0xd8e   : > { %v12013_v26 = vsub.f32 %v11941_v23, %v12012_v25  ;;  %15005 = vmatmul.mubr.f32.vlgmr.msra.gmra.mrb[28].mxu1 %v12012_v25 }
 0xd8f   : > { %15431 = vmatpush3.bf16.msra.mxu1 %v15412_v57  ;;  %15026 = vmatprep.mubr.msk.f32.mxu1 %vm15880_vm0, %v15881_v9 }
 0xd90   : > { %15432 = vmatprep.subr.bf16.mxu1 %v15879_v3  ;;  %v12014_v4 = vand.u32 4294901760, %v12013_v26 }
 0xd92   : > { %v12015_v5 = vsub.f32 %v12013_v26, %v12014_v4 }
 0xd93   : > { %15434 = vmatpush3.bf16.msra.mxu1 %v15415_v39 }
 0xd94   : > { %15441 = vmatprep.subr.bf16.mxu1 %v15879_v3  ;;  %v12016_v21 = vand.u32 4294901760, %v12015_v5 }
 0xd96   : > { %15027 = vmatmul.mubr.f32.vlgmr.msra.gmra.mrb[30].mxu1 %v12014_v4  ;;  %14994 = vmatmul.mubr.f32.vlgmr.msra.gmra.mrb[26].mxu0 %v12016_v21  ;;  %v12959_v4 = vld [vmem:[%s17542_s23 + $0x8] sm:$0xff] }
 0xd97   : > { %15425 = vmatpush3.bf16.msra.mxu0 %v15424_v45  ;;  %15443 = vmatpush3.bf16.msra.mxu1 %v15412_v57  ;;  %v12560_v57 = vsub.f32 %v12459_v49, %v12476_v50  ;;  %v12981_v21 = vand.u32 4294901760, %v12959_v4 }
 0xd98   : > { %15426 = vmatprep.subr.bf16.mxu0 %v15879_v3  ;;  %15444 = vmatprep.subr.bf16.mxu1 %v15879_v3 }
 0xd99   : > { %15015 = vmatprep.mubr.msk.f32.mxu0 %vm15880_vm0, %v15881_v9  ;;  %15048 = vmatprep.mubr.msk.f32.mxu1 %vm15880_vm0, %v15881_v9  ;;  %v15460_v22 = vpack.c.bf16 %v12560_v57, %v12553_v56 }
 0xd9b   : > { %15428 = vmatpush3.bf16.msra.mxu0 %v15427_v60  ;;  %15446 = vmatpush3.bf16.msra.mxu1 %v15415_v39  ;;  %v12561_v39 = vand.u32 4294901760, %v12560_v57  ;;  %v12575_v60 = vand.u32 4294901760, %v12574_v59 }
 0xd9c   : > { %15435 = vmatprep.subr.bf16.mxu0 %v15879_v3  ;;  %15483 = vmatprep.subr.bf16.mxu1 %v15879_v3 }
 0xd9d   : > { %v12562_v7 = vsub.f32 %v12560_v57, %v12561_v39  ;;  %v12576_v12 = vsub.f32 %v12574_v59, %v12575_v60  ;;  %v15472_v23 = vpack.c.bf16 %v12561_v39, %v12554_v11 }
 0xd9e   : > { %15016 = vmatmul.mubr.f32.vlgmr.msra.gmra.mrb[28].mxu0 %v12013_v26  ;;  %15049 = vmatmul.mubr.f32.vlgmr.msra.gmra.mrb[32].mxu1 %v12012_v25  ;;  %v12958_v26 = vld [vmem:[%s17542_s23] sm:$0xff] }
 0xd9f   : > { %15437 = vmatpush3.bf16.msra.mxu0 %v15436_v61  ;;  %15037 = vmatprep.mubr.msk.f32.mxu0 %vm15880_vm0, %v15881_v9  ;;  %v12563_v14 = vand.u32 4294901760, %v12562_v7  ;;  %v12577_v0 = vand.u32 4294901760, %v12576_v12  ;;  %v12978_v5 = vand.u32 4294901760, %v12958_v26 }
 0xda0   : > { %15438 = vmatprep.subr.bf16.mxu0 %v15879_v3  ;;  %15133 = vmatprep.mubr.msk.f32.mxu1 %vm15880_vm0, %v15881_v9 }
 0xda1   : > { %v15454_v61 = vpack.c.bf16 %v12563_v14, %v12556_v18 }
 0xda3   : > { %15440 = vmatpush3.bf16.msra.mxu0 %v15439_v6 }
 0xda4   : > { %15447 = vmatprep.subr.bf16.mxu0 %v15879_v3 }
 0xda6   : > { %15038 = vmatmul.mubr.f32.vlgmr.msra.gmra.mrb[30].mxu0 %v12012_v25 }
 0xda7   : > { %15059 = vmatprep.mubr.msk.f32.mxu0 %vm15880_vm0, %v15881_v9  ;;  %15449 = vmatpush3.bf16.msra.mxu0 %v17332_v55 }
 0xda8   : > { %15450 = vmatprep.subr.bf16.mxu0 %v15879_v3 }
 0xe61   : > { %v12109_v1 = vpop.f32.mrb[28].mxu1 }
 0xe62   : > { %v15006_v30 = vpop.f32.mrb[29].mxu1 }
 0xe63   : > { %v17348_v30 = vsub.f32 %v12958_v26, %v12978_v5 }
 0xe69   : > { %v12266_v13 = vpop.f32.mrb[30].mxu1  ;;  %v12018_v20 = vpop.f32.mrb[26].mxu0 }
 0xe6a   : > { %v12019_v31 = vadd.f32 %v13710_v19, %v12018_v20  ;;  %v15028_v32 = vpop.f32.mrb[31].mxu1  ;;  %v14995_v33 = vpop.f32.mrb[27].mxu0  ;;  %v17350_v19 = vsub.f32 %v12959_v4, %v12981_v21 }
 0xe6b   : > { %v13711_v33 = vld [vmem:[%s17538_s19] ss:$0 sm:$0xff] }
 0xe6c   : > { %v12110_v34 = vadd.f32 %v12109_v1, %v12019_v31  ;;  %v17346_v1 = vpack.c.bf16 %v12981_v21, %v12978_v5  ;;  %v13070_v11 = vand.u32 4294901760, %v17350_v19 }
 0xe6e   : > { %15485 = vmatpush3.bf16.msra.mxu1 %v17346_v1  ;;  %v13071_v17 = vsub.f32 %v17350_v19, %v13070_v11 }
 0xe6f   : > { %15486 = vmatprep.subr.bf16.mxu1 %v15879_v3 }
 0xe70   : > { %v13072_v18 = vand.u32 4294901760, %v13071_v17 }
 0xe71   : > { %v12189_v35 = vpop.f32.mrb[28].mxu0  ;;  %v12424_v36 = vpop.f32.mrb[32].mxu1 }
 0xe72   : > { %v12190_v37 = vadd.f32 %v12189_v35, %v12110_v34  ;;  %v15017_v38 = vpop.f32.mrb[29].mxu0  ;;  %v15050_v42 = vpop.f32.mrb[33].mxu1  ;;  %v13712_v35 = vld [vmem:[%s17539_s20] ss:$0 sm:$0xff] }
 0xe74   : > { %v12267_v40 = vadd.f32 %v12266_v13, %v12190_v37 }
 0xe79   : > { %v12349_v41 = vpop.f32.mrb[30].mxu0 }
 0xe7a   : > { %v12350_v43 = vadd.f32 %v12349_v41, %v12267_v40  ;;  %v15039_v44 = vpop.f32.mrb[31].mxu0 }
 0xe7c   : > { %v12425_v46 = vadd.f32 %v12424_v36, %v12350_v43 }
 0xe7e   : > { %v12428_v8 = vadd.f32 %v12425_v46, %v16834_v62  ;;  %v12460_v62 = vld [vmem:[%s17540_s21 + $0x10] sm:$0xff] }
 0xe7f   : > { %v12479_v53 = vand.u32 4294901760, %v12460_v62  ;;  %v12960_v46 = vld [vmem:[%s17542_s23 + $0x10] sm:$0xff] }
 0xe80   : > { %v12431_v10 = vsel %vm926_vm1, %v12428_v8, 0.0 }
 0xe81   : > { %12432 = vadd.xlane.f32.xlu0 %v12431_v10  ;;  %v12567_v58 = vsub.f32 %v12460_v62, %v12479_v53  ;;  %v17335_v2 = vpack.c.bf16 %v12482_v54, %v12479_v53  ;;  %v12984_v10 = vand.u32 4294901760, %v12960_v46  ;;  %v12964_v62 = vld [vmem:[%s17542_s23 + $0x30] sm:$0xff] }
 0xe82   : > { %v12996_v50 = vand.u32 4294901760, %v12964_v62 }
 0xe83   : > { %15452 = vmatpush3.bf16.msra.mxu0 %v17335_v2  ;;  %v12568_v45 = vand.u32 4294901760, %v12567_v58  ;;  %v15463_v24 = vpack.c.bf16 %v12574_v59, %v12567_v58  ;;  %v17422_v53 = vsub.f32 %v12960_v46, %v12984_v10  ;;  %v17434_v59 = vsub.f32 %v12965_v51, %v12999_v52  ;;  %v13714_v51 = vld [vmem:[%s17543_s24] ss:$0 sm:$0xff] }
 0xe84   : > { %15453 = vmatprep.subr.bf16.mxu0 %v15879_v3  ;;  %v17430_v57 = vpack.c.bf16 %v12999_v52, %v12996_v50 }
 0xe85   : > { %v12569_v6 = vsub.f32 %v12567_v58, %v12568_v45  ;;  %v15475_v25 = vpack.c.bf16 %v12575_v60, %v12568_v45  ;;  %v17432_v58 = vsub.f32 %v12964_v62, %v12996_v50  ;;  %v13077_v14 = vand.u32 4294901760, %v17422_v53 }
 0xe86   : > { %v13112_v5 = vand.u32 4294901760, %v17434_v59 }
 0xe87   : > { %v12570_v63 = vand.u32 4294901760, %v12569_v6  ;;  %v13105_v4 = vand.u32 4294901760, %v17432_v58 }
 0xe89   : > { %v15457_v27 = vpack.c.bf16 %v12577_v0, %v12570_v63 }
 0xf0e   : > { %v12433_v47 = vpop.xlane.xlu0 %12432 }
 0xf0f   : > { %v12434_v28 = vmul.f32 0.03125, %v12433_v47 }
 0xf11   : > { %v12435_v15 = vsub.f32 %v12428_v8, %v12434_v28  ;;  %v12961_v8 = vld [vmem:[%s17542_s23 + $0x18] sm:$0xff] }
 0xf12   : > { %v12987_v47 = vand.u32 4294901760, %v12961_v8 }
 0xf13   : > { %v12436_v29 = vmul.f32 %v12435_v15, %v12435_v15 }
 0xf14   : > { %v17398_v28 = vpack.c.bf16 %v12987_v47, %v12984_v10  ;;  %v17424_v54 = vsub.f32 %v12961_v8, %v12987_v47 }
 0xf15   : > { %v12437_v48 = vsel %vm926_vm1, %v12436_v29, 0.0  ;;  %v12963_v29 = vld [vmem:[%s17542_s23 + $0x28] sm:$0xff] }
 0xf16   : > { %12438 = vadd.xlane.f32.xlu1 %v12437_v48  ;;  %15488 = vmatpush3.bf16.msra.mxu1 %v17398_v28  ;;  %v12993_v16 = vand.u32 4294901760, %v12963_v29  ;;  %v13084_v45 = vand.u32 4294901760, %v17424_v54 }
 0xf17   : > { %15489 = vmatprep.subr.bf16.mxu1 %v15879_v3 }
 0xf18   : > { %v17428_v56 = vsub.f32 %v12963_v29, %v12993_v16  ;;  %v13085_v6 = vsub.f32 %v17424_v54, %v13084_v45 }
 0xf1a   : > { %v13086_v63 = vand.u32 4294901760, %v13085_v6 }
 0xfa3   : > { %v12439_v13 = vpop.xlane.xlu1 %12438 }
 0xfa4   : > { %v12440_v20 = vmul.f32 0.03125, %v12439_v13  ;;  %v13106_v13 = vsub.f32 %v17432_v58, %v13105_v4 }
 0xfa6   : > { %v12441_v31 = vadd.f32 1e-05, %v12440_v20  ;;  %v13113_v20 = vsub.f32 %v17434_v59, %v13112_v5 }
 0xfa8   : > { %15850 = vrsqrt.f32 %v12441_v31  ;;  %v13107_v31 = vand.u32 4294901760, %v13106_v13 }
 0xfb2   : > { %v15851_v32 = vpop.eup %15850 }
 0xfb3   : > { %v12443_v34 = vmul.f32 %v15851_v32, %v12435_v15  ;;  %v12962_v15 = vld [vmem:[%s17542_s23 + $0x20] sm:$0xff]  ;;  %v13114_v32 = vand.u32 4294901760, %v13113_v20 }
 0xfb4   : > { %v12990_v48 = vand.u32 4294901760, %v12962_v15 }
 0xfb5   : > { %v12450_v36 = vmul.f32 %v13711_v33, %v12443_v34  ;;  %v15505_v33 = vpack.c.bf16 %v13114_v32, %v13107_v31  ;;  %v15508_v34 = vpack.c.bf16 %v17350_v19, %v17348_v30 }
 0xfb6   : > { %v17410_v49 = vpack.c.bf16 %v12993_v16, %v12990_v48 }
 0xfb7   : > { %v17360_v37 = vadd.f32 %v13712_v35, %v12450_v36  ;;  %v15511_v35 = vpack.c.bf16 %v17424_v54, %v17422_v53 }
 0xfb8   : > { %15491 = vmatpush3.bf16.msra.mxu1 %v17410_v49 }
 0xfb9   : > { %v12470_v38 = vsel %vm926_vm1, %v17360_v37, 0  ;;  %15492 = vmatprep.subr.bf16.mxu1 %v15879_v3 }
 0xfba   : > { %v12541_v42 = vand.u32 4294901760, %v12470_v38 }
 0xfbc   : > { %v12542_v40 = vsub.f32 %v12470_v38, %v12541_v42  ;;  %15494 = vmatpush3.bf16.msra.mxu1 %v17430_v57  ;;  %v15517_v38 = vpack.c.bf16 %v17434_v59, %v17432_v58 }
 0xfbd   : > { %15495 = vmatprep.subr.bf16.mxu1 %v15879_v3 }
 0xfbe   : > { %v12543_v41 = vand.u32 4294901760, %v12542_v40 }
 0xfc0   : > { %v12544_v43 = vsub.f32 %v12542_v40, %v12543_v41 }
 0xfc2   : > { %v12545_v44 = vand.u32 4294901760, %v12544_v43  ;;  %v15541_v43 = vpack.c.bf16 %v13112_v5, %v13105_v4 }
 0xfc4   : > { %15060 = vmatmul.mubr.f32.vlgmr.msra.gmra.mrb[32].mxu0 %v12545_v44  ;;  %v13713_v44 = vld [vmem:[%s17541_s22] ss:$0 sm:$0xff] }
 0xfc5   : > { %15455 = vmatpush3.bf16.msra.mxu0 %v15454_v61  ;;  %15070 = vmatprep.mubr.msk.f32.mxu0 %vm15880_vm0, %v15881_v9  ;;  %v13078_v61 = vsub.f32 %v17422_v53, %v13077_v14 }
 0xfc6   : > { %15456 = vmatprep.subr.bf16.mxu0 %v15879_v3 }
 0xfc7   : > { %v13079_v12 = vand.u32 4294901760, %v13078_v61 }
 0xfc9   : > { %15458 = vmatpush3.bf16.msra.mxu0 %v15457_v27  ;;  %v13098_v27 = vand.u32 4294901760, %v17428_v56 }
 0xfca   : > { %15459 = vmatprep.subr.bf16.mxu0 %v15879_v3 }
 0xfcc   : > { %15071 = vmatmul.mubr.f32.vlgmr.msra.gmra.mrb[32].mxu0 %v12541_v42 }
 0xfcd   : > { %15461 = vmatpush3.bf16.msra.mxu0 %v15460_v22  ;;  %15081 = vmatprep.mubr.msk.f32.mxu0 %vm15880_vm0, %v15881_v9  ;;  %v15499_v22 = vpack.c.bf16 %v13086_v63, %v13079_v12 }
 0xfce   : > { %15462 = vmatprep.subr.bf16.mxu0 %v15879_v3 }
 0xfd1   : > { %15464 = vmatpush3.bf16.msra.mxu0 %v15463_v24 }
 0xfd2   : > { %15465 = vmatprep.subr.bf16.mxu0 %v15879_v3 }
 0xfd4   : > { %15082 = vmatmul.mubr.f32.vlgmr.msra.gmra.mrb[32].mxu0 %v12542_v40  ;;  %v15535_v40 = vpack.c.bf16 %v13084_v45, %v13077_v14 }
 0xfd5   : > { %15467 = vmatpush3.bf16.msra.mxu0 %v17332_v55  ;;  %15092 = vmatprep.mubr.msk.f32.mxu0 %vm15880_vm0, %v15881_v9 }
 0xfd6   : > { %15468 = vmatprep.subr.bf16.mxu0 %v15879_v3 }
 0xfd9   : > { %15470 = vmatpush3.bf16.msra.mxu0 %v17335_v2 }
 0xfda   : > { %15471 = vmatprep.subr.bf16.mxu0 %v15879_v3 }
 0xfdc   : > { %15093 = vmatmul.mubr.f32.vlgmr.msra.gmra.mrb[32].mxu0 %v12543_v41 }
 0xfdd   : > { %15473 = vmatpush3.bf16.msra.mxu0 %v15472_v23  ;;  %15103 = vmatprep.mubr.msk.f32.mxu0 %vm15880_vm0, %v15881_v9  ;;  %v13099_v23 = vsub.f32 %v17428_v56, %v13098_v27 }
 0xfde   : > { %15474 = vmatprep.subr.bf16.mxu0 %v15879_v3 }
 0xfdf   : > { %v13100_v26 = vand.u32 4294901760, %v13099_v23 }
 0xfe1   : > { %15476 = vmatpush3.bf16.msra.mxu0 %v15475_v25 }
 0xfe2   : > { %15477 = vmatprep.subr.bf16.mxu0 %v15879_v3 }
 0xfe4   : > { %15104 = vmatmul.mubr.f32.vlgmr.msra.gmra.mrb[32].mxu0 %v12541_v42 }
 0xfe5   : > { %15479 = vmatpush3.bf16.msra.mxu0 %v17332_v55  ;;  %15114 = vmatprep.mubr.msk.f32.mxu0 %vm15880_vm0, %v15881_v9  ;;  %v17426_v55 = vsub.f32 %v12962_v15, %v12990_v48 }
 0xfe6   : > { %15480 = vmatprep.subr.bf16.mxu0 %v15879_v3 }
 0xfe7   : > { %v13091_v0 = vand.u32 4294901760, %v17426_v55  ;;  %v15514_v36 = vpack.c.bf16 %v17428_v56, %v17426_v55 }
 0xfe9   : > { %15482 = vmatpush3.bf16.msra.mxu0 %v17335_v2  ;;  %v13063_v2 = vand.u32 4294901760, %v17348_v30  ;;  %v13092_v24 = vsub.f32 %v17426_v55, %v13091_v0  ;;  %v15538_v41 = vpack.c.bf16 %v13098_v27, %v13091_v0 }
 0xfea   : > { %15519 = vmatprep.subr.bf16.mxu0 %v15879_v3 }
 0xfeb   : > { %v13064_v39 = vsub.f32 %v17348_v30, %v13063_v2  ;;  %v13093_v25 = vand.u32 4294901760, %v13092_v24 }
 0xfec   : > { %15115 = vmatmul.mubr.f32.vlgmr.msra.gmra.mrb[32].mxu0 %v12541_v42  ;;  %v15532_v42 = vpack.c.bf16 %v13070_v11, %v13063_v2 }
 0xfed   : > { %15521 = vmatpush3.bf16.msra.mxu0 %v17346_v1  ;;  %15190 = vmatprep.mubr.msk.f32.mxu0 %vm15880_vm0, %v15881_v9  ;;  %v13065_v7 = vand.u32 4294901760, %v13064_v39  ;;  %v15502_v21 = vpack.c.bf16 %v13100_v26, %v13093_v25 }
 0xfee   : > { %15522 = vmatprep.subr.bf16.mxu0 %v15879_v3 }
 0xfef   : > { %v15496_v60 = vpack.c.bf16 %v13072_v18, %v13065_v7 }
 0xff1   : > { %15524 = vmatpush3.bf16.msra.mxu0 %v17398_v28 }
 0xff2   : > { %15525 = vmatprep.subr.bf16.mxu0 %v15879_v3 }
 0xff5   : > { %15527 = vmatpush3.bf16.msra.mxu0 %v17410_v49 }
 0xff6   : > { %15528 = vmatprep.subr.bf16.mxu0 %v15879_v3 }
 0xff9   : > { %15530 = vmatpush3.bf16.msra.mxu0 %v17430_v57 }
 0xffa   : > { %15543 = vmatprep.subr.bf16.mxu0 %v15879_v3 }
0x10bf   : > { %v12953_v46 = vpop.f32.mrb[32].mxu0 }
0x10c0   : > { %v15568_v8 = vadd.f32 %v13713_v44, %v12953_v46  ;;  %v15116_v30 = vpop.f32.mrb[33].mxu0 }
0x10c2   : > { %v12957_v19 = vmax.f32 %v15568_v8, 0.0 }
0x10c4   : > { %v12975_v10 = vsel %vm12973_vm5, %v12957_v19, 0 }
0x10c5   : > { %v13050_v47 = vand.u32 4294901760, %v12975_v10 }
0x10c7   : > { %v13051_v15 = vsub.f32 %v12975_v10, %v13050_v47 }
0x10c9   : > { %v13052_v29 = vand.u32 4294901760, %v13051_v15 }
0x10cb   : > { %15191 = vmatmul.mubr.f32.vlgmr.msra.gmra.mrb[34].mxu0 %v13052_v29  ;;  %v13053_v48 = vsub.f32 %v13051_v15, %v13052_v29 }
0x10cc   : > { %15545 = vmatpush3.bf16.msra.mxu0 %v17346_v1  ;;  %15228 = vmatprep.mubr.msk.f32.mxu0 %vm15880_vm0, %v15881_v9 }
0x10cd   : > { %15546 = vmatprep.subr.bf16.mxu0 %v15879_v3  ;;  %v13054_v16 = vand.u32 4294901760, %v13053_v48 }
0x10cf   : > { %15134 = vmatmul.mubr.f32.vlgmr.msra.gmra.mrb[34].mxu1 %v13054_v16 }
0x10d0   : > { %15497 = vmatpush3.bf16.msra.mxu1 %v15496_v60  ;;  %15548 = vmatpush3.bf16.msra.mxu0 %v17398_v28 }
0x10d1   : > { %15498 = vmatprep.subr.bf16.mxu1 %v15879_v3  ;;  %15549 = vmatprep.subr.bf16.mxu0 %v15879_v3 }
0x10d2   : > { %15152 = vmatprep.mubr.msk.f32.mxu1 %vm15880_vm0, %v15881_v9 }
0x10d4   : > { %15500 = vmatpush3.bf16.msra.mxu1 %v15499_v22  ;;  %15551 = vmatpush3.bf16.msra.mxu0 %v17410_v49  ;;  %v13716_v22 = vld [vmem:[%s17545_s26] ss:$0 sm:$0xff] }
0x10d5   : > { %15501 = vmatprep.subr.bf16.mxu1 %v15879_v3  ;;  %15552 = vmatprep.subr.bf16.mxu0 %v15879_v3 }
0x10d8   : > { %15503 = vmatpush3.bf16.msra.mxu1 %v15502_v21  ;;  %15554 = vmatpush3.bf16.msra.mxu0 %v17430_v57 }
0x10d9   : > { %15504 = vmatprep.subr.bf16.mxu1 %v15879_v3 }
0x10db   : > { %15229 = vmatmul.mubr.f32.vlgmr.msra.gmra.mrb[36].mxu0 %v13050_v47 }
0x10dc   : > { %15506 = vmatpush3.bf16.msra.mxu1 %v15505_v33 }
0x10dd   : > { %15507 = vmatprep.subr.bf16.mxu1 %v15879_v3 }
0x10df   : > { %15153 = vmatmul.mubr.f32.vlgmr.msra.gmra.mrb[36].mxu1 %v13050_v47 }
0x10e0   : > { %15509 = vmatpush3.bf16.msra.mxu1 %v15508_v34  ;;  %15171 = vmatprep.mubr.msk.f32.mxu1 %vm15880_vm0, %v15881_v9 }
0x10e1   : > { %15510 = vmatprep.subr.bf16.mxu1 %v15879_v3 }
0x10e4   : > { %15512 = vmatpush3.bf16.msra.mxu1 %v15511_v35 }
0x10e5   : > { %15513 = vmatprep.subr.bf16.mxu1 %v15879_v3 }
0x10e8   : > { %15515 = vmatpush3.bf16.msra.mxu1 %v15514_v36 }
0x10e9   : > { %15516 = vmatprep.subr.bf16.mxu1 %v15879_v3 }
0x10ec   : > { %15518 = vmatpush3.bf16.msra.mxu1 %v15517_v38 }
0x10ed   : > { %15531 = vmatprep.subr.bf16.mxu1 %v15879_v3 }
0x10ef   : > { %15172 = vmatmul.mubr.f32.vlgmr.msra.gmra.mrb[38].mxu1 %v13051_v15 }
0x10f0   : > { %15533 = vmatpush3.bf16.msra.mxu1 %v15532_v42  ;;  %15209 = vmatprep.mubr.msk.f32.mxu1 %vm15880_vm0, %v15881_v9 }
0x10f1   : > { %15534 = vmatprep.subr.bf16.mxu1 %v15879_v3 }
0x10f4   : > { %15536 = vmatpush3.bf16.msra.mxu1 %v15535_v40 }
0x10f5   : > { %15537 = vmatprep.subr.bf16.mxu1 %v15879_v3 }
0x10f8   : > { %15539 = vmatpush3.bf16.msra.mxu1 %v15538_v41 }
0x10f9   : > { %15540 = vmatprep.subr.bf16.mxu1 %v15879_v3 }
0x10fc   : > { %15542 = vmatpush3.bf16.msra.mxu1 %v15541_v43 }
0x10ff   : > { %15210 = vmatmul.mubr.f32.vlgmr.msra.gmra.mrb[40].mxu1 %v13050_v47 }
0x119e   : > { %v13336_v1 = vpop.f32.mrb[34].mxu0 }
0x119f   : > { %v15192_v28 = vpop.f32.mrb[35].mxu0 }
0x11a2   : > { %v13056_v49 = vpop.f32.mrb[34].mxu1 }
0x11a3   : > { %v15135_v62 = vpop.f32.mrb[35].mxu1  ;;  %v13057_v52 = vadd.f32 %v13714_v51, %v13056_v49 }
0x11ae   : > { %v13510_v50 = vpop.f32.mrb[36].mxu0 }
0x11af   : > { %v15230_v9 = vpop.f32.mrb[37].mxu0 }
0x11b2   : > { %v13167_v53 = vpop.f32.mrb[36].mxu1 }
0x11b3   : > { %v13168_v54 = vadd.f32 %v13167_v53, %v13057_v52  ;;  %v15154_v55 = vpop.f32.mrb[37].mxu1 }
0x11c2   : > { %v13255_v56 = vpop.f32.mrb[38].mxu1 }
0x11c3   : > { %v13256_v57 = vadd.f32 %v13255_v56, %v13168_v54  ;;  %v15173_v58 = vpop.f32.mrb[39].mxu1 }
0x11c5   : > { %v13337_v3 = vadd.f32 %v13336_v1, %v13256_v57 }
0x11d2   : > { %v13431_v59 = vpop.f32.mrb[40].mxu1 }
0x11d3   : > { %v13432_v2 = vadd.f32 %v13431_v59, %v13337_v3  ;;  %v15211_v11 = vpop.f32.mrb[41].mxu1 }
0x11d5   : > { %v13511_v39 = vadd.f32 %v13510_v50, %v13432_v2 }
0x11d7   : > { %v13514_v17 = vadd.f32 %v13511_v39, %v17360_v37  ;;  %v13715_v37 = vld [vmem:[%s17544_s25] ss:$0 sm:$0xff] }
0x11d9   : > { %v13517_v7 = vsel %vm926_vm1, %v13514_v17, 0.0 }
0x11da   : > { %13518 = vadd.xlane.f32.xlu0 %v13517_v7 }
0x1267   : > { %v13519_v18 = vpop.xlane.xlu0 %13518 }
0x1268   : > { %v13520_v14 = vmul.f32 0.03125, %v13519_v18 }
0x126a   : > { %v13521_v45 = vsub.f32 %v13514_v17, %v13520_v14 }
0x126c   : > { %v13522_v60 = vmul.f32 %v13521_v45, %v13521_v45 }
0x126e   : > { %v13523_v61 = vsel %vm926_vm1, %v13522_v60, 0.0 }
0x126f   : > { %13524 = vadd.xlane.f32.xlu0 %v13523_v61 }
0x12fc   : > { %v13525_v6 = vpop.xlane.xlu0 %13524 }
0x12fd   : > { %v13526_v12 = vmul.f32 0.03125, %v13525_v6 }
0x12ff   : > { %v13527_v63 = vadd.f32 1e-05, %v13526_v12 }
0x1301   : > { %15852 = vrsqrt.f32 %v13527_v63 }
0x130b   : > { %v15853_v0 = vpop.eup %15852 }
0x130c   : > { %v13529_v27 = vmul.f32 %v15853_v0, %v13521_v45 }
0x130e   : > { %v13536_v24 = vmul.f32 %v13715_v37, %v13529_v27 }
0x1310   : > { %v13543_v23 = vadd.f32 %v13716_v22, %v13536_v24 }
0x1312   : > { %13544 = vst.msk [vmem:[%s909_s29] sm:$0xff] %vm926_vm1, %v13543_v23 }
0x1313 PF: > { %s37_s8 = sadd.s32 1, %s15877_s8   ;;  %s17603_s7 = sld [smem:[#allocation2_spill]] }
0x1314   : > { %p34_p5 = scmp.ge.s32.totalorder %s37_s8, 4   ;;  %s17604_s4 = sld [smem:[#allocation3_spill]] }
0x1316   :  { %36 = sbr.rel (!%p34_p5) target bundleno = 13 (0xd), region = 170 }

</bundles_post_ra>
